<compile_context>
chip_gen: v7x
topology: tpu7x:2x2x1
jax: 0.10.0
libtpu: 0.0.40
codegen_flags: <defaults>
</compile_context>

<pallas_src>
import jax
import jax.numpy as jnp
from jax.experimental import pallas as pl
from jax.experimental.pallas import tpu as pltpu


def _lstm_kernel(x_ref, wih_ref, whh_ref, b_ref, wlin_ref, blin_ref,
                 out_ref, xp_sc, hseq_sc):
    """Whole-sequence LSTM + output Linear in one invocation.

    x_ref    : (S, B, I)      full input sequence (VMEM)
    wih_ref  : (I, 4*Hp)      input->gates weight, gate blocks padded to Hp
    whh_ref  : (Hp, 4*Hp)     hidden->gates weight, padded
    b_ref    : (1, 4*Hp)      combined bias (b_ih + b_hh), padded
    wlin_ref : (Hp, O)        output Linear weight (transposed, padded rows)
    blin_ref : (1, O)         output Linear bias
    out_ref  : (S, B, O)      full output sequence
    xp_sc    : (S, B, 4*Hp)   scratch: precomputed x-projection for all steps
    hseq_sc  : (S, B, Hp)     scratch: hidden state for every timestep
    """
    seq, batch, in_dim = x_ref.shape
    hp = whh_ref.shape[0]
    out_dim = out_ref.shape[-1]
    prec = jax.lax.Precision.HIGHEST

    # ---- Phase 1: batched input projection + bias for all timesteps ---------
    x2d = x_ref[...].reshape(seq * batch, in_dim)
    xp = (jnp.dot(x2d, wih_ref[...], preferred_element_type=jnp.float32,
                  precision=prec)
          + b_ref[...])                                   # (S*B, 4*Hp)
    xp_sc[...] = xp.reshape(seq, batch, 4 * hp)

    # ---- Phase 2: serial recurrence (only h @ W_hh on the critical path) ----
    whh = whh_ref[...]

    def step(t, carry):
        h_prev, c_prev = carry
        gates = xp_sc[t] + jnp.dot(h_prev, whh,
                                   preferred_element_type=jnp.float32,
                                   precision=prec)        # (B, 4*Hp)
        i_g = jax.nn.sigmoid(gates[:, 0 * hp:1 * hp])
        f_g = jax.nn.sigmoid(gates[:, 1 * hp:2 * hp])
        g_g = jnp.tanh(gates[:, 2 * hp:3 * hp])
        o_g = jax.nn.sigmoid(gates[:, 3 * hp:4 * hp])
        c_new = f_g * c_prev + i_g * g_g
        h_new = o_g * jnp.tanh(c_new)
        hseq_sc[t] = h_new
        return h_new, c_new

    h0 = jnp.zeros((batch, hp), jnp.float32)
    c0 = jnp.zeros((batch, hp), jnp.float32)
    jax.lax.fori_loop(0, seq, step, (h0, c0), unroll=True)

    # ---- Phase 3: one output Linear for all timesteps + single store --------
    h2d = hseq_sc[...].reshape(seq * batch, hp)
    out = (jnp.dot(h2d, wlin_ref[...], preferred_element_type=jnp.float32,
                   precision=prec)
           + blin_ref[...])                               # (S*B, O)
    out_ref[...] = out.reshape(seq, batch, out_dim).astype(out_ref.dtype)


def custom_lstm_forward(x, raw_params, hidden_pad=128):
    """x: (seq, batch, input_size) f32 -> (seq, batch, output_size) f32.

    raw_params holds PyTorch-layout tensors:
      w_ih (4H, I), w_hh (4H, H), b_ih (4H,), b_hh (4H,), w_lin (O, H), b_lin (O,)
    """
    seq, batch, _ = x.shape
    w_ih = raw_params["w_ih"]
    w_hh = raw_params["w_hh"]
    b_all = raw_params["b_ih"] + raw_params["b_hh"]
    w_lin = raw_params["w_lin"]
    b_lin = raw_params["b_lin"]

    hidden = w_hh.shape[1]
    hp = max(hidden_pad, hidden)
    out_dim = w_lin.shape[0]

    # Pad each of the 4 gate blocks from H -> Hp with zeros (no leak: padded
    # lanes stay exactly 0 through the recurrence) and transpose for row-major
    # (row, 4*Hp) matmuls.
    def pad_gates_t(w):                       # (4H, X) -> (X, 4*Hp)
        w4 = w.reshape(4, hidden, -1)
        w4 = jnp.pad(w4, ((0, 0), (0, hp - hidden), (0, 0)))
        return w4.reshape(4 * hp, -1).T

    wih_t = pad_gates_t(w_ih).astype(jnp.float32)                    # (I, 4Hp)
    whh_t = jnp.pad(pad_gates_t(w_hh),
                    ((0, hp - hidden), (0, 0))).astype(jnp.float32)  # (Hp, 4Hp)
    b_p = jnp.pad(b_all.reshape(4, hidden),
                  ((0, 0), (0, hp - hidden))).reshape(1, 4 * hp)     # (1, 4Hp)
    wlin_t = jnp.pad(w_lin.T, ((0, hp - hidden), (0, 0)))            # (Hp, O)
    blin = b_lin.reshape(1, out_dim)                                 # (1, O)

    # No grid: single invocation, every operand mapped whole into VMEM once.
    return pl.pallas_call(
        _lstm_kernel,
        out_shape=jax.ShapeDtypeStruct((seq, batch, out_dim), jnp.float32),
        scratch_shapes=[
            pltpu.VMEM((seq, batch, 4 * hp), jnp.float32),  # x-projection
            pltpu.VMEM((seq, batch, hp), jnp.float32),      # hidden sequence
        ],
    )(x.astype(jnp.float32), wih_t, whh_t, b_p, wlin_t, blin)
    # TODO(synk): for large batch on v7x, add a leading "parallel" batch-chunk
    # grid axis to use the second TensorCore (irrelevant at batch=2).


def init_raw_params(key, input_size, hidden_size, output_size):
    """Deterministic synthetic params, PyTorch-style uniform(-k, k) init."""
    k = 1.0 / jnp.sqrt(hidden_size)
    ks = jax.random.split(key, 6)
    return {
        "w_ih": jax.random.uniform(ks[0], (4 * hidden_size, input_size),
                                   jnp.float32, -k, k),
        "w_hh": jax.random.uniform(ks[1], (4 * hidden_size, hidden_size),
                                   jnp.float32, -k, k),
        "b_ih": jax.random.uniform(ks[2], (4 * hidden_size,),
                                   jnp.float32, -k, k),
        "b_hh": jax.random.uniform(ks[3], (4 * hidden_size,),
                                   jnp.float32, -k, k),
        "w_lin": jax.random.uniform(ks[4], (output_size, hidden_size),
                                    jnp.float32, -k, k),
        "b_lin": jax.random.uniform(ks[5], (output_size,),
                                    jnp.float32, -k, k),
    }


def ref_forward(x, raw_params):
    """Pure-JAX reference matching PyTorch nn.LSTM + per-step Linear."""
    w_ih = raw_params["w_ih"]
    w_hh = raw_params["w_hh"]
    b = raw_params["b_ih"] + raw_params["b_hh"]
    w_lin = raw_params["w_lin"]
    b_lin = raw_params["b_lin"]
    hidden = w_hh.shape[1]
    batch = x.shape[1]
    prec = jax.lax.Precision.HIGHEST

    def step(carry, x_t):
        h, c = carry
        g = (jnp.dot(x_t, w_ih.T, precision=prec)
             + jnp.dot(h, w_hh.T, precision=prec) + b)
        i = jax.nn.sigmoid(g[:, 0 * hidden:1 * hidden])
        f = jax.nn.sigmoid(g[:, 1 * hidden:2 * hidden])
        gg = jnp.tanh(g[:, 2 * hidden:3 * hidden])
        o = jax.nn.sigmoid(g[:, 3 * hidden:4 * hidden])
        c = f * c + i * gg
        h = o * jnp.tanh(c)
        return (h, c), h

    init = (jnp.zeros((batch, hidden), jnp.float32),
            jnp.zeros((batch, hidden), jnp.float32))
    _, hs = jax.lax.scan(step, init, x)
    return jnp.einsum("sbh,oh->sbo", hs, w_lin, precision=prec) + b_lin


if __name__ == "__main__":
    # Shapes consistent with the module: 3 input signals, hidden=30, 1 output.
    seq, batch, input_size = 8, 2, 3
    hidden_size, output_size = 30, 1

    key = jax.random.PRNGKey(0)
    k_x, k_p = jax.random.split(key)
    x = jax.random.normal(k_x, (seq, batch, input_size), jnp.float32)
    raw = init_raw_params(k_p, input_size, hidden_size, output_size)

    out = custom_lstm_forward(x, raw)
    jax.block_until_ready(out)
    assert out.shape == (seq, batch, output_size)

    ref = ref_forward(x, raw)
    max_err = float(jnp.max(jnp.abs(out - ref)))
    assert max_err < 2e-3, f"mismatch vs reference: max abs err = {max_err}"

    print("KERNEL_OK")
</pallas_src>

<mosaic_0001>
module attributes {stable_mosaic.version = 11 : i64} {
  func.func @_lstm_kernel(%arg0: memref<8x2x3xf32, #tpu.memory_space<vmem>>, %arg1: memref<3x512xf32, #tpu.memory_space<vmem>>, %arg2: memref<128x512xf32, #tpu.memory_space<vmem>>, %arg3: memref<1x512xf32, #tpu.memory_space<vmem>>, %arg4: memref<128x1xf32, #tpu.memory_space<vmem>>, %arg5: memref<1x1xf32, #tpu.memory_space<vmem>>, %arg6: memref<8x2x1xf32, #tpu.memory_space<vmem>>, %arg7: memref<8x2x512xf32, #tpu.memory_space<vmem>>, %arg8: memref<8x2x128xf32, #tpu.memory_space<vmem>>) attributes {dimension_semantics = [], scalar_prefetch = 0 : i64, scratch_operands = 2 : i64, tpu.core_type = #tpu.core_type<tc>} {
    %c0 = arith.constant 0 : index
    %c0_0 = arith.constant 0 : index
    %c0_1 = arith.constant 0 : index
    %0 = vector.load %arg0[%c0, %c0_0, %c0_1] : memref<8x2x3xf32, #tpu.memory_space<vmem>>, vector<8x2x3xf32>
    %1 = vector.shape_cast %0 : vector<8x2x3xf32> to vector<16x3xf32>
    %c0_2 = arith.constant 0 : index
    %c0_3 = arith.constant 0 : index
    %2 = vector.load %arg1[%c0_2, %c0_3] : memref<3x512xf32, #tpu.memory_space<vmem>>, vector<3x512xf32>
    %cst = arith.constant dense<0.000000e+00> : vector<16x512xf32>
    %3 = tpu.matmul %1, %2, %cst {dimension_numbers = #tpu.dot_dimension_numbers<[1], [0], [0], [1], [0, 0, 1, 1], [], []>, precision = #tpu.contract_precision<fp32>} : vector<16x3xf32>, vector<3x512xf32>, vector<16x512xf32> -> vector<16x512xf32>
    %c0_4 = arith.constant 0 : index
    %c0_5 = arith.constant 0 : index
    %4 = vector.load %arg3[%c0_4, %c0_5] : memref<1x512xf32, #tpu.memory_space<vmem>>, vector<1x512xf32>
    %5 = vector.broadcast %4 : vector<1x512xf32> to vector<16x512xf32>
    %6 = arith.addf %3, %5 : vector<16x512xf32>
    %7 = vector.shape_cast %6 : vector<16x512xf32> to vector<8x2x512xf32>
    %c0_6 = arith.constant 0 : index
    %c0_7 = arith.constant 0 : index
    %c0_8 = arith.constant 0 : index
    %8 = vector.load %arg7[%c0_6, %c0_7, %c0_8] : memref<8x2x512xf32, #tpu.memory_space<vmem>>, vector<8x2x512xf32>
    tpu.vector_store %arg7[%c0_6, %c0_7, %c0_8], %7 {strides = array<i32>} : memref<8x2x512xf32, #tpu.memory_space<vmem>>, vector<8x2x512xf32>,
    %c0_9 = arith.constant 0 : index
    %c0_10 = arith.constant 0 : index
    %9 = vector.load %arg2[%c0_9, %c0_10] : memref<128x512xf32, #tpu.memory_space<vmem>>, vector<128x512xf32>
    %cst_11 = arith.constant 0.000000e+00 : f32
    %10 = vector.broadcast %cst_11 : f32 to vector<2x128xf32>
    %cst_12 = arith.constant 0.000000e+00 : f32
    %11 = vector.broadcast %cst_12 : f32 to vector<2x128xf32>
    %c0_i32 = arith.constant 0 : i32
    %12 = arith.index_cast %c0_i32 : i32 to index
    %c0_13 = arith.constant 0 : index
    %c0_14 = arith.constant 0 : index
    %13 = vector.load %arg7[%12, %c0_13, %c0_14] : memref<8x2x512xf32, #tpu.memory_space<vmem>>, vector<1x2x512xf32>
    %14 = vector.shape_cast %13 : vector<1x2x512xf32> to vector<2x512xf32>
    %cst_15 = arith.constant dense<0.000000e+00> : vector<2x512xf32>
    %15 = tpu.matmul %10, %9, %cst_15 {dimension_numbers = #tpu.dot_dimension_numbers<[1], [0], [0], [1], [0, 0, 1, 1], [], []>, precision = #tpu.contract_precision<fp32>} : vector<2x128xf32>, vector<128x512xf32>, vector<2x512xf32> -> vector<2x512xf32>
    %16 = arith.addf %14, %15 : vector<2x512xf32>
    %17 = vector.extract_strided_slice %16 {offsets = [0, 0], sizes = [2, 128], strides = [1, 1]} : vector<2x512xf32> to vector<2x128xf32>
    %18 = arith.negf %17 : vector<2x128xf32>
    %19 = math.exp %18 : vector<2x128xf32>
    %cst_16 = arith.constant 1.000000e+00 : f32
    %20 = vector.broadcast %cst_16 : f32 to vector<2x128xf32>
    %21 = arith.addf %20, %19 : vector<2x128xf32>
    %22 = arith.divf %20, %21 : vector<2x128xf32>
    %23 = vector.extract_strided_slice %16 {offsets = [0, 128], sizes = [2, 128], strides = [1, 1]} : vector<2x512xf32> to vector<2x128xf32>
    %24 = arith.negf %23 : vector<2x128xf32>
    %25 = math.exp %24 : vector<2x128xf32>
    %cst_17 = arith.constant 1.000000e+00 : f32
    %26 = vector.broadcast %cst_17 : f32 to vector<2x128xf32>
    %27 = arith.addf %26, %25 : vector<2x128xf32>
    %28 = arith.divf %26, %27 : vector<2x128xf32>
    %29 = vector.extract_strided_slice %16 {offsets = [0, 256], sizes = [2, 128], strides = [1, 1]} : vector<2x512xf32> to vector<2x128xf32>
    %30 = math.tanh %29 : vector<2x128xf32>
    %31 = vector.extract_strided_slice %16 {offsets = [0, 384], sizes = [2, 128], strides = [1, 1]} : vector<2x512xf32> to vector<2x128xf32>
    %32 = arith.negf %31 : vector<2x128xf32>
    %33 = math.exp %32 : vector<2x128xf32>
    %cst_18 = arith.constant 1.000000e+00 : f32
    %34 = vector.broadcast %cst_18 : f32 to vector<2x128xf32>
    %35 = arith.addf %34, %33 : vector<2x128xf32>
    %36 = arith.divf %34, %35 : vector<2x128xf32>
    %37 = arith.mulf %28, %11 : vector<2x128xf32>
    %38 = arith.mulf %22, %30 : vector<2x128xf32>
    %39 = arith.addf %37, %38 : vector<2x128xf32>
    %40 = math.tanh %39 : vector<2x128xf32>
    %41 = arith.mulf %36, %40 : vector<2x128xf32>
    %42 = arith.index_cast %c0_i32 : i32 to index
    %c0_19 = arith.constant 0 : index
    %c0_20 = arith.constant 0 : index
    %43 = vector.load %arg8[%42, %c0_19, %c0_20] : memref<8x2x128xf32, #tpu.memory_space<vmem>>, vector<1x2x128xf32>
    %44 = vector.shape_cast %43 : vector<1x2x128xf32> to vector<2x128xf32>
    %45 = vector.shape_cast %41 : vector<2x128xf32> to vector<1x2x128xf32>
    tpu.vector_store %arg8[%42, %c0_19, %c0_20], %45 {strides = array<i32>} : memref<8x2x128xf32, #tpu.memory_space<vmem>>, vector<1x2x128xf32>,
    %c1_i32 = arith.constant 1 : i32
    %46 = arith.index_cast %c1_i32 : i32 to index
    %c0_21 = arith.constant 0 : index
    %c0_22 = arith.constant 0 : index
    %47 = vector.load %arg7[%46, %c0_21, %c0_22] : memref<8x2x512xf32, #tpu.memory_space<vmem>>, vector<1x2x512xf32>
    %48 = vector.shape_cast %47 : vector<1x2x512xf32> to vector<2x512xf32>
    %cst_23 = arith.constant dense<0.000000e+00> : vector<2x512xf32>
    %49 = tpu.matmul %41, %9, %cst_23 {dimension_numbers = #tpu.dot_dimension_numbers<[1], [0], [0], [1], [0, 0, 1, 1], [], []>, precision = #tpu.contract_precision<fp32>} : vector<2x128xf32>, vector<128x512xf32>, vector<2x512xf32> -> vector<2x512xf32>
    %50 = arith.addf %48, %49 : vector<2x512xf32>
    %51 = vector.extract_strided_slice %50 {offsets = [0, 0], sizes = [2, 128], strides = [1, 1]} : vector<2x512xf32> to vector<2x128xf32>
    %52 = arith.negf %51 : vector<2x128xf32>
    %53 = math.exp %52 : vector<2x128xf32>
    %cst_24 = arith.constant 1.000000e+00 : f32
    %54 = vector.broadcast %cst_24 : f32 to vector<2x128xf32>
    %55 = arith.addf %54, %53 : vector<2x128xf32>
    %56 = arith.divf %54, %55 : vector<2x128xf32>
    %57 = vector.extract_strided_slice %50 {offsets = [0, 128], sizes = [2, 128], strides = [1, 1]} : vector<2x512xf32> to vector<2x128xf32>
    %58 = arith.negf %57 : vector<2x128xf32>
    %59 = math.exp %58 : vector<2x128xf32>
    %cst_25 = arith.constant 1.000000e+00 : f32
    %60 = vector.broadcast %cst_25 : f32 to vector<2x128xf32>
    %61 = arith.addf %60, %59 : vector<2x128xf32>
    %62 = arith.divf %60, %61 : vector<2x128xf32>
    %63 = vector.extract_strided_slice %50 {offsets = [0, 256], sizes = [2, 128], strides = [1, 1]} : vector<2x512xf32> to vector<2x128xf32>
    %64 = math.tanh %63 : vector<2x128xf32>
    %65 = vector.extract_strided_slice %50 {offsets = [0, 384], sizes = [2, 128], strides = [1, 1]} : vector<2x512xf32> to vector<2x128xf32>
    %66 = arith.negf %65 : vector<2x128xf32>
    %67 = math.exp %66 : vector<2x128xf32>
    %cst_26 = arith.constant 1.000000e+00 : f32
    %68 = vector.broadcast %cst_26 : f32 to vector<2x128xf32>
    %69 = arith.addf %68, %67 : vector<2x128xf32>
    %70 = arith.divf %68, %69 : vector<2x128xf32>
    %71 = arith.mulf %62, %39 : vector<2x128xf32>
    %72 = arith.mulf %56, %64 : vector<2x128xf32>
    %73 = arith.addf %71, %72 : vector<2x128xf32>
    %74 = math.tanh %73 : vector<2x128xf32>
    %75 = arith.mulf %70, %74 : vector<2x128xf32>
    %76 = arith.index_cast %c1_i32 : i32 to index
    %c0_27 = arith.constant 0 : index
    %c0_28 = arith.constant 0 : index
    %77 = vector.load %arg8[%76, %c0_27, %c0_28] : memref<8x2x128xf32, #tpu.memory_space<vmem>>, vector<1x2x128xf32>
    %78 = vector.shape_cast %77 : vector<1x2x128xf32> to vector<2x128xf32>
    %79 = vector.shape_cast %75 : vector<2x128xf32> to vector<1x2x128xf32>
    tpu.vector_store %arg8[%76, %c0_27, %c0_28], %79 {strides = array<i32>} : memref<8x2x128xf32, #tpu.memory_space<vmem>>, vector<1x2x128xf32>,
    %c2_i32 = arith.constant 2 : i32
    %80 = arith.index_cast %c2_i32 : i32 to index
    %c0_29 = arith.constant 0 : index
    %c0_30 = arith.constant 0 : index
    %81 = vector.load %arg7[%80, %c0_29, %c0_30] : memref<8x2x512xf32, #tpu.memory_space<vmem>>, vector<1x2x512xf32>
    %82 = vector.shape_cast %81 : vector<1x2x512xf32> to vector<2x512xf32>
    %cst_31 = arith.constant dense<0.000000e+00> : vector<2x512xf32>
    %83 = tpu.matmul %75, %9, %cst_31 {dimension_numbers = #tpu.dot_dimension_numbers<[1], [0], [0], [1], [0, 0, 1, 1], [], []>, precision = #tpu.contract_precision<fp32>} : vector<2x128xf32>, vector<128x512xf32>, vector<2x512xf32> -> vector<2x512xf32>
    %84 = arith.addf %82, %83 : vector<2x512xf32>
    %85 = vector.extract_strided_slice %84 {offsets = [0, 0], sizes = [2, 128], strides = [1, 1]} : vector<2x512xf32> to vector<2x128xf32>
    %86 = arith.negf %85 : vector<2x128xf32>
    %87 = math.exp %86 : vector<2x128xf32>
    %cst_32 = arith.constant 1.000000e+00 : f32
    %88 = vector.broadcast %cst_32 : f32 to vector<2x128xf32>
    %89 = arith.addf %88, %87 : vector<2x128xf32>
    %90 = arith.divf %88, %89 : vector<2x128xf32>
    %91 = vector.extract_strided_slice %84 {offsets = [0, 128], sizes = [2, 128], strides = [1, 1]} : vector<2x512xf32> to vector<2x128xf32>
    %92 = arith.negf %91 : vector<2x128xf32>
    %93 = math.exp %92 : vector<2x128xf32>
    %cst_33 = arith.constant 1.000000e+00 : f32
    %94 = vector.broadcast %cst_33 : f32 to vector<2x128xf32>
    %95 = arith.addf %94, %93 : vector<2x128xf32>
    %96 = arith.divf %94, %95 : vector<2x128xf32>
    %97 = vector.extract_strided_slice %84 {offsets = [0, 256], sizes = [2, 128], strides = [1, 1]} : vector<2x512xf32> to vector<2x128xf32>
    %98 = math.tanh %97 : vector<2x128xf32>
    %99 = vector.extract_strided_slice %84 {offsets = [0, 384], sizes = [2, 128], strides = [1, 1]} : vector<2x512xf32> to vector<2x128xf32>
    %100 = arith.negf %99 : vector<2x128xf32>
    %101 = math.exp %100 : vector<2x128xf32>
    %cst_34 = arith.constant 1.000000e+00 : f32
    %102 = vector.broadcast %cst_34 : f32 to vector<2x128xf32>
    %103 = arith.addf %102, %101 : vector<2x128xf32>
    %104 = arith.divf %102, %103 : vector<2x128xf32>
    %105 = arith.mulf %96, %73 : vector<2x128xf32>
    %106 = arith.mulf %90, %98 : vector<2x128xf32>
    %107 = arith.addf %105, %106 : vector<2x128xf32>
    %108 = math.tanh %107 : vector<2x128xf32>
    %109 = arith.mulf %104, %108 : vector<2x128xf32>
    %110 = arith.index_cast %c2_i32 : i32 to index
    %c0_35 = arith.constant 0 : index
    %c0_36 = arith.constant 0 : index
    %111 = vector.load %arg8[%110, %c0_35, %c0_36] : memref<8x2x128xf32, #tpu.memory_space<vmem>>, vector<1x2x128xf32>
    %112 = vector.shape_cast %111 : vector<1x2x128xf32> to vector<2x128xf32>
    %113 = vector.shape_cast %109 : vector<2x128xf32> to vector<1x2x128xf32>
    tpu.vector_store %arg8[%110, %c0_35, %c0_36], %113 {strides = array<i32>} : memref<8x2x128xf32, #tpu.memory_space<vmem>>, vector<1x2x128xf32>,
    %c3_i32 = arith.constant 3 : i32
    %114 = arith.index_cast %c3_i32 : i32 to index
    %c0_37 = arith.constant 0 : index
    %c0_38 = arith.constant 0 : index
    %115 = vector.load %arg7[%114, %c0_37, %c0_38] : memref<8x2x512xf32, #tpu.memory_space<vmem>>, vector<1x2x512xf32>
    %116 = vector.shape_cast %115 : vector<1x2x512xf32> to vector<2x512xf32>
    %cst_39 = arith.constant dense<0.000000e+00> : vector<2x512xf32>
    %117 = tpu.matmul %109, %9, %cst_39 {dimension_numbers = #tpu.dot_dimension_numbers<[1], [0], [0], [1], [0, 0, 1, 1], [], []>, precision = #tpu.contract_precision<fp32>} : vector<2x128xf32>, vector<128x512xf32>, vector<2x512xf32> -> vector<2x512xf32>
    %118 = arith.addf %116, %117 : vector<2x512xf32>
    %119 = vector.extract_strided_slice %118 {offsets = [0, 0], sizes = [2, 128], strides = [1, 1]} : vector<2x512xf32> to vector<2x128xf32>
    %120 = arith.negf %119 : vector<2x128xf32>
    %121 = math.exp %120 : vector<2x128xf32>
    %cst_40 = arith.constant 1.000000e+00 : f32
    %122 = vector.broadcast %cst_40 : f32 to vector<2x128xf32>
    %123 = arith.addf %122, %121 : vector<2x128xf32>
    %124 = arith.divf %122, %123 : vector<2x128xf32>
    %125 = vector.extract_strided_slice %118 {offsets = [0, 128], sizes = [2, 128], strides = [1, 1]} : vector<2x512xf32> to vector<2x128xf32>
    %126 = arith.negf %125 : vector<2x128xf32>
    %127 = math.exp %126 : vector<2x128xf32>
    %cst_41 = arith.constant 1.000000e+00 : f32
    %128 = vector.broadcast %cst_41 : f32 to vector<2x128xf32>
    %129 = arith.addf %128, %127 : vector<2x128xf32>
    %130 = arith.divf %128, %129 : vector<2x128xf32>
    %131 = vector.extract_strided_slice %118 {offsets = [0, 256], sizes = [2, 128], strides = [1, 1]} : vector<2x512xf32> to vector<2x128xf32>
    %132 = math.tanh %131 : vector<2x128xf32>
    %133 = vector.extract_strided_slice %118 {offsets = [0, 384], sizes = [2, 128], strides = [1, 1]} : vector<2x512xf32> to vector<2x128xf32>
    %134 = arith.negf %133 : vector<2x128xf32>
    %135 = math.exp %134 : vector<2x128xf32>
    %cst_42 = arith.constant 1.000000e+00 : f32
    %136 = vector.broadcast %cst_42 : f32 to vector<2x128xf32>
    %137 = arith.addf %136, %135 : vector<2x128xf32>
    %138 = arith.divf %136, %137 : vector<2x128xf32>
    %139 = arith.mulf %130, %107 : vector<2x128xf32>
    %140 = arith.mulf %124, %132 : vector<2x128xf32>
    %141 = arith.addf %139, %140 : vector<2x128xf32>
    %142 = math.tanh %141 : vector<2x128xf32>
    %143 = arith.mulf %138, %142 : vector<2x128xf32>
    %144 = arith.index_cast %c3_i32 : i32 to index
    %c0_43 = arith.constant 0 : index
    %c0_44 = arith.constant 0 : index
    %145 = vector.load %arg8[%144, %c0_43, %c0_44] : memref<8x2x128xf32, #tpu.memory_space<vmem>>, vector<1x2x128xf32>
    %146 = vector.shape_cast %145 : vector<1x2x128xf32> to vector<2x128xf32>
    %147 = vector.shape_cast %143 : vector<2x128xf32> to vector<1x2x128xf32>
    tpu.vector_store %arg8[%144, %c0_43, %c0_44], %147 {strides = array<i32>} : memref<8x2x128xf32, #tpu.memory_space<vmem>>, vector<1x2x128xf32>,
    %c4_i32 = arith.constant 4 : i32
    %148 = arith.index_cast %c4_i32 : i32 to index
    %c0_45 = arith.constant 0 : index
    %c0_46 = arith.constant 0 : index
    %149 = vector.load %arg7[%148, %c0_45, %c0_46] : memref<8x2x512xf32, #tpu.memory_space<vmem>>, vector<1x2x512xf32>
    %150 = vector.shape_cast %149 : vector<1x2x512xf32> to vector<2x512xf32>
    %cst_47 = arith.constant dense<0.000000e+00> : vector<2x512xf32>
    %151 = tpu.matmul %143, %9, %cst_47 {dimension_numbers = #tpu.dot_dimension_numbers<[1], [0], [0], [1], [0, 0, 1, 1], [], []>, precision = #tpu.contract_precision<fp32>} : vector<2x128xf32>, vector<128x512xf32>, vector<2x512xf32> -> vector<2x512xf32>
    %152 = arith.addf %150, %151 : vector<2x512xf32>
    %153 = vector.extract_strided_slice %152 {offsets = [0, 0], sizes = [2, 128], strides = [1, 1]} : vector<2x512xf32> to vector<2x128xf32>
    %154 = arith.negf %153 : vector<2x128xf32>
    %155 = math.exp %154 : vector<2x128xf32>
    %cst_48 = arith.constant 1.000000e+00 : f32
    %156 = vector.broadcast %cst_48 : f32 to vector<2x128xf32>
    %157 = arith.addf %156, %155 : vector<2x128xf32>
    %158 = arith.divf %156, %157 : vector<2x128xf32>
    %159 = vector.extract_strided_slice %152 {offsets = [0, 128], sizes = [2, 128], strides = [1, 1]} : vector<2x512xf32> to vector<2x128xf32>
    %160 = arith.negf %159 : vector<2x128xf32>
    %161 = math.exp %160 : vector<2x128xf32>
    %cst_49 = arith.constant 1.000000e+00 : f32
    %162 = vector.broadcast %cst_49 : f32 to vector<2x128xf32>
    %163 = arith.addf %162, %161 : vector<2x128xf32>
    %164 = arith.divf %162, %163 : vector<2x128xf32>
    %165 = vector.extract_strided_slice %152 {offsets = [0, 256], sizes = [2, 128], strides = [1, 1]} : vector<2x512xf32> to vector<2x128xf32>
    %166 = math.tanh %165 : vector<2x128xf32>
    %167 = vector.extract_strided_slice %152 {offsets = [0, 384], sizes = [2, 128], strides = [1, 1]} : vector<2x512xf32> to vector<2x128xf32>
    %168 = arith.negf %167 : vector<2x128xf32>
    %169 = math.exp %168 : vector<2x128xf32>
    %cst_50 = arith.constant 1.000000e+00 : f32
    %170 = vector.broadcast %cst_50 : f32 to vector<2x128xf32>
    %171 = arith.addf %170, %169 : vector<2x128xf32>
    %172 = arith.divf %170, %171 : vector<2x128xf32>
    %173 = arith.mulf %164, %141 : vector<2x128xf32>
    %174 = arith.mulf %158, %166 : vector<2x128xf32>
    %175 = arith.addf %173, %174 : vector<2x128xf32>
    %176 = math.tanh %175 : vector<2x128xf32>
    %177 = arith.mulf %172, %176 : vector<2x128xf32>
    %178 = arith.index_cast %c4_i32 : i32 to index
    %c0_51 = arith.constant 0 : index
    %c0_52 = arith.constant 0 : index
    %179 = vector.load %arg8[%178, %c0_51, %c0_52] : memref<8x2x128xf32, #tpu.memory_space<vmem>>, vector<1x2x128xf32>
    %180 = vector.shape_cast %179 : vector<1x2x128xf32> to vector<2x128xf32>
    %181 = vector.shape_cast %177 : vector<2x128xf32> to vector<1x2x128xf32>
    tpu.vector_store %arg8[%178, %c0_51, %c0_52], %181 {strides = array<i32>} : memref<8x2x128xf32, #tpu.memory_space<vmem>>, vector<1x2x128xf32>,
    %c5_i32 = arith.constant 5 : i32
    %182 = arith.index_cast %c5_i32 : i32 to index
    %c0_53 = arith.constant 0 : index
    %c0_54 = arith.constant 0 : index
    %183 = vector.load %arg7[%182, %c0_53, %c0_54] : memref<8x2x512xf32, #tpu.memory_space<vmem>>, vector<1x2x512xf32>
    %184 = vector.shape_cast %183 : vector<1x2x512xf32> to vector<2x512xf32>
    %cst_55 = arith.constant dense<0.000000e+00> : vector<2x512xf32>
    %185 = tpu.matmul %177, %9, %cst_55 {dimension_numbers = #tpu.dot_dimension_numbers<[1], [0], [0], [1], [0, 0, 1, 1], [], []>, precision = #tpu.contract_precision<fp32>} : vector<2x128xf32>, vector<128x512xf32>, vector<2x512xf32> -> vector<2x512xf32>
    %186 = arith.addf %184, %185 : vector<2x512xf32>
    %187 = vector.extract_strided_slice %186 {offsets = [0, 0], sizes = [2, 128], strides = [1, 1]} : vector<2x512xf32> to vector<2x128xf32>
    %188 = arith.negf %187 : vector<2x128xf32>
    %189 = math.exp %188 : vector<2x128xf32>
    %cst_56 = arith.constant 1.000000e+00 : f32
    %190 = vector.broadcast %cst_56 : f32 to vector<2x128xf32>
    %191 = arith.addf %190, %189 : vector<2x128xf32>
    %192 = arith.divf %190, %191 : vector<2x128xf32>
    %193 = vector.extract_strided_slice %186 {offsets = [0, 128], sizes = [2, 128], strides = [1, 1]} : vector<2x512xf32> to vector<2x128xf32>
    %194 = arith.negf %193 : vector<2x128xf32>
    %195 = math.exp %194 : vector<2x128xf32>
    %cst_57 = arith.constant 1.000000e+00 : f32
    %196 = vector.broadcast %cst_57 : f32 to vector<2x128xf32>
    %197 = arith.addf %196, %195 : vector<2x128xf32>
    %198 = arith.divf %196, %197 : vector<2x128xf32>
    %199 = vector.extract_strided_slice %186 {offsets = [0, 256], sizes = [2, 128], strides = [1, 1]} : vector<2x512xf32> to vector<2x128xf32>
    %200 = math.tanh %199 : vector<2x128xf32>
    %201 = vector.extract_strided_slice %186 {offsets = [0, 384], sizes = [2, 128], strides = [1, 1]} : vector<2x512xf32> to vector<2x128xf32>
    %202 = arith.negf %201 : vector<2x128xf32>
    %203 = math.exp %202 : vector<2x128xf32>
    %cst_58 = arith.constant 1.000000e+00 : f32
    %204 = vector.broadcast %cst_58 : f32 to vector<2x128xf32>
    %205 = arith.addf %204, %203 : vector<2x128xf32>
    %206 = arith.divf %204, %205 : vector<2x128xf32>
    %207 = arith.mulf %198, %175 : vector<2x128xf32>
    %208 = arith.mulf %192, %200 : vector<2x128xf32>
    %209 = arith.addf %207, %208 : vector<2x128xf32>
    %210 = math.tanh %209 : vector<2x128xf32>
    %211 = arith.mulf %206, %210 : vector<2x128xf32>
    %212 = arith.index_cast %c5_i32 : i32 to index
    %c0_59 = arith.constant 0 : index
    %c0_60 = arith.constant 0 : index
    %213 = vector.load %arg8[%212, %c0_59, %c0_60] : memref<8x2x128xf32, #tpu.memory_space<vmem>>, vector<1x2x128xf32>
    %214 = vector.shape_cast %213 : vector<1x2x128xf32> to vector<2x128xf32>
    %215 = vector.shape_cast %211 : vector<2x128xf32> to vector<1x2x128xf32>
    tpu.vector_store %arg8[%212, %c0_59, %c0_60], %215 {strides = array<i32>} : memref<8x2x128xf32, #tpu.memory_space<vmem>>, vector<1x2x128xf32>,
    %c6_i32 = arith.constant 6 : i32
    %216 = arith.index_cast %c6_i32 : i32 to index
    %c0_61 = arith.constant 0 : index
    %c0_62 = arith.constant 0 : index
    %217 = vector.load %arg7[%216, %c0_61, %c0_62] : memref<8x2x512xf32, #tpu.memory_space<vmem>>, vector<1x2x512xf32>
    %218 = vector.shape_cast %217 : vector<1x2x512xf32> to vector<2x512xf32>
    %cst_63 = arith.constant dense<0.000000e+00> : vector<2x512xf32>
    %219 = tpu.matmul %211, %9, %cst_63 {dimension_numbers = #tpu.dot_dimension_numbers<[1], [0], [0], [1], [0, 0, 1, 1], [], []>, precision = #tpu.contract_precision<fp32>} : vector<2x128xf32>, vector<128x512xf32>, vector<2x512xf32> -> vector<2x512xf32>
    %220 = arith.addf %218, %219 : vector<2x512xf32>
    %221 = vector.extract_strided_slice %220 {offsets = [0, 0], sizes = [2, 128], strides = [1, 1]} : vector<2x512xf32> to vector<2x128xf32>
    %222 = arith.negf %221 : vector<2x128xf32>
    %223 = math.exp %222 : vector<2x128xf32>
    %cst_64 = arith.constant 1.000000e+00 : f32
    %224 = vector.broadcast %cst_64 : f32 to vector<2x128xf32>
    %225 = arith.addf %224, %223 : vector<2x128xf32>
    %226 = arith.divf %224, %225 : vector<2x128xf32>
    %227 = vector.extract_strided_slice %220 {offsets = [0, 128], sizes = [2, 128], strides = [1, 1]} : vector<2x512xf32> to vector<2x128xf32>
    %228 = arith.negf %227 : vector<2x128xf32>
    %229 = math.exp %228 : vector<2x128xf32>
    %cst_65 = arith.constant 1.000000e+00 : f32
    %230 = vector.broadcast %cst_65 : f32 to vector<2x128xf32>
    %231 = arith.addf %230, %229 : vector<2x128xf32>
    %232 = arith.divf %230, %231 : vector<2x128xf32>
    %233 = vector.extract_strided_slice %220 {offsets = [0, 256], sizes = [2, 128], strides = [1, 1]} : vector<2x512xf32> to vector<2x128xf32>
    %234 = math.tanh %233 : vector<2x128xf32>
    %235 = vector.extract_strided_slice %220 {offsets = [0, 384], sizes = [2, 128], strides = [1, 1]} : vector<2x512xf32> to vector<2x128xf32>
    %236 = arith.negf %235 : vector<2x128xf32>
    %237 = math.exp %236 : vector<2x128xf32>
    %cst_66 = arith.constant 1.000000e+00 : f32
    %238 = vector.broadcast %cst_66 : f32 to vector<2x128xf32>
    %239 = arith.addf %238, %237 : vector<2x128xf32>
    %240 = arith.divf %238, %239 : vector<2x128xf32>
    %241 = arith.mulf %232, %209 : vector<2x128xf32>
    %242 = arith.mulf %226, %234 : vector<2x128xf32>
    %243 = arith.addf %241, %242 : vector<2x128xf32>
    %244 = math.tanh %243 : vector<2x128xf32>
    %245 = arith.mulf %240, %244 : vector<2x128xf32>
    %246 = arith.index_cast %c6_i32 : i32 to index
    %c0_67 = arith.constant 0 : index
    %c0_68 = arith.constant 0 : index
    %247 = vector.load %arg8[%246, %c0_67, %c0_68] : memref<8x2x128xf32, #tpu.memory_space<vmem>>, vector<1x2x128xf32>
    %248 = vector.shape_cast %247 : vector<1x2x128xf32> to vector<2x128xf32>
    %249 = vector.shape_cast %245 : vector<2x128xf32> to vector<1x2x128xf32>
    tpu.vector_store %arg8[%246, %c0_67, %c0_68], %249 {strides = array<i32>} : memref<8x2x128xf32, #tpu.memory_space<vmem>>, vector<1x2x128xf32>,
    %c7_i32 = arith.constant 7 : i32
    %250 = arith.index_cast %c7_i32 : i32 to index
    %c0_69 = arith.constant 0 : index
    %c0_70 = arith.constant 0 : index
    %251 = vector.load %arg7[%250, %c0_69, %c0_70] : memref<8x2x512xf32, #tpu.memory_space<vmem>>, vector<1x2x512xf32>
    %252 = vector.shape_cast %251 : vector<1x2x512xf32> to vector<2x512xf32>
    %cst_71 = arith.constant dense<0.000000e+00> : vector<2x512xf32>
    %253 = tpu.matmul %245, %9, %cst_71 {dimension_numbers = #tpu.dot_dimension_numbers<[1], [0], [0], [1], [0, 0, 1, 1], [], []>, precision = #tpu.contract_precision<fp32>} : vector<2x128xf32>, vector<128x512xf32>, vector<2x512xf32> -> vector<2x512xf32>
    %254 = arith.addf %252, %253 : vector<2x512xf32>
    %255 = vector.extract_strided_slice %254 {offsets = [0, 0], sizes = [2, 128], strides = [1, 1]} : vector<2x512xf32> to vector<2x128xf32>
    %256 = arith.negf %255 : vector<2x128xf32>
    %257 = math.exp %256 : vector<2x128xf32>
    %cst_72 = arith.constant 1.000000e+00 : f32
    %258 = vector.broadcast %cst_72 : f32 to vector<2x128xf32>
    %259 = arith.addf %258, %257 : vector<2x128xf32>
    %260 = arith.divf %258, %259 : vector<2x128xf32>
    %261 = vector.extract_strided_slice %254 {offsets = [0, 128], sizes = [2, 128], strides = [1, 1]} : vector<2x512xf32> to vector<2x128xf32>
    %262 = arith.negf %261 : vector<2x128xf32>
    %263 = math.exp %262 : vector<2x128xf32>
    %cst_73 = arith.constant 1.000000e+00 : f32
    %264 = vector.broadcast %cst_73 : f32 to vector<2x128xf32>
    %265 = arith.addf %264, %263 : vector<2x128xf32>
    %266 = arith.divf %264, %265 : vector<2x128xf32>
    %267 = vector.extract_strided_slice %254 {offsets = [0, 256], sizes = [2, 128], strides = [1, 1]} : vector<2x512xf32> to vector<2x128xf32>
    %268 = math.tanh %267 : vector<2x128xf32>
    %269 = vector.extract_strided_slice %254 {offsets = [0, 384], sizes = [2, 128], strides = [1, 1]} : vector<2x512xf32> to vector<2x128xf32>
    %270 = arith.negf %269 : vector<2x128xf32>
    %271 = math.exp %270 : vector<2x128xf32>
    %cst_74 = arith.constant 1.000000e+00 : f32
    %272 = vector.broadcast %cst_74 : f32 to vector<2x128xf32>
    %273 = arith.addf %272, %271 : vector<2x128xf32>
    %274 = arith.divf %272, %273 : vector<2x128xf32>
    %275 = arith.mulf %266, %243 : vector<2x128xf32>
    %276 = arith.mulf %260, %268 : vector<2x128xf32>
    %277 = arith.addf %275, %276 : vector<2x128xf32>
    %278 = math.tanh %277 : vector<2x128xf32>
    %279 = arith.mulf %274, %278 : vector<2x128xf32>
    %280 = arith.index_cast %c7_i32 : i32 to index
    %c0_75 = arith.constant 0 : index
    %c0_76 = arith.constant 0 : index
    %281 = vector.load %arg8[%280, %c0_75, %c0_76] : memref<8x2x128xf32, #tpu.memory_space<vmem>>, vector<1x2x128xf32>
    %282 = vector.shape_cast %281 : vector<1x2x128xf32> to vector<2x128xf32>
    %283 = vector.shape_cast %279 : vector<2x128xf32> to vector<1x2x128xf32>
    tpu.vector_store %arg8[%280, %c0_75, %c0_76], %283 {strides = array<i32>} : memref<8x2x128xf32, #tpu.memory_space<vmem>>, vector<1x2x128xf32>,
    %c8_i32 = arith.constant 8 : i32
    %c0_77 = arith.constant 0 : index
    %c0_78 = arith.constant 0 : index
    %c0_79 = arith.constant 0 : index
    %284 = vector.load %arg8[%c0_77, %c0_78, %c0_79] : memref<8x2x128xf32, #tpu.memory_space<vmem>>, vector<8x2x128xf32>
    %285 = vector.shape_cast %284 : vector<8x2x128xf32> to vector<16x128xf32>
    %c0_80 = arith.constant 0 : index
    %c0_81 = arith.constant 0 : index
    %286 = vector.load %arg4[%c0_80, %c0_81] : memref<128x1xf32, #tpu.memory_space<vmem>>, vector<128x1xf32>
    %cst_82 = arith.constant dense<0.000000e+00> : vector<16x1xf32>
    %287 = tpu.matmul %285, %286, %cst_82 {dimension_numbers = #tpu.dot_dimension_numbers<[1], [0], [0], [1], [0, 0, 1, 1], [], []>, precision = #tpu.contract_precision<fp32>} : vector<16x128xf32>, vector<128x1xf32>, vector<16x1xf32> -> vector<16x1xf32>
    %c0_83 = arith.constant 0 : index
    %c0_84 = arith.constant 0 : index
    %288 = vector.load %arg5[%c0_83, %c0_84] : memref<1x1xf32, #tpu.memory_space<vmem>>, vector<1x1xf32>
    %289 = vector.broadcast %288 : vector<1x1xf32> to vector<16x1xf32>
    %290 = arith.addf %287, %289 : vector<16x1xf32>
    %291 = vector.shape_cast %290 : vector<16x1xf32> to vector<8x2x1xf32>
    %c0_85 = arith.constant 0 : index
    %c0_86 = arith.constant 0 : index
    %c0_87 = arith.constant 0 : index
    %292 = vector.load %arg6[%c0_85, %c0_86, %c0_87] : memref<8x2x1xf32, #tpu.memory_space<vmem>>, vector<8x2x1xf32>
    tpu.vector_store %arg6[%c0_85, %c0_86, %c0_87], %291 {strides = array<i32>} : memref<8x2x1xf32, #tpu.memory_space<vmem>>, vector<8x2x1xf32>,
    return
  }
}

</mosaic_0001>

<bundles_post_ra>
// kernel: tpu_custom_call.1
= control target key start
LH: loop header
LB: loop body
LE: loop exit
PB: predicated region body
PF: predicated region fallthrough
CT: control target
= control target key end

     0   :  { %s23980_s0 = inlined_call_operand.vmem [shape: f32[8,2,3], index: 0, kind: input, shape index: {}]   ;;  %s23981_s1 = inlined_call_operand.vmem [shape: f32[3,512], index: 1, kind: input, shape index: {}]   ;;  %s23982_s2 = inlined_call_operand.hbm [shape: f32[128,512], index: 2, kind: input, shape index: {}]   ;;  %s23983_s3 = inlined_call_operand.vmem [shape: f32[1,512], index: 3, kind: input, shape index: {}]   ;;  %s23984_s4 = inlined_call_operand.vmem [shape: f32[128,1], index: 4, kind: input, shape index: {}]   ;;  %s23985_s5 = inlined_call_operand.<no memory space> [shape: f32[1,1], index: 5, kind: input, shape index: {}]   ;;  %s23986_s6 = inlined_call_operand.vmem [shape: f32[8,2,1], index: 6, kind: output, shape index: {}]  }
   0x1   :  { %v11_v0 = vstv %s23985_s5 }
   0x2   :  { %12 = vst [vmem:[#allocation4] sm:$0x1] %v11_v0 }
   0x3   :  { %13 = vsyncpa [#allocation6], 0  ;;  %s20238_s23 = smov [#allocation5]   ;;  %s20214_s27 = scalar_lea.hbm %s23982_s2, 8192 }
   0x4   :  { %s23_s24 = sshll.u32 %s20238_s23, 4  ;;  %p20215_p0 = scmp.ne.s32.totalorder %s23982_s2, %s20214_s27  ;;  %s24_s24 = int_to_ptr.vmem [resolvable:$true] %s23_s24 }
   0x5   :  { %p20218_p1 = scmp.lt.u32.totalorder %s20214_s27, %s23982_s2 }
   0x7   :  { %p20220_p2 = pnand %p20218_p1, %p20215_p0 }
   0x9   :  { %20223 = shalt.err (!%p20220_p2)
}
   0xa   :  { %s20224_s5 = scalar_lea.vmem %s24_s24, 8192  ;;  %p20229_p4 = scmp.lt.s32.totalorder %s24_s24, %s24_s24 }
   0xb   :  { %p20225_p3 = scmp.ne.s32.totalorder %s24_s24, %s20224_s5  ;;  %p20230_p5 = scmp.lt.s32.totalorder %s20224_s5, %s20224_s5 }
   0xd   :  { %p20231_p6 = por %p20230_p5, %p20229_p4 }
   0xf   :  { %p20232_p7 = pnand %p20231_p6, %p20225_p3 }
  0x11   :  { %20235 = shalt.err (!%p20232_p7)
}
  0x12   :  { %s20239_s8 = smov 512   ;;  %s20240_s9 = smov 32  }
  0x13   :  { %29 = dma.hbm_to_vmem [thread:$0]  %s23982_s2, 8192, %s24_s24, [#allocation6], %s20239_s8, %s20239_s8, %s20240_s9  }
  0x14   :  { %20236 = dma.done.wait [#allocation6], 8192  }
  0x15   :  { %20237 = vsyncadd [#allocation6], 4294959104  ;;  %v51_v1 = vlaneseq  ;;  %v23997_v2 = vmov 0.0   ;;  %v20242_v3 = vmov 1983009808   ;;  %vm122_vm0 = vcmask 1042432  }
  0x16   :  { %197 = vmatprep.mubr.f32.mxu0 %v23997_v2  ;;  %711 = vmatprep.mubr.f32.mxu1 %v23997_v2  ;;  %v82_v4 = vunpack.c.l.s4 %v20242_v3  ;;  %v48_v7 = vld [vmem:[%s23981_s1 + $0x8] sm:$0x77]  ;;  %v47_v8 = vld [vmem:[%s23981_s1] sm:$0x77]  ;;  %vm117_vm1 = vcmask 23552   ;;  %vm16238_vm2 = vcmask 1024  }
  0x17   :  { %v20295_v5 = vshrl.u32 %v51_v1, 7  ;;  %v39_v9 = vld [vmem:[%s23980_s0] sm:$0x3]  ;;  %v116_v11 = vcombine.high %v48_v7, %v48_v7  ;;  %v115_v12 = vcombine.high %v47_v8, %v47_v8  ;;  %v127_v13 = vsel %vm122_vm0, %v48_v7, 0  ;;  %v40_v15 = vld [vmem:[%s23980_s0 + $0x2] sm:$0x3] }
  0x18   :  { %v83_v6 = vunpack.c.0.s8 %v82_v4  ;;  %v123_v14 = vsel %vm122_vm0, %v47_v8, 0  ;;  %v41_v16 = vld [vmem:[%s23980_s0 + $0x4] sm:$0x3]  ;;  %v20317_v17 = vand.u32 4294901760, %v127_v13  ;;  %v42_v19 = vld [vmem:[%s23980_s0 + $0x6] sm:$0x3]  ;;  %v79_v20 = vcombine.low %v39_v9, %v40_v15 }
  0x19   :  { %24364 = vst [vmem:[#allocation8_spill] sm:$0xff] %v20295_v5  ;;  %v20319_v18 = vand.u32 4294901760, %v123_v14  ;;  %v43_v21 = vld [vmem:[%s23980_s0 + $0x8] sm:$0x3]  ;;  %v129_v22 = vsel %vm122_vm0, %v116_v11, 0  ;;  %v125_v23 = vsel %vm122_vm0, %v115_v12, 0  ;;  %v80_v24 = vcombine.low %v41_v16, %v42_v19 }
  0x1a   :  { %v20307_v10 = vsub.s32 %v83_v6, %v20295_v5  ;;  %v44_v25 = vld [vmem:[%s23980_s0 + $0xa] sm:$0x3]  ;;  %v45_v26 = vld [vmem:[%s23980_s0 + $0xc] sm:$0x3]  ;;  %v20335_v27 = vand.u32 4294901760, %v129_v22  ;;  %v20337_v28 = vand.u32 4294901760, %v125_v23  ;;  %v20340_v29 = vsub.f32 %v127_v13, %v20317_v17 }
  0x1b   :  { %v46_v30 = vld [vmem:[%s23980_s0 + $0xe] sm:$0x3]  ;;  %v96_v33 = vcombine.low %v43_v21, %v44_v25  ;;  %v20350_v35 = vsub.f32 %v123_v14, %v20319_v18  ;;  %v20404_v3 = vld [vmem:[#allocation5 + $0x8] sm:$0xff]  ;;  %v20418_v8 = vld [vmem:[#allocation5] sm:$0xff] }
  0x1c   :  { %24365 = vst [vmem:[#allocation9_spill] sm:$0xff] %v20307_v10  ;;  %v87_v31 = vrot.slane %v79_v20, %v20307_v10  ;;  %v94_v32 = vrot.slane %v80_v24, %v20307_v10  ;;  %v97_v34 = vcombine.low %v45_v26, %v46_v30  ;;  %646 = vmatprep.subr.mxu1 %v20335_v27  ;;  %v742_v44 = vand.u32 4294901760, %v20340_v29  ;;  %v20406_v4 = vld [vmem:[#allocation5 + $0x28] sm:$0xff]  ;;  %v20420_v9 = vld [vmem:[#allocation5 + $0x20] sm:$0xff] }
  0x1d   :  { %132 = vmatprep.subr.mxu0 %v20337_v28  ;;  %v20353_v36 = vsub.f32 %v129_v22, %v20335_v27  ;;  %v20356_v37 = vsub.f32 %v125_v23, %v20337_v28  ;;  %648 = vmatpush1.msra.mxu1 %v20317_v17  ;;  %v104_v39 = vrot.slane %v96_v33, %v20307_v10  ;;  %v228_v49 = vand.u32 4294901760, %v20350_v35  ;;  %v20428_v12 = vld [vmem:[#allocation5 + $0x48] sm:$0xff]  ;;  %v20434_v14 = vld [vmem:[#allocation5 + $0x40] sm:$0xff] }
  0x1e   :  { %134 = vmatpush1.msra.mxu0 %v20319_v18  ;;  %v95_v38 = vcombine.low %v87_v31, %v94_v32  ;;  %v111_v40 = vrot.slane %v97_v34, %v20307_v10  ;;  %v743_v55 = vsub.f32 %v20340_v29, %v742_v44  ;;  %v1320_v6 = vand.u32 4294901760, %v20404_v3  ;;  %v20432_v13 = vld [vmem:[#allocation5 + $0x68] sm:$0xff]  ;;  %v20436_v15 = vld [vmem:[#allocation5 + $0x60] sm:$0xff] }
  0x1f   :  { %v736_v41 = vand.u32 4294901760, %v20353_v36  ;;  %v222_v42 = vand.u32 4294901760, %v20356_v37  ;;  %v229_v58 = vsub.f32 %v20350_v35, %v228_v49  ;;  %v1324_v7 = vand.u32 4294901760, %v20406_v4  ;;  %v20444_v20 = vld [vmem:[#allocation5 + $0x88] sm:$0xff]  ;;  %v20454_v25 = vld [vmem:[#allocation5 + $0x80] sm:$0xff] }
  0x20   :  { %v118_v43 = vsel %vm117_vm1, %v95_v38, 0  ;;  %v112_v45 = vcombine.low %v104_v39, %v111_v40  ;;  %v744_v61 = vand.u32 4294901760, %v743_v55  ;;  %v1322_v16 = vand.u32 4294901760, %v20418_v8  ;;  %v20452_v24 = vld [vmem:[#allocation5 + $0xa8] sm:$0xff]  ;;  %v20474_v30 = vld [vmem:[#allocation5 + $0xe0] sm:$0xff] }
  0x21   :  { %v737_v46 = vsub.f32 %v20353_v36, %v736_v41  ;;  %v20367_v47 = vand.u32 4294901760, %v118_v43  ;;  %v223_v48 = vsub.f32 %v20356_v37, %v222_v42  ;;  %v230_v0 = vand.u32 4294901760, %v229_v58  ;;  %v20460_v26 = vld [vmem:[#allocation5 + $0xc8] sm:$0xff] }
  0x22   :  { %v120_v50 = vsel %vm117_vm1, %v112_v45, 0  ;;  %v20426_v11 = vpack.c.bf16 %v1324_v7, %v1320_v6  ;;  %v1326_v19 = vand.u32 4294901760, %v20420_v9  ;;  %v1328_v21 = vand.u32 4294901760, %v20428_v12  ;;  %v20476_v31 = vld [vmem:[#allocation5 + $0x108] sm:$0xff] }
  0x23   :  { %v738_v51 = vand.u32 4294901760, %v737_v46  ;;  %v199_v52 = vsub.f32 %v118_v43, %v20367_v47  ;;  %v20373_v53 = vand.u32 4294901760, %v120_v50  ;;  %v224_v54 = vand.u32 4294901760, %v223_v48  ;;  %v20480_v34 = vld [vmem:[#allocation5 + $0x128] sm:$0xff] }
  0x24   :  { %24366 = vst [vmem:[#allocation10_spill] sm:$0xff] %v20426_v11  ;;  %v1330_v22 = vand.u32 4294901760, %v20434_v14  ;;  %v1334_v23 = vand.u32 4294901760, %v20436_v15  ;;  %v24002_v32 = vand.u32 4294901760, %v20444_v20  ;;  %v24001_v33 = vand.u32 4294901760, %v20452_v24  ;;  %v20530_v55 = vld [vmem:[#allocation5 + $0x188] sm:$0xff] }
  0x25   :  { %739 = vmatprep.subr.mxu1 %v738_v51  ;;  %v200_v56 = vand.u32 4294901760, %v199_v52  ;;  %v210_v57 = vsub.f32 %v120_v50, %v20373_v53  ;;  %225 = vmatprep.subr.mxu0 %v224_v54  ;;  %v23996_v39 = vand.u32 4294901760, %v20454_v25  ;;  %v23988_v45 = vand.u32 4294901760, %v20476_v31  ;;  %v20520_v50 = vld [vmem:[#allocation5 + $0x148] sm:$0xff]  ;;  %v20528_v54 = vld [vmem:[#allocation5 + $0x160] sm:$0xff] }
  0x26   :  { %v20496_v38 = vpack.c.bf16 %v1334_v23, %v1330_v22  ;;  %v23987_v46 = vand.u32 4294901760, %v20480_v34  ;;  %v20522_v51 = vld [vmem:[#allocation5 + $0x168] sm:$0xff] }
  0x27   :  { %v201_v59 = vsub.f32 %v199_v52, %v200_v56  ;;  %v211_v60 = vand.u32 4294901760, %v210_v57 }
  0x28   :  { %24369 = vst [vmem:[#allocation13_spill] sm:$0xff] %v20496_v38 }
  0x29   :  { %v202_v62 = vand.u32 4294901760, %v201_v59  ;;  %v212_v63 = vsub.f32 %v210_v57, %v211_v60  ;;  %v20552_v59 = vld [vmem:[#allocation5 + $0x1a8] sm:$0xff] }
  0x2b   :  { %203 = vmatmul.mubr.f32.vlgmr.msra.gmra.mrb[0].mxu0 %v202_v62  ;;  %717 = vmatmul.mubr.f32.vlgmr.msra.gmra.mrb[0].mxu1 %v202_v62  ;;  %v213_v1 = vand.u32 4294901760, %v212_v63  ;;  %v23999_v62 = vand.u32 4294901760, %v20522_v51  ;;  %v20570_v63 = vld [vmem:[#allocation5 + $0x180] sm:$0xff] }
  0x2c   :  { %745 = vmatpush1.msra.mxu1 %v744_v61  ;;  %208 = vmatprep.mubr.f32.mxu0 %v23997_v2  ;;  %v24000_v61 = vand.u32 4294901760, %v20520_v50 }
  0x2d   :  { %722 = vmatprep.mubr.f32.mxu1 %v23997_v2  ;;  %231 = vmatpush1.msra.mxu0 %v230_v0 }
  0x2e   :  { %825 = vmatprep.subr.mxu1 %v20353_v36  ;;  %311 = vmatprep.subr.mxu0 %v20356_v37  ;;  %v20484_v36 = vld [vmem:[#allocation5 + $0x120] sm:$0xff] }
  0x2f   :  { %214 = vmatmul.mubr.f32.gmra.mrb[2].mxu0 %v213_v1  ;;  %728 = vmatmul.mubr.f32.gmra.mrb[2].mxu1 %v213_v1  ;;  %v24003_v1 = vand.u32 4294901760, %v20528_v54 }
  0x30   :  { %294 = vmatprep.mubr.f32.mxu0 %v23997_v2  ;;  %808 = vmatprep.mubr.f32.mxu1 %v23997_v2 }
  0x33   :  { %296 = vmatmul.mubr.f32.vlgmr.msra.gmra.mrb[0].mxu0 %v20367_v47  ;;  %810 = vmatmul.mubr.f32.vlgmr.msra.gmra.mrb[0].mxu1 %v20367_v47 }
  0x34   :  { %828 = vmatpush1.msra.mxu1 %v20340_v29  ;;  %301 = vmatprep.mubr.f32.mxu0 %v23997_v2  ;;  %v20472_v29 = vld [vmem:[#allocation5 + $0xc0] sm:$0xff] }
  0x35   :  { %815 = vmatprep.mubr.f32.mxu1 %v23997_v2  ;;  %314 = vmatpush1.msra.mxu0 %v20350_v35  ;;  %v20482_v35 = vld [vmem:[#allocation5 + $0x100] sm:$0xff]  ;;  %v23992_v43 = vand.u32 4294901760, %v20472_v29 }
  0x36   :  { %909 = vmatprep.subr.mxu1 %v20335_v27  ;;  %395 = vmatprep.subr.mxu0 %v20337_v28  ;;  %v23990_v48 = vand.u32 4294901760, %v20482_v35 }
  0x37   :  { %303 = vmatmul.mubr.f32.gmra.mrb[2].mxu0 %v20373_v53  ;;  %817 = vmatmul.mubr.f32.gmra.mrb[2].mxu1 %v20373_v53 }
  0x38   :  { %377 = vmatprep.mubr.f32.mxu0 %v23997_v2  ;;  %891 = vmatprep.mubr.f32.mxu1 %v23997_v2 }
  0x3b   :  { %380 = vmatmul.mubr.f32.vlgmr.msra.gmra.mrb[0].mxu0 %v199_v52  ;;  %894 = vmatmul.mubr.f32.vlgmr.msra.gmra.mrb[0].mxu1 %v199_v52  ;;  %v20526_v52 = vld [vmem:[#allocation5 + $0x140] sm:$0xff] }
  0x3c   :  { %911 = vmatpush1.msra.mxu1 %v20317_v17  ;;  %385 = vmatprep.mubr.f32.mxu0 %v23997_v2  ;;  %v24004_v0 = vand.u32 4294901760, %v20526_v52 }
  0x3d   :  { %899 = vmatprep.mubr.f32.mxu1 %v23997_v2  ;;  %397 = vmatpush1.msra.mxu0 %v20319_v18 }
  0x3e   :  { %996 = vmatprep.subr.mxu1 %v736_v41  ;;  %482 = vmatprep.subr.mxu0 %v222_v42  ;;  %v23994_v41 = vand.u32 4294901760, %v20460_v26 }
  0x3f   :  { %388 = vmatmul.mubr.f32.gmra.mrb[2].mxu0 %v210_v57  ;;  %902 = vmatmul.mubr.f32.gmra.mrb[2].mxu1 %v210_v57 }
  0x40   :  { %460 = vmatprep.mubr.f32.mxu0 %v23997_v2  ;;  %974 = vmatprep.mubr.f32.mxu1 %v23997_v2 }
  0x43   :  { %464 = vmatmul.mubr.f32.vlgmr.msra.gmra.mrb[0].mxu0 %v200_v56  ;;  %978 = vmatmul.mubr.f32.vlgmr.msra.gmra.mrb[0].mxu1 %v200_v56 }
  0x44   :  { %1000 = vmatpush1.msra.mxu1 %v742_v44  ;;  %469 = vmatprep.mubr.f32.mxu0 %v23997_v2  ;;  %v23991_v44 = vand.u32 4294901760, %v20474_v30 }
  0x45   :  { %983 = vmatprep.mubr.f32.mxu1 %v23997_v2  ;;  %486 = vmatpush1.msra.mxu0 %v228_v49  ;;  %v20518_v49 = vpack.c.bf16 %v24001_v33, %v24002_v32 }
  0x46   :  { %1079 = vmatprep.subr.mxu1 %v20335_v27  ;;  %565 = vmatprep.subr.mxu0 %v20337_v28  ;;  %v20462_v27 = vld [vmem:[#allocation5 + $0xe8] sm:$0xff]  ;;  %v20470_v28 = vpack.c.bf16 %v1326_v19, %v1322_v16  ;;  %v20550_v58 = vpack.c.bf16 %v23991_v44, %v23992_v43  ;;  %v20586_v44 = vsub.f32 %v20404_v3, %v1320_v6  ;;  %v24005_v43 = vand.u32 4294901760, %v20552_v59 }
  0x47   :  { %473 = vmatmul.mubr.f32.gmra.mrb[2].mxu0 %v211_v60  ;;  %987 = vmatmul.mubr.f32.gmra.mrb[2].mxu1 %v211_v60  ;;  %v23993_v42 = vand.u32 4294901760, %v20462_v27  ;;  %24370 = vst [vmem:[#allocation14_spill] sm:$0xff] %v20518_v49  ;;  %v20603_v3 = vsub.f32 %v20418_v8, %v1322_v16  ;;  %v20608_v6 = vsub.f32 %v20420_v9, %v1326_v19  ;;  %v24010_v9 = vand.u32 4294901760, %v20570_v63 }
  0x48   :  { %549 = vmatprep.mubr.f32.mxu0 %v23997_v2  ;;  %1063 = vmatprep.mubr.f32.mxu1 %v23997_v2  ;;  %24367 = vst [vmem:[#allocation11_spill] sm:$0xff] %v20470_v28  ;;  %24373 = vst [vmem:[#allocation17_spill] sm:$0xff] %v20550_v58  ;;  %v20628_v8 = vsub.f32 %v20436_v15, %v1334_v23 }
  0x49   :  { %v20544_v57 = vpack.c.bf16 %v23993_v42, %v23994_v41  ;;  %v20589_v42 = vld [vmem:[#allocation5 + $0x1c0] sm:$0xff]  ;;  %v1431_v23 = vand.u32 4294901760, %v20603_v3 }
  0x4a   :  { %v20591_v41 = vld [vmem:[#allocation5 + $0x1e0] sm:$0xff]  ;;  %24377 = vst [vmem:[#allocation21_spill] sm:$0xff] %v20628_v8  ;;  %v24019_v15 = vand.u32 4294901760, %v20589_v42  ;;  %v1467_v32 = vand.u32 4294901760, %v20628_v8 }
  0x4b   :  { %551 = vmatmul.mubr.f32.vlgmr.msra.gmra.mrb[0].mxu0 %v20367_v47  ;;  %1065 = vmatmul.mubr.f32.vlgmr.msra.gmra.mrb[0].mxu1 %v20367_v47  ;;  %24372 = vst [vmem:[#allocation16_spill] sm:$0xff] %v20544_v57  ;;  %v1432_v5 = vsub.f32 %v20603_v3, %v1431_v23 }
  0x4c   :  { %1081 = vmatpush1.msra.mxu1 %v20317_v17  ;;  %556 = vmatprep.mubr.f32.mxu0 %v23997_v2  ;;  %v1332_v17 = vand.u32 4294901760, %v20432_v13 }
  0x4d   :  { %1070 = vmatprep.mubr.f32.mxu1 %v23997_v2  ;;  %567 = vmatpush1.msra.mxu0 %v20319_v18  ;;  %v20458_v18 = vld [vmem:[#allocation5 + $0xa0] sm:$0xff] }
  0x4e   :  { %16596 = vmatprep.subr.bf16.mxu1 %v20426_v11  ;;  %16692 = vmatprep.subr.bf16.mxu0 %v20426_v11  ;;  %v20490_v37 = vpack.c.bf16 %v1332_v17, %v1328_v21  ;;  %v23995_v40 = vand.u32 4294901760, %v20458_v18 }
  0x4f   :  { %558 = vmatmul.mubr.f32.gmra.mrb[2].mxu0 %v20373_v53  ;;  %1072 = vmatmul.mubr.f32.gmra.mrb[2].mxu1 %v20373_v53 }
  0x50   :  { %630 = vmatprep.mubr.f32.mxu0 %v23997_v2  ;;  %1144 = vmatprep.mubr.f32.mxu1 %v23997_v2  ;;  %24368 = vst [vmem:[#allocation12_spill] sm:$0xff] %v20490_v37  ;;  %v20538_v56 = vpack.c.bf16 %v23995_v40, %v23996_v39  ;;  %v20597_v40 = vsub.f32 %v20406_v4, %v1324_v7 }
  0x51   :  { %v20613_v39 = vsub.f32 %v20428_v12, %v1328_v21  ;;  %v20618_v4 = vsub.f32 %v20432_v13, %v1332_v17  ;;  %v20623_v7 = vsub.f32 %v20434_v14, %v1330_v22  ;;  %v20642_v14 = vpack.c.bf16 %v23999_v62, %v24000_v61 }
  0x52   :  { %24371 = vst [vmem:[#allocation15_spill] sm:$0xff] %v20538_v56  ;;  %v1425_v21 = vand.u32 4294901760, %v20586_v44  ;;  %v20651_v17 = vpack.c.bf16 %v24003_v1, %v24004_v0  ;;  %v1437_v22 = vand.u32 4294901760, %v20597_v40 }
  0x53   :  { %632 = vmatmul.mubr.f32.vlgmr.msra.gmra.mrb[0].mxu0 %v20367_v47  ;;  %1146 = vmatmul.mubr.f32.vlgmr.msra.gmra.mrb[0].mxu1 %v20367_v47  ;;  %v23989_v47 = vand.u32 4294901760, %v20484_v36  ;;  %24376 = vst [vmem:[#allocation20_spill] sm:$0xff] %v20623_v7  ;;  %24378 = vst [vmem:[#allocation22_spill] sm:$0xff] %v20642_v14  ;;  %v1449_v62 = vand.u32 4294901760, %v20613_v39  ;;  %v1461_v61 = vand.u32 4294901760, %v20618_v4  ;;  %v1455_v33 = vand.u32 4294901760, %v20623_v7 }
  0x54   :  { %16598 = vmatpush1.bf16.msra.mxu1 %v20470_v28  ;;  %16694 = vmatpush1.bf16.msra.mxu0 %v20470_v28  ;;  %24379 = vst [vmem:[#allocation23_spill] sm:$0xff] %v20651_v17  ;;  %v1426_v10 = vsub.f32 %v20586_v44, %v1425_v21 }
  0x55   :  { %637 = vmatprep.mubr.f32.mxu0 %v23997_v2  ;;  %1151 = vmatprep.mubr.f32.mxu1 %v23997_v2  ;;  %v20566_v60 = vpack.c.bf16 %v23989_v47, %v23990_v48  ;;  %v20579_v47 = vld [vmem:[#allocation5 + $0x1c8] sm:$0xff] }
  0x56   :  { %16600 = vmatprep.subr.bf16.mxu1 %v20490_v37  ;;  %16696 = vmatprep.subr.bf16.mxu0 %v20490_v37  ;;  %v20581_v48 = vld [vmem:[#allocation5 + $0x1e8] sm:$0xff]  ;;  %v24012_v13 = vand.u32 4294901760, %v20579_v47 }
  0x57   :  { %639 = vmatmul.mubr.f32.gmra.mrb[2].mxu0 %v20373_v53  ;;  %1153 = vmatmul.mubr.f32.gmra.mrb[2].mxu1 %v20373_v53  ;;  %v20560_v53 = vpack.c.bf16 %v23987_v46, %v23988_v45  ;;  %24375 = vst [vmem:[#allocation19_spill] sm:$0xff] %v20566_v60  ;;  %v24006_v46 = vand.u32 4294901760, %v20530_v55  ;;  %v20577_v45 = vld [vmem:[#allocation5 + $0x1a0] sm:$0xff]  ;;  %v24011_v16 = vand.u32 4294901760, %v20581_v48 }
  0x58   :  { %16602 = vmatpush1.bf16.msra.mxu1 %v20496_v38  ;;  %16698 = vmatpush1.bf16.msra.mxu0 %v20496_v38  ;;  %v24009_v12 = vand.u32 4294901760, %v20577_v45 }
  0x59   :  { %24374 = vst [vmem:[#allocation18_spill] sm:$0xff] %v20560_v53  ;;  %16604 = vmatprep.subr.bf16.mxu1 %v20518_v49  ;;  %16700 = vmatprep.subr.bf16.mxu0 %v20518_v49  ;;  %v20666_v1 = vpack.c.bf16 %v24005_v43, %v24006_v46  ;;  %v20678_v19 = vpack.c.bf16 %v24011_v16, %v24012_v13  ;;  %v24383_v43 = vand.u32 4294901760, %v20591_v41 }
  0x5a   :  { %1416 = vmatprep.mubr.f32.mxu1 %v23997_v2  ;;  %1885 = vmatprep.mubr.f32.mxu0 %v23997_v2  ;;  %v1443_v2 = vand.u32 4294901760, %v20608_v6  ;;  %v20672_v0 = vpack.c.bf16 %v24009_v12, %v24010_v9  ;;  %v24385_v12 = vand.u32 4294901760, %v20444_v20  ;;  %v1438_v16 = vsub.f32 %v20597_v40, %v1437_v22 }
  0x5b   :  { %24380 = vst [vmem:[#allocation24_spill] sm:$0xff] %v20666_v1  ;;  %24382 = vst [vmem:[#allocation26_spill] sm:$0xff] %v20678_v19  ;;  %v20686_v46 = vpack.c.bf16 %v24383_v43, %v24019_v15  ;;  %v20695_v13 = vpack.c.bf16 %v1437_v22, %v1425_v21  ;;  %v1462_v43 = vsub.f32 %v20618_v4, %v1461_v61  ;;  %v24389_v21 = vand.u32 4294901760, %v20454_v25 }
  0x5c   :  { %16606 = vmatpush1.bf16.msra.mxu1 %v20538_v56  ;;  %16702 = vmatpush1.bf16.msra.mxu0 %v20538_v56  ;;  %24381 = vst [vmem:[#allocation25_spill] sm:$0xff] %v20672_v0  ;;  %v20692_v9 = vsub.f32 %v20444_v20, %v24385_v12  ;;  %v1456_v15 = vsub.f32 %v20623_v7, %v1455_v33  ;;  %v24388_v20 = vand.u32 4294901760, %v20452_v24  ;;  %v24390_v56 = vand.u32 4294901760, %v20458_v18 }
  0x5d   :  { %16608 = vmatprep.subr.bf16.mxu1 %v20544_v57  ;;  %16704 = vmatprep.subr.bf16.mxu0 %v20544_v57  ;;  %24384 = vst [vmem:[#allocation27_spill] sm:$0xff] %v20686_v46  ;;  %24387 = vst [vmem:[#allocation29_spill] sm:$0xff] %v20695_v13  ;;  %v1468_v57 = vsub.f32 %v20628_v8, %v1467_v32  ;;  %v20713_v22 = vsub.f32 %v20454_v25, %v24389_v21  ;;  %v24392_v25 = vand.u32 4294901760, %v20462_v27 }
  0x5e   :  { %24386 = vst [vmem:[#allocation28_spill] sm:$0xff] %v20692_v9  ;;  %v20708_v12 = vsub.f32 %v20452_v24, %v24388_v20  ;;  %v20718_v49 = vsub.f32 %v20458_v18, %v24390_v56  ;;  %v1473_v38 = vand.u32 4294901760, %v20692_v9  ;;  %v24391_v24 = vand.u32 4294901760, %v20460_v26 }
  0x5f   :  { %v20731_v21 = vsub.f32 %v20462_v27, %v24392_v25  ;;  %v1439_v37 = vand.u32 4294901760, %v1438_v16  ;;  %v1433_v18 = vand.u32 4294901760, %v1432_v5  ;;  %v20733_v8 = vpack.c.bf16 %v1443_v2, %v1431_v23 }
  0x60   :  { %16610 = vmatpush1.bf16.msra.mxu1 %v20550_v58  ;;  %16706 = vmatpush1.bf16.msra.mxu0 %v20550_v58  ;;  %v1450_v58 = vsub.f32 %v20613_v39, %v1449_v62  ;;  %v20726_v20 = vsub.f32 %v20460_v26, %v24391_v24  ;;  %v1469_v28 = vand.u32 4294901760, %v1468_v57  ;;  %v1485_v26 = vand.u32 4294901760, %v20708_v12 }
  0x61   :  { %16612 = vmatprep.subr.bf16.mxu1 %v20560_v53  ;;  %16708 = vmatprep.subr.bf16.mxu0 %v20560_v53  ;;  %v1444_v53 = vsub.f32 %v20608_v6, %v1443_v2  ;;  %24393 = vst [vmem:[#allocation30_spill] sm:$0xff] %v20731_v21  ;;  %24394 = vst [vmem:[#allocation31_spill] sm:$0xff] %v20733_v8  ;;  %v1479_v24 = vand.u32 4294901760, %v20713_v22  ;;  %v1491_v27 = vand.u32 4294901760, %v20718_v49  ;;  %v24395_v16 = vand.u32 4294901760, %v20472_v29 }
  0x62   :  { %v1451_v7 = vand.u32 4294901760, %v1450_v58  ;;  %v1474_v2 = vsub.f32 %v20692_v9, %v1473_v38  ;;  %v1497_v57 = vand.u32 4294901760, %v20726_v20  ;;  %v1509_v58 = vand.u32 4294901760, %v20731_v21 }
  0x63   :  { %v1445_v56 = vand.u32 4294901760, %v1444_v53  ;;  %v20743_v5 = vsub.f32 %v20472_v29, %v24395_v16  ;;  %v24396_v53 = vand.u32 4294901760, %v20474_v30  ;;  %v24399_v29 = vand.u32 4294901760, %v20476_v31 }
  0x64   :  { %16614 = vmatpush1.bf16.msra.mxu1 %v20566_v60  ;;  %16710 = vmatpush1.bf16.msra.mxu0 %v20566_v60  ;;  %v1427_v60 = vand.u32 4294901760, %v1426_v10  ;;  %v1457_v10 = vand.u32 4294901760, %v1456_v15  ;;  %v24400_v16 = vand.u32 4294901760, %v20480_v34 }
  0x65   :  { %16616 = vmatprep.subr.bf16.mxu1 %v20642_v14  ;;  %16712 = vmatprep.subr.bf16.mxu0 %v20642_v14  ;;  %v1463_v14 = vand.u32 4294901760, %v1462_v43  ;;  %v20753_v15 = vsub.f32 %v20474_v30, %v24396_v53  ;;  %v20757_v43 = vpack.c.bf16 %v1461_v61, %v1449_v62  ;;  %v20762_v25 = vsub.f32 %v20476_v31, %v24399_v29 }
  0x66   :  { %v20755_v23 = vpack.c.bf16 %v1439_v37, %v1427_v60  ;;  %v20773_v30 = vpack.c.bf16 %v1469_v28, %v1457_v10  ;;  %v20775_v37 = vpack.c.bf16 %v1467_v32, %v1455_v33  ;;  %v1486_v31 = vsub.f32 %v20708_v12, %v1485_v26 }
  0x67   :  { %24398 = vst [vmem:[#allocation33_spill] sm:$0xff] %v20757_v43  ;;  %v20771_v9 = vpack.c.bf16 %v1463_v14, %v1451_v7  ;;  %v1480_v60 = vsub.f32 %v20713_v22, %v1479_v24  ;;  %v1492_v61 = vsub.f32 %v20718_v49, %v1491_v27  ;;  %v1475_v28 = vand.u32 4294901760, %v1474_v2 }
  0x68   :  { %16618 = vmatpush1.bf16.msra.mxu1 %v20651_v17  ;;  %16714 = vmatpush1.bf16.msra.mxu0 %v20651_v17  ;;  %24397 = vst [vmem:[#allocation32_spill] sm:$0xff] %v20755_v23  ;;  %v20769_v17 = vpack.c.bf16 %v1445_v56, %v1433_v18  ;;  %24404 = vst [vmem:[#allocation37_spill] sm:$0xff] %v20773_v30  ;;  %v1498_v32 = vsub.f32 %v20726_v20, %v1497_v57  ;;  %v1515_v62 = vand.u32 4294901760, %v20753_v15 }
  0x69   :  { %16620 = vmatprep.subr.bf16.mxu1 %v20666_v1  ;;  %16716 = vmatprep.subr.bf16.mxu0 %v20666_v1  ;;  %v20767_v1 = vsub.f32 %v20480_v34, %v24400_v16  ;;  %24403 = vst [vmem:[#allocation36_spill] sm:$0xff] %v20771_v9  ;;  %24405 = vst [vmem:[#allocation38_spill] sm:$0xff] %v20775_v37  ;;  %v1503_v34 = vand.u32 4294901760, %v20743_v5  ;;  %v1510_v33 = vsub.f32 %v20731_v21, %v1509_v58 }
  0x6a   :  { %24402 = vst [vmem:[#allocation35_spill] sm:$0xff] %v20769_v17  ;;  %v1521_v7 = vand.u32 4294901760, %v20762_v25  ;;  %v24406_v18 = vand.u32 4294901760, %v20482_v35  ;;  %v24407_v10 = vand.u32 4294901760, %v20484_v36  ;;  %v20800_v2 = vpack.c.bf16 %v1485_v26, %v1473_v38 }
  0x6b   :  { %24401 = vst [vmem:[#allocation34_spill] sm:$0xff] %v20767_v1  ;;  %v1533_v14 = vand.u32 4294901760, %v20767_v1  ;;  %v20802_v29 = vpack.c.bf16 %v1491_v27, %v1479_v24  ;;  %v24410_v16 = vand.u32 4294901760, %v20520_v50  ;;  %v1493_v38 = vand.u32 4294901760, %v1492_v61 }
  0x6c   :  { %16622 = vmatpush1.bf16.msra.mxu1 %v20672_v0  ;;  %16718 = vmatpush1.bf16.msra.mxu0 %v20672_v0  ;;  %v20793_v56 = vsub.f32 %v20482_v35, %v24406_v18  ;;  %v20798_v53 = vsub.f32 %v20484_v36, %v24407_v10  ;;  %24408 = vst [vmem:[#allocation39_spill] sm:$0xff] %v20800_v2  ;;  %v24411_v0 = vand.u32 4294901760, %v20522_v51  ;;  %v1487_v35 = vand.u32 4294901760, %v1486_v31 }
  0x6d   :  { %16624 = vmatprep.subr.bf16.mxu1 %v20678_v19  ;;  %16720 = vmatprep.subr.bf16.mxu0 %v20678_v19  ;;  %24409 = vst [vmem:[#allocation40_spill] sm:$0xff] %v20802_v29  ;;  %v20807_v19 = vsub.f32 %v20520_v50, %v24410_v16  ;;  %v1481_v36 = vand.u32 4294901760, %v1480_v60  ;;  %v1504_v26 = vsub.f32 %v20743_v5, %v1503_v34  ;;  %v1499_v50 = vand.u32 4294901760, %v1498_v32 }
  0x6e   :  { %v20812_v21 = vsub.f32 %v20522_v51, %v24411_v0  ;;  %v1511_v24 = vand.u32 4294901760, %v1510_v33  ;;  %v20819_v27 = vpack.c.bf16 %v1509_v58, %v1497_v57  ;;  %v1516_v51 = vsub.f32 %v20753_v15, %v1515_v62 }
  0x6f   :  { %v1522_v0 = vsub.f32 %v20762_v25, %v1521_v7  ;;  %v1534_v18 = vsub.f32 %v20767_v1, %v1533_v14  ;;  %v1527_v31 = vand.u32 4294901760, %v20793_v56  ;;  %v1539_v60 = vand.u32 4294901760, %v20798_v53 }
  0x70   :  { %16626 = vmatpush1.bf16.msra.mxu1 %v20686_v46  ;;  %16722 = vmatpush1.bf16.msra.mxu0 %v20686_v46  ;;  %24412 = vst [vmem:[#allocation41_spill] sm:$0xff] %v20819_v27  ;;  %v24413_v61 = vmov 0.0   ;;  %v1545_v10 = vand.u32 4294901760, %v20807_v19  ;;  %v1557_v32 = vand.u32 4294901760, %v20812_v21  ;;  %v24414_v57 = vand.u32 4294901760, %v20526_v52 }
  0x71   :  { %16628 = vmatprep.subr.bf16.mxu1 %v20755_v23  ;;  %16724 = vmatprep.subr.bf16.mxu0 %v20695_v13  ;;  %v24415_v33 = vand.u32 4294901760, %v20528_v54  ;;  %v20842_v13 = vpack.c.bf16 %v1487_v35, %v1475_v28  ;;  %v20844_v23 = vpack.c.bf16 %v1493_v38, %v1481_v36  ;;  %v1505_v46 = vand.u32 4294901760, %v1504_v26 }
  0x72   :  { %v20833_v58 = vsub.f32 %v20526_v52, %v24414_v57  ;;  %v20846_v1 = vpack.c.bf16 %v1515_v62, %v1503_v34  ;;  %v20850_v52 = vpack.c.bf16 %v1511_v24, %v1499_v50  ;;  %v1517_v57 = vand.u32 4294901760, %v1516_v51 }
  0x73   :  { %1417 = vmatmul.mubr.f32.vlgmr.msra.gmra.mrb[4].mxu1 %v24413_v61  ;;  %1886 = vmatmul.mubr.f32.vlgmr.msra.gmra.mrb[4].mxu0 %v24413_v61  ;;  %v20838_v16 = vsub.f32 %v20528_v54, %v24415_v33  ;;  %24416 = vst [vmem:[#allocation42_spill] sm:$0xff] %v20842_v13  ;;  %24417 = vst [vmem:[#allocation43_spill] sm:$0xff] %v20844_v23  ;;  %v24420_v54 = vand.u32 4294901760, %v20530_v55  ;;  %v24421_v28 = vand.u32 4294901760, %v20552_v59  ;;  %v1523_v36 = vand.u32 4294901760, %v1522_v0 }
  0x74   :  { %16630 = vmatpush1.bf16.msra.mxu1 %v20769_v17  ;;  %16726 = vmatpush1.bf16.msra.mxu0 %v20733_v8  ;;  %24418 = vst [vmem:[#allocation44_spill] sm:$0xff] %v20846_v1  ;;  %24419 = vst [vmem:[#allocation45_spill] sm:$0xff] %v20850_v52  ;;  %v1535_v34 = vand.u32 4294901760, %v1534_v18  ;;  %v1528_v62 = vsub.f32 %v20793_v56, %v1527_v31  ;;  %v1540_v38 = vsub.f32 %v20798_v53, %v1539_v60 }
  0x75   :  { %16632 = vmatprep.subr.bf16.mxu1 %v20771_v9  ;;  %16728 = vmatprep.subr.bf16.mxu0 %v20757_v43  ;;  %v20855_v33 = vsub.f32 %v20530_v55, %v24420_v54  ;;  %v20860_v35 = vsub.f32 %v20552_v59, %v24421_v28  ;;  %v1546_v26 = vsub.f32 %v20807_v19, %v1545_v10  ;;  %v1551_v50 = vand.u32 4294901760, %v20833_v58 }
  0x76   :  { %1647 = vmatprep.mubr.f32.mxu1 %v24413_v61  ;;  %2052 = vmatprep.mubr.f32.mxu0 %v24413_v61  ;;  %v1558_v55 = vsub.f32 %v20812_v21, %v1557_v32  ;;  %v1563_v24 = vand.u32 4294901760, %v20838_v16  ;;  %v20872_v59 = vpack.c.bf16 %v1533_v14, %v1521_v7  ;;  %v24423_v51 = vand.u32 4294901760, %v20570_v63 }
  0x77   :  { %v24424_v18 = vand.u32 4294901760, %v20577_v45  ;;  %v1569_v28 = vand.u32 4294901760, %v20855_v33  ;;  %v24425_v7 = vand.u32 4294901760, %v20579_v47  ;;  %v1529_v43 = vand.u32 4294901760, %v1528_v62 }
  0x78   :  { %16634 = vmatpush1.bf16.msra.mxu1 %v20773_v30  ;;  %16730 = vmatpush1.bf16.msra.mxu0 %v20775_v37  ;;  %24422 = vst [vmem:[#allocation46_spill] sm:$0xff] %v20872_v59  ;;  %v20877_v0 = vsub.f32 %v20570_v63, %v24423_v51  ;;  %v1581_v37 = vand.u32 4294901760, %v20860_v35  ;;  %v24426_v63 = vand.u32 4294901760, %v20581_v48  ;;  %v1547_v8 = vand.u32 4294901760, %v1546_v26 }
  0x79   :  { %v20882_v54 = vsub.f32 %v20577_v45, %v24424_v18  ;;  %16636 = vmatprep.subr.bf16.mxu1 %v20842_v13  ;;  %16732 = vmatprep.subr.bf16.mxu0 %v20800_v2  ;;  %v20891_v14 = vsub.f32 %v20579_v47, %v24425_v7  ;;  %v20898_v45 = vpack.c.bf16 %v1517_v57, %v1505_v46  ;;  %v1541_v2 = vand.u32 4294901760, %v1540_v38 }
  0x7a   :  { %v20896_v51 = vsub.f32 %v20581_v48, %v24426_v63  ;;  %v20900_v18 = vpack.c.bf16 %v1535_v34, %v1523_v36  ;;  %v1559_v13 = vand.u32 4294901760, %v1558_v55  ;;  %v1552_v30 = vsub.f32 %v20833_v58, %v1551_v50 }
  0x7b   :  { %24427 = vst [vmem:[#allocation47_spill] sm:$0xff] %v20898_v45  ;;  %v1564_v9 = vsub.f32 %v20838_v16, %v1563_v24  ;;  %v1575_v47 = vand.u32 4294901760, %v20877_v0  ;;  %v1587_v48 = vand.u32 4294901760, %v20882_v54  ;;  %v24429_v46 = vand.u32 4294901760, %v20589_v42 }
  0x7c   :  { %24428 = vst [vmem:[#allocation48_spill] sm:$0xff] %v20900_v18  ;;  %16638 = vmatpush1.bf16.msra.mxu1 %v20844_v23  ;;  %16734 = vmatpush1.bf16.msra.mxu0 %v20802_v29  ;;  %v24430_v36 = vand.u32 4294901760, %v20591_v41  ;;  %v1570_v62 = vsub.f32 %v20855_v33, %v1569_v28  ;;  %v1582_v38 = vsub.f32 %v20860_v35, %v1581_v37  ;;  %v1593_v26 = vand.u32 4294901760, %v20891_v14 }
  0x7d   :  { %v20911_v57 = vsub.f32 %v20589_v42, %v24429_v46  ;;  %16640 = vmatprep.subr.bf16.mxu1 %v20850_v52  ;;  %16736 = vmatprep.subr.bf16.mxu0 %v20819_v27  ;;  %v1605_v55 = vand.u32 4294901760, %v20896_v51  ;;  %v20924_v7 = vpack.c.bf16 %v1539_v60, %v1527_v31  ;;  %v20926_v42 = vpack.c.bf16 %v1557_v32, %v1545_v10 }
  0x7e   :  { %v20916_v34 = vsub.f32 %v20591_v41, %v24430_v36  ;;  %v20928_v63 = vpack.c.bf16 %v1541_v2, %v1529_v43  ;;  %v20930_v41 = vpack.c.bf16 %v1559_v13, %v1547_v8  ;;  %v1553_v46 = vand.u32 4294901760, %v1552_v30 }
  0x7f   :  { %24431 = vst [vmem:[#allocation49_spill] sm:$0xff] %v20924_v7  ;;  %24432 = vst [vmem:[#allocation50_spill] sm:$0xff] %v20926_v42  ;;  %v1565_v36 = vand.u32 4294901760, %v1564_v9  ;;  %v1576_v27 = vsub.f32 %v20877_v0, %v1575_v47  ;;  %v1588_v29 = vsub.f32 %v20882_v54, %v1587_v48  ;;  %v1599_v52 = vand.u32 4294901760, %v20911_v57 }
  0x80   :  { %24433 = vst [vmem:[#allocation51_spill] sm:$0xff] %v20928_v63  ;;  %24434 = vst [vmem:[#allocation52_spill] sm:$0xff] %v20930_v41  ;;  %16642 = vmatpush1.bf16.msra.mxu1 %v20898_v45  ;;  %16738 = vmatpush1.bf16.msra.mxu0 %v20846_v1  ;;  %v1611_v31 = vand.u32 4294901760, %v20916_v34  ;;  %v1571_v8 = vand.u32 4294901760, %v1570_v62  ;;  %v1583_v13 = vand.u32 4294901760, %v1582_v38  ;;  %v1594_v9 = vsub.f32 %v20891_v14, %v1593_v26  ;;  %v21163_v1 = vld [vmem:[#allocation5 + $0x138] sm:$0xff] }
  0x81   :  { %16644 = vmatprep.subr.bf16.mxu1 %v20900_v18  ;;  %16740 = vmatprep.subr.bf16.mxu0 %v20872_v59  ;;  %v1606_v43 = vsub.f32 %v20896_v51, %v1605_v55  ;;  %v20942_v30 = vpack.c.bf16 %v1565_v36, %v1553_v46  ;;  %v20944_v2 = vpack.c.bf16 %v1563_v24, %v1551_v50  ;;  %v1577_v60 = vand.u32 4294901760, %v1576_v27 }
  0x82   :  { %v1589_v10 = vand.u32 4294901760, %v1588_v29  ;;  %v1600_v32 = vsub.f32 %v20911_v57, %v1599_v52  ;;  %v1612_v59 = vsub.f32 %v20916_v34, %v1611_v31  ;;  %v20952_v62 = vpack.c.bf16 %v1583_v13, %v1571_v8 }
  0x83   :  { %24435 = vst [vmem:[#allocation53_spill] sm:$0xff] %v20942_v30  ;;  %24436 = vst [vmem:[#allocation54_spill] sm:$0xff] %v20944_v2  ;;  %v20954_v38 = vpack.c.bf16 %v1581_v37, %v1569_v28  ;;  %v1595_v50 = vand.u32 4294901760, %v1594_v9  ;;  %v1607_v24 = vand.u32 4294901760, %v1606_v43  ;;  %v20960_v29 = vpack.c.bf16 %v1587_v48, %v1575_v47  ;;  %v24450_v48 = vld [vmem:[#allocation21_spill] sm:$0xff]  ;;  %v24458_v9 = vld [vmem:[#allocation30_spill] sm:$0xff] }
  0x84   :  { %16646 = vmatpush1.bf16.msra.mxu1 %v20928_v63  ;;  %16742 = vmatpush1.bf16.msra.mxu0 %v20924_v7  ;;  %24437 = vst [vmem:[#allocation55_spill] sm:$0xff] %v20952_v62  ;;  %v20958_v27 = vpack.c.bf16 %v1589_v10, %v1577_v60  ;;  %v1601_v46 = vand.u32 4294901760, %v1600_v32  ;;  %v1613_v36 = vand.u32 4294901760, %v1612_v59  ;;  %v20966_v37 = vpack.c.bf16 %v1605_v55, %v1593_v26  ;;  %v24453_v26 = vld [vmem:[#allocation28_spill] sm:$0xff]  ;;  %v24460_v43 = vld [vmem:[#allocation15_spill] sm:$0xff] }
  0x85   :  { %16648 = vmatprep.subr.bf16.mxu1 %v20930_v41  ;;  %16744 = vmatprep.subr.bf16.mxu0 %v20926_v42  ;;  %24438 = vst [vmem:[#allocation56_spill] sm:$0xff] %v20954_v38  ;;  %24440 = vst [vmem:[#allocation58_spill] sm:$0xff] %v20960_v29  ;;  %v20964_v8 = vpack.c.bf16 %v1607_v24, %v1595_v50  ;;  %v20972_v13 = vpack.c.bf16 %v1611_v31, %v1599_v52  ;;  %v24457_v31 = vld [vmem:[#allocation14_spill] sm:$0xff]  ;;  %v21056_v24 = vld [vmem:[#allocation5 + $0x18] sm:$0xff] }
  0x86   :  { %24439 = vst [vmem:[#allocation57_spill] sm:$0xff] %v20958_v27  ;;  %24442 = vst [vmem:[#allocation60_spill] sm:$0xff] %v20966_v37  ;;  %v20970_v28 = vpack.c.bf16 %v1613_v36, %v1601_v46  ;;  %v20978_v59 = vpack.c.bf16 %v20597_v40, %v20586_v44  ;;  %v20984_v47 = vpack.c.bf16 %v20608_v6, %v20603_v3  ;;  %v24448_v40 = vld [vmem:[#allocation11_spill] sm:$0xff]  ;;  %v24449_v44 = vld [vmem:[#allocation20_spill] sm:$0xff] }
  0x87   :  { %24441 = vst [vmem:[#allocation59_spill] sm:$0xff] %v20964_v8  ;;  %24444 = vst [vmem:[#allocation62_spill] sm:$0xff] %v20972_v13  ;;  %v20990_v52 = vpack.c.bf16 %v20618_v4, %v20613_v39  ;;  %v20998_v3 = vpack.c.bf16 %v24450_v48, %v24449_v44  ;;  %v24452_v6 = vld [vmem:[#allocation12_spill] sm:$0xff]  ;;  %v21004_v39 = vpack.c.bf16 %v20708_v12, %v24453_v26  ;;  %v24455_v4 = vld [vmem:[#allocation13_spill] sm:$0xff] }
  0x88   :  { %16650 = vmatpush1.bf16.msra.mxu1 %v20942_v30  ;;  %16746 = vmatpush1.bf16.msra.mxu0 %v20944_v2  ;;  %24443 = vst [vmem:[#allocation61_spill] sm:$0xff] %v20970_v28  ;;  %24445 = vst [vmem:[#allocation63_spill] sm:$0xff] %v20978_v59  ;;  %v21012_v55 = vpack.c.bf16 %v20718_v49, %v20713_v22  ;;  %v21018_v12 = vpack.c.bf16 %v24458_v9, %v20726_v20  ;;  %v24462_v49 = vld [vmem:[#allocation16_spill] sm:$0xff]  ;;  %v24463_v22 = vld [vmem:[#allocation34_spill] sm:$0xff] }
  0x89   :  { %16652 = vmatprep.subr.bf16.mxu1 %v20952_v62  ;;  %16748 = vmatprep.subr.bf16.mxu0 %v20954_v38  ;;  %24446 = vst [vmem:[#allocation64_spill] sm:$0xff] %v20984_v47  ;;  %24447 = vst [vmem:[#allocation65_spill] sm:$0xff] %v20990_v52  ;;  %v21024_v60 = vpack.c.bf16 %v20753_v15, %v20743_v5  ;;  %v21030_v10 = vpack.c.bf16 %v24463_v22, %v20762_v25  ;;  %v24465_v20 = vld [vmem:[#allocation17_spill] sm:$0xff]  ;;  %v24467_v5 = vld [vmem:[#allocation18_spill] sm:$0xff] }
  0x8a   :  { %24451 = vst [vmem:[#allocation20_spill] sm:$0xff] %v20998_v3  ;;  %24454 = vst [vmem:[#allocation21_spill] sm:$0xff] %v21004_v39  ;;  %v21036_v32 = vpack.c.bf16 %v20798_v53, %v20793_v56  ;;  %v21042_v15 = vpack.c.bf16 %v20812_v21, %v20807_v19  ;;  %v24469_v25 = vld [vmem:[#allocation19_spill] sm:$0xff]  ;;  %v21048_v50 = vpack.c.bf16 %v20838_v16, %v20833_v58  ;;  %v24471_v56 = vld [vmem:[#allocation22_spill] sm:$0xff] }
  0x8b   :  { %24456 = vst [vmem:[#allocation28_spill] sm:$0xff] %v21012_v55  ;;  %24459 = vst [vmem:[#allocation30_spill] sm:$0xff] %v21018_v12  ;;  %v21054_v53 = vpack.c.bf16 %v20860_v35, %v20855_v33  ;;  %v21058_v19 = vld [vmem:[#allocation5 + $0x38] sm:$0xff]  ;;  %v21064_v58 = vpack.c.bf16 %v20882_v54, %v20877_v0  ;;  %v24475_v16 = vld [vmem:[#allocation24_spill] sm:$0xff]  ;;  %v21070_v33 = vpack.c.bf16 %v20896_v51, %v20891_v14  ;;  %v24086_v35 = vand.u32 4294901760, %v21056_v24 }
  0x8c   :  { %16654 = vmatpush1.bf16.msra.mxu1 %v20958_v27  ;;  %16750 = vmatpush1.bf16.msra.mxu0 %v20960_v29  ;;  %24461 = vst [vmem:[#allocation66_spill] sm:$0xff] %v21024_v60  ;;  %24464 = vst [vmem:[#allocation34_spill] sm:$0xff] %v21030_v10  ;;  %v24473_v21 = vld [vmem:[#allocation23_spill] sm:$0xff]  ;;  %v24085_v46 = vand.u32 4294901760, %v21058_v19  ;;  %v21074_v36 = vld [vmem:[#allocation5 + $0x10] sm:$0xff]  ;;  %v21086_v14 = vpack.c.bf16 %v20916_v34, %v20911_v57 }
  0x8d   :  { %16656 = vmatprep.subr.bf16.mxu1 %v20964_v8  ;;  %16752 = vmatprep.subr.bf16.mxu0 %v20966_v37  ;;  %24466 = vst [vmem:[#allocation67_spill] sm:$0xff] %v21036_v32  ;;  %24468 = vst [vmem:[#allocation68_spill] sm:$0xff] %v21042_v15  ;;  %v21076_v44 = vld [vmem:[#allocation5 + $0x30] sm:$0xff]  ;;  %v21078_v48 = vld [vmem:[#allocation5 + $0x58] sm:$0xff]  ;;  %v24481_v38 = vand.u32 4294901760, %v21074_v36 }
  0x8e   :  { %24470 = vst [vmem:[#allocation69_spill] sm:$0xff] %v21048_v50  ;;  %24472 = vst [vmem:[#allocation70_spill] sm:$0xff] %v21054_v53  ;;  %v21080_v0 = vld [vmem:[#allocation5 + $0x78] sm:$0xff]  ;;  %v24477_v54 = vld [vmem:[#allocation25_spill] sm:$0xff]  ;;  %v21096_v22 = vpack.c.bf16 %v24085_v46, %v24086_v35  ;;  %v24482_v46 = vand.u32 4294901760, %v21076_v44  ;;  %v24483_v2 = vand.u32 4294901760, %v21078_v48 }
  0x8f   :  { %24474 = vst [vmem:[#allocation71_spill] sm:$0xff] %v21064_v58  ;;  %24476 = vst [vmem:[#allocation72_spill] sm:$0xff] %v21070_v33  ;;  %v24479_v9 = vld [vmem:[#allocation26_spill] sm:$0xff]  ;;  %v21104_v51 = vld [vmem:[#allocation5 + $0x98] sm:$0xff]  ;;  %v24484_v42 = vand.u32 4294901760, %v21080_v0  ;;  %v24509_v41 = vand.u32 4294901760, %v21080_v0 }
  0x90   :  { %16658 = vmatpush1.bf16.msra.mxu1 %v20970_v28  ;;  %16754 = vmatpush1.bf16.msra.mxu0 %v20972_v13  ;;  %24478 = vst [vmem:[#allocation73_spill] sm:$0xff] %v21086_v14  ;;  %v21100_v57 = vld [vmem:[#allocation5 + $0x50] sm:$0xff]  ;;  %v21106_v26 = vld [vmem:[#allocation5 + $0xb8] sm:$0xff]  ;;  %v21114_v35 = vpack.c.bf16 %v24482_v46, %v24481_v38  ;;  %v24498_v28 = vand.u32 4294901760, %v21076_v44  ;;  %v24519_v23 = vand.u32 4294901760, %v21104_v51 }
  0x91   :  { %16660 = vmatprep.subr.bf16.mxu1 %v20978_v59  ;;  %16756 = vmatprep.subr.bf16.mxu0 %v20426_v11  ;;  %v21102_v34 = vld [vmem:[#allocation5 + $0x70] sm:$0xff]  ;;  %v24480_v29 = vld [vmem:[#allocation27_spill] sm:$0xff]  ;;  %v24109_v37 = vand.u32 4294901760, %v21100_v57  ;;  %v21123_v7 = vpack.c.bf16 %v24484_v42, %v24483_v2  ;;  %v21274_v63 = vsub.f32 %v21080_v0, %v24509_v41 }
  0x92   :  { %v21129_v38 = vld [vmem:[#allocation5 + $0xb0] sm:$0xff]  ;;  %v21132_v46 = vld [vmem:[#allocation5 + $0xd8] sm:$0xff]  ;;  %v24485_v42 = vand.u32 4294901760, %v21102_v34 }
  0x93   :  { %1648 = vmatmul.mubr.f32.vlgmr.msra.gmra.mrb[4].mxu1 %v24413_v61  ;;  %2053 = vmatmul.mubr.f32.vlgmr.msra.gmra.mrb[4].mxu0 %v24413_v61  ;;  %v21134_v13 = vld [vmem:[#allocation5 + $0xf8] sm:$0xff]  ;;  %v21251_v27 = vld [vmem:[#allocation5 + $0x190] sm:$0xff] }
  0x94   :  { %16662 = vmatpush1.bf16.msra.mxu1 %v20984_v47  ;;  %16758 = vmatpush1.bf16.msra.mxu0 %v24448_v40  ;;  %v21143_v2 = vpack.c.bf16 %v24485_v42, %v24109_v37  ;;  %v21159_v37 = vld [vmem:[#allocation5 + $0xf0] sm:$0xff]  ;;  %v24490_v42 = vand.u32 4294901760, %v21129_v38  ;;  %v21258_v62 = vld [vmem:[#allocation5 + $0x1f8] sm:$0xff] }
  0x95   :  { %16664 = vmatprep.subr.bf16.mxu1 %v20990_v52  ;;  %16760 = vmatprep.subr.bf16.mxu0 %v24452_v6  ;;  %v24495_v52 = vand.u32 4294901760, %v21056_v24  ;;  %v21260_v30 = vld [vmem:[#allocation5 + $0x1d0] sm:$0xff] }
  0x96   :  { %1782 = vmatprep.mubr.f32.mxu1 %v24413_v61  ;;  %2155 = vmatprep.mubr.f32.mxu0 %v24413_v61 }
  0x97   :  { %v21206_v47 = vsub.f32 %v21056_v24, %v24495_v52  ;;  %v21224_v52 = vsub.f32 %v21076_v44, %v24498_v28 }
  0x98   :  { %16666 = vmatpush1.bf16.msra.mxu1 %v20998_v3  ;;  %16762 = vmatpush1.bf16.msra.mxu0 %v24455_v4 }
  0x99   :  { %16668 = vmatprep.subr.bf16.mxu1 %v21004_v39  ;;  %16764 = vmatprep.subr.bf16.mxu0 %v24457_v31  ;;  %v24493_v39 = vand.u32 4294901760, %v21134_v13  ;;  %v24515_v0 = vand.u32 4294901760, %v21206_v47 }
  0x9c   :  { %16670 = vmatpush1.bf16.msra.mxu1 %v21012_v55  ;;  %16766 = vmatpush1.bf16.msra.mxu0 %v24460_v43  ;;  %v21183_v55 = vld [vmem:[#allocation5 + $0x158] sm:$0xff] }
  0x9d   :  { %16672 = vmatprep.subr.bf16.mxu1 %v21018_v12  ;;  %16768 = vmatprep.subr.bf16.mxu0 %v24462_v49  ;;  %v21199_v12 = vld [vmem:[#allocation5 + $0x170] sm:$0xff] }
  0xa0   :  { %16674 = vmatpush1.bf16.msra.mxu1 %v21024_v60  ;;  %16770 = vmatpush1.bf16.msra.mxu0 %v24465_v20  ;;  %v21197_v60 = vld [vmem:[#allocation5 + $0x150] sm:$0xff] }
  0xa1   :  { %16676 = vmatprep.subr.bf16.mxu1 %v21030_v10  ;;  %16772 = vmatprep.subr.bf16.mxu0 %v24467_v5  ;;  %v21168_v10 = vld [vmem:[#allocation5 + $0x130] sm:$0xff] }
  0xa4   :  { %16678 = vmatpush1.bf16.msra.mxu1 %v21036_v32  ;;  %16774 = vmatpush1.bf16.msra.mxu0 %v24469_v25  ;;  %v21166_v32 = vld [vmem:[#allocation5 + $0x110] sm:$0xff] }
  0xa5   :  { %16680 = vmatprep.subr.bf16.mxu1 %v21042_v15  ;;  %16776 = vmatprep.subr.bf16.mxu0 %v24471_v56  ;;  %v24505_v28 = vand.u32 4294901760, %v21166_v32 }
  0xa8   :  { %16682 = vmatpush1.bf16.msra.mxu1 %v21048_v50  ;;  %16778 = vmatpush1.bf16.msra.mxu0 %v24473_v21 }
  0xa9   :  { %16684 = vmatprep.subr.bf16.mxu1 %v21054_v53  ;;  %16780 = vmatprep.subr.bf16.mxu0 %v24475_v16  ;;  %v24487_v53 = vand.u32 4294901760, %v21106_v26 }
  0xac   :  { %16686 = vmatpush1.bf16.msra.mxu1 %v21064_v58  ;;  %16782 = vmatpush1.bf16.msra.mxu0 %v24477_v54  ;;  %v24486_v58 = vand.u32 4294901760, %v21104_v51 }
  0xad   :  { %16688 = vmatprep.subr.bf16.mxu1 %v21070_v33  ;;  %16784 = vmatprep.subr.bf16.mxu0 %v24479_v9  ;;  %v21127_v33 = vld [vmem:[#allocation5 + $0x90] sm:$0xff] }
  0xae   :  { %v21155_v50 = vpack.c.bf16 %v24487_v53, %v24486_v58  ;;  %v24489_v58 = vand.u32 4294901760, %v21127_v33  ;;  %v24492_v53 = vand.u32 4294901760, %v21132_v46 }
  0xb0   :  { %16690 = vmatpush1.bf16.msra.mxu1 %v21086_v14  ;;  %16786 = vmatpush1.bf16.msra.mxu0 %v24480_v29  ;;  %24488 = vst [vmem:[#allocation74_spill] sm:$0xff] %v21155_v50  ;;  %v21161_v14 = vld [vmem:[#allocation5 + $0x118] sm:$0xff]  ;;  %v21178_v15 = vpack.c.bf16 %v24490_v42, %v24489_v58  ;;  %v21192_v3 = vpack.c.bf16 %v24493_v39, %v24492_v53  ;;  %v24496_v39 = vand.u32 4294901760, %v21058_v19  ;;  %v24503_v58 = vand.u32 4294901760, %v21163_v1 }
  0xb1   :  { %16788 = vmatprep.subr.bf16.mxu1 %v21096_v22  ;;  %16980 = vmatprep.subr.bf16.mxu0 %v20426_v11  ;;  %v21147_v11 = vld [vmem:[#allocation5 + $0xd0] sm:$0xff]  ;;  %v24502_v42 = vand.u32 4294901760, %v21161_v14 }
  0xb2   :  { %24491 = vst [vmem:[#allocation75_spill] sm:$0xff] %v21178_v15  ;;  %24494 = vst [vmem:[#allocation76_spill] sm:$0xff] %v21192_v3  ;;  %v21211_v53 = vsub.f32 %v21058_v19, %v24496_v39  ;;  %v24499_v24 = vand.u32 4294901760, %v21147_v11  ;;  %v24500_v19 = vand.u32 4294901760, %v21159_v37 }
  0xb3   :  { %1783 = vmatmul.mubr.f32.vlgmr.msra.gmra.mrb[4].mxu1 %v24413_v61  ;;  %2156 = vmatmul.mubr.f32.vlgmr.msra.gmra.mrb[4].mxu0 %v24413_v61 }
  0xb4   :  { %16790 = vmatpush1.bf16.msra.mxu1 %v21114_v35  ;;  %2258 = vmatprep.mubr.f32.mxu1 %v24413_v61  ;;  %v21231_v39 = vpack.c.bf16 %v24500_v19, %v24499_v24  ;;  %v24508_v19 = vand.u32 4294901760, %v21078_v48 }
  0xb5   :  { %16792 = vmatprep.subr.bf16.mxu1 %v21123_v7  ;;  %16982 = vmatpush1.bf16.msra.mxu0 %v24448_v40  ;;  %v21201_v40 = vld [vmem:[#allocation5 + $0x198] sm:$0xff] }
  0xb6   :  { %16984 = vmatprep.subr.bf16.mxu0 %v24452_v6  ;;  %3157 = vmatprep.mubr.f32.mxu0 %v24413_v61  ;;  %v21185_v6 = vld [vmem:[#allocation5 + $0x178] sm:$0xff]  ;;  %24501 = vst [vmem:[#allocation77_spill] sm:$0xff] %v21231_v39  ;;  %v21269_v8 = vsub.f32 %v21078_v48, %v24508_v19  ;;  %v24513_v48 = vand.u32 4294901760, %v21100_v57 }
  0xb7   :  { %v24511_v18 = vand.u32 4294901760, %v21185_v6 }
  0xb8   :  { %16794 = vmatpush1.bf16.msra.mxu1 %v21143_v2  ;;  %v21288_v19 = vsub.f32 %v21100_v57, %v24513_v48  ;;  %v24514_v57 = vand.u32 4294901760, %v21102_v34 }
  0xb9   :  { %16796 = vmatprep.subr.bf16.mxu1 %v21155_v50  ;;  %16986 = vmatpush1.bf16.msra.mxu0 %v24455_v4  ;;  %v24497_v4 = vand.u32 4294901760, %v21074_v36 }
  0xba   :  { %16988 = vmatprep.subr.bf16.mxu0 %v24457_v31  ;;  %v21237_v31 = vpack.c.bf16 %v24503_v58, %v24502_v42  ;;  %v21253_v42 = vld [vmem:[#allocation5 + $0x1b0] sm:$0xff]  ;;  %v21255_v58 = vld [vmem:[#allocation5 + $0x1d8] sm:$0xff]  ;;  %v21302_v48 = vsub.f32 %v21102_v34, %v24514_v57  ;;  %v24518_v57 = vand.u32 4294901760, %v21224_v52  ;;  %v24538_v50 = vand.u32 4294901760, %v21288_v19 }
  0xbb   :  { %v21219_v59 = vsub.f32 %v21074_v36, %v24497_v4  ;;  %v21239_v4 = vld [vmem:[#allocation5 + $0x1b8] sm:$0xff]  ;;  %v24506_v36 = vand.u32 4294901760, %v21168_v10 }
  0xbc   :  { %16798 = vmatpush1.bf16.msra.mxu1 %v21178_v15  ;;  %24504 = vst [vmem:[#allocation78_spill] sm:$0xff] %v21237_v31  ;;  %v24523_v17 = vand.u32 4294901760, %v21239_v4  ;;  %v24537_v15 = vand.u32 4294901760, %v21274_v63 }
  0xbd   :  { %16800 = vmatprep.subr.bf16.mxu1 %v21192_v3  ;;  %v21246_v44 = vpack.c.bf16 %v24506_v36, %v24505_v28  ;;  %16990 = vmatpush1.bf16.msra.mxu0 %v24460_v43  ;;  %v21262_v28 = vld [vmem:[#allocation5 + $0x1f0] sm:$0xff]  ;;  %v24510_v43 = vand.u32 4294901760, %v21183_v55  ;;  %v24517_v24 = vand.u32 4294901760, %v21219_v59  ;;  %v24520_v36 = vand.u32 4294901760, %v21197_v60 }
  0xbe   :  { %16992 = vmatprep.subr.bf16.mxu0 %v24462_v49  ;;  %v2268_v49 = vsub.f32 %v21206_v47, %v24515_v0  ;;  %v24525_v0 = vand.u32 4294901760, %v21251_v27 }
  0xbf   :  { %24507 = vst [vmem:[#allocation79_spill] sm:$0xff] %v21246_v44  ;;  %v21281_v45 = vpack.c.bf16 %v24511_v18, %v24510_v43  ;;  %v24516_v18 = vand.u32 4294901760, %v21211_v53  ;;  %v2274_v34 = vsub.f32 %v21219_v59, %v24517_v24  ;;  %v24521_v43 = vand.u32 4294901760, %v21199_v12 }
  0xc0   :  { %16802 = vmatpush1.bf16.msra.mxu1 %v21231_v39  ;;  %v24522_v24 = vand.u32 4294901760, %v21201_v40 }
  0xc1   :  { %24512 = vst [vmem:[#allocation80_spill] sm:$0xff] %v21281_v45  ;;  %16804 = vmatprep.subr.bf16.mxu1 %v21237_v31  ;;  %16994 = vmatpush1.bf16.msra.mxu0 %v24465_v20  ;;  %v2280_v41 = vsub.f32 %v21211_v53, %v24516_v18  ;;  %v2286_v20 = vsub.f32 %v21224_v52, %v24518_v57  ;;  %v24526_v31 = vand.u32 4294901760, %v21253_v42 }
  0xc2   :  { %16996 = vmatprep.subr.bf16.mxu0 %v24467_v5  ;;  %v21324_v18 = vsub.f32 %v21104_v51, %v24519_v23  ;;  %v21331_v5 = vpack.c.bf16 %v24521_v43, %v24520_v36  ;;  %v21337_v57 = vpack.c.bf16 %v24523_v17, %v24522_v24  ;;  %v24528_v51 = vand.u32 4294901760, %v21106_v26 }
  0xc3   :  { %v21343_v23 = vpack.c.bf16 %v24526_v31, %v24525_v0  ;;  %v24529_v36 = vand.u32 4294901760, %v21255_v58  ;;  %v24530_v43 = vand.u32 4294901760, %v21258_v62  ;;  %v24532_v17 = vand.u32 4294901760, %v21260_v30 }
  0xc4   :  { %16806 = vmatpush1.bf16.msra.mxu1 %v21246_v44  ;;  %24524 = vst [vmem:[#allocation81_spill] sm:$0xff] %v21337_v57  ;;  %v21348_v44 = vsub.f32 %v21106_v26, %v24528_v51  ;;  %v24533_v24 = vand.u32 4294901760, %v21262_v28  ;;  %v24535_v0 = vand.u32 4294901760, %v21127_v33  ;;  %v2269_v51 = vand.u32 4294901760, %v2268_v49 }
  0xc5   :  { %24527 = vst [vmem:[#allocation82_spill] sm:$0xff] %v21343_v23  ;;  %16808 = vmatprep.subr.bf16.mxu1 %v21281_v45  ;;  %v21355_v39 = vpack.c.bf16 %v24530_v43, %v24529_v36  ;;  %16998 = vmatpush1.bf16.msra.mxu0 %v24469_v25  ;;  %v2281_v45 = vand.u32 4294901760, %v2280_v41  ;;  %v24536_v36 = vand.u32 4294901760, %v21269_v8  ;;  %v2287_v31 = vand.u32 4294901760, %v2286_v20 }
  0xc6   :  { %v21361_v3 = vpack.c.bf16 %v24533_v24, %v24532_v17  ;;  %v21367_v26 = vsub.f32 %v21127_v33, %v24535_v0  ;;  %v2304_v17 = vsub.f32 %v21274_v63, %v24537_v15  ;;  %17000 = vmatprep.subr.bf16.mxu0 %v24471_v56  ;;  %v2275_v24 = vand.u32 4294901760, %v2274_v34 }
  0xc7   :  { %24531 = vst [vmem:[#allocation83_spill] sm:$0xff] %v21355_v39  ;;  %v2292_v43 = vsub.f32 %v21269_v8, %v24536_v36  ;;  %v2298_v33 = vsub.f32 %v21288_v19, %v24538_v50  ;;  %v24539_v41 = vand.u32 4294901760, %v21129_v38  ;;  %v24540_v15 = vand.u32 4294901760, %v21132_v46 }
  0xc8   :  { %24534 = vst [vmem:[#allocation84_spill] sm:$0xff] %v21361_v3  ;;  %16810 = vmatpush1.bf16.msra.mxu1 %v21331_v5  ;;  %v24541_v20 = vand.u32 4294901760, %v21134_v13  ;;  %v24542_v0 = vand.u32 4294901760, %v21302_v48  ;;  %v2305_v25 = vand.u32 4294901760, %v2304_v17 }
  0xc9   :  { %v21386_v36 = vsub.f32 %v21129_v38, %v24539_v41  ;;  %v21391_v34 = vsub.f32 %v21132_v46, %v24540_v15  ;;  %16812 = vmatprep.subr.bf16.mxu1 %v21337_v57  ;;  %v24543_v38 = vand.u32 4294901760, %v21147_v11  ;;  %v24544_v46 = vand.u32 4294901760, %v21159_v37  ;;  %17002 = vmatpush1.bf16.msra.mxu0 %v24473_v21 }
  0xca   :  { %v21396_v50 = vsub.f32 %v21134_v13, %v24541_v20  ;;  %v2310_v49 = vsub.f32 %v21302_v48, %v24542_v0  ;;  %v21414_v13 = vpack.c.bf16 %v2281_v45, %v2269_v51  ;;  %v2293_v20 = vand.u32 4294901760, %v2292_v43  ;;  %17004 = vmatprep.subr.bf16.mxu0 %v24475_v16 }
  0xcb   :  { %v21406_v41 = vsub.f32 %v21147_v11, %v24543_v38  ;;  %v21411_v15 = vsub.f32 %v21159_v37, %v24544_v46  ;;  %v24546_v0 = vand.u32 4294901760, %v21161_v14  ;;  %v21422_v11 = vpack.c.bf16 %v2287_v31, %v2275_v24 }
  0xcc   :  { %24545 = vst [vmem:[#allocation85_spill] sm:$0xff] %v21414_v13  ;;  %v2299_v38 = vand.u32 4294901760, %v2298_v33  ;;  %v24548_v57 = vand.u32 4294901760, %v21324_v18  ;;  %v24549_v46 = vand.u32 4294901760, %v21163_v1  ;;  %16814 = vmatpush1.bf16.msra.mxu1 %v21343_v23  ;;  %v24550_v51 = vand.u32 4294901760, %v21348_v44 }
  0xcd   :  { %v21419_v56 = vsub.f32 %v21161_v14, %v24546_v0  ;;  %24547 = vst [vmem:[#allocation86_spill] sm:$0xff] %v21422_v11  ;;  %16816 = vmatprep.subr.bf16.mxu1 %v21355_v39  ;;  %v24551_v24 = vand.u32 4294901760, %v21367_v26  ;;  %17006 = vmatpush1.bf16.msra.mxu0 %v24477_v54  ;;  %v24553_v31 = vand.u32 4294901760, %v21166_v32  ;;  %v24559_v33 = vand.u32 4294901760, %v21396_v50 }
  0xce   :  { %v2316_v37 = vsub.f32 %v21324_v18, %v24548_v57  ;;  %v21430_v45 = vsub.f32 %v21163_v1, %v24549_v46  ;;  %v2328_v14 = vsub.f32 %v21348_v44, %v24550_v51  ;;  %v2311_v57 = vand.u32 4294901760, %v2310_v49  ;;  %17008 = vmatprep.subr.bf16.mxu0 %v24479_v9 }
  0xcf   :  { %v2322_v1 = vsub.f32 %v21367_v26, %v24551_v24  ;;  %v21446_v46 = vpack.c.bf16 %v2305_v25, %v2293_v20  ;;  %v21452_v17 = vsub.f32 %v21166_v32, %v24553_v31  ;;  %v24554_v49 = vand.u32 4294901760, %v21168_v10 }
  0xd0   :  { %v2317_v24 = vand.u32 4294901760, %v2316_v37  ;;  %v24555_v25 = vand.u32 4294901760, %v21183_v55  ;;  %v24556_v51 = vand.u32 4294901760, %v21185_v6  ;;  %16818 = vmatpush1.bf16.msra.mxu1 %v21361_v3  ;;  %v2329_v31 = vand.u32 4294901760, %v2328_v14 }
  0xd1   :  { %24552 = vst [vmem:[#allocation87_spill] sm:$0xff] %v21446_v46  ;;  %v21457_v43 = vsub.f32 %v21168_v10, %v24554_v49  ;;  %v24557_v10 = vand.u32 4294901760, %v21386_v36  ;;  %v24558_v37 = vand.u32 4294901760, %v21391_v34  ;;  %16820 = vmatprep.subr.bf16.mxu1 %v21414_v13  ;;  %v24562_v9 = vand.u32 4294901760, %v21411_v15  ;;  %17010 = vmatpush1.bf16.msra.mxu0 %v24480_v29 }
  0xd2   :  { %v21464_v20 = vsub.f32 %v21183_v55, %v24555_v25  ;;  %v21469_v32 = vsub.f32 %v21185_v6, %v24556_v51  ;;  %v2352_v55 = vsub.f32 %v21396_v50, %v24559_v33  ;;  %v21482_v25 = vpack.c.bf16 %v2311_v57, %v2299_v38 }
  0xd3   :  { %v2334_v49 = vsub.f32 %v21386_v36, %v24557_v10  ;;  %v2340_v0 = vsub.f32 %v21391_v34, %v24558_v37  ;;  %v2323_v6 = vand.u32 4294901760, %v2322_v1  ;;  %v24561_v51 = vand.u32 4294901760, %v21406_v41  ;;  %2259 = vmatmul.mubr.f32.vlgmr.msra.gmra.mrb[6].mxu1 %v24413_v61 }
  0xd4   :  { %24560 = vst [vmem:[#allocation88_spill] sm:$0xff] %v21482_v25  ;;  %v2358_v10 = vsub.f32 %v21411_v15, %v24562_v9  ;;  %v24563_v37 = vand.u32 4294901760, %v21419_v56  ;;  %v24564_v57 = vand.u32 4294901760, %v21197_v60  ;;  %v24566_v9 = vand.u32 4294901760, %v21430_v45  ;;  %16822 = vmatpush1.bf16.msra.mxu1 %v21422_v11  ;;  %2489 = vmatprep.mubr.f32.mxu1 %v24413_v61 }
  0xd5   :  { %v2346_v14 = vsub.f32 %v21406_v41, %v24561_v51  ;;  %v24565_v51 = vld [vmem:[#allocation32_spill] sm:$0xff]  ;;  %v24567_v33 = vand.u32 4294901760, %v21199_v12  ;;  %v2353_v21 = vand.u32 4294901760, %v2352_v55  ;;  %16824 = vmatprep.subr.bf16.mxu1 %v21446_v46  ;;  %v24574_v46 = vand.u32 4294901760, %v21469_v32 }
  0xd6   :  { %v2364_v54 = vsub.f32 %v21419_v56, %v24563_v37  ;;  %v21499_v1 = vsub.f32 %v21197_v60, %v24564_v57  ;;  %17012 = vmatprep.subr.bf16.mxu0 %v24565_v51  ;;  %v2376_v29 = vsub.f32 %v21430_v45, %v24566_v9  ;;  %v21514_v60 = vpack.c.bf16 %v2329_v31, %v2317_v24 }
  0xd7   :  { %v21511_v38 = vsub.f32 %v21199_v12, %v24567_v33  ;;  %v2335_v57 = vand.u32 4294901760, %v2334_v49  ;;  %v2341_v51 = vand.u32 4294901760, %v2340_v0  ;;  %v2347_v9 = vand.u32 4294901760, %v2346_v14 }
  0xd8   :  { %24568 = vst [vmem:[#allocation89_spill] sm:$0xff] %v21514_v60  ;;  %v2359_v16 = vand.u32 4294901760, %v2358_v10  ;;  %v24569_v37 = vand.u32 4294901760, %v21201_v40  ;;  %v24570_v12 = vand.u32 4294901760, %v21239_v4  ;;  %v2365_v24 = vand.u32 4294901760, %v2364_v54  ;;  %16826 = vmatpush1.bf16.msra.mxu1 %v21482_v25 }
  0xd9   :  { %v24571_v0 = vand.u32 4294901760, %v21452_v17  ;;  %v24572_v49 = vand.u32 4294901760, %v21457_v43  ;;  %v2377_v10 = vand.u32 4294901760, %v2376_v29  ;;  %v24578_v14 = vand.u32 4294901760, %v21253_v42  ;;  %16828 = vmatprep.subr.bf16.mxu1 %v21514_v60 }
  0xda   :  { %v21521_v13 = vsub.f32 %v21201_v40, %v24569_v37  ;;  %v21526_v33 = vsub.f32 %v21239_v4, %v24570_v12  ;;  %v24573_v40 = vand.u32 4294901760, %v21464_v20  ;;  %v2400_v4 = vsub.f32 %v21469_v32, %v24574_v46 }
  0xdb   :  { %v2370_v31 = vsub.f32 %v21452_v17, %v24571_v0  ;;  %v2382_v55 = vsub.f32 %v21457_v43, %v24572_v49  ;;  %v21543_v12 = vpack.c.bf16 %v2335_v57, %v2323_v6  ;;  %v21545_v0 = vpack.c.bf16 %v2353_v21, %v2341_v51 }
  0xdc   :  { %v2388_v37 = vsub.f32 %v21464_v20, %v24573_v40  ;;  %v24577_v49 = vand.u32 4294901760, %v21251_v27  ;;  %v21555_v40 = vsub.f32 %v21253_v42, %v24578_v14  ;;  %v24579_v6 = vand.u32 4294901760, %v21255_v58 }
  0xdd   :  { %24575 = vst [vmem:[#allocation90_spill] sm:$0xff] %v21543_v12  ;;  %24576 = vst [vmem:[#allocation91_spill] sm:$0xff] %v21545_v0  ;;  %v24580_v51 = vand.u32 4294901760, %v21258_v62  ;;  %v21570_v57 = vpack.c.bf16 %v2359_v16, %v2347_v9  ;;  %v2371_v42 = vand.u32 4294901760, %v2370_v31  ;;  %v2383_v14 = vand.u32 4294901760, %v2382_v55  ;;  %16830 = vmatpush1.bf16.msra.mxu1 %v21543_v12 }
  0xde   :  { %v21550_v29 = vsub.f32 %v21251_v27, %v24577_v49  ;;  %v21563_v21 = vsub.f32 %v21255_v58, %v24579_v6  ;;  %v24582_v49 = vand.u32 4294901760, %v21499_v1  ;;  %v21575_v60 = vpack.c.bf16 %v2377_v10, %v2365_v24  ;;  %16832 = vmatprep.subr.bf16.mxu1 %v21545_v0 }
  0xdf   :  { %v21568_v27 = vsub.f32 %v21258_v62, %v24580_v51  ;;  %24581 = vst [vmem:[#allocation92_spill] sm:$0xff] %v21570_v57  ;;  %v2389_v54 = vand.u32 4294901760, %v2388_v37  ;;  %v2401_v25 = vand.u32 4294901760, %v2400_v4  ;;  %v24584_v58 = vand.u32 4294901760, %v21511_v38 }
  0xe0   :  { %v2394_v46 = vsub.f32 %v21499_v1, %v24582_v49  ;;  %24583 = vst [vmem:[#allocation93_spill] sm:$0xff] %v21575_v60  ;;  %v24191_v62 = vand.u32 4294901760, %v21550_v29  ;;  %v24192_v16 = vand.u32 4294901760, %v21555_v40  ;;  %v24585_v9 = vand.u32 4294901760, %v21260_v30 }
  0xe1   :  { %v2406_v6 = vsub.f32 %v21511_v38, %v24584_v58  ;;  %v24586_v24 = vand.u32 4294901760, %v21262_v28  ;;  %v24587_v10 = vand.u32 4294901760, %v21521_v13  ;;  %v24588_v4 = vand.u32 4294901760, %v21526_v33  ;;  %16834 = vmatpush1.bf16.msra.mxu1 %v21570_v57 }
  0xe2   :  { %v21586_v31 = vsub.f32 %v21260_v30, %v24585_v9  ;;  %v21602_v58 = vpack.c.bf16 %v2383_v14, %v2371_v42  ;;  %v21604_v9 = vpack.c.bf16 %v2401_v25, %v2389_v54  ;;  %16836 = vmatprep.subr.bf16.mxu1 %v21575_v60  ;;  %v24592_v14 = vand.u32 4294901760, %v21568_v27 }
  0xe3   :  { %v21591_v55 = vsub.f32 %v21262_v28, %v24586_v24  ;;  %v2412_v37 = vsub.f32 %v21521_v13, %v24587_v10  ;;  %v2424_v51 = vsub.f32 %v21526_v33, %v24588_v4  ;;  %v2395_v28 = vand.u32 4294901760, %v2394_v46 }
  0xe4   :  { %24589 = vst [vmem:[#allocation94_spill] sm:$0xff] %v21602_v58  ;;  %24590 = vst [vmem:[#allocation95_spill] sm:$0xff] %v21604_v9  ;;  %v2407_v24 = vand.u32 4294901760, %v2406_v6  ;;  %v2418_v10 = vsub.f32 %v21550_v29, %v24191_v62  ;;  %v2430_v4 = vsub.f32 %v21555_v40, %v24192_v16  ;;  %v24591_v46 = vand.u32 4294901760, %v21563_v21 }
  0xe5   :  { %v2413_v25 = vand.u32 4294901760, %v2412_v37  ;;  %v2425_v54 = vand.u32 4294901760, %v2424_v51  ;;  %v2448_v6 = vsub.f32 %v21568_v27, %v24592_v14  ;;  %16838 = vmatpush1.bf16.msra.mxu1 %v21602_v58  ;;  %v24594_v30 = vand.u32 4294901760, %v21586_v31 }
  0xe6   :  { %v2436_v42 = vsub.f32 %v21563_v21, %v24591_v46  ;;  %v21622_v62 = vpack.c.bf16 %v2407_v24, %v2395_v28  ;;  %v2419_v16 = vand.u32 4294901760, %v2418_v10  ;;  %v2431_v49 = vand.u32 4294901760, %v2430_v4  ;;  %16840 = vmatprep.subr.bf16.mxu1 %v21604_v9 }
  0xe7   :  { %v2442_v60 = vsub.f32 %v21586_v31, %v24594_v30  ;;  %v24595_v37 = vand.u32 4294901760, %v21591_v55  ;;  %v21632_v46 = vpack.c.bf16 %v2425_v54, %v2413_v25  ;;  %v2449_v14 = vand.u32 4294901760, %v2448_v6 }
  0xe8   :  { %24593 = vst [vmem:[#allocation96_spill] sm:$0xff] %v21622_v62  ;;  %v2437_v57 = vand.u32 4294901760, %v2436_v42  ;;  %v21635_v28 = vpack.c.bf16 %v2431_v49, %v2419_v16  ;;  %v21646_v25 = vpack.c.bf16 %v21211_v53, %v21206_v47  ;;  %v21662_v16 = vpack.c.bf16 %v21302_v48, %v21288_v19 }
  0xe9   :  { %v2454_v51 = vsub.f32 %v21591_v55, %v24595_v37  ;;  %24596 = vst [vmem:[#allocation97_spill] sm:$0xff] %v21632_v46  ;;  %16842 = vmatpush1.bf16.msra.mxu1 %v21622_v62  ;;  %v2443_v24 = vand.u32 4294901760, %v2442_v60  ;;  %v21651_v60 = vpack.c.bf16 %v21224_v52, %v21219_v59  ;;  %v21668_v49 = vpack.c.bf16 %v21348_v44, %v21324_v18 }
  0xea   :  { %24597 = vst [vmem:[#allocation98_spill] sm:$0xff] %v21635_v28  ;;  %16844 = vmatprep.subr.bf16.mxu1 %v21632_v46  ;;  %v21638_v4 = vpack.c.bf16 %v2449_v14, %v2437_v57  ;;  %24600 = vst [vmem:[#allocation101_spill] sm:$0xff] %v21646_v25  ;;  %v21656_v57 = vpack.c.bf16 %v21274_v63, %v21269_v8  ;;  %v21673_v54 = vpack.c.bf16 %v21386_v36, %v21367_v26  ;;  %v24623_v46 = vld [vmem:[#allocation80_spill] sm:$0xff] }
  0xeb   :  { %v2455_v10 = vand.u32 4294901760, %v2454_v51  ;;  %24601 = vst [vmem:[#allocation102_spill] sm:$0xff] %v21651_v60  ;;  %24603 = vst [vmem:[#allocation104_spill] sm:$0xff] %v21662_v16  ;;  %v21678_v42 = vpack.c.bf16 %v21396_v50, %v21391_v34  ;;  %v21683_v6 = vpack.c.bf16 %v21411_v15, %v21406_v41  ;;  %v21688_v37 = vpack.c.bf16 %v21430_v45, %v21419_v56 }
  0xec   :  { %24598 = vst [vmem:[#allocation99_spill] sm:$0xff] %v21638_v4  ;;  %24602 = vst [vmem:[#allocation103_spill] sm:$0xff] %v21656_v57  ;;  %v21693_v51 = vpack.c.bf16 %v21457_v43, %v21452_v17  ;;  %v21698_v14 = vpack.c.bf16 %v21469_v32, %v21464_v20 }
  0xed   :  { %16846 = vmatpush1.bf16.msra.mxu1 %v21635_v28  ;;  %v21641_v30 = vpack.c.bf16 %v2455_v10, %v2443_v24  ;;  %24604 = vst [vmem:[#allocation105_spill] sm:$0xff] %v21668_v49  ;;  %24605 = vst [vmem:[#allocation106_spill] sm:$0xff] %v21673_v54  ;;  %v21703_v24 = vpack.c.bf16 %v21511_v38, %v21499_v1  ;;  %v21708_v10 = vpack.c.bf16 %v21526_v33, %v21521_v13 }
  0xee   :  { %16848 = vmatprep.subr.bf16.mxu1 %v21638_v4  ;;  %24606 = vst [vmem:[#allocation107_spill] sm:$0xff] %v21678_v42  ;;  %24607 = vst [vmem:[#allocation108_spill] sm:$0xff] %v21683_v6 }
  0xef   :  { %24599 = vst [vmem:[#allocation100_spill] sm:$0xff] %v21641_v30  ;;  %24608 = vst [vmem:[#allocation109_spill] sm:$0xff] %v21688_v37 }
  0xf0   :  { %24609 = vst [vmem:[#allocation110_spill] sm:$0xff] %v21693_v51  ;;  %24610 = vst [vmem:[#allocation111_spill] sm:$0xff] %v21698_v14 }
  0xf1   :  { %16850 = vmatpush1.bf16.msra.mxu1 %v21641_v30  ;;  %24611 = vst [vmem:[#allocation112_spill] sm:$0xff] %v21703_v24  ;;  %24612 = vst [vmem:[#allocation113_spill] sm:$0xff] %v21708_v10  ;;  %v24622_v30 = vld [vmem:[#allocation79_spill] sm:$0xff] }
  0xf2   :  { %16852 = vmatprep.subr.bf16.mxu1 %v21646_v25 }
  0xf4   :  { %2490 = vmatmul.mubr.f32.vlgmr.msra.gmra.mrb[6].mxu1 %v24413_v61 }
  0xf5   :  { %16854 = vmatpush1.bf16.msra.mxu1 %v21651_v60  ;;  %2624 = vmatprep.mubr.f32.mxu1 %v24413_v61 }
  0xf6   :  { %16856 = vmatprep.subr.bf16.mxu1 %v21656_v57  ;;  %v24621_v57 = vld [vmem:[#allocation78_spill] sm:$0xff] }
  0xf9   :  { %16858 = vmatpush1.bf16.msra.mxu1 %v21662_v16 }
  0xfa   :  { %16860 = vmatprep.subr.bf16.mxu1 %v21668_v49 }
  0xfd   :  { %16862 = vmatpush1.bf16.msra.mxu1 %v21673_v54  ;;  %v49_v54 = vld [vmem:[%s23983_s3] sm:$0xf] }
  0xfe   :  { %16864 = vmatprep.subr.bf16.mxu1 %v21678_v42  ;;  %v24620_v42 = vld [vmem:[#allocation77_spill] sm:$0xff] }
 0x101   :  { %16866 = vmatpush1.bf16.msra.mxu1 %v21683_v6 }
 0x102   :  { %16868 = vmatprep.subr.bf16.mxu1 %v21688_v37  ;;  %v21713_v37 = vpack.c.bf16 %v21555_v40, %v21550_v29 }
 0x104   :  { %24613 = vst [vmem:[#allocation114_spill] sm:$0xff] %v21713_v37 }
 0x105   :  { %16870 = vmatpush1.bf16.msra.mxu1 %v21693_v51  ;;  %v21718_v51 = vpack.c.bf16 %v21568_v27, %v21563_v21 }
 0x106   :  { %16872 = vmatprep.subr.bf16.mxu1 %v21698_v14  ;;  %v21723_v14 = vpack.c.bf16 %v21591_v55, %v21586_v31 }
 0x107   :  { %24614 = vst [vmem:[#allocation115_spill] sm:$0xff] %v21718_v51 }
 0x108   :  { %24615 = vst [vmem:[#allocation116_spill] sm:$0xff] %v21723_v14 }
 0x109   :  { %16874 = vmatpush1.bf16.msra.mxu1 %v21703_v24  ;;  %v24618_v24 = vld [vmem:[#allocation76_spill] sm:$0xff] }
 0x10a   :  { %16876 = vmatprep.subr.bf16.mxu1 %v21708_v10  ;;  %v24617_v10 = vld [vmem:[#allocation75_spill] sm:$0xff] }
 0x10d   :  { %16878 = vmatpush1.bf16.msra.mxu1 %v21713_v37  ;;  %v24616_v37 = vld [vmem:[#allocation74_spill] sm:$0xff] }
 0x10e   :  { %16880 = vmatprep.subr.bf16.mxu1 %v21718_v51  ;;  %v24619_v51 = vld [vmem:[#allocation8_spill] sm:$0xff] }
 0x10f   :  { %v61_v6 = vsub.s32 2, %v24619_v51  ;;  %v57_v49 = vsub.s32 1, %v24619_v51  ;;  %v65_v16 = vsub.s32 3, %v24619_v51 }
 0x111   :  { %16882 = vmatpush1.bf16.msra.mxu1 %v21723_v14  ;;  %v53_v14 = vsub.s32 0, %v24619_v51  ;;  %v62_v25 = vrot.slane %v49_v54, %v61_v6  ;;  %v58_v4 = vrot.slane %v49_v54, %v57_v49  ;;  %v66_v28 = vrot.slane %v49_v54, %v65_v16  ;;  %v24624_v51 = vld [vmem:[#allocation81_spill] sm:$0xff] }
 0x112   :  { %16884 = vmatprep.subr.bf16.mxu1 %v21096_v22 }
 0x113   :  { %v54_v60 = vrot.slane %v49_v54, %v53_v14 }
 0x114   :  { %2625 = vmatmul.mubr.f32.vlgmr.msra.gmra.mrb[6].mxu1 %v24413_v61 }
 0x115   :  { %16886 = vmatpush1.bf16.msra.mxu1 %v21114_v35  ;;  %2727 = vmatprep.mubr.f32.mxu1 %v24413_v61 }
 0x116   :  { %16888 = vmatprep.subr.bf16.mxu1 %v21123_v7 }
 0x119   :  { %16890 = vmatpush1.bf16.msra.mxu1 %v21143_v2 }
 0x11a   :  { %16892 = vmatprep.subr.bf16.mxu1 %v24616_v37 }
 0x11d   :  { %16894 = vmatpush1.bf16.msra.mxu1 %v24617_v10 }
 0x11e   :  { %16896 = vmatprep.subr.bf16.mxu1 %v24618_v24 }
 0x121   :  { %16898 = vmatpush1.bf16.msra.mxu1 %v24620_v42 }
 0x122   :  { %16900 = vmatprep.subr.bf16.mxu1 %v24621_v57 }
 0x125   :  { %16902 = vmatpush1.bf16.msra.mxu1 %v24622_v30 }
 0x126   :  { %16904 = vmatprep.subr.bf16.mxu1 %v24623_v46  ;;  %v633_v62 = vpop.f32.mrb[0].mxu0  ;;  %v1147_v9 = vpop.f32.mrb[0].mxu1 }
 0x127   :  { %v19859_v58 = vadd.f32 %v633_v62, %v54_v60  ;;  %v19863_v0 = vadd.f32 %v1147_v9, %v62_v25  ;;  %v635_v12 = vpop.f32.mrb[1].mxu0  ;;  %v1149_v11 = vpop.f32.mrb[1].mxu1  ;;  %v24625_v62 = vld [vmem:[#allocation9_spill] sm:$0xff] }
 0x128   :  { %v19860_v42 = vadd.f32 %v635_v12, %v58_v4  ;;  %v19864_v24 = vadd.f32 %v1149_v11, %v66_v28 }
 0x129   :  { %16906 = vmatpush1.bf16.msra.mxu1 %v21331_v5 }
 0x12a   :  { %16908 = vmatprep.subr.bf16.mxu1 %v24624_v51  ;;  %v1167_v14 = vcombine.low %v19859_v58, %v19860_v42  ;;  %v1168_v6 = vcombine.high %v19859_v58, %v19860_v42  ;;  %v1169_v57 = vcombine.low %v19863_v0, %v19864_v24  ;;  %v1170_v30 = vcombine.high %v19863_v0, %v19864_v24  ;;  %v640_v49 = vpop.f32.mrb[2].mxu0  ;;  %v1154_v16 = vpop.f32.mrb[2].mxu1 }
 0x12b   :  { %v19861_v54 = vadd.f32 %v640_v49, %v54_v60  ;;  %v19865_v46 = vadd.f32 %v1154_v16, %v62_v25  ;;  %v642_v10 = vpop.f32.mrb[3].mxu0  ;;  %v1156_v37 = vpop.f32.mrb[3].mxu1  ;;  %v24628_v25 = vand.u32 4294901760, %v21206_v47  ;;  %v24629_v60 = vand.u32 4294901760, %v21211_v53 }
 0x12c   :  { %v21750_v9 = vrot.slane %v1167_v14, %v24625_v62  ;;  %v21753_v12 = vrot.slane %v1168_v6, %v24625_v62  ;;  %v21756_v11 = vrot.slane %v1169_v57, %v24625_v62  ;;  %v21759_v51 = vrot.slane %v1170_v30, %v24625_v62  ;;  %v24704_v30 = vld [vmem:[#allocation93_spill] sm:$0xff]  ;;  %v24705_v57 = vld [vmem:[#allocation51_spill] sm:$0xff] }
 0x12d   :  { %16910 = vmatpush1.bf16.msra.mxu1 %v21343_v23  ;;  %v19862_v0 = vadd.f32 %v642_v10, %v58_v4  ;;  %v19866_v58 = vadd.f32 %v1156_v37, %v66_v28  ;;  %v21767_v42 = vpack.c.bf16 %v24629_v60, %v24628_v25  ;;  %v24631_v53 = vand.u32 4294901760, %v21219_v59  ;;  %v24703_v28 = vld [vmem:[#allocation48_spill] sm:$0xff] }
 0x12e   :  { %24626 = vst [vmem:[#allocation8_spill] sm:$0xff] %v21753_v12  ;;  %24627 = vst [vmem:[#allocation9_spill] sm:$0xff] %v21759_v51  ;;  %16912 = vmatprep.subr.bf16.mxu1 %v21355_v39  ;;  %v1199_v24 = vcombine.low %v21750_v9, %v21756_v11  ;;  %v24632_v14 = vand.u32 4294901760, %v21224_v52  ;;  %v24634_v49 = vand.u32 4294901760, %v21269_v8  ;;  %v24635_v16 = vand.u32 4294901760, %v21274_v63  ;;  %v24702_v8 = vld [vmem:[#allocation92_spill] sm:$0xff] }
 0x12f   :  { %24630 = vst [vmem:[#allocation117_spill] sm:$0xff] %v21767_v42  ;;  %v1203_v4 = vcombine.low %v19861_v54, %v19862_v0  ;;  %v1204_v37 = vcombine.high %v19861_v54, %v19862_v0  ;;  %v1205_v10 = vcombine.low %v19865_v46, %v19866_v58  ;;  %v1206_v47 = vcombine.high %v19865_v46, %v19866_v58  ;;  %v24710_v51 = vld [vmem:[#allocation96_spill] sm:$0xff]  ;;  %v24711_v12 = vld [vmem:[#allocation55_spill] sm:$0xff] }
 0x130   :  { %v21782_v6 = vpack.c.bf16 %v24632_v14, %v24631_v53  ;;  %v21788_v25 = vpack.c.bf16 %v24635_v16, %v24634_v49  ;;  %v24641_v58 = vand.u32 4294901760, %v21288_v19  ;;  %v24647_v14 = vand.u32 4294901760, %v21367_v26 }
 0x131   :  { %16914 = vmatpush1.bf16.msra.mxu1 %v21361_v3  ;;  %v21791_v60 = vrot.slane %v1203_v4, %v24625_v62  ;;  %v21794_v54 = vrot.slane %v1204_v37, %v24625_v62  ;;  %v21797_v46 = vrot.slane %v1205_v10, %v24625_v62  ;;  %v21800_v59 = vrot.slane %v1206_v47, %v24625_v62 }
 0x132   :  { %24633 = vst [vmem:[#allocation118_spill] sm:$0xff] %v21782_v6  ;;  %24636 = vst [vmem:[#allocation119_spill] sm:$0xff] %v21788_v25  ;;  %16916 = vmatprep.subr.bf16.mxu1 %v21767_v42  ;;  %v24642_v4 = vand.u32 4294901760, %v21302_v48  ;;  %v24644_v10 = vand.u32 4294901760, %v21324_v18  ;;  %v24645_v47 = vand.u32 4294901760, %v21348_v44  ;;  %v24648_v19 = vand.u32 4294901760, %v21386_v36 }
 0x133   :  { %24637 = vst [vmem:[#allocation120_spill] sm:$0xff] %v21791_v60  ;;  %24638 = vst [vmem:[#allocation121_spill] sm:$0xff] %v21794_v54  ;;  %v24650_v48 = vand.u32 4294901760, %v21391_v34  ;;  %v24651_v16 = vand.u32 4294901760, %v21396_v50  ;;  %v24653_v44 = vand.u32 4294901760, %v21406_v41  ;;  %v24654_v18 = vand.u32 4294901760, %v21411_v15 }
 0x134   :  { %24639 = vst [vmem:[#allocation122_spill] sm:$0xff] %v21797_v46  ;;  %24640 = vst [vmem:[#allocation123_spill] sm:$0xff] %v21800_v59  ;;  %2728 = vmatmul.mubr.f32.vlgmr.msra.gmra.mrb[6].mxu1 %v24413_v61  ;;  %v21817_v37 = vpack.c.bf16 %v24642_v4, %v24641_v58  ;;  %v21825_v53 = vpack.c.bf16 %v24645_v47, %v24644_v10  ;;  %v21832_v49 = vpack.c.bf16 %v24648_v19, %v24647_v14  ;;  %v24706_v59 = vld [vmem:[#allocation94_spill] sm:$0xff]  ;;  %v24707_v54 = vld [vmem:[#allocation52_spill] sm:$0xff] }
 0x135   :  { %16918 = vmatpush1.bf16.msra.mxu1 %v21782_v6  ;;  %2894 = vmatprep.mubr.f32.mxu1 %v24413_v61  ;;  %v21839_v58 = vpack.c.bf16 %v24651_v16, %v24650_v48  ;;  %v21846_v4 = vpack.c.bf16 %v24654_v18, %v24653_v44  ;;  %v24656_v26 = vand.u32 4294901760, %v21419_v56  ;;  %v24657_v36 = vand.u32 4294901760, %v21430_v45  ;;  %v24708_v46 = vld [vmem:[#allocation95_spill] sm:$0xff]  ;;  %v24709_v60 = vld [vmem:[#allocation53_spill] sm:$0xff] }
 0x136   :  { %24643 = vst [vmem:[#allocation124_spill] sm:$0xff] %v21817_v37  ;;  %16920 = vmatprep.subr.bf16.mxu1 %v21788_v25  ;;  %24646 = vst [vmem:[#allocation125_spill] sm:$0xff] %v21825_v53  ;;  %v24659_v34 = vand.u32 4294901760, %v21452_v17  ;;  %v24660_v50 = vand.u32 4294901760, %v21457_v43  ;;  %v24662_v41 = vand.u32 4294901760, %v21464_v20  ;;  %v24663_v15 = vand.u32 4294901760, %v21469_v32 }
 0x137   :  { %24649 = vst [vmem:[#allocation126_spill] sm:$0xff] %v21832_v49  ;;  %24652 = vst [vmem:[#allocation127_spill] sm:$0xff] %v21839_v58  ;;  %v21853_v10 = vpack.c.bf16 %v24657_v36, %v24656_v26  ;;  %v24665_v56 = vand.u32 4294901760, %v21499_v1  ;;  %v24666_v45 = vand.u32 4294901760, %v21511_v38  ;;  %v24668_v43 = vand.u32 4294901760, %v21521_v13  ;;  %v24686_v26 = vld [vmem:[#allocation80_spill] sm:$0xff] }
 0x138   :  { %24655 = vst [vmem:[#allocation128_spill] sm:$0xff] %v21846_v4  ;;  %v21860_v47 = vpack.c.bf16 %v24660_v50, %v24659_v34  ;;  %v21867_v14 = vpack.c.bf16 %v24663_v15, %v24662_v41  ;;  %v24669_v17 = vand.u32 4294901760, %v21526_v33  ;;  %v24671_v20 = vand.u32 4294901760, %v21550_v29  ;;  %v24680_v29 = vld [vmem:[#allocation74_spill] sm:$0xff]  ;;  %v24687_v36 = vld [vmem:[#allocation81_spill] sm:$0xff] }
 0x139   :  { %16922 = vmatpush1.bf16.msra.mxu1 %v21817_v37  ;;  %24658 = vst [vmem:[#allocation129_spill] sm:$0xff] %v21853_v10  ;;  %v21874_v19 = vpack.c.bf16 %v24666_v45, %v24665_v56  ;;  %v24672_v32 = vand.u32 4294901760, %v21555_v40  ;;  %v24674_v38 = vand.u32 4294901760, %v21563_v21  ;;  %v24675_v1 = vand.u32 4294901760, %v21568_v27  ;;  %v24681_v40 = vld [vmem:[#allocation75_spill] sm:$0xff]  ;;  %v24682_v21 = vld [vmem:[#allocation76_spill] sm:$0xff] }
 0x13a   :  { %16924 = vmatprep.subr.bf16.mxu1 %v21825_v53  ;;  %24661 = vst [vmem:[#allocation130_spill] sm:$0xff] %v21860_v47  ;;  %24664 = vst [vmem:[#allocation131_spill] sm:$0xff] %v21867_v14  ;;  %v21881_v48 = vpack.c.bf16 %v24669_v17, %v24668_v43  ;;  %v24677_v13 = vand.u32 4294901760, %v21586_v31  ;;  %v24678_v33 = vand.u32 4294901760, %v21591_v55  ;;  %v24683_v27 = vld [vmem:[#allocation77_spill] sm:$0xff]  ;;  %v24684_v31 = vld [vmem:[#allocation78_spill] sm:$0xff] }
 0x13b   :  { %24667 = vst [vmem:[#allocation132_spill] sm:$0xff] %v21874_v19  ;;  %v21888_v16 = vpack.c.bf16 %v24672_v32, %v24671_v20  ;;  %v21895_v44 = vpack.c.bf16 %v24675_v1, %v24674_v38  ;;  %v24685_v55 = vld [vmem:[#allocation79_spill] sm:$0xff]  ;;  %v24688_v17 = vld [vmem:[#allocation85_spill] sm:$0xff] }
 0x13c   :  { %24670 = vst [vmem:[#allocation133_spill] sm:$0xff] %v21881_v48  ;;  %v21902_v18 = vpack.c.bf16 %v24678_v33, %v24677_v13 }
 0x13d   :  { %16926 = vmatpush1.bf16.msra.mxu1 %v21832_v49  ;;  %24673 = vst [vmem:[#allocation134_spill] sm:$0xff] %v21888_v16  ;;  %24676 = vst [vmem:[#allocation135_spill] sm:$0xff] %v21895_v44 }
 0x13e   :  { %16928 = vmatprep.subr.bf16.mxu1 %v21839_v58  ;;  %24679 = vst [vmem:[#allocation136_spill] sm:$0xff] %v21902_v18 }
 0x141   :  { %16930 = vmatpush1.bf16.msra.mxu1 %v21846_v4 }
 0x142   :  { %16932 = vmatprep.subr.bf16.mxu1 %v21853_v10 }
 0x145   :  { %16934 = vmatpush1.bf16.msra.mxu1 %v21860_v47 }
 0x146   :  { %16936 = vmatprep.subr.bf16.mxu1 %v21867_v14 }
 0x149   :  { %16938 = vmatpush1.bf16.msra.mxu1 %v21874_v19 }
 0x14a   :  { %16940 = vmatprep.subr.bf16.mxu1 %v21881_v48 }
 0x14d   :  { %16942 = vmatpush1.bf16.msra.mxu1 %v21888_v16 }
 0x14e   :  { %16944 = vmatprep.subr.bf16.mxu1 %v21895_v44 }
 0x151   :  { %16946 = vmatpush1.bf16.msra.mxu1 %v21902_v18 }
 0x152   :  { %16948 = vmatprep.subr.bf16.mxu1 %v21096_v22 }
 0x154   :  { %2895 = vmatmul.mubr.f32.vlgmr.msra.gmra.mrb[6].mxu1 %v24413_v61 }
 0x155   :  { %16950 = vmatpush1.bf16.msra.mxu1 %v21114_v35  ;;  %2997 = vmatprep.mubr.f32.mxu1 %v24413_v61 }
 0x156   :  { %16952 = vmatprep.subr.bf16.mxu1 %v21123_v7 }
 0x159   :  { %16954 = vmatpush1.bf16.msra.mxu1 %v21143_v2 }
 0x15a   :  { %16956 = vmatprep.subr.bf16.mxu1 %v24680_v29 }
 0x15d   :  { %16958 = vmatpush1.bf16.msra.mxu1 %v24681_v40 }
 0x15e   :  { %16960 = vmatprep.subr.bf16.mxu1 %v24682_v21 }
 0x161   :  { %16962 = vmatpush1.bf16.msra.mxu1 %v24683_v27 }
 0x162   :  { %16964 = vmatprep.subr.bf16.mxu1 %v24684_v31 }
 0x165   :  { %16966 = vmatpush1.bf16.msra.mxu1 %v24685_v55 }
 0x166   :  { %16968 = vmatprep.subr.bf16.mxu1 %v24686_v26 }
 0x169   :  { %16970 = vmatpush1.bf16.msra.mxu1 %v21331_v5 }
 0x16a   :  { %16972 = vmatprep.subr.bf16.mxu1 %v24687_v36 }
 0x16d   :  { %16974 = vmatpush1.bf16.msra.mxu1 %v21343_v23 }
 0x16e   :  { %16976 = vmatprep.subr.bf16.mxu1 %v21355_v39 }
 0x171   :  { %16978 = vmatpush1.bf16.msra.mxu1 %v21361_v3 }
 0x172   :  { %17172 = vmatprep.subr.bf16.mxu1 %v21096_v22 }
 0x174   :  { %2998 = vmatmul.mubr.f32.vlgmr.msra.gmra.mrb[6].mxu1 %v24413_v61 }
 0x175   :  { %17174 = vmatpush1.bf16.msra.mxu1 %v21114_v35  ;;  %4012 = vmatprep.mubr.f32.mxu1 %v24413_v61 }
 0x176   :  { %17176 = vmatprep.subr.bf16.mxu1 %v21123_v7 }
 0x179   :  { %17178 = vmatpush1.bf16.msra.mxu1 %v21143_v2 }
 0x17a   :  { %17180 = vmatprep.subr.bf16.mxu1 %v24680_v29 }
 0x17d   :  { %17182 = vmatpush1.bf16.msra.mxu1 %v24681_v40 }
 0x17e   :  { %17184 = vmatprep.subr.bf16.mxu1 %v24682_v21 }
 0x181   :  { %17186 = vmatpush1.bf16.msra.mxu1 %v24683_v27 }
 0x182   :  { %17188 = vmatprep.subr.bf16.mxu1 %v24684_v31 }
 0x185   :  { %17190 = vmatpush1.bf16.msra.mxu1 %v24685_v55 }
 0x186   :  { %17192 = vmatprep.subr.bf16.mxu1 %v24686_v26  ;;  %v1784_v34 = vpop.f32.mrb[4].mxu1  ;;  %v2157_v50 = vpop.f32.mrb[4].mxu0 }
 0x187   :  { %v19867_v41 = vadd.f32 %v2157_v50, %v1784_v34  ;;  %v1786_v15 = vpop.f32.mrb[5].mxu1  ;;  %v2159_v56 = vpop.f32.mrb[5].mxu0 }
 0x188   :  { %v19868_v45 = vadd.f32 %v2159_v56, %v1786_v15 }
 0x189   :  { %17194 = vmatpush1.bf16.msra.mxu1 %v21331_v5 }
 0x18a   :  { %17196 = vmatprep.subr.bf16.mxu1 %v24687_v36  ;;  %v3008_v43 = vcombine.low %v19867_v41, %v19868_v45 }
 0x18c   :  { %v3016_v1 = vrot.slane %v3008_v43, %v24625_v62 }
 0x18d   :  { %17198 = vmatpush1.bf16.msra.mxu1 %v21343_v23 }
 0x18e   :  { %17200 = vmatprep.subr.bf16.mxu1 %v21355_v39 }
 0x191   :  { %17202 = vmatpush1.bf16.msra.mxu1 %v21361_v3 }
 0x192   :  { %17204 = vmatprep.subr.bf16.mxu1 %v24688_v17 }
 0x247   :  { %v2999_v20 = vpop.f32.mrb[6].mxu1 }
 0x248   :  { %v3001_v32 = vpop.f32.mrb[7].mxu1 }
 0x249   :  { %v3009_v38 = vcombine.low %v2999_v20, %v3001_v32 }
 0x24b   :  { %v3023_v13 = vrot.slane %v3009_v38, %v24625_v62 }
 0x24d   :  { %v3024_v33 = vcombine.low %v3016_v1, %v3023_v13 }
 0x24f   :  { %v3026_v34 = vadd.f32 %v3024_v33, %v1199_v24 }
 0x251   :  { %v16252_v50 = vmul.f32 -1.442695, %v3026_v34  ;;  %v3034_v41 = vrot.slane %v3026_v34, 2  ;;  %v3045_v56 = vrot.slane %v3026_v34, 6  ;;  %v3042_v52 = vrot.slane %v3026_v34, 4 }
 0x253   :  { %20086 = vpow2.f32 %v16252_v50  ;;  %v16253_v15 = vmul.f32 -1.442695, %v3034_v41  ;;  %v16254_v45 = vmul.f32 -1.442695, %v3045_v56 }
 0x255   :  { %20088 = vpow2.f32 %v16253_v15 }
 0x256   :  { %20090 = vpow2.f32 %v16254_v45 }
 0x25d   :  { %v20087_v0 = vpop.eup %20086 }
 0x25e   :  { %v3030_v63 = vadd.f32 1.0, %v20087_v0 }
 0x25f   :  { %v20089_v20 = vpop.eup %20088 }
 0x260   :  { %20092 = vrcp.f32 %v3030_v63  ;;  %v3039_v43 = vadd.f32 1.0, %v20089_v20  ;;  %v20091_v32 = vpop.eup %20090 }
 0x261   :  { %20094 = vtanh.f32 %v3042_v52  ;;  %v3050_v13 = vadd.f32 1.0, %v20091_v32  ;;  %v24690_v32 = vld [vmem:[#allocation86_spill] sm:$0xff] }
 0x262   :  { %20096 = vrcp.f32 %v3039_v43  ;;  %v24689_v43 = vld [vmem:[#allocation35_spill] sm:$0xff] }
 0x263   :  { %20098 = vrcp.f32 %v3050_v13  ;;  %v24694_v13 = vld [vmem:[#allocation88_spill] sm:$0xff] }
 0x26a   :  { %v20093_v38 = vpop.eup %20092 }
 0x26b   :  { %v20095_v1 = vpop.eup %20094 }
 0x26c   :  { %v20097_v24 = vpop.eup %20096  ;;  %v3054_v50 = vmul.f32 %v20095_v1, %v20093_v38  ;;  %v24691_v38 = vld [vmem:[#allocation36_spill] sm:$0xff]  ;;  %v24692_v1 = vld [vmem:[#allocation87_spill] sm:$0xff] }
 0x26d   :  { %v3053_v33 = vmul.f32 0.0, %v20097_v24  ;;  %v20099_v34 = vpop.eup %20098  ;;  %v24693_v24 = vld [vmem:[#allocation37_spill] sm:$0xff] }
 0x26f   :  { %v21948_v41 = vadd.f32 %v3054_v50, %v3053_v33  ;;  %v24695_v33 = vld [vmem:[#allocation42_spill] sm:$0xff]  ;;  %v24696_v50 = vld [vmem:[#allocation89_spill] sm:$0xff] }
 0x271   :  { %20100 = vtanh.f32 %v21948_v41 }
 0x27b   :  { %v20101_v0 = vpop.eup %20100 }
 0x27c   :  { %v3057_v15 = vmul.f32 %v20101_v0, %v20099_v34  ;;  %v24697_v34 = vld [vmem:[#allocation43_spill] sm:$0xff]  ;;  %v24698_v0 = vld [vmem:[#allocation90_spill] sm:$0xff] }
 0x27e   :  { %3058 = vst [vmem:[#allocation3] sm:$0x3] %v3057_v15  ;;  %v21951_v63 = vand.u32 4294901760, %v3057_v15 }
 0x280   :  { %v21954_v52 = vsub.f32 %v3057_v15, %v21951_v63  ;;  %v24699_v15 = vld [vmem:[#allocation45_spill] sm:$0xff] }
 0x282   :  { %v21957_v56 = vand.u32 4294901760, %v21954_v52 }
 0x284   :  { %v3161_v45 = vsub.f32 %v21954_v52, %v21957_v56 }
 0x286   :  { %v3162_v20 = vand.u32 4294901760, %v3161_v45  ;;  %v24700_v45 = vld [vmem:[#allocation91_spill] sm:$0xff] }
 0x288   :  { %3163 = vmatmul.mubr.f32.vlgmr.msra.gmra.mrb[6].mxu0 %v3162_v20  ;;  %4018 = vmatmul.mubr.f32.vlgmr.msra.gmra.mrb[8].mxu1 %v3162_v20  ;;  %v24701_v20 = vld [vmem:[#allocation47_spill] sm:$0xff] }
 0x289   :  { %17014 = vmatpush1.bf16.msra.mxu0 %v24689_v43  ;;  %17206 = vmatpush1.bf16.msra.mxu1 %v24690_v32 }
 0x28a   :  { %17016 = vmatprep.subr.bf16.mxu0 %v24691_v38  ;;  %17208 = vmatprep.subr.bf16.mxu1 %v24692_v1 }
 0x28b   :  { %3393 = vmatprep.mubr.f32.mxu0 %v24413_v61  ;;  %4248 = vmatprep.mubr.f32.mxu1 %v24413_v61 }
 0x28d   :  { %17018 = vmatpush1.bf16.msra.mxu0 %v24693_v24  ;;  %17210 = vmatpush1.bf16.msra.mxu1 %v24694_v13  ;;  %v24769_v13 = vld [vmem:[#allocation33_spill] sm:$0xff]  ;;  %v24770_v24 = vld [vmem:[#allocation38_spill] sm:$0xff] }
 0x28e   :  { %17020 = vmatprep.subr.bf16.mxu0 %v24695_v33  ;;  %17212 = vmatprep.subr.bf16.mxu1 %v24696_v50  ;;  %v24767_v50 = vld [vmem:[#allocation29_spill] sm:$0xff]  ;;  %v24768_v33 = vld [vmem:[#allocation31_spill] sm:$0xff] }
 0x291   :  { %17022 = vmatpush1.bf16.msra.mxu0 %v24697_v34  ;;  %17214 = vmatpush1.bf16.msra.mxu1 %v24698_v0  ;;  %v24765_v0 = vld [vmem:[#allocation26_spill] sm:$0xff]  ;;  %v24766_v34 = vld [vmem:[#allocation27_spill] sm:$0xff] }
 0x292   :  { %17024 = vmatprep.subr.bf16.mxu0 %v24699_v15  ;;  %17216 = vmatprep.subr.bf16.mxu1 %v24700_v45  ;;  %v24763_v45 = vld [vmem:[#allocation24_spill] sm:$0xff]  ;;  %v24764_v15 = vld [vmem:[#allocation25_spill] sm:$0xff] }
 0x295   :  { %17026 = vmatpush1.bf16.msra.mxu0 %v24701_v20  ;;  %17218 = vmatpush1.bf16.msra.mxu1 %v24702_v8  ;;  %v24712_v20 = vld [vmem:[#allocation97_spill] sm:$0xff] }
 0x296   :  { %17028 = vmatprep.subr.bf16.mxu0 %v24703_v28  ;;  %17220 = vmatprep.subr.bf16.mxu1 %v24704_v30  ;;  %v24713_v8 = vld [vmem:[#allocation57_spill] sm:$0xff]  ;;  %v24714_v28 = vld [vmem:[#allocation98_spill] sm:$0xff]  ;;  %v24715_v30 = vld [vmem:[#allocation59_spill] sm:$0xff] }
 0x299   :  { %17030 = vmatpush1.bf16.msra.mxu0 %v24705_v57  ;;  %17222 = vmatpush1.bf16.msra.mxu1 %v24706_v59  ;;  %v24716_v57 = vld [vmem:[#allocation99_spill] sm:$0xff]  ;;  %v24717_v59 = vld [vmem:[#allocation61_spill] sm:$0xff] }
 0x29a   :  { %17032 = vmatprep.subr.bf16.mxu0 %v24707_v54  ;;  %17224 = vmatprep.subr.bf16.mxu1 %v24708_v46  ;;  %v24718_v54 = vld [vmem:[#allocation100_spill] sm:$0xff]  ;;  %v24719_v46 = vld [vmem:[#allocation63_spill] sm:$0xff] }
 0x29d   :  { %17034 = vmatpush1.bf16.msra.mxu0 %v24709_v60  ;;  %17226 = vmatpush1.bf16.msra.mxu1 %v24710_v51  ;;  %v24720_v60 = vld [vmem:[#allocation101_spill] sm:$0xff]  ;;  %v24735_v51 = vld [vmem:[#allocation34_spill] sm:$0xff] }
 0x29e   :  { %17036 = vmatprep.subr.bf16.mxu0 %v24711_v12  ;;  %17228 = vmatprep.subr.bf16.mxu1 %v24712_v20  ;;  %v24721_v20 = vld [vmem:[#allocation64_spill] sm:$0xff] }
 0x29f   :  { %v24734_v12 = vld [vmem:[#allocation108_spill] sm:$0xff] }
 0x2a1   :  { %17038 = vmatpush1.bf16.msra.mxu0 %v24713_v8  ;;  %17230 = vmatpush1.bf16.msra.mxu1 %v24714_v28  ;;  %v24722_v8 = vld [vmem:[#allocation102_spill] sm:$0xff]  ;;  %v24723_v28 = vld [vmem:[#allocation65_spill] sm:$0xff] }
 0x2a2   :  { %17040 = vmatprep.subr.bf16.mxu0 %v24715_v30  ;;  %17232 = vmatprep.subr.bf16.mxu1 %v24716_v57  ;;  %v24724_v30 = vld [vmem:[#allocation103_spill] sm:$0xff]  ;;  %v24729_v57 = vld [vmem:[#allocation28_spill] sm:$0xff] }
 0x2a5   :  { %17042 = vmatpush1.bf16.msra.mxu0 %v24717_v59  ;;  %17234 = vmatpush1.bf16.msra.mxu1 %v24718_v54  ;;  %v24725_v54 = vld [vmem:[#allocation20_spill] sm:$0xff]  ;;  %v24728_v59 = vld [vmem:[#allocation105_spill] sm:$0xff] }
 0x2a6   :  { %17044 = vmatprep.subr.bf16.mxu0 %v24719_v46  ;;  %17236 = vmatprep.subr.bf16.mxu1 %v24720_v60  ;;  %v24726_v46 = vld [vmem:[#allocation104_spill] sm:$0xff]  ;;  %v24727_v60 = vld [vmem:[#allocation21_spill] sm:$0xff] }
 0x2a8   :  { %3395 = vmatmul.mubr.f32.vlgmr.msra.gmra.mrb[6].mxu0 %v21951_v63  ;;  %4250 = vmatmul.mubr.f32.vlgmr.msra.gmra.mrb[8].mxu1 %v21951_v63 }
 0x2a9   :  { %17046 = vmatpush1.bf16.msra.mxu0 %v24721_v20  ;;  %17238 = vmatpush1.bf16.msra.mxu1 %v24722_v8  ;;  %v24730_v20 = vld [vmem:[#allocation106_spill] sm:$0xff] }
 0x2aa   :  { %17048 = vmatprep.subr.bf16.mxu0 %v24723_v28  ;;  %17240 = vmatprep.subr.bf16.mxu1 %v24724_v30  ;;  %v24731_v8 = vld [vmem:[#allocation30_spill] sm:$0xff]  ;;  %v24732_v28 = vld [vmem:[#allocation107_spill] sm:$0xff] }
 0x2ab   :  { %3529 = vmatprep.mubr.f32.mxu0 %v24413_v61  ;;  %4384 = vmatprep.mubr.f32.mxu1 %v24413_v61  ;;  %v24733_v30 = vld [vmem:[#allocation66_spill] sm:$0xff] }
 0x2ad   :  { %17050 = vmatpush1.bf16.msra.mxu0 %v24725_v54  ;;  %17242 = vmatpush1.bf16.msra.mxu1 %v24726_v46  ;;  %v24736_v54 = vld [vmem:[#allocation109_spill] sm:$0xff]  ;;  %v24737_v46 = vld [vmem:[#allocation67_spill] sm:$0xff] }
 0x2ae   :  { %17052 = vmatprep.subr.bf16.mxu0 %v24727_v60  ;;  %17244 = vmatprep.subr.bf16.mxu1 %v24728_v59  ;;  %v24738_v60 = vld [vmem:[#allocation110_spill] sm:$0xff]  ;;  %v24739_v59 = vld [vmem:[#allocation68_spill] sm:$0xff] }
 0x2b1   :  { %17054 = vmatpush1.bf16.msra.mxu0 %v24729_v57  ;;  %17246 = vmatpush1.bf16.msra.mxu1 %v24730_v20  ;;  %v24740_v57 = vld [vmem:[#allocation111_spill] sm:$0xff]  ;;  %v24741_v20 = vld [vmem:[#allocation69_spill] sm:$0xff] }
 0x2b2   :  { %17056 = vmatprep.subr.bf16.mxu0 %v24731_v8  ;;  %17248 = vmatprep.subr.bf16.mxu1 %v24732_v28  ;;  %v24742_v8 = vld [vmem:[#allocation112_spill] sm:$0xff]  ;;  %v24743_v28 = vld [vmem:[#allocation70_spill] sm:$0xff] }
 0x2b5   :  { %17058 = vmatpush1.bf16.msra.mxu0 %v24733_v30  ;;  %17250 = vmatpush1.bf16.msra.mxu1 %v24734_v12  ;;  %v24744_v30 = vld [vmem:[#allocation113_spill] sm:$0xff]  ;;  %v24745_v12 = vld [vmem:[#allocation71_spill] sm:$0xff] }
 0x2b6   :  { %17060 = vmatprep.subr.bf16.mxu0 %v24735_v51  ;;  %17252 = vmatprep.subr.bf16.mxu1 %v24736_v54  ;;  %v24746_v51 = vld [vmem:[#allocation114_spill] sm:$0xff]  ;;  %v24747_v54 = vld [vmem:[#allocation72_spill] sm:$0xff] }
 0x2b9   :  { %17062 = vmatpush1.bf16.msra.mxu0 %v24737_v46  ;;  %17254 = vmatpush1.bf16.msra.mxu1 %v24738_v60  ;;  %v24748_v46 = vld [vmem:[#allocation115_spill] sm:$0xff]  ;;  %v24749_v60 = vld [vmem:[#allocation73_spill] sm:$0xff] }
 0x2ba   :  { %17064 = vmatprep.subr.bf16.mxu0 %v24739_v59  ;;  %17256 = vmatprep.subr.bf16.mxu1 %v24740_v57  ;;  %v24750_v59 = vld [vmem:[#allocation116_spill] sm:$0xff]  ;;  %v24751_v57 = vld [vmem:[#allocation10_spill] sm:$0xff] }
 0x2bd   :  { %17066 = vmatpush1.bf16.msra.mxu0 %v24741_v20  ;;  %17258 = vmatpush1.bf16.msra.mxu1 %v24742_v8  ;;  %v24761_v8 = vld [vmem:[#allocation22_spill] sm:$0xff]  ;;  %v24762_v20 = vld [vmem:[#allocation23_spill] sm:$0xff] }
 0x2be   :  { %17068 = vmatprep.subr.bf16.mxu0 %v24743_v28  ;;  %17260 = vmatprep.subr.bf16.mxu1 %v24744_v30  ;;  %v24752_v30 = vld [vmem:[#allocation11_spill] sm:$0xff] }
 0x2bf   :  { %v24760_v28 = vld [vmem:[#allocation19_spill] sm:$0xff] }
 0x2c1   :  { %17070 = vmatpush1.bf16.msra.mxu0 %v24745_v12  ;;  %17262 = vmatpush1.bf16.msra.mxu1 %v24746_v51  ;;  %v24753_v51 = vld [vmem:[#allocation12_spill] sm:$0xff]  ;;  %v24759_v12 = vld [vmem:[#allocation18_spill] sm:$0xff] }
 0x2c2   :  { %17072 = vmatprep.subr.bf16.mxu0 %v24747_v54  ;;  %17264 = vmatprep.subr.bf16.mxu1 %v24748_v46  ;;  %v24757_v46 = vld [vmem:[#allocation16_spill] sm:$0xff]  ;;  %v24758_v54 = vld [vmem:[#allocation17_spill] sm:$0xff] }
 0x2c5   :  { %17074 = vmatpush1.bf16.msra.mxu0 %v24749_v60  ;;  %17266 = vmatpush1.bf16.msra.mxu1 %v24750_v59  ;;  %v24754_v59 = vld [vmem:[#allocation13_spill] sm:$0xff]  ;;  %v24755_v60 = vld [vmem:[#allocation14_spill] sm:$0xff] }
 0x2c6   :  { %17076 = vmatprep.subr.bf16.mxu0 %v24751_v57  ;;  %17268 = vmatprep.subr.bf16.mxu1 %v21096_v22 }
 0x2c8   :  { %3532 = vmatmul.mubr.f32.vlgmr.msra.gmra.mrb[6].mxu0 %v21954_v52  ;;  %4387 = vmatmul.mubr.f32.vlgmr.msra.gmra.mrb[8].mxu1 %v21954_v52  ;;  %v24756_v52 = vld [vmem:[#allocation15_spill] sm:$0xff] }
 0x2c9   :  { %17078 = vmatpush1.bf16.msra.mxu0 %v24752_v30  ;;  %17270 = vmatpush1.bf16.msra.mxu1 %v21114_v35 }
 0x2ca   :  { %17080 = vmatprep.subr.bf16.mxu0 %v24753_v51  ;;  %17272 = vmatprep.subr.bf16.mxu1 %v21123_v7 }
 0x2cb   :  { %3634 = vmatprep.mubr.f32.mxu0 %v24413_v61  ;;  %4489 = vmatprep.mubr.f32.mxu1 %v24413_v61 }
 0x2cd   :  { %17082 = vmatpush1.bf16.msra.mxu0 %v24754_v59  ;;  %17274 = vmatpush1.bf16.msra.mxu1 %v21143_v2 }
 0x2ce   :  { %17084 = vmatprep.subr.bf16.mxu0 %v24755_v60  ;;  %17276 = vmatprep.subr.bf16.mxu1 %v24680_v29 }
 0x2d1   :  { %17086 = vmatpush1.bf16.msra.mxu0 %v24756_v52  ;;  %17278 = vmatpush1.bf16.msra.mxu1 %v24681_v40 }
 0x2d2   :  { %17088 = vmatprep.subr.bf16.mxu0 %v24757_v46  ;;  %17280 = vmatprep.subr.bf16.mxu1 %v24682_v21 }
 0x2d5   :  { %17090 = vmatpush1.bf16.msra.mxu0 %v24758_v54  ;;  %17282 = vmatpush1.bf16.msra.mxu1 %v24683_v27 }
 0x2d6   :  { %17092 = vmatprep.subr.bf16.mxu0 %v24759_v12  ;;  %17284 = vmatprep.subr.bf16.mxu1 %v24684_v31 }
 0x2d9   :  { %17094 = vmatpush1.bf16.msra.mxu0 %v24760_v28  ;;  %17286 = vmatpush1.bf16.msra.mxu1 %v24685_v55 }
 0x2da   :  { %17096 = vmatprep.subr.bf16.mxu0 %v24761_v8  ;;  %17288 = vmatprep.subr.bf16.mxu1 %v24686_v26 }
 0x2dd   :  { %17098 = vmatpush1.bf16.msra.mxu0 %v24762_v20  ;;  %17290 = vmatpush1.bf16.msra.mxu1 %v21331_v5 }
 0x2de   :  { %17100 = vmatprep.subr.bf16.mxu0 %v24763_v45  ;;  %17292 = vmatprep.subr.bf16.mxu1 %v24687_v36 }
 0x2e1   :  { %17102 = vmatpush1.bf16.msra.mxu0 %v24764_v15  ;;  %17294 = vmatpush1.bf16.msra.mxu1 %v21343_v23 }
 0x2e2   :  { %17104 = vmatprep.subr.bf16.mxu0 %v24765_v0  ;;  %17296 = vmatprep.subr.bf16.mxu1 %v21355_v39 }
 0x2e5   :  { %17106 = vmatpush1.bf16.msra.mxu0 %v24766_v34  ;;  %17298 = vmatpush1.bf16.msra.mxu1 %v21361_v3 }
 0x2e6   :  { %17108 = vmatprep.subr.bf16.mxu0 %v24767_v50  ;;  %17300 = vmatprep.subr.bf16.mxu1 %v21767_v42  ;;  %v24771_v42 = vld [vmem:[#allocation39_spill] sm:$0xff] }
 0x2e8   :  { %3638 = vmatmul.mubr.f32.vlgmr.msra.gmra.mrb[6].mxu0 %v21957_v56  ;;  %4493 = vmatmul.mubr.f32.vlgmr.msra.gmra.mrb[8].mxu1 %v21957_v56  ;;  %v24772_v56 = vld [vmem:[#allocation40_spill] sm:$0xff] }
 0x2e9   :  { %17110 = vmatpush1.bf16.msra.mxu0 %v24768_v33  ;;  %17302 = vmatpush1.bf16.msra.mxu1 %v21782_v6  ;;  %v24773_v6 = vld [vmem:[#allocation41_spill] sm:$0xff] }
 0x2ea   :  { %17112 = vmatprep.subr.bf16.mxu0 %v24769_v13  ;;  %17304 = vmatprep.subr.bf16.mxu1 %v21788_v25  ;;  %v24774_v25 = vld [vmem:[#allocation44_spill] sm:$0xff]  ;;  %v24775_v13 = vld [vmem:[#allocation46_spill] sm:$0xff] }
 0x2eb   :  { %3804 = vmatprep.mubr.f32.mxu0 %v24413_v61  ;;  %4659 = vmatprep.mubr.f32.mxu1 %v24413_v61 }
 0x2ed   :  { %17114 = vmatpush1.bf16.msra.mxu0 %v24770_v24  ;;  %17306 = vmatpush1.bf16.msra.mxu1 %v21817_v37  ;;  %v24776_v37 = vld [vmem:[#allocation49_spill] sm:$0xff] }
 0x2ee   :  { %17116 = vmatprep.subr.bf16.mxu0 %v24771_v42  ;;  %17308 = vmatprep.subr.bf16.mxu1 %v21825_v53  ;;  %v24777_v53 = vld [vmem:[#allocation50_spill] sm:$0xff] }
 0x2f1   :  { %17118 = vmatpush1.bf16.msra.mxu0 %v24772_v56  ;;  %17310 = vmatpush1.bf16.msra.mxu1 %v21832_v49  ;;  %v24778_v49 = vld [vmem:[#allocation54_spill] sm:$0xff] }
 0x2f2   :  { %17120 = vmatprep.subr.bf16.mxu0 %v24773_v6  ;;  %17312 = vmatprep.subr.bf16.mxu1 %v21839_v58  ;;  %v24779_v58 = vld [vmem:[#allocation56_spill] sm:$0xff] }
 0x2f5   :  { %17122 = vmatpush1.bf16.msra.mxu0 %v24774_v25  ;;  %17314 = vmatpush1.bf16.msra.mxu1 %v21846_v4  ;;  %v24780_v4 = vld [vmem:[#allocation58_spill] sm:$0xff] }
 0x2f6   :  { %17124 = vmatprep.subr.bf16.mxu0 %v24775_v13  ;;  %17316 = vmatprep.subr.bf16.mxu1 %v21853_v10  ;;  %v24781_v10 = vld [vmem:[#allocation60_spill] sm:$0xff] }
 0x2f9   :  { %17126 = vmatpush1.bf16.msra.mxu0 %v24776_v37  ;;  %17318 = vmatpush1.bf16.msra.mxu1 %v21860_v47  ;;  %v24782_v47 = vld [vmem:[#allocation62_spill] sm:$0xff] }
 0x2fa   :  { %17128 = vmatprep.subr.bf16.mxu0 %v24777_v53  ;;  %17320 = vmatprep.subr.bf16.mxu1 %v21867_v14 }
 0x2fd   :  { %17130 = vmatpush1.bf16.msra.mxu0 %v24778_v49  ;;  %17322 = vmatpush1.bf16.msra.mxu1 %v21874_v19  ;;  %v24784_v49 = vcombine.high %v21750_v9, %v21756_v11 }
 0x2fe   :  { %17132 = vmatprep.subr.bf16.mxu0 %v24779_v58  ;;  %17324 = vmatprep.subr.bf16.mxu1 %v21881_v48 }
 0x301   :  { %17134 = vmatpush1.bf16.msra.mxu0 %v24780_v4  ;;  %17326 = vmatpush1.bf16.msra.mxu1 %v21888_v16 }
 0x302   :  { %17136 = vmatprep.subr.bf16.mxu0 %v24781_v10  ;;  %17328 = vmatprep.subr.bf16.mxu1 %v21895_v44 }
 0x305   :  { %17138 = vmatpush1.bf16.msra.mxu0 %v24782_v47  ;;  %17330 = vmatpush1.bf16.msra.mxu1 %v21902_v18 }
 0x306   :  { %17140 = vmatprep.subr.bf16.mxu0 %v24751_v57  ;;  %17332 = vmatprep.subr.bf16.mxu1 %v21096_v22 }
 0x308   :  { %3806 = vmatmul.mubr.f32.vlgmr.msra.gmra.mrb[6].mxu0 %v21951_v63  ;;  %4661 = vmatmul.mubr.f32.vlgmr.msra.gmra.mrb[8].mxu1 %v21951_v63 }
 0x309   :  { %17142 = vmatpush1.bf16.msra.mxu0 %v24752_v30  ;;  %17334 = vmatpush1.bf16.msra.mxu1 %v21114_v35 }
 0x30a   :  { %17144 = vmatprep.subr.bf16.mxu0 %v24753_v51  ;;  %17336 = vmatprep.subr.bf16.mxu1 %v21123_v7 }
 0x30b   :  { %3908 = vmatprep.mubr.f32.mxu0 %v24413_v61  ;;  %4763 = vmatprep.mubr.f32.mxu1 %v24413_v61 }
 0x30d   :  { %17146 = vmatpush1.bf16.msra.mxu0 %v24754_v59  ;;  %17338 = vmatpush1.bf16.msra.mxu1 %v21143_v2 }
 0x30e   :  { %17148 = vmatprep.subr.bf16.mxu0 %v24755_v60  ;;  %17340 = vmatprep.subr.bf16.mxu1 %v24680_v29 }
 0x311   :  { %17150 = vmatpush1.bf16.msra.mxu0 %v24756_v52  ;;  %17342 = vmatpush1.bf16.msra.mxu1 %v24681_v40 }
 0x312   :  { %17152 = vmatprep.subr.bf16.mxu0 %v24757_v46  ;;  %17344 = vmatprep.subr.bf16.mxu1 %v24682_v21 }
 0x315   :  { %17154 = vmatpush1.bf16.msra.mxu0 %v24758_v54  ;;  %17346 = vmatpush1.bf16.msra.mxu1 %v24683_v27 }
 0x316   :  { %17156 = vmatprep.subr.bf16.mxu0 %v24759_v12  ;;  %17348 = vmatprep.subr.bf16.mxu1 %v24684_v31 }
 0x319   :  { %17158 = vmatpush1.bf16.msra.mxu0 %v24760_v28  ;;  %17350 = vmatpush1.bf16.msra.mxu1 %v24685_v55 }
 0x31a   :  { %17160 = vmatprep.subr.bf16.mxu0 %v24761_v8  ;;  %17352 = vmatprep.subr.bf16.mxu1 %v24686_v26 }
 0x31d   :  { %17162 = vmatpush1.bf16.msra.mxu0 %v24762_v20  ;;  %17354 = vmatpush1.bf16.msra.mxu1 %v21331_v5 }
 0x31e   :  { %17164 = vmatprep.subr.bf16.mxu0 %v24763_v45  ;;  %17356 = vmatprep.subr.bf16.mxu1 %v24687_v36 }
 0x321   :  { %17166 = vmatpush1.bf16.msra.mxu0 %v24764_v15  ;;  %17358 = vmatpush1.bf16.msra.mxu1 %v21343_v23 }
 0x322   :  { %17168 = vmatprep.subr.bf16.mxu0 %v24765_v0  ;;  %17360 = vmatprep.subr.bf16.mxu1 %v21355_v39 }
 0x325   :  { %17170 = vmatpush1.bf16.msra.mxu0 %v24766_v34  ;;  %17362 = vmatpush1.bf16.msra.mxu1 %v21361_v3 }
 0x326   :  { %17364 = vmatprep.subr.bf16.mxu0 %v24751_v57  ;;  %17556 = vmatprep.subr.bf16.mxu1 %v21096_v22 }
 0x328   :  { %3910 = vmatmul.mubr.f32.vlgmr.msra.gmra.mrb[6].mxu0 %v21951_v63  ;;  %4765 = vmatmul.mubr.f32.vlgmr.msra.gmra.mrb[8].mxu1 %v21951_v63  ;;  %v24783_v63 = vld [vmem:[#allocation32_spill] sm:$0xff] }
 0x329   :  { %17366 = vmatpush1.bf16.msra.mxu0 %v24752_v30  ;;  %17558 = vmatpush1.bf16.msra.mxu1 %v21114_v35 }
 0x32a   :  { %17368 = vmatprep.subr.bf16.mxu0 %v24753_v51  ;;  %17560 = vmatprep.subr.bf16.mxu1 %v21123_v7 }
 0x32b   :  { %4925 = vmatprep.mubr.f32.mxu0 %v24413_v61  ;;  %5780 = vmatprep.mubr.f32.mxu1 %v24413_v61 }
 0x32d   :  { %17370 = vmatpush1.bf16.msra.mxu0 %v24754_v59  ;;  %17562 = vmatpush1.bf16.msra.mxu1 %v21143_v2 }
 0x32e   :  { %17372 = vmatprep.subr.bf16.mxu0 %v24755_v60  ;;  %17564 = vmatprep.subr.bf16.mxu1 %v24680_v29 }
 0x331   :  { %17374 = vmatpush1.bf16.msra.mxu0 %v24756_v52  ;;  %17566 = vmatpush1.bf16.msra.mxu1 %v24681_v40 }
 0x332   :  { %17376 = vmatprep.subr.bf16.mxu0 %v24757_v46  ;;  %17568 = vmatprep.subr.bf16.mxu1 %v24682_v21 }
 0x335   :  { %17378 = vmatpush1.bf16.msra.mxu0 %v24758_v54  ;;  %17570 = vmatpush1.bf16.msra.mxu1 %v24683_v27 }
 0x336   :  { %17380 = vmatprep.subr.bf16.mxu0 %v24759_v12  ;;  %17572 = vmatprep.subr.bf16.mxu1 %v24684_v31 }
 0x339   :  { %17382 = vmatpush1.bf16.msra.mxu0 %v24760_v28  ;;  %17574 = vmatpush1.bf16.msra.mxu1 %v24685_v55 }
 0x33a   :  { %17384 = vmatprep.subr.bf16.mxu0 %v24761_v8  ;;  %17576 = vmatprep.subr.bf16.mxu1 %v24686_v26 }
 0x33d   :  { %17386 = vmatpush1.bf16.msra.mxu0 %v24762_v20  ;;  %17578 = vmatpush1.bf16.msra.mxu1 %v21331_v5 }
 0x33e   :  { %17388 = vmatprep.subr.bf16.mxu0 %v24763_v45  ;;  %17580 = vmatprep.subr.bf16.mxu1 %v24687_v36 }
 0x341   :  { %17390 = vmatpush1.bf16.msra.mxu0 %v24764_v15  ;;  %17582 = vmatpush1.bf16.msra.mxu1 %v21343_v23 }
 0x342   :  { %17392 = vmatprep.subr.bf16.mxu0 %v24765_v0  ;;  %17584 = vmatprep.subr.bf16.mxu1 %v21355_v39 }
 0x345   :  { %17394 = vmatpush1.bf16.msra.mxu0 %v24766_v34  ;;  %17586 = vmatpush1.bf16.msra.mxu1 %v21361_v3 }
 0x346   :  { %17396 = vmatprep.subr.bf16.mxu0 %v24783_v63  ;;  %17588 = vmatprep.subr.bf16.mxu1 %v24688_v17 }
 0x3fb   :  { %v3911_v18 = vpop.f32.mrb[6].mxu0  ;;  %v4766_v47 = vpop.f32.mrb[8].mxu1 }
 0x3fc   :  { %v3913_v44 = vpop.f32.mrb[7].mxu0  ;;  %v4768_v10 = vpop.f32.mrb[9].mxu1 }
 0x3fd   :  { %v4775_v16 = vcombine.low %v3911_v18, %v3913_v44  ;;  %v4776_v4 = vcombine.low %v4766_v47, %v4768_v10 }
 0x3ff   :  { %v4783_v48 = vrot.slane %v4775_v16, %v24625_v62  ;;  %v4790_v58 = vrot.slane %v4776_v4, %v24625_v62 }
 0x401   :  { %v4791_v19 = vcombine.low %v4783_v48, %v4790_v58 }
 0x403   :  { %v4793_v14 = vadd.f32 %v4791_v19, %v24784_v49 }
 0x405   :  { %v16255_v53 = vmul.f32 -1.442695, %v4793_v14  ;;  %v4801_v37 = vrot.slane %v4793_v14, 2  ;;  %v4812_v17 = vrot.slane %v4793_v14, 6  ;;  %v4809_v6 = vrot.slane %v4793_v14, 4 }
 0x407   :  { %20102 = vpow2.f32 %v16255_v53  ;;  %v16256_v63 = vmul.f32 -1.442695, %v4801_v37  ;;  %v16257_v13 = vmul.f32 -1.442695, %v4812_v17 }
 0x409   :  { %20104 = vpow2.f32 %v16256_v63  ;;  %v24786_v63 = vld [vmem:[#allocation88_spill] sm:$0xff] }
 0x40a   :  { %20106 = vpow2.f32 %v16257_v13  ;;  %v24785_v13 = vld [vmem:[#allocation37_spill] sm:$0xff] }
 0x411   :  { %v20103_v25 = vpop.eup %20102 }
 0x412   :  { %v4797_v44 = vadd.f32 1.0, %v20103_v25 }
 0x413   :  { %v20105_v10 = vpop.eup %20104 }
 0x414   :  { %20108 = vrcp.f32 %v4797_v44  ;;  %v4806_v47 = vadd.f32 1.0, %v20105_v10  ;;  %v20107_v58 = vpop.eup %20106  ;;  %v24787_v44 = vld [vmem:[#allocation42_spill] sm:$0xff]  ;;  %v24788_v10 = vld [vmem:[#allocation89_spill] sm:$0xff] }
 0x415   :  { %20110 = vtanh.f32 %v4809_v6  ;;  %v4817_v49 = vadd.f32 1.0, %v20107_v58  ;;  %v24790_v58 = vld [vmem:[#allocation90_spill] sm:$0xff] }
 0x416   :  { %20112 = vrcp.f32 %v4806_v47  ;;  %v24789_v47 = vld [vmem:[#allocation43_spill] sm:$0xff] }
 0x417   :  { %20114 = vrcp.f32 %v4817_v49  ;;  %v24794_v49 = vld [vmem:[#allocation92_spill] sm:$0xff] }
 0x41e   :  { %v20109_v4 = vpop.eup %20108 }
 0x41f   :  { %v20111_v9 = vpop.eup %20110 }
 0x420   :  { %v20113_v11 = vpop.eup %20112  ;;  %v4821_v37 = vmul.f32 %v20111_v9, %v20109_v4  ;;  %v24791_v4 = vld [vmem:[#allocation45_spill] sm:$0xff]  ;;  %v24792_v9 = vld [vmem:[#allocation91_spill] sm:$0xff] }
 0x421   :  { %v4820_v53 = vmul.f32 %v20113_v11, %v21948_v41  ;;  %v20115_v25 = vpop.eup %20114  ;;  %v24793_v11 = vld [vmem:[#allocation47_spill] sm:$0xff] }
 0x423   :  { %v22181_v19 = vadd.f32 %v4821_v37, %v4820_v53  ;;  %v24795_v53 = vld [vmem:[#allocation48_spill] sm:$0xff]  ;;  %v24796_v37 = vld [vmem:[#allocation93_spill] sm:$0xff] }
 0x425   :  { %20116 = vtanh.f32 %v22181_v19 }
 0x42f   :  { %v20117_v14 = vpop.eup %20116 }
 0x430   :  { %v4824_v48 = vmul.f32 %v20117_v14, %v20115_v25  ;;  %v24797_v25 = vld [vmem:[#allocation51_spill] sm:$0xff]  ;;  %v24798_v14 = vld [vmem:[#allocation94_spill] sm:$0xff] }
 0x432   :  { %4826 = vst [vmem:[#allocation3 + $0x2] sm:$0x3] %v4824_v48  ;;  %v22184_v16 = vand.u32 4294901760, %v4824_v48 }
 0x434   :  { %v22187_v6 = vsub.f32 %v4824_v48, %v22184_v16  ;;  %v24799_v48 = vld [vmem:[#allocation52_spill] sm:$0xff] }
 0x436   :  { %v22190_v18 = vand.u32 4294901760, %v22187_v6 }
 0x438   :  { %v4929_v17 = vsub.f32 %v22187_v6, %v22190_v18 }
 0x43a   :  { %v4930_v41 = vand.u32 4294901760, %v4929_v17  ;;  %v24800_v17 = vld [vmem:[#allocation95_spill] sm:$0xff] }
 0x43c   :  { %4931 = vmatmul.mubr.f32.vlgmr.msra.gmra.mrb[8].mxu0 %v4930_v41  ;;  %5786 = vmatmul.mubr.f32.vlgmr.msra.gmra.mrb[10].mxu1 %v4930_v41  ;;  %v24801_v41 = vld [vmem:[#allocation53_spill] sm:$0xff] }
 0x43d   :  { %17398 = vmatpush1.bf16.msra.mxu0 %v24689_v43  ;;  %17590 = vmatpush1.bf16.msra.mxu1 %v24690_v32 }
 0x43e   :  { %17400 = vmatprep.subr.bf16.mxu0 %v24691_v38  ;;  %17592 = vmatprep.subr.bf16.mxu1 %v24692_v1 }
 0x43f   :  { %5161 = vmatprep.mubr.f32.mxu0 %v24413_v61  ;;  %6016 = vmatprep.mubr.f32.mxu1 %v24413_v61 }
 0x441   :  { %17402 = vmatpush1.bf16.msra.mxu0 %v24785_v13  ;;  %17594 = vmatpush1.bf16.msra.mxu1 %v24786_v63 }
 0x442   :  { %17404 = vmatprep.subr.bf16.mxu0 %v24787_v44  ;;  %17596 = vmatprep.subr.bf16.mxu1 %v24788_v10 }
 0x445   :  { %17406 = vmatpush1.bf16.msra.mxu0 %v24789_v47  ;;  %17598 = vmatpush1.bf16.msra.mxu1 %v24790_v58 }
 0x446   :  { %17408 = vmatprep.subr.bf16.mxu0 %v24791_v4  ;;  %17600 = vmatprep.subr.bf16.mxu1 %v24792_v9  ;;  %v24802_v4 = vld [vmem:[#allocation96_spill] sm:$0xff]  ;;  %v24803_v9 = vld [vmem:[#allocation55_spill] sm:$0xff] }
 0x449   :  { %17410 = vmatpush1.bf16.msra.mxu0 %v24793_v11  ;;  %17602 = vmatpush1.bf16.msra.mxu1 %v24794_v49  ;;  %v24804_v11 = vld [vmem:[#allocation97_spill] sm:$0xff] }
 0x44a   :  { %17412 = vmatprep.subr.bf16.mxu0 %v24795_v53  ;;  %17604 = vmatprep.subr.bf16.mxu1 %v24796_v37  ;;  %v24805_v49 = vld [vmem:[#allocation57_spill] sm:$0xff]  ;;  %v24806_v53 = vld [vmem:[#allocation98_spill] sm:$0xff]  ;;  %v24807_v37 = vld [vmem:[#allocation59_spill] sm:$0xff] }
 0x44d   :  { %17414 = vmatpush1.bf16.msra.mxu0 %v24797_v25  ;;  %17606 = vmatpush1.bf16.msra.mxu1 %v24798_v14  ;;  %v24808_v25 = vld [vmem:[#allocation99_spill] sm:$0xff]  ;;  %v24809_v14 = vld [vmem:[#allocation61_spill] sm:$0xff] }
 0x44e   :  { %17416 = vmatprep.subr.bf16.mxu0 %v24799_v48  ;;  %17608 = vmatprep.subr.bf16.mxu1 %v24800_v17  ;;  %v24810_v48 = vld [vmem:[#allocation100_spill] sm:$0xff]  ;;  %v24811_v17 = vld [vmem:[#allocation63_spill] sm:$0xff] }
 0x451   :  { %17418 = vmatpush1.bf16.msra.mxu0 %v24801_v41  ;;  %17610 = vmatpush1.bf16.msra.mxu1 %v24802_v4  ;;  %v24812_v41 = vld [vmem:[#allocation101_spill] sm:$0xff]  ;;  %v24827_v4 = vld [vmem:[#allocation34_spill] sm:$0xff] }
 0x452   :  { %17420 = vmatprep.subr.bf16.mxu0 %v24803_v9  ;;  %17612 = vmatprep.subr.bf16.mxu1 %v24804_v11  ;;  %v24813_v11 = vld [vmem:[#allocation64_spill] sm:$0xff] }
 0x453   :  { %v24826_v9 = vld [vmem:[#allocation108_spill] sm:$0xff] }
 0x455   :  { %17422 = vmatpush1.bf16.msra.mxu0 %v24805_v49  ;;  %17614 = vmatpush1.bf16.msra.mxu1 %v24806_v53  ;;  %v24814_v49 = vld [vmem:[#allocation102_spill] sm:$0xff]  ;;  %v24815_v53 = vld [vmem:[#allocation65_spill] sm:$0xff] }
 0x456   :  { %17424 = vmatprep.subr.bf16.mxu0 %v24807_v37  ;;  %17616 = vmatprep.subr.bf16.mxu1 %v24808_v25  ;;  %v24816_v37 = vld [vmem:[#allocation103_spill] sm:$0xff]  ;;  %v24821_v25 = vld [vmem:[#allocation28_spill] sm:$0xff] }
 0x459   :  { %17426 = vmatpush1.bf16.msra.mxu0 %v24809_v14  ;;  %17618 = vmatpush1.bf16.msra.mxu1 %v24810_v48  ;;  %v24817_v48 = vld [vmem:[#allocation20_spill] sm:$0xff]  ;;  %v24820_v14 = vld [vmem:[#allocation105_spill] sm:$0xff] }
 0x45a   :  { %17428 = vmatprep.subr.bf16.mxu0 %v24811_v17  ;;  %17620 = vmatprep.subr.bf16.mxu1 %v24812_v41  ;;  %v24818_v17 = vld [vmem:[#allocation104_spill] sm:$0xff]  ;;  %v24819_v41 = vld [vmem:[#allocation21_spill] sm:$0xff] }
 0x45c   :  { %5163 = vmatmul.mubr.f32.vlgmr.msra.gmra.mrb[8].mxu0 %v22184_v16  ;;  %6018 = vmatmul.mubr.f32.vlgmr.msra.gmra.mrb[10].mxu1 %v22184_v16 }
 0x45d   :  { %17430 = vmatpush1.bf16.msra.mxu0 %v24813_v11  ;;  %17622 = vmatpush1.bf16.msra.mxu1 %v24814_v49  ;;  %v24822_v11 = vld [vmem:[#allocation106_spill] sm:$0xff] }
 0x45e   :  { %17432 = vmatprep.subr.bf16.mxu0 %v24815_v53  ;;  %17624 = vmatprep.subr.bf16.mxu1 %v24816_v37  ;;  %v24823_v49 = vld [vmem:[#allocation30_spill] sm:$0xff]  ;;  %v24824_v53 = vld [vmem:[#allocation107_spill] sm:$0xff] }
 0x45f   :  { %5297 = vmatprep.mubr.f32.mxu0 %v24413_v61  ;;  %6152 = vmatprep.mubr.f32.mxu1 %v24413_v61  ;;  %v24825_v37 = vld [vmem:[#allocation66_spill] sm:$0xff] }
 0x461   :  { %17434 = vmatpush1.bf16.msra.mxu0 %v24817_v48  ;;  %17626 = vmatpush1.bf16.msra.mxu1 %v24818_v17  ;;  %v24828_v48 = vld [vmem:[#allocation109_spill] sm:$0xff]  ;;  %v24829_v17 = vld [vmem:[#allocation67_spill] sm:$0xff] }
 0x462   :  { %17436 = vmatprep.subr.bf16.mxu0 %v24819_v41  ;;  %17628 = vmatprep.subr.bf16.mxu1 %v24820_v14  ;;  %v24830_v41 = vld [vmem:[#allocation110_spill] sm:$0xff]  ;;  %v24831_v14 = vld [vmem:[#allocation68_spill] sm:$0xff] }
 0x465   :  { %17438 = vmatpush1.bf16.msra.mxu0 %v24821_v25  ;;  %17630 = vmatpush1.bf16.msra.mxu1 %v24822_v11  ;;  %v24832_v25 = vld [vmem:[#allocation111_spill] sm:$0xff]  ;;  %v24833_v11 = vld [vmem:[#allocation69_spill] sm:$0xff] }
 0x466   :  { %17440 = vmatprep.subr.bf16.mxu0 %v24823_v49  ;;  %17632 = vmatprep.subr.bf16.mxu1 %v24824_v53  ;;  %v24834_v49 = vld [vmem:[#allocation112_spill] sm:$0xff]  ;;  %v24835_v53 = vld [vmem:[#allocation70_spill] sm:$0xff] }
 0x469   :  { %17442 = vmatpush1.bf16.msra.mxu0 %v24825_v37  ;;  %17634 = vmatpush1.bf16.msra.mxu1 %v24826_v9  ;;  %v24836_v37 = vld [vmem:[#allocation113_spill] sm:$0xff]  ;;  %v24837_v9 = vld [vmem:[#allocation71_spill] sm:$0xff] }
 0x46a   :  { %17444 = vmatprep.subr.bf16.mxu0 %v24827_v4  ;;  %17636 = vmatprep.subr.bf16.mxu1 %v24828_v48  ;;  %v24838_v4 = vld [vmem:[#allocation114_spill] sm:$0xff]  ;;  %v24839_v48 = vld [vmem:[#allocation72_spill] sm:$0xff] }
 0x46d   :  { %17446 = vmatpush1.bf16.msra.mxu0 %v24829_v17  ;;  %17638 = vmatpush1.bf16.msra.mxu1 %v24830_v41  ;;  %v24840_v17 = vld [vmem:[#allocation115_spill] sm:$0xff]  ;;  %v24841_v41 = vld [vmem:[#allocation73_spill] sm:$0xff] }
 0x46e   :  { %17448 = vmatprep.subr.bf16.mxu0 %v24831_v14  ;;  %17640 = vmatprep.subr.bf16.mxu1 %v24832_v25  ;;  %v24842_v14 = vld [vmem:[#allocation116_spill] sm:$0xff] }
 0x471   :  { %17450 = vmatpush1.bf16.msra.mxu0 %v24833_v11  ;;  %17642 = vmatpush1.bf16.msra.mxu1 %v24834_v49 }
 0x472   :  { %17452 = vmatprep.subr.bf16.mxu0 %v24835_v53  ;;  %17644 = vmatprep.subr.bf16.mxu1 %v24836_v37 }
 0x475   :  { %17454 = vmatpush1.bf16.msra.mxu0 %v24837_v9  ;;  %17646 = vmatpush1.bf16.msra.mxu1 %v24838_v4 }
 0x476   :  { %17456 = vmatprep.subr.bf16.mxu0 %v24839_v48  ;;  %17648 = vmatprep.subr.bf16.mxu1 %v24840_v17  ;;  %v24846_v17 = vld [vmem:[#allocation119_spill] sm:$0xff]  ;;  %v24854_v48 = vld [vmem:[#allocation46_spill] sm:$0xff] }
 0x479   :  { %17458 = vmatpush1.bf16.msra.mxu0 %v24841_v41  ;;  %17650 = vmatpush1.bf16.msra.mxu1 %v24842_v14  ;;  %v24844_v14 = vld [vmem:[#allocation118_spill] sm:$0xff]  ;;  %v24845_v41 = vld [vmem:[#allocation33_spill] sm:$0xff] }
 0x47a   :  { %17460 = vmatprep.subr.bf16.mxu0 %v24751_v57  ;;  %17652 = vmatprep.subr.bf16.mxu1 %v21096_v22 }
 0x47c   :  { %5300 = vmatmul.mubr.f32.vlgmr.msra.gmra.mrb[8].mxu0 %v22187_v6  ;;  %6155 = vmatmul.mubr.f32.vlgmr.msra.gmra.mrb[10].mxu1 %v22187_v6  ;;  %v24843_v6 = vld [vmem:[#allocation117_spill] sm:$0xff] }
 0x47d   :  { %17462 = vmatpush1.bf16.msra.mxu0 %v24752_v30  ;;  %17654 = vmatpush1.bf16.msra.mxu1 %v21114_v35 }
 0x47e   :  { %17464 = vmatprep.subr.bf16.mxu0 %v24753_v51  ;;  %17656 = vmatprep.subr.bf16.mxu1 %v21123_v7 }
 0x47f   :  { %5402 = vmatprep.mubr.f32.mxu0 %v24413_v61  ;;  %6257 = vmatprep.mubr.f32.mxu1 %v24413_v61 }
 0x481   :  { %17466 = vmatpush1.bf16.msra.mxu0 %v24754_v59  ;;  %17658 = vmatpush1.bf16.msra.mxu1 %v21143_v2 }
 0x482   :  { %17468 = vmatprep.subr.bf16.mxu0 %v24755_v60  ;;  %17660 = vmatprep.subr.bf16.mxu1 %v24680_v29 }
 0x485   :  { %17470 = vmatpush1.bf16.msra.mxu0 %v24756_v52  ;;  %17662 = vmatpush1.bf16.msra.mxu1 %v24681_v40 }
 0x486   :  { %17472 = vmatprep.subr.bf16.mxu0 %v24757_v46  ;;  %17664 = vmatprep.subr.bf16.mxu1 %v24682_v21 }
 0x489   :  { %17474 = vmatpush1.bf16.msra.mxu0 %v24758_v54  ;;  %17666 = vmatpush1.bf16.msra.mxu1 %v24683_v27 }
 0x48a   :  { %17476 = vmatprep.subr.bf16.mxu0 %v24759_v12  ;;  %17668 = vmatprep.subr.bf16.mxu1 %v24684_v31 }
 0x48d   :  { %17478 = vmatpush1.bf16.msra.mxu0 %v24760_v28  ;;  %17670 = vmatpush1.bf16.msra.mxu1 %v24685_v55 }
 0x48e   :  { %17480 = vmatprep.subr.bf16.mxu0 %v24761_v8  ;;  %17672 = vmatprep.subr.bf16.mxu1 %v24686_v26 }
 0x491   :  { %17482 = vmatpush1.bf16.msra.mxu0 %v24762_v20  ;;  %17674 = vmatpush1.bf16.msra.mxu1 %v21331_v5 }
 0x492   :  { %17484 = vmatprep.subr.bf16.mxu0 %v24763_v45  ;;  %17676 = vmatprep.subr.bf16.mxu1 %v24687_v36 }
 0x495   :  { %17486 = vmatpush1.bf16.msra.mxu0 %v24764_v15  ;;  %17678 = vmatpush1.bf16.msra.mxu1 %v21343_v23 }
 0x496   :  { %17488 = vmatprep.subr.bf16.mxu0 %v24765_v0  ;;  %17680 = vmatprep.subr.bf16.mxu1 %v21355_v39 }
 0x499   :  { %17490 = vmatpush1.bf16.msra.mxu0 %v24766_v34  ;;  %17682 = vmatpush1.bf16.msra.mxu1 %v21361_v3 }
 0x49a   :  { %17492 = vmatprep.subr.bf16.mxu0 %v24767_v50  ;;  %17684 = vmatprep.subr.bf16.mxu1 %v24843_v6  ;;  %v24847_v50 = vld [vmem:[#allocation124_spill] sm:$0xff]  ;;  %v24848_v6 = vld [vmem:[#allocation125_spill] sm:$0xff] }
 0x49c   :  { %5406 = vmatmul.mubr.f32.vlgmr.msra.gmra.mrb[8].mxu0 %v22190_v18  ;;  %6261 = vmatmul.mubr.f32.vlgmr.msra.gmra.mrb[10].mxu1 %v22190_v18  ;;  %v24849_v18 = vld [vmem:[#allocation126_spill] sm:$0xff] }
 0x49d   :  { %17494 = vmatpush1.bf16.msra.mxu0 %v24768_v33  ;;  %17686 = vmatpush1.bf16.msra.mxu1 %v24844_v14  ;;  %v24850_v14 = vld [vmem:[#allocation41_spill] sm:$0xff]  ;;  %v24853_v33 = vld [vmem:[#allocation128_spill] sm:$0xff] }
 0x49e   :  { %17496 = vmatprep.subr.bf16.mxu0 %v24845_v41  ;;  %17688 = vmatprep.subr.bf16.mxu1 %v24846_v17  ;;  %v24851_v41 = vld [vmem:[#allocation127_spill] sm:$0xff]  ;;  %v24852_v17 = vld [vmem:[#allocation44_spill] sm:$0xff] }
 0x49f   :  { %5572 = vmatprep.mubr.f32.mxu0 %v24413_v61  ;;  %6427 = vmatprep.mubr.f32.mxu1 %v24413_v61 }
 0x4a1   :  { %17498 = vmatpush1.bf16.msra.mxu0 %v24770_v24  ;;  %17690 = vmatpush1.bf16.msra.mxu1 %v24847_v50  ;;  %v24855_v24 = vld [vmem:[#allocation129_spill] sm:$0xff] }
 0x4a2   :  { %17500 = vmatprep.subr.bf16.mxu0 %v24771_v42  ;;  %17692 = vmatprep.subr.bf16.mxu1 %v24848_v6  ;;  %v24856_v50 = vld [vmem:[#allocation49_spill] sm:$0xff]  ;;  %v24857_v42 = vld [vmem:[#allocation130_spill] sm:$0xff] }
 0x4a3   :  { %v24858_v6 = vld [vmem:[#allocation50_spill] sm:$0xff] }
 0x4a5   :  { %17502 = vmatpush1.bf16.msra.mxu0 %v24772_v56  ;;  %17694 = vmatpush1.bf16.msra.mxu1 %v24849_v18  ;;  %v24859_v56 = vld [vmem:[#allocation131_spill] sm:$0xff]  ;;  %v24860_v18 = vld [vmem:[#allocation54_spill] sm:$0xff] }
 0x4a6   :  { %17504 = vmatprep.subr.bf16.mxu0 %v24850_v14  ;;  %17696 = vmatprep.subr.bf16.mxu1 %v24851_v41  ;;  %v24861_v14 = vld [vmem:[#allocation132_spill] sm:$0xff] }
 0x4a7   :  { %v24862_v41 = vld [vmem:[#allocation56_spill] sm:$0xff] }
 0x4a9   :  { %17506 = vmatpush1.bf16.msra.mxu0 %v24852_v17  ;;  %17698 = vmatpush1.bf16.msra.mxu1 %v24853_v33  ;;  %v24863_v17 = vld [vmem:[#allocation133_spill] sm:$0xff]  ;;  %v24864_v33 = vld [vmem:[#allocation58_spill] sm:$0xff] }
 0x4aa   :  { %17508 = vmatprep.subr.bf16.mxu0 %v24854_v48  ;;  %17700 = vmatprep.subr.bf16.mxu1 %v24855_v24  ;;  %v24865_v48 = vld [vmem:[#allocation134_spill] sm:$0xff]  ;;  %v24866_v24 = vld [vmem:[#allocation60_spill] sm:$0xff] }
 0x4ad   :  { %17510 = vmatpush1.bf16.msra.mxu0 %v24856_v50  ;;  %17702 = vmatpush1.bf16.msra.mxu1 %v24857_v42  ;;  %v24867_v50 = vld [vmem:[#allocation135_spill] sm:$0xff]  ;;  %v24868_v42 = vld [vmem:[#allocation62_spill] sm:$0xff] }
 0x4ae   :  { %17512 = vmatprep.subr.bf16.mxu0 %v24858_v6  ;;  %17704 = vmatprep.subr.bf16.mxu1 %v24859_v56  ;;  %v24869_v6 = vld [vmem:[#allocation136_spill] sm:$0xff] }
 0x4af   :  { %v24872_v56 = vld [vmem:[#allocation8_spill] sm:$0xff] }
 0x4b1   :  { %17514 = vmatpush1.bf16.msra.mxu0 %v24860_v18  ;;  %17706 = vmatpush1.bf16.msra.mxu1 %v24861_v14 }
 0x4b2   :  { %17516 = vmatprep.subr.bf16.mxu0 %v24862_v41  ;;  %17708 = vmatprep.subr.bf16.mxu1 %v24863_v17 }
 0x4b5   :  { %17518 = vmatpush1.bf16.msra.mxu0 %v24864_v33  ;;  %17710 = vmatpush1.bf16.msra.mxu1 %v24865_v48 }
 0x4b6   :  { %17520 = vmatprep.subr.bf16.mxu0 %v24866_v24  ;;  %17712 = vmatprep.subr.bf16.mxu1 %v24867_v50 }
 0x4b9   :  { %17522 = vmatpush1.bf16.msra.mxu0 %v24868_v42  ;;  %17714 = vmatpush1.bf16.msra.mxu1 %v24869_v6  ;;  %v24871_v6 = vld [vmem:[#allocation85_spill] sm:$0xff] }
 0x4ba   :  { %17524 = vmatprep.subr.bf16.mxu0 %v24751_v57  ;;  %17716 = vmatprep.subr.bf16.mxu1 %v21096_v22 }
 0x4bc   :  { %5574 = vmatmul.mubr.f32.vlgmr.msra.gmra.mrb[8].mxu0 %v22184_v16  ;;  %6429 = vmatmul.mubr.f32.vlgmr.msra.gmra.mrb[10].mxu1 %v22184_v16 }
 0x4bd   :  { %17526 = vmatpush1.bf16.msra.mxu0 %v24752_v30  ;;  %17718 = vmatpush1.bf16.msra.mxu1 %v21114_v35 }
 0x4be   :  { %17528 = vmatprep.subr.bf16.mxu0 %v24753_v51  ;;  %17720 = vmatprep.subr.bf16.mxu1 %v21123_v7 }
 0x4bf   :  { %5676 = vmatprep.mubr.f32.mxu0 %v24413_v61  ;;  %6531 = vmatprep.mubr.f32.mxu1 %v24413_v61 }
 0x4c1   :  { %17530 = vmatpush1.bf16.msra.mxu0 %v24754_v59  ;;  %17722 = vmatpush1.bf16.msra.mxu1 %v21143_v2 }
 0x4c2   :  { %17532 = vmatprep.subr.bf16.mxu0 %v24755_v60  ;;  %17724 = vmatprep.subr.bf16.mxu1 %v24680_v29 }
 0x4c5   :  { %17534 = vmatpush1.bf16.msra.mxu0 %v24756_v52  ;;  %17726 = vmatpush1.bf16.msra.mxu1 %v24681_v40 }
 0x4c6   :  { %17536 = vmatprep.subr.bf16.mxu0 %v24757_v46  ;;  %17728 = vmatprep.subr.bf16.mxu1 %v24682_v21 }
 0x4c9   :  { %17538 = vmatpush1.bf16.msra.mxu0 %v24758_v54  ;;  %17730 = vmatpush1.bf16.msra.mxu1 %v24683_v27 }
 0x4ca   :  { %17540 = vmatprep.subr.bf16.mxu0 %v24759_v12  ;;  %17732 = vmatprep.subr.bf16.mxu1 %v24684_v31 }
 0x4cd   :  { %17542 = vmatpush1.bf16.msra.mxu0 %v24760_v28  ;;  %17734 = vmatpush1.bf16.msra.mxu1 %v24685_v55 }
 0x4ce   :  { %17544 = vmatprep.subr.bf16.mxu0 %v24761_v8  ;;  %17736 = vmatprep.subr.bf16.mxu1 %v24686_v26 }
 0x4d1   :  { %17546 = vmatpush1.bf16.msra.mxu0 %v24762_v20  ;;  %17738 = vmatpush1.bf16.msra.mxu1 %v21331_v5 }
 0x4d2   :  { %17548 = vmatprep.subr.bf16.mxu0 %v24763_v45  ;;  %17740 = vmatprep.subr.bf16.mxu1 %v24687_v36 }
 0x4d5   :  { %17550 = vmatpush1.bf16.msra.mxu0 %v24764_v15  ;;  %17742 = vmatpush1.bf16.msra.mxu1 %v21343_v23 }
 0x4d6   :  { %17552 = vmatprep.subr.bf16.mxu0 %v24765_v0  ;;  %17744 = vmatprep.subr.bf16.mxu1 %v21355_v39 }
 0x4d9   :  { %17554 = vmatpush1.bf16.msra.mxu0 %v24766_v34  ;;  %17746 = vmatpush1.bf16.msra.mxu1 %v21361_v3 }
 0x4da   :  { %17748 = vmatprep.subr.bf16.mxu0 %v24751_v57  ;;  %17940 = vmatprep.subr.bf16.mxu1 %v21096_v22 }
 0x4dc   :  { %5678 = vmatmul.mubr.f32.vlgmr.msra.gmra.mrb[8].mxu0 %v22184_v16  ;;  %6533 = vmatmul.mubr.f32.vlgmr.msra.gmra.mrb[10].mxu1 %v22184_v16  ;;  %v24870_v16 = vld [vmem:[#allocation32_spill] sm:$0xff] }
 0x4dd   :  { %17750 = vmatpush1.bf16.msra.mxu0 %v24752_v30  ;;  %17942 = vmatpush1.bf16.msra.mxu1 %v21114_v35 }
 0x4de   :  { %17752 = vmatprep.subr.bf16.mxu0 %v24753_v51  ;;  %17944 = vmatprep.subr.bf16.mxu1 %v21123_v7 }
 0x4df   :  { %6693 = vmatprep.mubr.f32.mxu0 %v24413_v61  ;;  %7548 = vmatprep.mubr.f32.mxu1 %v24413_v61 }
 0x4e1   :  { %17754 = vmatpush1.bf16.msra.mxu0 %v24754_v59  ;;  %17946 = vmatpush1.bf16.msra.mxu1 %v21143_v2 }
 0x4e2   :  { %17756 = vmatprep.subr.bf16.mxu0 %v24755_v60  ;;  %17948 = vmatprep.subr.bf16.mxu1 %v24680_v29 }
 0x4e5   :  { %17758 = vmatpush1.bf16.msra.mxu0 %v24756_v52  ;;  %17950 = vmatpush1.bf16.msra.mxu1 %v24681_v40 }
 0x4e6   :  { %17760 = vmatprep.subr.bf16.mxu0 %v24757_v46  ;;  %17952 = vmatprep.subr.bf16.mxu1 %v24682_v21 }
 0x4e9   :  { %17762 = vmatpush1.bf16.msra.mxu0 %v24758_v54  ;;  %17954 = vmatpush1.bf16.msra.mxu1 %v24683_v27 }
 0x4ea   :  { %17764 = vmatprep.subr.bf16.mxu0 %v24759_v12  ;;  %17956 = vmatprep.subr.bf16.mxu1 %v24684_v31 }
 0x4ed   :  { %17766 = vmatpush1.bf16.msra.mxu0 %v24760_v28  ;;  %17958 = vmatpush1.bf16.msra.mxu1 %v24685_v55 }
 0x4ee   :  { %17768 = vmatprep.subr.bf16.mxu0 %v24761_v8  ;;  %17960 = vmatprep.subr.bf16.mxu1 %v24686_v26 }
 0x4f1   :  { %17770 = vmatpush1.bf16.msra.mxu0 %v24762_v20  ;;  %17962 = vmatpush1.bf16.msra.mxu1 %v21331_v5 }
 0x4f2   :  { %17772 = vmatprep.subr.bf16.mxu0 %v24763_v45  ;;  %17964 = vmatprep.subr.bf16.mxu1 %v24687_v36 }
 0x4f5   :  { %17774 = vmatpush1.bf16.msra.mxu0 %v24764_v15  ;;  %17966 = vmatpush1.bf16.msra.mxu1 %v21343_v23 }
 0x4f6   :  { %17776 = vmatprep.subr.bf16.mxu0 %v24765_v0  ;;  %17968 = vmatprep.subr.bf16.mxu1 %v21355_v39  ;;  %v24873_v39 = vld [vmem:[#allocation9_spill] sm:$0xff] }
 0x4f9   :  { %17778 = vmatpush1.bf16.msra.mxu0 %v24766_v34  ;;  %17970 = vmatpush1.bf16.msra.mxu1 %v21361_v3  ;;  %v24874_v34 = vcombine.low %v24872_v56, %v24873_v39 }
 0x4fa   :  { %17780 = vmatprep.subr.bf16.mxu0 %v24870_v16  ;;  %17972 = vmatprep.subr.bf16.mxu1 %v24871_v6 }
 0x5af   :  { %v5679_v42 = vpop.f32.mrb[8].mxu0  ;;  %v6534_v50 = vpop.f32.mrb[10].mxu1 }
 0x5b0   :  { %v5681_v24 = vpop.f32.mrb[9].mxu0  ;;  %v6536_v48 = vpop.f32.mrb[11].mxu1 }
 0x5b1   :  { %v6543_v33 = vcombine.low %v5679_v42, %v5681_v24  ;;  %v6544_v17 = vcombine.low %v6534_v50, %v6536_v48 }
 0x5b3   :  { %v6551_v41 = vrot.slane %v6543_v33, %v24625_v62  ;;  %v6558_v14 = vrot.slane %v6544_v17, %v24625_v62 }
 0x5b5   :  { %v6559_v18 = vcombine.low %v6551_v41, %v6558_v14 }
 0x5b7   :  { %v6561_v0 = vadd.f32 %v6559_v18, %v24874_v34 }
 0x5b9   :  { %v16258_v3 = vmul.f32 -1.442695, %v6561_v0  ;;  %v6569_v23 = vrot.slane %v6561_v0, 2  ;;  %v6580_v6 = vrot.slane %v6561_v0, 6  ;;  %v6577_v45 = vrot.slane %v6561_v0, 4 }
 0x5bb   :  { %20118 = vpow2.f32 %v16258_v3  ;;  %v16259_v16 = vmul.f32 -1.442695, %v6569_v23  ;;  %v16260_v15 = vmul.f32 -1.442695, %v6580_v6 }
 0x5bd   :  { %20120 = vpow2.f32 %v16259_v16 }
 0x5be   :  { %20122 = vpow2.f32 %v16260_v15 }
 0x5c5   :  { %v20119_v36 = vpop.eup %20118 }
 0x5c6   :  { %v6565_v42 = vadd.f32 1.0, %v20119_v36 }
 0x5c7   :  { %v20121_v24 = vpop.eup %20120 }
 0x5c8   :  { %20124 = vrcp.f32 %v6565_v42  ;;  %v6574_v33 = vadd.f32 1.0, %v20121_v24  ;;  %v20123_v50 = vpop.eup %20122  ;;  %v24875_v42 = vld [vmem:[#allocation45_spill] sm:$0xff]  ;;  %v24876_v24 = vld [vmem:[#allocation91_spill] sm:$0xff] }
 0x5c9   :  { %20126 = vtanh.f32 %v6577_v45  ;;  %v6585_v17 = vadd.f32 1.0, %v20123_v50  ;;  %v24878_v50 = vld [vmem:[#allocation92_spill] sm:$0xff] }
 0x5ca   :  { %20128 = vrcp.f32 %v6574_v33  ;;  %v24877_v33 = vld [vmem:[#allocation47_spill] sm:$0xff] }
 0x5cb   :  { %20130 = vrcp.f32 %v6585_v17  ;;  %v24882_v17 = vld [vmem:[#allocation94_spill] sm:$0xff] }
 0x5d2   :  { %v20125_v14 = vpop.eup %20124 }
 0x5d3   :  { %v20127_v48 = vpop.eup %20126 }
 0x5d4   :  { %v20129_v34 = vpop.eup %20128  ;;  %v6589_v23 = vmul.f32 %v20127_v48, %v20125_v14  ;;  %v24879_v14 = vld [vmem:[#allocation48_spill] sm:$0xff]  ;;  %v24880_v48 = vld [vmem:[#allocation93_spill] sm:$0xff] }
 0x5d5   :  { %v6588_v3 = vmul.f32 %v20129_v34, %v22181_v19  ;;  %v20131_v36 = vpop.eup %20130  ;;  %v24881_v34 = vld [vmem:[#allocation51_spill] sm:$0xff] }
 0x5d7   :  { %v22414_v41 = vadd.f32 %v6589_v23, %v6588_v3  ;;  %v24883_v3 = vld [vmem:[#allocation52_spill] sm:$0xff]  ;;  %v24884_v23 = vld [vmem:[#allocation95_spill] sm:$0xff] }
 0x5d9   :  { %20132 = vtanh.f32 %v22414_v41 }
 0x5e3   :  { %v20133_v0 = vpop.eup %20132 }
 0x5e4   :  { %v6592_v15 = vmul.f32 %v20133_v0, %v20131_v36  ;;  %v24885_v36 = vld [vmem:[#allocation53_spill] sm:$0xff]  ;;  %v24886_v0 = vld [vmem:[#allocation96_spill] sm:$0xff] }
 0x5e6   :  { %6594 = vst [vmem:[#allocation3 + $0x4] sm:$0x3] %v6592_v15  ;;  %v22417_v6 = vand.u32 4294901760, %v6592_v15 }
 0x5e8   :  { %v22420_v45 = vsub.f32 %v6592_v15, %v22417_v6  ;;  %v24887_v15 = vld [vmem:[#allocation55_spill] sm:$0xff] }
 0x5ea   :  { %v22423_v18 = vand.u32 4294901760, %v22420_v45 }
 0x5ec   :  { %v6697_v19 = vsub.f32 %v22420_v45, %v22423_v18 }
 0x5ee   :  { %v6698_v16 = vand.u32 4294901760, %v6697_v19  ;;  %v24888_v19 = vld [vmem:[#allocation97_spill] sm:$0xff] }
 0x5f0   :  { %6699 = vmatmul.mubr.f32.vlgmr.msra.gmra.mrb[10].mxu0 %v6698_v16  ;;  %7554 = vmatmul.mubr.f32.vlgmr.msra.gmra.mrb[12].mxu1 %v6698_v16  ;;  %v24889_v16 = vld [vmem:[#allocation57_spill] sm:$0xff] }
 0x5f1   :  { %17782 = vmatpush1.bf16.msra.mxu0 %v24689_v43  ;;  %17974 = vmatpush1.bf16.msra.mxu1 %v24690_v32 }
 0x5f2   :  { %17784 = vmatprep.subr.bf16.mxu0 %v24691_v38  ;;  %17976 = vmatprep.subr.bf16.mxu1 %v24692_v1 }
 0x5f3   :  { %6929 = vmatprep.mubr.f32.mxu0 %v24413_v61  ;;  %7784 = vmatprep.mubr.f32.mxu1 %v24413_v61 }
 0x5f5   :  { %17786 = vmatpush1.bf16.msra.mxu0 %v24785_v13  ;;  %17978 = vmatpush1.bf16.msra.mxu1 %v24786_v63 }
 0x5f6   :  { %17788 = vmatprep.subr.bf16.mxu0 %v24787_v44  ;;  %17980 = vmatprep.subr.bf16.mxu1 %v24788_v10 }
 0x5f9   :  { %17790 = vmatpush1.bf16.msra.mxu0 %v24789_v47  ;;  %17982 = vmatpush1.bf16.msra.mxu1 %v24790_v58 }
 0x5fa   :  { %17792 = vmatprep.subr.bf16.mxu0 %v24875_v42  ;;  %17984 = vmatprep.subr.bf16.mxu1 %v24876_v24 }
 0x5fd   :  { %17794 = vmatpush1.bf16.msra.mxu0 %v24877_v33  ;;  %17986 = vmatpush1.bf16.msra.mxu1 %v24878_v50 }
 0x5fe   :  { %17796 = vmatprep.subr.bf16.mxu0 %v24879_v14  ;;  %17988 = vmatprep.subr.bf16.mxu1 %v24880_v48  ;;  %v24890_v14 = vld [vmem:[#allocation98_spill] sm:$0xff]  ;;  %v24891_v48 = vld [vmem:[#allocation59_spill] sm:$0xff] }
 0x601   :  { %17798 = vmatpush1.bf16.msra.mxu0 %v24881_v34  ;;  %17990 = vmatpush1.bf16.msra.mxu1 %v24882_v17  ;;  %v24892_v34 = vld [vmem:[#allocation99_spill] sm:$0xff]  ;;  %v24893_v17 = vld [vmem:[#allocation61_spill] sm:$0xff] }
 0x602   :  { %17800 = vmatprep.subr.bf16.mxu0 %v24883_v3  ;;  %17992 = vmatprep.subr.bf16.mxu1 %v24884_v23  ;;  %v24894_v3 = vld [vmem:[#allocation100_spill] sm:$0xff]  ;;  %v24895_v23 = vld [vmem:[#allocation63_spill] sm:$0xff] }
 0x605   :  { %17802 = vmatpush1.bf16.msra.mxu0 %v24885_v36  ;;  %17994 = vmatpush1.bf16.msra.mxu1 %v24886_v0  ;;  %v24896_v36 = vld [vmem:[#allocation101_spill] sm:$0xff]  ;;  %v24911_v0 = vld [vmem:[#allocation34_spill] sm:$0xff] }
 0x606   :  { %17804 = vmatprep.subr.bf16.mxu0 %v24887_v15  ;;  %17996 = vmatprep.subr.bf16.mxu1 %v24888_v19  ;;  %v24897_v19 = vld [vmem:[#allocation64_spill] sm:$0xff] }
 0x607   :  { %v24910_v15 = vld [vmem:[#allocation108_spill] sm:$0xff] }
 0x609   :  { %17806 = vmatpush1.bf16.msra.mxu0 %v24889_v16  ;;  %17998 = vmatpush1.bf16.msra.mxu1 %v24890_v14  ;;  %v24898_v16 = vld [vmem:[#allocation102_spill] sm:$0xff]  ;;  %v24899_v14 = vld [vmem:[#allocation65_spill] sm:$0xff] }
 0x60a   :  { %17808 = vmatprep.subr.bf16.mxu0 %v24891_v48  ;;  %18000 = vmatprep.subr.bf16.mxu1 %v24892_v34  ;;  %v24900_v48 = vld [vmem:[#allocation103_spill] sm:$0xff]  ;;  %v24905_v34 = vld [vmem:[#allocation28_spill] sm:$0xff] }
 0x60d   :  { %17810 = vmatpush1.bf16.msra.mxu0 %v24893_v17  ;;  %18002 = vmatpush1.bf16.msra.mxu1 %v24894_v3  ;;  %v24901_v3 = vld [vmem:[#allocation20_spill] sm:$0xff]  ;;  %v24904_v17 = vld [vmem:[#allocation105_spill] sm:$0xff] }
 0x60e   :  { %17812 = vmatprep.subr.bf16.mxu0 %v24895_v23  ;;  %18004 = vmatprep.subr.bf16.mxu1 %v24896_v36  ;;  %v24902_v23 = vld [vmem:[#allocation104_spill] sm:$0xff]  ;;  %v24903_v36 = vld [vmem:[#allocation21_spill] sm:$0xff] }
 0x610   :  { %6931 = vmatmul.mubr.f32.vlgmr.msra.gmra.mrb[10].mxu0 %v22417_v6  ;;  %7786 = vmatmul.mubr.f32.vlgmr.msra.gmra.mrb[12].mxu1 %v22417_v6 }
 0x611   :  { %17814 = vmatpush1.bf16.msra.mxu0 %v24897_v19  ;;  %18006 = vmatpush1.bf16.msra.mxu1 %v24898_v16  ;;  %v24906_v19 = vld [vmem:[#allocation106_spill] sm:$0xff] }
 0x612   :  { %17816 = vmatprep.subr.bf16.mxu0 %v24899_v14  ;;  %18008 = vmatprep.subr.bf16.mxu1 %v24900_v48  ;;  %v24907_v16 = vld [vmem:[#allocation30_spill] sm:$0xff]  ;;  %v24908_v14 = vld [vmem:[#allocation107_spill] sm:$0xff] }
 0x613   :  { %7065 = vmatprep.mubr.f32.mxu0 %v24413_v61  ;;  %7920 = vmatprep.mubr.f32.mxu1 %v24413_v61  ;;  %v24909_v48 = vld [vmem:[#allocation66_spill] sm:$0xff] }
 0x615   :  { %17818 = vmatpush1.bf16.msra.mxu0 %v24901_v3  ;;  %18010 = vmatpush1.bf16.msra.mxu1 %v24902_v23  ;;  %v24912_v3 = vld [vmem:[#allocation109_spill] sm:$0xff]  ;;  %v24913_v23 = vld [vmem:[#allocation67_spill] sm:$0xff] }
 0x616   :  { %17820 = vmatprep.subr.bf16.mxu0 %v24903_v36  ;;  %18012 = vmatprep.subr.bf16.mxu1 %v24904_v17  ;;  %v24914_v36 = vld [vmem:[#allocation110_spill] sm:$0xff]  ;;  %v24915_v17 = vld [vmem:[#allocation68_spill] sm:$0xff] }
 0x619   :  { %17822 = vmatpush1.bf16.msra.mxu0 %v24905_v34  ;;  %18014 = vmatpush1.bf16.msra.mxu1 %v24906_v19  ;;  %v24944_v19 = vld [vmem:[#allocation46_spill] sm:$0xff] }
 0x61a   :  { %17824 = vmatprep.subr.bf16.mxu0 %v24907_v16  ;;  %18016 = vmatprep.subr.bf16.mxu1 %v24908_v14  ;;  %v24937_v14 = vld [vmem:[#allocation125_spill] sm:$0xff]  ;;  %v24943_v16 = vld [vmem:[#allocation128_spill] sm:$0xff] }
 0x61d   :  { %17826 = vmatpush1.bf16.msra.mxu0 %v24909_v48  ;;  %18018 = vmatpush1.bf16.msra.mxu1 %v24910_v15  ;;  %v24933_v15 = vld [vmem:[#allocation119_spill] sm:$0xff]  ;;  %v24934_v48 = vld [vmem:[#allocation38_spill] sm:$0xff] }
 0x61e   :  { %17828 = vmatprep.subr.bf16.mxu0 %v24911_v0  ;;  %18020 = vmatprep.subr.bf16.mxu1 %v24912_v3  ;;  %v24916_v3 = vld [vmem:[#allocation72_spill] sm:$0xff]  ;;  %v24932_v0 = vld [vmem:[#allocation33_spill] sm:$0xff] }
 0x621   :  { %17830 = vmatpush1.bf16.msra.mxu0 %v24913_v23  ;;  %18022 = vmatpush1.bf16.msra.mxu1 %v24914_v36  ;;  %v24917_v23 = vld [vmem:[#allocation115_spill] sm:$0xff]  ;;  %v24918_v36 = vld [vmem:[#allocation73_spill] sm:$0xff] }
 0x622   :  { %17832 = vmatprep.subr.bf16.mxu0 %v24915_v17  ;;  %18024 = vmatprep.subr.bf16.mxu1 %v24832_v25  ;;  %v24919_v17 = vld [vmem:[#allocation116_spill] sm:$0xff]  ;;  %v24931_v25 = vld [vmem:[#allocation118_spill] sm:$0xff] }
 0x625   :  { %17834 = vmatpush1.bf16.msra.mxu0 %v24833_v11  ;;  %18026 = vmatpush1.bf16.msra.mxu1 %v24834_v49  ;;  %v24929_v49 = vld [vmem:[#allocation117_spill] sm:$0xff]  ;;  %v24930_v11 = vld [vmem:[#allocation31_spill] sm:$0xff] }
 0x626   :  { %17836 = vmatprep.subr.bf16.mxu0 %v24835_v53  ;;  %18028 = vmatprep.subr.bf16.mxu1 %v24836_v37  ;;  %v24927_v37 = vld [vmem:[#allocation84_spill] sm:$0xff]  ;;  %v24928_v53 = vld [vmem:[#allocation29_spill] sm:$0xff] }
 0x629   :  { %17838 = vmatpush1.bf16.msra.mxu0 %v24837_v9  ;;  %18030 = vmatpush1.bf16.msra.mxu1 %v24838_v4  ;;  %v24925_v4 = vld [vmem:[#allocation83_spill] sm:$0xff] }
 0x62a   :  { %17840 = vmatprep.subr.bf16.mxu0 %v24916_v3  ;;  %18032 = vmatprep.subr.bf16.mxu1 %v24917_v23  ;;  %v24923_v23 = vld [vmem:[#allocation82_spill] sm:$0xff]  ;;  %v24926_v9 = vld [vmem:[#allocation27_spill] sm:$0xff] }
 0x62b   :  { %v24924_v3 = vld [vmem:[#allocation26_spill] sm:$0xff] }
 0x62d   :  { %17842 = vmatpush1.bf16.msra.mxu0 %v24918_v36  ;;  %18034 = vmatpush1.bf16.msra.mxu1 %v24919_v17  ;;  %v24921_v17 = vld [vmem:[#allocation81_spill] sm:$0xff] }
 0x62e   :  { %17844 = vmatprep.subr.bf16.mxu0 %v24751_v57  ;;  %18036 = vmatprep.subr.bf16.mxu1 %v21096_v22  ;;  %v24922_v36 = vld [vmem:[#allocation25_spill] sm:$0xff] }
 0x630   :  { %7068 = vmatmul.mubr.f32.vlgmr.msra.gmra.mrb[10].mxu0 %v22420_v45  ;;  %7923 = vmatmul.mubr.f32.vlgmr.msra.gmra.mrb[12].mxu1 %v22420_v45  ;;  %v24920_v45 = vld [vmem:[#allocation24_spill] sm:$0xff] }
 0x631   :  { %17846 = vmatpush1.bf16.msra.mxu0 %v24752_v30  ;;  %18038 = vmatpush1.bf16.msra.mxu1 %v21114_v35 }
 0x632   :  { %17848 = vmatprep.subr.bf16.mxu0 %v24753_v51  ;;  %18040 = vmatprep.subr.bf16.mxu1 %v21123_v7 }
 0x633   :  { %7170 = vmatprep.mubr.f32.mxu0 %v24413_v61  ;;  %8025 = vmatprep.mubr.f32.mxu1 %v24413_v61 }
 0x635   :  { %17850 = vmatpush1.bf16.msra.mxu0 %v24754_v59  ;;  %18042 = vmatpush1.bf16.msra.mxu1 %v21143_v2 }
 0x636   :  { %17852 = vmatprep.subr.bf16.mxu0 %v24755_v60  ;;  %18044 = vmatprep.subr.bf16.mxu1 %v24680_v29 }
 0x639   :  { %17854 = vmatpush1.bf16.msra.mxu0 %v24756_v52  ;;  %18046 = vmatpush1.bf16.msra.mxu1 %v24681_v40 }
 0x63a   :  { %17856 = vmatprep.subr.bf16.mxu0 %v24757_v46  ;;  %18048 = vmatprep.subr.bf16.mxu1 %v24682_v21 }
 0x63d   :  { %17858 = vmatpush1.bf16.msra.mxu0 %v24758_v54  ;;  %18050 = vmatpush1.bf16.msra.mxu1 %v24683_v27 }
 0x63e   :  { %17860 = vmatprep.subr.bf16.mxu0 %v24759_v12  ;;  %18052 = vmatprep.subr.bf16.mxu1 %v24684_v31 }
 0x641   :  { %17862 = vmatpush1.bf16.msra.mxu0 %v24760_v28  ;;  %18054 = vmatpush1.bf16.msra.mxu1 %v24685_v55 }
 0x642   :  { %17864 = vmatprep.subr.bf16.mxu0 %v24761_v8  ;;  %18056 = vmatprep.subr.bf16.mxu1 %v24686_v26 }
 0x645   :  { %17866 = vmatpush1.bf16.msra.mxu0 %v24762_v20  ;;  %18058 = vmatpush1.bf16.msra.mxu1 %v21331_v5 }
 0x646   :  { %17868 = vmatprep.subr.bf16.mxu0 %v24920_v45  ;;  %18060 = vmatprep.subr.bf16.mxu1 %v24921_v17 }
 0x649   :  { %17870 = vmatpush1.bf16.msra.mxu0 %v24922_v36  ;;  %18062 = vmatpush1.bf16.msra.mxu1 %v24923_v23 }
 0x64a   :  { %17872 = vmatprep.subr.bf16.mxu0 %v24924_v3  ;;  %18064 = vmatprep.subr.bf16.mxu1 %v24925_v4 }
 0x64d   :  { %17874 = vmatpush1.bf16.msra.mxu0 %v24926_v9  ;;  %18066 = vmatpush1.bf16.msra.mxu1 %v24927_v37 }
 0x64e   :  { %17876 = vmatprep.subr.bf16.mxu0 %v24928_v53  ;;  %18068 = vmatprep.subr.bf16.mxu1 %v24929_v49  ;;  %v24935_v53 = vld [vmem:[#allocation124_spill] sm:$0xff]  ;;  %v24936_v49 = vld [vmem:[#allocation39_spill] sm:$0xff] }
 0x650   :  { %7174 = vmatmul.mubr.f32.vlgmr.msra.gmra.mrb[10].mxu0 %v22423_v18  ;;  %8029 = vmatmul.mubr.f32.vlgmr.msra.gmra.mrb[12].mxu1 %v22423_v18  ;;  %v24938_v18 = vld [vmem:[#allocation40_spill] sm:$0xff] }
 0x651   :  { %17878 = vmatpush1.bf16.msra.mxu0 %v24930_v11  ;;  %18070 = vmatpush1.bf16.msra.mxu1 %v24931_v25  ;;  %v24939_v11 = vld [vmem:[#allocation126_spill] sm:$0xff]  ;;  %v24940_v25 = vld [vmem:[#allocation41_spill] sm:$0xff] }
 0x652   :  { %17880 = vmatprep.subr.bf16.mxu0 %v24932_v0  ;;  %18072 = vmatprep.subr.bf16.mxu1 %v24933_v15  ;;  %v24941_v0 = vld [vmem:[#allocation127_spill] sm:$0xff]  ;;  %v24942_v15 = vld [vmem:[#allocation44_spill] sm:$0xff] }
 0x653   :  { %7340 = vmatprep.mubr.f32.mxu0 %v24413_v61  ;;  %8195 = vmatprep.mubr.f32.mxu1 %v24413_v61 }
 0x655   :  { %17882 = vmatpush1.bf16.msra.mxu0 %v24934_v48  ;;  %18074 = vmatpush1.bf16.msra.mxu1 %v24935_v53  ;;  %v24945_v48 = vld [vmem:[#allocation129_spill] sm:$0xff] }
 0x656   :  { %17884 = vmatprep.subr.bf16.mxu0 %v24936_v49  ;;  %18076 = vmatprep.subr.bf16.mxu1 %v24937_v14  ;;  %v24946_v53 = vld [vmem:[#allocation49_spill] sm:$0xff]  ;;  %v24947_v49 = vld [vmem:[#allocation130_spill] sm:$0xff] }
 0x657   :  { %v24948_v14 = vld [vmem:[#allocation50_spill] sm:$0xff] }
 0x659   :  { %17886 = vmatpush1.bf16.msra.mxu0 %v24938_v18  ;;  %18078 = vmatpush1.bf16.msra.mxu1 %v24939_v11  ;;  %v24949_v18 = vld [vmem:[#allocation131_spill] sm:$0xff]  ;;  %v24950_v11 = vld [vmem:[#allocation54_spill] sm:$0xff] }
 0x65a   :  { %17888 = vmatprep.subr.bf16.mxu0 %v24940_v25  ;;  %18080 = vmatprep.subr.bf16.mxu1 %v24941_v0  ;;  %v24951_v25 = vld [vmem:[#allocation132_spill] sm:$0xff] }
 0x65b   :  { %v24952_v0 = vld [vmem:[#allocation56_spill] sm:$0xff] }
 0x65d   :  { %17890 = vmatpush1.bf16.msra.mxu0 %v24942_v15  ;;  %18082 = vmatpush1.bf16.msra.mxu1 %v24943_v16  ;;  %v24953_v15 = vld [vmem:[#allocation133_spill] sm:$0xff]  ;;  %v24954_v16 = vld [vmem:[#allocation58_spill] sm:$0xff] }
 0x65e   :  { %17892 = vmatprep.subr.bf16.mxu0 %v24944_v19  ;;  %18084 = vmatprep.subr.bf16.mxu1 %v24945_v48  ;;  %v24955_v19 = vld [vmem:[#allocation134_spill] sm:$0xff]  ;;  %v24956_v48 = vld [vmem:[#allocation60_spill] sm:$0xff] }
 0x661   :  { %17894 = vmatpush1.bf16.msra.mxu0 %v24946_v53  ;;  %18086 = vmatpush1.bf16.msra.mxu1 %v24947_v49  ;;  %v24957_v53 = vld [vmem:[#allocation135_spill] sm:$0xff]  ;;  %v24958_v49 = vld [vmem:[#allocation62_spill] sm:$0xff] }
 0x662   :  { %17896 = vmatprep.subr.bf16.mxu0 %v24948_v14  ;;  %18088 = vmatprep.subr.bf16.mxu1 %v24949_v18  ;;  %v24959_v14 = vld [vmem:[#allocation136_spill] sm:$0xff]  ;;  %v24962_v18 = vcombine.high %v24872_v56, %v24873_v39 }
 0x665   :  { %17898 = vmatpush1.bf16.msra.mxu0 %v24950_v11  ;;  %18090 = vmatpush1.bf16.msra.mxu1 %v24951_v25 }
 0x666   :  { %17900 = vmatprep.subr.bf16.mxu0 %v24952_v0  ;;  %18092 = vmatprep.subr.bf16.mxu1 %v24953_v15 }
 0x669   :  { %17902 = vmatpush1.bf16.msra.mxu0 %v24954_v16  ;;  %18094 = vmatpush1.bf16.msra.mxu1 %v24955_v19 }
 0x66a   :  { %17904 = vmatprep.subr.bf16.mxu0 %v24956_v48  ;;  %18096 = vmatprep.subr.bf16.mxu1 %v24957_v53 }
 0x66d   :  { %17906 = vmatpush1.bf16.msra.mxu0 %v24958_v49  ;;  %18098 = vmatpush1.bf16.msra.mxu1 %v24959_v14  ;;  %v24961_v14 = vld [vmem:[#allocation85_spill] sm:$0xff] }
 0x66e   :  { %17908 = vmatprep.subr.bf16.mxu0 %v24751_v57  ;;  %18100 = vmatprep.subr.bf16.mxu1 %v21096_v22 }
 0x670   :  { %7342 = vmatmul.mubr.f32.vlgmr.msra.gmra.mrb[10].mxu0 %v22417_v6  ;;  %8197 = vmatmul.mubr.f32.vlgmr.msra.gmra.mrb[12].mxu1 %v22417_v6 }
 0x671   :  { %17910 = vmatpush1.bf16.msra.mxu0 %v24752_v30  ;;  %18102 = vmatpush1.bf16.msra.mxu1 %v21114_v35 }
 0x672   :  { %17912 = vmatprep.subr.bf16.mxu0 %v24753_v51  ;;  %18104 = vmatprep.subr.bf16.mxu1 %v21123_v7 }
 0x673   :  { %7444 = vmatprep.mubr.f32.mxu0 %v24413_v61  ;;  %8299 = vmatprep.mubr.f32.mxu1 %v24413_v61 }
 0x675   :  { %17914 = vmatpush1.bf16.msra.mxu0 %v24754_v59  ;;  %18106 = vmatpush1.bf16.msra.mxu1 %v21143_v2 }
 0x676   :  { %17916 = vmatprep.subr.bf16.mxu0 %v24755_v60  ;;  %18108 = vmatprep.subr.bf16.mxu1 %v24680_v29 }
 0x679   :  { %17918 = vmatpush1.bf16.msra.mxu0 %v24756_v52  ;;  %18110 = vmatpush1.bf16.msra.mxu1 %v24681_v40 }
 0x67a   :  { %17920 = vmatprep.subr.bf16.mxu0 %v24757_v46  ;;  %18112 = vmatprep.subr.bf16.mxu1 %v24682_v21 }
 0x67d   :  { %17922 = vmatpush1.bf16.msra.mxu0 %v24758_v54  ;;  %18114 = vmatpush1.bf16.msra.mxu1 %v24683_v27 }
 0x67e   :  { %17924 = vmatprep.subr.bf16.mxu0 %v24759_v12  ;;  %18116 = vmatprep.subr.bf16.mxu1 %v24684_v31 }
 0x681   :  { %17926 = vmatpush1.bf16.msra.mxu0 %v24760_v28  ;;  %18118 = vmatpush1.bf16.msra.mxu1 %v24685_v55 }
 0x682   :  { %17928 = vmatprep.subr.bf16.mxu0 %v24761_v8  ;;  %18120 = vmatprep.subr.bf16.mxu1 %v24686_v26 }
 0x685   :  { %17930 = vmatpush1.bf16.msra.mxu0 %v24762_v20  ;;  %18122 = vmatpush1.bf16.msra.mxu1 %v21331_v5 }
 0x686   :  { %17932 = vmatprep.subr.bf16.mxu0 %v24920_v45  ;;  %18124 = vmatprep.subr.bf16.mxu1 %v24921_v17 }
 0x689   :  { %17934 = vmatpush1.bf16.msra.mxu0 %v24922_v36  ;;  %18126 = vmatpush1.bf16.msra.mxu1 %v24923_v23 }
 0x68a   :  { %17936 = vmatprep.subr.bf16.mxu0 %v24924_v3  ;;  %18128 = vmatprep.subr.bf16.mxu1 %v24925_v4 }
 0x68d   :  { %17938 = vmatpush1.bf16.msra.mxu0 %v24926_v9  ;;  %18130 = vmatpush1.bf16.msra.mxu1 %v24927_v37 }
 0x68e   :  { %18132 = vmatprep.subr.bf16.mxu0 %v24751_v57  ;;  %18324 = vmatprep.subr.bf16.mxu1 %v21096_v22 }
 0x690   :  { %7446 = vmatmul.mubr.f32.vlgmr.msra.gmra.mrb[10].mxu0 %v22417_v6  ;;  %8301 = vmatmul.mubr.f32.vlgmr.msra.gmra.mrb[12].mxu1 %v22417_v6  ;;  %v24960_v6 = vld [vmem:[#allocation32_spill] sm:$0xff] }
 0x691   :  { %18134 = vmatpush1.bf16.msra.mxu0 %v24752_v30  ;;  %18326 = vmatpush1.bf16.msra.mxu1 %v21114_v35 }
 0x692   :  { %18136 = vmatprep.subr.bf16.mxu0 %v24753_v51  ;;  %18328 = vmatprep.subr.bf16.mxu1 %v21123_v7 }
 0x693   :  { %8461 = vmatprep.mubr.f32.mxu0 %v24413_v61  ;;  %9316 = vmatprep.mubr.f32.mxu1 %v24413_v61 }
 0x695   :  { %18138 = vmatpush1.bf16.msra.mxu0 %v24754_v59  ;;  %18330 = vmatpush1.bf16.msra.mxu1 %v21143_v2 }
 0x696   :  { %18140 = vmatprep.subr.bf16.mxu0 %v24755_v60  ;;  %18332 = vmatprep.subr.bf16.mxu1 %v24680_v29 }
 0x699   :  { %18142 = vmatpush1.bf16.msra.mxu0 %v24756_v52  ;;  %18334 = vmatpush1.bf16.msra.mxu1 %v24681_v40 }
 0x69a   :  { %18144 = vmatprep.subr.bf16.mxu0 %v24757_v46  ;;  %18336 = vmatprep.subr.bf16.mxu1 %v24682_v21 }
 0x69d   :  { %18146 = vmatpush1.bf16.msra.mxu0 %v24758_v54  ;;  %18338 = vmatpush1.bf16.msra.mxu1 %v24683_v27 }
 0x69e   :  { %18148 = vmatprep.subr.bf16.mxu0 %v24759_v12  ;;  %18340 = vmatprep.subr.bf16.mxu1 %v24684_v31 }
 0x6a1   :  { %18150 = vmatpush1.bf16.msra.mxu0 %v24760_v28  ;;  %18342 = vmatpush1.bf16.msra.mxu1 %v24685_v55 }
 0x6a2   :  { %18152 = vmatprep.subr.bf16.mxu0 %v24761_v8  ;;  %18344 = vmatprep.subr.bf16.mxu1 %v24686_v26 }
 0x6a5   :  { %18154 = vmatpush1.bf16.msra.mxu0 %v24762_v20  ;;  %18346 = vmatpush1.bf16.msra.mxu1 %v21331_v5 }
 0x6a6   :  { %18156 = vmatprep.subr.bf16.mxu0 %v24920_v45  ;;  %18348 = vmatprep.subr.bf16.mxu1 %v24921_v17 }
 0x6a9   :  { %18158 = vmatpush1.bf16.msra.mxu0 %v24922_v36  ;;  %18350 = vmatpush1.bf16.msra.mxu1 %v24923_v23 }
 0x6aa   :  { %18160 = vmatprep.subr.bf16.mxu0 %v24924_v3  ;;  %18352 = vmatprep.subr.bf16.mxu1 %v24925_v4 }
 0x6ad   :  { %18162 = vmatpush1.bf16.msra.mxu0 %v24926_v9  ;;  %18354 = vmatpush1.bf16.msra.mxu1 %v24927_v37 }
 0x6ae   :  { %18164 = vmatprep.subr.bf16.mxu0 %v24960_v6  ;;  %18356 = vmatprep.subr.bf16.mxu1 %v24961_v14 }
 0x763   :  { %v7447_v49 = vpop.f32.mrb[10].mxu0  ;;  %v8302_v53 = vpop.f32.mrb[12].mxu1 }
 0x764   :  { %v7449_v48 = vpop.f32.mrb[11].mxu0  ;;  %v8304_v19 = vpop.f32.mrb[13].mxu1 }
 0x765   :  { %v8311_v16 = vcombine.low %v7447_v49, %v7449_v48  ;;  %v8312_v15 = vcombine.low %v8302_v53, %v8304_v19 }
 0x767   :  { %v8319_v0 = vrot.slane %v8311_v16, %v24625_v62  ;;  %v8326_v25 = vrot.slane %v8312_v15, %v24625_v62 }
 0x769   :  { %v8327_v11 = vcombine.low %v8319_v0, %v8326_v25 }
 0x76b   :  { %v8329_v9 = vadd.f32 %v8327_v11, %v24962_v18  ;;  %v24963_v18 = vld [vmem:[#allocation48_spill] sm:$0xff] }
 0x76d   :  { %v16261_v37 = vmul.f32 -1.442695, %v8329_v9  ;;  %v8337_v4 = vrot.slane %v8329_v9, 2  ;;  %v8348_v14 = vrot.slane %v8329_v9, 6  ;;  %v8345_v36 = vrot.slane %v8329_v9, 4 }
 0x76f   :  { %20134 = vpow2.f32 %v16261_v37  ;;  %v16262_v6 = vmul.f32 -1.442695, %v8337_v4  ;;  %v16263_v3 = vmul.f32 -1.442695, %v8348_v14 }
 0x771   :  { %20136 = vpow2.f32 %v16262_v6  ;;  %v24964_v6 = vld [vmem:[#allocation93_spill] sm:$0xff] }
 0x772   :  { %20138 = vpow2.f32 %v16263_v3 }
 0x779   :  { %v20135_v23 = vpop.eup %20134 }
 0x77a   :  { %v8333_v49 = vadd.f32 1.0, %v20135_v23 }
 0x77b   :  { %v20137_v53 = vpop.eup %20136 }
 0x77c   :  { %20140 = vrcp.f32 %v8333_v49  ;;  %v8342_v48 = vadd.f32 1.0, %v20137_v53  ;;  %v20139_v25 = vpop.eup %20138  ;;  %v24965_v49 = vld [vmem:[#allocation51_spill] sm:$0xff]  ;;  %v24966_v53 = vld [vmem:[#allocation94_spill] sm:$0xff] }
 0x77d   :  { %20142 = vtanh.f32 %v8345_v36  ;;  %v8353_v11 = vadd.f32 1.0, %v20139_v25  ;;  %v24968_v25 = vld [vmem:[#allocation95_spill] sm:$0xff] }
 0x77e   :  { %20144 = vrcp.f32 %v8342_v48  ;;  %v24967_v48 = vld [vmem:[#allocation52_spill] sm:$0xff] }
 0x77f   :  { %20146 = vrcp.f32 %v8353_v11  ;;  %v24972_v11 = vld [vmem:[#allocation97_spill] sm:$0xff] }
 0x786   :  { %v20141_v0 = vpop.eup %20140 }
 0x787   :  { %v20143_v39 = vpop.eup %20142 }
 0x788   :  { %v20145_v56 = vpop.eup %20144  ;;  %v8357_v4 = vmul.f32 %v20143_v39, %v20141_v0  ;;  %v24969_v0 = vld [vmem:[#allocation53_spill] sm:$0xff]  ;;  %v24970_v39 = vld [vmem:[#allocation96_spill] sm:$0xff] }
 0x789   :  { %v8356_v37 = vmul.f32 %v20145_v56, %v22414_v41  ;;  %v20147_v9 = vpop.eup %20146  ;;  %v24971_v56 = vld [vmem:[#allocation55_spill] sm:$0xff] }
 0x78b   :  { %v22647_v15 = vadd.f32 %v8357_v4, %v8356_v37  ;;  %v24973_v37 = vld [vmem:[#allocation57_spill] sm:$0xff]  ;;  %v24974_v4 = vld [vmem:[#allocation98_spill] sm:$0xff] }
 0x78d   :  { %20148 = vtanh.f32 %v22647_v15 }
 0x797   :  { %v20149_v14 = vpop.eup %20148 }
 0x798   :  { %v8360_v3 = vmul.f32 %v20149_v14, %v20147_v9  ;;  %v24975_v9 = vld [vmem:[#allocation59_spill] sm:$0xff] }
 0x799   :  { %v24976_v14 = vld [vmem:[#allocation99_spill] sm:$0xff] }
 0x79a   :  { %8362 = vst [vmem:[#allocation3 + $0x6] sm:$0x3] %v8360_v3  ;;  %v22650_v23 = vand.u32 4294901760, %v8360_v3 }
 0x79c   :  { %v22653_v36 = vsub.f32 %v8360_v3, %v22650_v23  ;;  %v24977_v3 = vld [vmem:[#allocation61_spill] sm:$0xff] }
 0x79e   :  { %v22656_v19 = vand.u32 4294901760, %v22653_v36 }
 0x7a0   :  { %v8465_v41 = vsub.f32 %v22653_v36, %v22656_v19 }
 0x7a2   :  { %v8466_v16 = vand.u32 4294901760, %v8465_v41  ;;  %v24978_v41 = vld [vmem:[#allocation100_spill] sm:$0xff] }
 0x7a4   :  { %8467 = vmatmul.mubr.f32.vlgmr.msra.gmra.mrb[12].mxu0 %v8466_v16  ;;  %9322 = vmatmul.mubr.f32.vlgmr.msra.gmra.mrb[14].mxu1 %v8466_v16  ;;  %v24979_v16 = vld [vmem:[#allocation63_spill] sm:$0xff] }
 0x7a5   :  { %18166 = vmatpush1.bf16.msra.mxu0 %v24689_v43  ;;  %18358 = vmatpush1.bf16.msra.mxu1 %v24690_v32 }
 0x7a6   :  { %18168 = vmatprep.subr.bf16.mxu0 %v24691_v38  ;;  %18360 = vmatprep.subr.bf16.mxu1 %v24692_v1 }
 0x7a7   :  { %8697 = vmatprep.mubr.f32.mxu0 %v24413_v61  ;;  %9552 = vmatprep.mubr.f32.mxu1 %v24413_v61 }
 0x7a9   :  { %18170 = vmatpush1.bf16.msra.mxu0 %v24785_v13  ;;  %18362 = vmatpush1.bf16.msra.mxu1 %v24786_v63 }
 0x7aa   :  { %18172 = vmatprep.subr.bf16.mxu0 %v24787_v44  ;;  %18364 = vmatprep.subr.bf16.mxu1 %v24788_v10 }
 0x7ad   :  { %18174 = vmatpush1.bf16.msra.mxu0 %v24789_v47  ;;  %18366 = vmatpush1.bf16.msra.mxu1 %v24790_v58 }
 0x7ae   :  { %18176 = vmatprep.subr.bf16.mxu0 %v24875_v42  ;;  %18368 = vmatprep.subr.bf16.mxu1 %v24876_v24 }
 0x7b1   :  { %18178 = vmatpush1.bf16.msra.mxu0 %v24877_v33  ;;  %18370 = vmatpush1.bf16.msra.mxu1 %v24878_v50 }
 0x7b2   :  { %18180 = vmatprep.subr.bf16.mxu0 %v24963_v18  ;;  %18372 = vmatprep.subr.bf16.mxu1 %v24964_v6 }
 0x7b5   :  { %18182 = vmatpush1.bf16.msra.mxu0 %v24965_v49  ;;  %18374 = vmatpush1.bf16.msra.mxu1 %v24966_v53  ;;  %v25032_v53 = vld [vmem:[#allocation46_spill] sm:$0xff] }
 0x7b6   :  { %18184 = vmatprep.subr.bf16.mxu0 %v24967_v48  ;;  %18376 = vmatprep.subr.bf16.mxu1 %v24968_v25  ;;  %v25025_v25 = vld [vmem:[#allocation125_spill] sm:$0xff]  ;;  %v25031_v48 = vld [vmem:[#allocation128_spill] sm:$0xff] }
 0x7b9   :  { %18186 = vmatpush1.bf16.msra.mxu0 %v24969_v0  ;;  %18378 = vmatpush1.bf16.msra.mxu1 %v24970_v39  ;;  %v24980_v0 = vld [vmem:[#allocation101_spill] sm:$0xff]  ;;  %v25022_v39 = vld [vmem:[#allocation38_spill] sm:$0xff] }
 0x7ba   :  { %18188 = vmatprep.subr.bf16.mxu0 %v24971_v56  ;;  %18380 = vmatprep.subr.bf16.mxu1 %v24972_v11  ;;  %v24981_v11 = vld [vmem:[#allocation64_spill] sm:$0xff]  ;;  %v24994_v56 = vld [vmem:[#allocation34_spill] sm:$0xff] }
 0x7bd   :  { %18190 = vmatpush1.bf16.msra.mxu0 %v24973_v37  ;;  %18382 = vmatpush1.bf16.msra.mxu1 %v24974_v4  ;;  %v24982_v37 = vld [vmem:[#allocation102_spill] sm:$0xff]  ;;  %v24983_v4 = vld [vmem:[#allocation65_spill] sm:$0xff] }
 0x7be   :  { %18192 = vmatprep.subr.bf16.mxu0 %v24975_v9  ;;  %18384 = vmatprep.subr.bf16.mxu1 %v24976_v14  ;;  %v24984_v9 = vld [vmem:[#allocation103_spill] sm:$0xff]  ;;  %v24993_v14 = vld [vmem:[#allocation108_spill] sm:$0xff] }
 0x7c1   :  { %18194 = vmatpush1.bf16.msra.mxu0 %v24977_v3  ;;  %18386 = vmatpush1.bf16.msra.mxu1 %v24978_v41  ;;  %v24985_v41 = vld [vmem:[#allocation20_spill] sm:$0xff]  ;;  %v24988_v3 = vld [vmem:[#allocation105_spill] sm:$0xff] }
 0x7c2   :  { %18196 = vmatprep.subr.bf16.mxu0 %v24979_v16  ;;  %18388 = vmatprep.subr.bf16.mxu1 %v24980_v0  ;;  %v24986_v16 = vld [vmem:[#allocation104_spill] sm:$0xff]  ;;  %v24987_v0 = vld [vmem:[#allocation21_spill] sm:$0xff] }
 0x7c4   :  { %8699 = vmatmul.mubr.f32.vlgmr.msra.gmra.mrb[12].mxu0 %v22650_v23  ;;  %9554 = vmatmul.mubr.f32.vlgmr.msra.gmra.mrb[14].mxu1 %v22650_v23 }
 0x7c5   :  { %18198 = vmatpush1.bf16.msra.mxu0 %v24981_v11  ;;  %18390 = vmatpush1.bf16.msra.mxu1 %v24982_v37  ;;  %v24989_v11 = vld [vmem:[#allocation106_spill] sm:$0xff] }
 0x7c6   :  { %18200 = vmatprep.subr.bf16.mxu0 %v24983_v4  ;;  %18392 = vmatprep.subr.bf16.mxu1 %v24984_v9  ;;  %v24990_v37 = vld [vmem:[#allocation30_spill] sm:$0xff]  ;;  %v24991_v4 = vld [vmem:[#allocation107_spill] sm:$0xff] }
 0x7c7   :  { %8833 = vmatprep.mubr.f32.mxu0 %v24413_v61  ;;  %9688 = vmatprep.mubr.f32.mxu1 %v24413_v61  ;;  %v24992_v9 = vld [vmem:[#allocation66_spill] sm:$0xff] }
 0x7c9   :  { %18202 = vmatpush1.bf16.msra.mxu0 %v24985_v41  ;;  %18394 = vmatpush1.bf16.msra.mxu1 %v24986_v16  ;;  %v24995_v41 = vld [vmem:[#allocation109_spill] sm:$0xff]  ;;  %v24996_v16 = vld [vmem:[#allocation67_spill] sm:$0xff] }
 0x7ca   :  { %18204 = vmatprep.subr.bf16.mxu0 %v24987_v0  ;;  %18396 = vmatprep.subr.bf16.mxu1 %v24988_v3  ;;  %v24997_v0 = vld [vmem:[#allocation110_spill] sm:$0xff]  ;;  %v24998_v3 = vld [vmem:[#allocation68_spill] sm:$0xff] }
 0x7cd   :  { %18206 = vmatpush1.bf16.msra.mxu0 %v24905_v34  ;;  %18398 = vmatpush1.bf16.msra.mxu1 %v24989_v11  ;;  %v24999_v34 = vld [vmem:[#allocation111_spill] sm:$0xff]  ;;  %v25000_v11 = vld [vmem:[#allocation69_spill] sm:$0xff] }
 0x7ce   :  { %18208 = vmatprep.subr.bf16.mxu0 %v24990_v37  ;;  %18400 = vmatprep.subr.bf16.mxu1 %v24991_v4  ;;  %v25001_v37 = vld [vmem:[#allocation112_spill] sm:$0xff]  ;;  %v25002_v4 = vld [vmem:[#allocation70_spill] sm:$0xff] }
 0x7d1   :  { %18210 = vmatpush1.bf16.msra.mxu0 %v24992_v9  ;;  %18402 = vmatpush1.bf16.msra.mxu1 %v24993_v14  ;;  %v25003_v9 = vld [vmem:[#allocation113_spill] sm:$0xff]  ;;  %v25004_v14 = vld [vmem:[#allocation71_spill] sm:$0xff] }
 0x7d2   :  { %18212 = vmatprep.subr.bf16.mxu0 %v24994_v56  ;;  %18404 = vmatprep.subr.bf16.mxu1 %v24995_v41  ;;  %v25005_v56 = vld [vmem:[#allocation114_spill] sm:$0xff]  ;;  %v25006_v41 = vld [vmem:[#allocation72_spill] sm:$0xff] }
 0x7d5   :  { %18214 = vmatpush1.bf16.msra.mxu0 %v24996_v16  ;;  %18406 = vmatpush1.bf16.msra.mxu1 %v24997_v0  ;;  %v25007_v16 = vld [vmem:[#allocation115_spill] sm:$0xff]  ;;  %v25008_v0 = vld [vmem:[#allocation73_spill] sm:$0xff] }
 0x7d6   :  { %18216 = vmatprep.subr.bf16.mxu0 %v24998_v3  ;;  %18408 = vmatprep.subr.bf16.mxu1 %v24999_v34  ;;  %v25009_v3 = vld [vmem:[#allocation116_spill] sm:$0xff]  ;;  %v25021_v34 = vld [vmem:[#allocation119_spill] sm:$0xff] }
 0x7d9   :  { %18218 = vmatpush1.bf16.msra.mxu0 %v25000_v11  ;;  %18410 = vmatpush1.bf16.msra.mxu1 %v25001_v37  ;;  %v25019_v37 = vld [vmem:[#allocation118_spill] sm:$0xff]  ;;  %v25020_v11 = vld [vmem:[#allocation33_spill] sm:$0xff] }
 0x7da   :  { %18220 = vmatprep.subr.bf16.mxu0 %v25002_v4  ;;  %18412 = vmatprep.subr.bf16.mxu1 %v25003_v9  ;;  %v25017_v9 = vld [vmem:[#allocation117_spill] sm:$0xff]  ;;  %v25018_v4 = vld [vmem:[#allocation31_spill] sm:$0xff] }
 0x7dd   :  { %18222 = vmatpush1.bf16.msra.mxu0 %v25004_v14  ;;  %18414 = vmatpush1.bf16.msra.mxu1 %v25005_v56  ;;  %v25015_v56 = vld [vmem:[#allocation84_spill] sm:$0xff]  ;;  %v25016_v14 = vld [vmem:[#allocation29_spill] sm:$0xff] }
 0x7de   :  { %18224 = vmatprep.subr.bf16.mxu0 %v25006_v41  ;;  %18416 = vmatprep.subr.bf16.mxu1 %v25007_v16  ;;  %v25013_v16 = vld [vmem:[#allocation83_spill] sm:$0xff] }
 0x7df   :  { %v25014_v41 = vld [vmem:[#allocation27_spill] sm:$0xff] }
 0x7e1   :  { %18226 = vmatpush1.bf16.msra.mxu0 %v25008_v0  ;;  %18418 = vmatpush1.bf16.msra.mxu1 %v25009_v3  ;;  %v25011_v3 = vld [vmem:[#allocation82_spill] sm:$0xff] }
 0x7e2   :  { %18228 = vmatprep.subr.bf16.mxu0 %v24751_v57  ;;  %18420 = vmatprep.subr.bf16.mxu1 %v21096_v22  ;;  %v25012_v0 = vld [vmem:[#allocation26_spill] sm:$0xff] }
 0x7e4   :  { %8836 = vmatmul.mubr.f32.vlgmr.msra.gmra.mrb[12].mxu0 %v22653_v36  ;;  %9691 = vmatmul.mubr.f32.vlgmr.msra.gmra.mrb[14].mxu1 %v22653_v36  ;;  %v25010_v36 = vld [vmem:[#allocation25_spill] sm:$0xff] }
 0x7e5   :  { %18230 = vmatpush1.bf16.msra.mxu0 %v24752_v30  ;;  %18422 = vmatpush1.bf16.msra.mxu1 %v21114_v35 }
 0x7e6   :  { %18232 = vmatprep.subr.bf16.mxu0 %v24753_v51  ;;  %18424 = vmatprep.subr.bf16.mxu1 %v21123_v7 }
 0x7e7   :  { %8938 = vmatprep.mubr.f32.mxu0 %v24413_v61  ;;  %9793 = vmatprep.mubr.f32.mxu1 %v24413_v61 }
 0x7e9   :  { %18234 = vmatpush1.bf16.msra.mxu0 %v24754_v59  ;;  %18426 = vmatpush1.bf16.msra.mxu1 %v21143_v2 }
 0x7ea   :  { %18236 = vmatprep.subr.bf16.mxu0 %v24755_v60  ;;  %18428 = vmatprep.subr.bf16.mxu1 %v24680_v29 }
 0x7ed   :  { %18238 = vmatpush1.bf16.msra.mxu0 %v24756_v52  ;;  %18430 = vmatpush1.bf16.msra.mxu1 %v24681_v40 }
 0x7ee   :  { %18240 = vmatprep.subr.bf16.mxu0 %v24757_v46  ;;  %18432 = vmatprep.subr.bf16.mxu1 %v24682_v21 }
 0x7f1   :  { %18242 = vmatpush1.bf16.msra.mxu0 %v24758_v54  ;;  %18434 = vmatpush1.bf16.msra.mxu1 %v24683_v27 }
 0x7f2   :  { %18244 = vmatprep.subr.bf16.mxu0 %v24759_v12  ;;  %18436 = vmatprep.subr.bf16.mxu1 %v24684_v31 }
 0x7f5   :  { %18246 = vmatpush1.bf16.msra.mxu0 %v24760_v28  ;;  %18438 = vmatpush1.bf16.msra.mxu1 %v24685_v55 }
 0x7f6   :  { %18248 = vmatprep.subr.bf16.mxu0 %v24761_v8  ;;  %18440 = vmatprep.subr.bf16.mxu1 %v24686_v26 }
 0x7f9   :  { %18250 = vmatpush1.bf16.msra.mxu0 %v24762_v20  ;;  %18442 = vmatpush1.bf16.msra.mxu1 %v21331_v5 }
 0x7fa   :  { %18252 = vmatprep.subr.bf16.mxu0 %v24920_v45  ;;  %18444 = vmatprep.subr.bf16.mxu1 %v24921_v17 }
 0x7fd   :  { %18254 = vmatpush1.bf16.msra.mxu0 %v25010_v36  ;;  %18446 = vmatpush1.bf16.msra.mxu1 %v25011_v3 }
 0x7fe   :  { %18256 = vmatprep.subr.bf16.mxu0 %v25012_v0  ;;  %18448 = vmatprep.subr.bf16.mxu1 %v25013_v16 }
 0x801   :  { %18258 = vmatpush1.bf16.msra.mxu0 %v25014_v41  ;;  %18450 = vmatpush1.bf16.msra.mxu1 %v25015_v56 }
 0x802   :  { %18260 = vmatprep.subr.bf16.mxu0 %v25016_v14  ;;  %18452 = vmatprep.subr.bf16.mxu1 %v25017_v9  ;;  %v25023_v14 = vld [vmem:[#allocation124_spill] sm:$0xff]  ;;  %v25024_v9 = vld [vmem:[#allocation39_spill] sm:$0xff] }
 0x804   :  { %8942 = vmatmul.mubr.f32.vlgmr.msra.gmra.mrb[12].mxu0 %v22656_v19  ;;  %9797 = vmatmul.mubr.f32.vlgmr.msra.gmra.mrb[14].mxu1 %v22656_v19  ;;  %v25026_v19 = vld [vmem:[#allocation40_spill] sm:$0xff] }
 0x805   :  { %18262 = vmatpush1.bf16.msra.mxu0 %v25018_v4  ;;  %18454 = vmatpush1.bf16.msra.mxu1 %v25019_v37  ;;  %v25027_v4 = vld [vmem:[#allocation126_spill] sm:$0xff]  ;;  %v25028_v37 = vld [vmem:[#allocation41_spill] sm:$0xff] }
 0x806   :  { %18264 = vmatprep.subr.bf16.mxu0 %v25020_v11  ;;  %18456 = vmatprep.subr.bf16.mxu1 %v25021_v34  ;;  %v25029_v11 = vld [vmem:[#allocation127_spill] sm:$0xff]  ;;  %v25030_v34 = vld [vmem:[#allocation44_spill] sm:$0xff] }
 0x807   :  { %9108 = vmatprep.mubr.f32.mxu0 %v24413_v61  ;;  %9963 = vmatprep.mubr.f32.mxu1 %v24413_v61 }
 0x809   :  { %18266 = vmatpush1.bf16.msra.mxu0 %v25022_v39  ;;  %18458 = vmatpush1.bf16.msra.mxu1 %v25023_v14  ;;  %v25033_v39 = vld [vmem:[#allocation129_spill] sm:$0xff] }
 0x80a   :  { %18268 = vmatprep.subr.bf16.mxu0 %v25024_v9  ;;  %18460 = vmatprep.subr.bf16.mxu1 %v25025_v25  ;;  %v25034_v14 = vld [vmem:[#allocation49_spill] sm:$0xff]  ;;  %v25035_v9 = vld [vmem:[#allocation130_spill] sm:$0xff] }
 0x80b   :  { %v25036_v25 = vld [vmem:[#allocation50_spill] sm:$0xff] }
 0x80d   :  { %18270 = vmatpush1.bf16.msra.mxu0 %v25026_v19  ;;  %18462 = vmatpush1.bf16.msra.mxu1 %v25027_v4  ;;  %v25037_v19 = vld [vmem:[#allocation131_spill] sm:$0xff]  ;;  %v25038_v4 = vld [vmem:[#allocation54_spill] sm:$0xff] }
 0x80e   :  { %18272 = vmatprep.subr.bf16.mxu0 %v25028_v37  ;;  %18464 = vmatprep.subr.bf16.mxu1 %v25029_v11  ;;  %v25039_v37 = vld [vmem:[#allocation132_spill] sm:$0xff] }
 0x80f   :  { %v25040_v11 = vld [vmem:[#allocation56_spill] sm:$0xff] }
 0x811   :  { %18274 = vmatpush1.bf16.msra.mxu0 %v25030_v34  ;;  %18466 = vmatpush1.bf16.msra.mxu1 %v25031_v48  ;;  %v25041_v34 = vld [vmem:[#allocation133_spill] sm:$0xff]  ;;  %v25042_v48 = vld [vmem:[#allocation58_spill] sm:$0xff] }
 0x812   :  { %18276 = vmatprep.subr.bf16.mxu0 %v25032_v53  ;;  %18468 = vmatprep.subr.bf16.mxu1 %v25033_v39  ;;  %v25043_v53 = vld [vmem:[#allocation134_spill] sm:$0xff]  ;;  %v25044_v39 = vld [vmem:[#allocation60_spill] sm:$0xff] }
 0x815   :  { %18278 = vmatpush1.bf16.msra.mxu0 %v25034_v14  ;;  %18470 = vmatpush1.bf16.msra.mxu1 %v25035_v9  ;;  %v25045_v14 = vld [vmem:[#allocation135_spill] sm:$0xff]  ;;  %v25046_v9 = vld [vmem:[#allocation62_spill] sm:$0xff] }
 0x816   :  { %18280 = vmatprep.subr.bf16.mxu0 %v25036_v25  ;;  %18472 = vmatprep.subr.bf16.mxu1 %v25037_v19  ;;  %v25047_v25 = vld [vmem:[#allocation136_spill] sm:$0xff] }
 0x817   :  { %v25050_v19 = vld [vmem:[#allocation120_spill] sm:$0xff] }
 0x819   :  { %18282 = vmatpush1.bf16.msra.mxu0 %v25038_v4  ;;  %18474 = vmatpush1.bf16.msra.mxu1 %v25039_v37 }
 0x81a   :  { %18284 = vmatprep.subr.bf16.mxu0 %v25040_v11  ;;  %18476 = vmatprep.subr.bf16.mxu1 %v25041_v34 }
 0x81d   :  { %18286 = vmatpush1.bf16.msra.mxu0 %v25042_v48  ;;  %18478 = vmatpush1.bf16.msra.mxu1 %v25043_v53 }
 0x81e   :  { %18288 = vmatprep.subr.bf16.mxu0 %v25044_v39  ;;  %18480 = vmatprep.subr.bf16.mxu1 %v25045_v14 }
 0x821   :  { %18290 = vmatpush1.bf16.msra.mxu0 %v25046_v9  ;;  %18482 = vmatpush1.bf16.msra.mxu1 %v25047_v25  ;;  %v25049_v25 = vld [vmem:[#allocation85_spill] sm:$0xff] }
 0x822   :  { %18292 = vmatprep.subr.bf16.mxu0 %v24751_v57  ;;  %18484 = vmatprep.subr.bf16.mxu1 %v21096_v22 }
 0x824   :  { %9110 = vmatmul.mubr.f32.vlgmr.msra.gmra.mrb[12].mxu0 %v22650_v23  ;;  %9965 = vmatmul.mubr.f32.vlgmr.msra.gmra.mrb[14].mxu1 %v22650_v23 }
 0x825   :  { %18294 = vmatpush1.bf16.msra.mxu0 %v24752_v30  ;;  %18486 = vmatpush1.bf16.msra.mxu1 %v21114_v35 }
 0x826   :  { %18296 = vmatprep.subr.bf16.mxu0 %v24753_v51  ;;  %18488 = vmatprep.subr.bf16.mxu1 %v21123_v7 }
 0x827   :  { %9212 = vmatprep.mubr.f32.mxu0 %v24413_v61  ;;  %10067 = vmatprep.mubr.f32.mxu1 %v24413_v61 }
 0x829   :  { %18298 = vmatpush1.bf16.msra.mxu0 %v24754_v59  ;;  %18490 = vmatpush1.bf16.msra.mxu1 %v21143_v2 }
 0x82a   :  { %18300 = vmatprep.subr.bf16.mxu0 %v24755_v60  ;;  %18492 = vmatprep.subr.bf16.mxu1 %v24680_v29 }
 0x82d   :  { %18302 = vmatpush1.bf16.msra.mxu0 %v24756_v52  ;;  %18494 = vmatpush1.bf16.msra.mxu1 %v24681_v40 }
 0x82e   :  { %18304 = vmatprep.subr.bf16.mxu0 %v24757_v46  ;;  %18496 = vmatprep.subr.bf16.mxu1 %v24682_v21 }
 0x831   :  { %18306 = vmatpush1.bf16.msra.mxu0 %v24758_v54  ;;  %18498 = vmatpush1.bf16.msra.mxu1 %v24683_v27 }
 0x832   :  { %18308 = vmatprep.subr.bf16.mxu0 %v24759_v12  ;;  %18500 = vmatprep.subr.bf16.mxu1 %v24684_v31 }
 0x835   :  { %18310 = vmatpush1.bf16.msra.mxu0 %v24760_v28  ;;  %18502 = vmatpush1.bf16.msra.mxu1 %v24685_v55 }
 0x836   :  { %18312 = vmatprep.subr.bf16.mxu0 %v24761_v8  ;;  %18504 = vmatprep.subr.bf16.mxu1 %v24686_v26 }
 0x839   :  { %18314 = vmatpush1.bf16.msra.mxu0 %v24762_v20  ;;  %18506 = vmatpush1.bf16.msra.mxu1 %v21331_v5 }
 0x83a   :  { %18316 = vmatprep.subr.bf16.mxu0 %v24920_v45  ;;  %18508 = vmatprep.subr.bf16.mxu1 %v24921_v17 }
 0x83d   :  { %18318 = vmatpush1.bf16.msra.mxu0 %v25010_v36  ;;  %18510 = vmatpush1.bf16.msra.mxu1 %v25011_v3 }
 0x83e   :  { %18320 = vmatprep.subr.bf16.mxu0 %v25012_v0  ;;  %18512 = vmatprep.subr.bf16.mxu1 %v25013_v16 }
 0x841   :  { %18322 = vmatpush1.bf16.msra.mxu0 %v25014_v41  ;;  %18514 = vmatpush1.bf16.msra.mxu1 %v25015_v56 }
 0x842   :  { %18516 = vmatprep.subr.bf16.mxu0 %v24751_v57  ;;  %18708 = vmatprep.subr.bf16.mxu1 %v21096_v22 }
 0x844   :  { %9214 = vmatmul.mubr.f32.vlgmr.msra.gmra.mrb[12].mxu0 %v22650_v23  ;;  %10069 = vmatmul.mubr.f32.vlgmr.msra.gmra.mrb[14].mxu1 %v22650_v23  ;;  %v25048_v23 = vld [vmem:[#allocation32_spill] sm:$0xff] }
 0x845   :  { %18518 = vmatpush1.bf16.msra.mxu0 %v24752_v30  ;;  %18710 = vmatpush1.bf16.msra.mxu1 %v21114_v35 }
 0x846   :  { %18520 = vmatprep.subr.bf16.mxu0 %v24753_v51  ;;  %18712 = vmatprep.subr.bf16.mxu1 %v21123_v7 }
 0x847   :  { %10229 = vmatprep.mubr.f32.mxu0 %v24413_v61  ;;  %11084 = vmatprep.mubr.f32.mxu1 %v24413_v61 }
 0x849   :  { %18522 = vmatpush1.bf16.msra.mxu0 %v24754_v59  ;;  %18714 = vmatpush1.bf16.msra.mxu1 %v21143_v2 }
 0x84a   :  { %18524 = vmatprep.subr.bf16.mxu0 %v24755_v60  ;;  %18716 = vmatprep.subr.bf16.mxu1 %v24680_v29 }
 0x84d   :  { %18526 = vmatpush1.bf16.msra.mxu0 %v24756_v52  ;;  %18718 = vmatpush1.bf16.msra.mxu1 %v24681_v40 }
 0x84e   :  { %18528 = vmatprep.subr.bf16.mxu0 %v24757_v46  ;;  %18720 = vmatprep.subr.bf16.mxu1 %v24682_v21 }
 0x851   :  { %18530 = vmatpush1.bf16.msra.mxu0 %v24758_v54  ;;  %18722 = vmatpush1.bf16.msra.mxu1 %v24683_v27 }
 0x852   :  { %18532 = vmatprep.subr.bf16.mxu0 %v24759_v12  ;;  %18724 = vmatprep.subr.bf16.mxu1 %v24684_v31 }
 0x855   :  { %18534 = vmatpush1.bf16.msra.mxu0 %v24760_v28  ;;  %18726 = vmatpush1.bf16.msra.mxu1 %v24685_v55 }
 0x856   :  { %18536 = vmatprep.subr.bf16.mxu0 %v24761_v8  ;;  %18728 = vmatprep.subr.bf16.mxu1 %v24686_v26 }
 0x859   :  { %18538 = vmatpush1.bf16.msra.mxu0 %v24762_v20  ;;  %18730 = vmatpush1.bf16.msra.mxu1 %v21331_v5 }
 0x85a   :  { %18540 = vmatprep.subr.bf16.mxu0 %v24920_v45  ;;  %18732 = vmatprep.subr.bf16.mxu1 %v24921_v17 }
 0x85d   :  { %18542 = vmatpush1.bf16.msra.mxu0 %v25010_v36  ;;  %18734 = vmatpush1.bf16.msra.mxu1 %v25011_v3 }
 0x85e   :  { %18544 = vmatprep.subr.bf16.mxu0 %v25012_v0  ;;  %18736 = vmatprep.subr.bf16.mxu1 %v25013_v16  ;;  %v25051_v16 = vld [vmem:[#allocation122_spill] sm:$0xff] }
 0x861   :  { %18546 = vmatpush1.bf16.msra.mxu0 %v25014_v41  ;;  %18738 = vmatpush1.bf16.msra.mxu1 %v25015_v56  ;;  %v25052_v41 = vcombine.low %v25050_v19, %v25051_v16 }
 0x862   :  { %18548 = vmatprep.subr.bf16.mxu0 %v25048_v23  ;;  %18740 = vmatprep.subr.bf16.mxu1 %v25049_v25 }
 0x917   :  { %v9215_v9 = vpop.f32.mrb[12].mxu0  ;;  %v10070_v14 = vpop.f32.mrb[14].mxu1 }
 0x918   :  { %v9217_v39 = vpop.f32.mrb[13].mxu0  ;;  %v10072_v53 = vpop.f32.mrb[15].mxu1 }
 0x919   :  { %v10079_v48 = vcombine.low %v9215_v9, %v9217_v39  ;;  %v10080_v34 = vcombine.low %v10070_v14, %v10072_v53 }
 0x91b   :  { %v10087_v11 = vrot.slane %v10079_v48, %v24625_v62  ;;  %v10094_v37 = vrot.slane %v10080_v34, %v24625_v62 }
 0x91d   :  { %v10095_v4 = vcombine.low %v10087_v11, %v10094_v37 }
 0x91f   :  { %v10097_v0 = vadd.f32 %v10095_v4, %v25052_v41 }
 0x921   :  { %v16264_v56 = vmul.f32 -1.442695, %v10097_v0  ;;  %v10105_v3 = vrot.slane %v10097_v0, 2  ;;  %v10116_v25 = vrot.slane %v10097_v0, 6  ;;  %v10113_v45 = vrot.slane %v10097_v0, 4 }
 0x923   :  { %20150 = vpow2.f32 %v16264_v56  ;;  %v16265_v23 = vmul.f32 -1.442695, %v10105_v3  ;;  %v16266_v36 = vmul.f32 -1.442695, %v10116_v25 }
 0x925   :  { %20152 = vpow2.f32 %v16265_v23 }
 0x926   :  { %20154 = vpow2.f32 %v16266_v36 }
 0x92d   :  { %v20151_v17 = vpop.eup %20150 }
 0x92e   :  { %v10101_v39 = vadd.f32 1.0, %v20151_v17 }
 0x92f   :  { %v20153_v53 = vpop.eup %20152 }
 0x930   :  { %20156 = vrcp.f32 %v10101_v39  ;;  %v10110_v48 = vadd.f32 1.0, %v20153_v53  ;;  %v20155_v34 = vpop.eup %20154  ;;  %v25053_v39 = vld [vmem:[#allocation94_spill] sm:$0xff]  ;;  %v25054_v53 = vld [vmem:[#allocation52_spill] sm:$0xff] }
 0x931   :  { %20158 = vtanh.f32 %v10113_v45  ;;  %v10121_v9 = vadd.f32 1.0, %v20155_v34  ;;  %v25056_v34 = vld [vmem:[#allocation53_spill] sm:$0xff] }
 0x932   :  { %20160 = vrcp.f32 %v10110_v48  ;;  %v25055_v48 = vld [vmem:[#allocation95_spill] sm:$0xff] }
 0x933   :  { %20162 = vrcp.f32 %v10121_v9  ;;  %v25060_v9 = vld [vmem:[#allocation57_spill] sm:$0xff] }
 0x93a   :  { %v20157_v11 = vpop.eup %20156 }
 0x93b   :  { %v20159_v37 = vpop.eup %20158 }
 0x93c   :  { %v20161_v4 = vpop.eup %20160  ;;  %v10125_v14 = vmul.f32 %v20159_v37, %v20157_v11  ;;  %v25057_v11 = vld [vmem:[#allocation96_spill] sm:$0xff]  ;;  %v25058_v37 = vld [vmem:[#allocation55_spill] sm:$0xff] }
 0x93d   :  { %v10124_v56 = vmul.f32 %v20161_v4, %v22647_v15  ;;  %v20163_v17 = vpop.eup %20162  ;;  %v25059_v4 = vld [vmem:[#allocation97_spill] sm:$0xff] }
 0x93f   :  { %v22880_v3 = vadd.f32 %v10125_v14, %v10124_v56  ;;  %v25061_v56 = vld [vmem:[#allocation98_spill] sm:$0xff]  ;;  %v25062_v14 = vld [vmem:[#allocation59_spill] sm:$0xff] }
 0x941   :  { %20164 = vtanh.f32 %v22880_v3 }
 0x94b   :  { %v20165_v25 = vpop.eup %20164 }
 0x94c   :  { %v10128_v0 = vmul.f32 %v20165_v25, %v20163_v17  ;;  %v25063_v17 = vld [vmem:[#allocation99_spill] sm:$0xff]  ;;  %v25064_v25 = vld [vmem:[#allocation61_spill] sm:$0xff] }
 0x94e   :  { %10130 = vst [vmem:[#allocation3 + $0x8] sm:$0x3] %v10128_v0  ;;  %v22883_v41 = vand.u32 4294901760, %v10128_v0 }
 0x950   :  { %v22886_v45 = vsub.f32 %v10128_v0, %v22883_v41  ;;  %v25065_v0 = vld [vmem:[#allocation100_spill] sm:$0xff] }
 0x952   :  { %v22889_v36 = vand.u32 4294901760, %v22886_v45 }
 0x954   :  { %v10233_v15 = vsub.f32 %v22886_v45, %v22889_v36 }
 0x956   :  { %v10234_v23 = vand.u32 4294901760, %v10233_v15  ;;  %v25066_v15 = vld [vmem:[#allocation63_spill] sm:$0xff] }
 0x958   :  { %10235 = vmatmul.mubr.f32.vlgmr.msra.gmra.mrb[14].mxu0 %v10234_v23  ;;  %11090 = vmatmul.mubr.f32.vlgmr.msra.gmra.mrb[16].mxu1 %v10234_v23  ;;  %v25067_v23 = vld [vmem:[#allocation101_spill] sm:$0xff] }
 0x959   :  { %18550 = vmatpush1.bf16.msra.mxu0 %v24689_v43  ;;  %18742 = vmatpush1.bf16.msra.mxu1 %v24690_v32 }
 0x95a   :  { %18552 = vmatprep.subr.bf16.mxu0 %v24691_v38  ;;  %18744 = vmatprep.subr.bf16.mxu1 %v24692_v1 }
 0x95b   :  { %10465 = vmatprep.mubr.f32.mxu0 %v24413_v61  ;;  %11320 = vmatprep.mubr.f32.mxu1 %v24413_v61 }
 0x95d   :  { %18554 = vmatpush1.bf16.msra.mxu0 %v24785_v13  ;;  %18746 = vmatpush1.bf16.msra.mxu1 %v24786_v63 }
 0x95e   :  { %18556 = vmatprep.subr.bf16.mxu0 %v24787_v44  ;;  %18748 = vmatprep.subr.bf16.mxu1 %v24788_v10 }
 0x961   :  { %18558 = vmatpush1.bf16.msra.mxu0 %v24789_v47  ;;  %18750 = vmatpush1.bf16.msra.mxu1 %v24790_v58 }
 0x962   :  { %18560 = vmatprep.subr.bf16.mxu0 %v24875_v42  ;;  %18752 = vmatprep.subr.bf16.mxu1 %v24876_v24 }
 0x965   :  { %18562 = vmatpush1.bf16.msra.mxu0 %v24877_v33  ;;  %18754 = vmatpush1.bf16.msra.mxu1 %v24878_v50 }
 0x966   :  { %18564 = vmatprep.subr.bf16.mxu0 %v24963_v18  ;;  %18756 = vmatprep.subr.bf16.mxu1 %v24964_v6  ;;  %v25122_v6 = vld [vmem:[#allocation46_spill] sm:$0xff] }
 0x969   :  { %18566 = vmatpush1.bf16.msra.mxu0 %v24965_v49  ;;  %18758 = vmatpush1.bf16.msra.mxu1 %v25053_v39  ;;  %v25115_v39 = vld [vmem:[#allocation125_spill] sm:$0xff]  ;;  %v25121_v49 = vld [vmem:[#allocation128_spill] sm:$0xff] }
 0x96a   :  { %18568 = vmatprep.subr.bf16.mxu0 %v25054_v53  ;;  %18760 = vmatprep.subr.bf16.mxu1 %v25055_v48  ;;  %v25111_v48 = vld [vmem:[#allocation119_spill] sm:$0xff]  ;;  %v25112_v53 = vld [vmem:[#allocation38_spill] sm:$0xff] }
 0x96d   :  { %18570 = vmatpush1.bf16.msra.mxu0 %v25056_v34  ;;  %18762 = vmatpush1.bf16.msra.mxu1 %v25057_v11  ;;  %v25082_v11 = vld [vmem:[#allocation34_spill] sm:$0xff]  ;;  %v25110_v34 = vld [vmem:[#allocation33_spill] sm:$0xff] }
 0x96e   :  { %18572 = vmatprep.subr.bf16.mxu0 %v25058_v37  ;;  %18764 = vmatprep.subr.bf16.mxu1 %v25059_v4  ;;  %v25068_v4 = vld [vmem:[#allocation64_spill] sm:$0xff] }
 0x96f   :  { %v25081_v37 = vld [vmem:[#allocation108_spill] sm:$0xff] }
 0x971   :  { %18574 = vmatpush1.bf16.msra.mxu0 %v25060_v9  ;;  %18766 = vmatpush1.bf16.msra.mxu1 %v25061_v56  ;;  %v25069_v9 = vld [vmem:[#allocation102_spill] sm:$0xff]  ;;  %v25070_v56 = vld [vmem:[#allocation65_spill] sm:$0xff] }
 0x972   :  { %18576 = vmatprep.subr.bf16.mxu0 %v25062_v14  ;;  %18768 = vmatprep.subr.bf16.mxu1 %v25063_v17  ;;  %v25071_v14 = vld [vmem:[#allocation103_spill] sm:$0xff]  ;;  %v25076_v17 = vld [vmem:[#allocation28_spill] sm:$0xff] }
 0x975   :  { %18578 = vmatpush1.bf16.msra.mxu0 %v25064_v25  ;;  %18770 = vmatpush1.bf16.msra.mxu1 %v25065_v0  ;;  %v25072_v0 = vld [vmem:[#allocation20_spill] sm:$0xff]  ;;  %v25075_v25 = vld [vmem:[#allocation105_spill] sm:$0xff] }
 0x976   :  { %18580 = vmatprep.subr.bf16.mxu0 %v25066_v15  ;;  %18772 = vmatprep.subr.bf16.mxu1 %v25067_v23  ;;  %v25073_v15 = vld [vmem:[#allocation104_spill] sm:$0xff]  ;;  %v25074_v23 = vld [vmem:[#allocation21_spill] sm:$0xff] }
 0x978   :  { %10467 = vmatmul.mubr.f32.vlgmr.msra.gmra.mrb[14].mxu0 %v22883_v41  ;;  %11322 = vmatmul.mubr.f32.vlgmr.msra.gmra.mrb[16].mxu1 %v22883_v41 }
 0x979   :  { %18582 = vmatpush1.bf16.msra.mxu0 %v25068_v4  ;;  %18774 = vmatpush1.bf16.msra.mxu1 %v25069_v9  ;;  %v25077_v4 = vld [vmem:[#allocation106_spill] sm:$0xff] }
 0x97a   :  { %18584 = vmatprep.subr.bf16.mxu0 %v25070_v56  ;;  %18776 = vmatprep.subr.bf16.mxu1 %v25071_v14  ;;  %v25078_v9 = vld [vmem:[#allocation30_spill] sm:$0xff]  ;;  %v25079_v56 = vld [vmem:[#allocation107_spill] sm:$0xff] }
 0x97b   :  { %10601 = vmatprep.mubr.f32.mxu0 %v24413_v61  ;;  %11456 = vmatprep.mubr.f32.mxu1 %v24413_v61  ;;  %v25080_v14 = vld [vmem:[#allocation66_spill] sm:$0xff] }
 0x97d   :  { %18586 = vmatpush1.bf16.msra.mxu0 %v25072_v0  ;;  %18778 = vmatpush1.bf16.msra.mxu1 %v25073_v15  ;;  %v25083_v0 = vld [vmem:[#allocation109_spill] sm:$0xff]  ;;  %v25084_v15 = vld [vmem:[#allocation67_spill] sm:$0xff] }
 0x97e   :  { %18588 = vmatprep.subr.bf16.mxu0 %v25074_v23  ;;  %18780 = vmatprep.subr.bf16.mxu1 %v25075_v25  ;;  %v25085_v23 = vld [vmem:[#allocation110_spill] sm:$0xff]  ;;  %v25086_v25 = vld [vmem:[#allocation68_spill] sm:$0xff] }
 0x981   :  { %18590 = vmatpush1.bf16.msra.mxu0 %v25076_v17  ;;  %18782 = vmatpush1.bf16.msra.mxu1 %v25077_v4  ;;  %v25087_v17 = vld [vmem:[#allocation111_spill] sm:$0xff]  ;;  %v25088_v4 = vld [vmem:[#allocation69_spill] sm:$0xff] }
 0x982   :  { %18592 = vmatprep.subr.bf16.mxu0 %v25078_v9  ;;  %18784 = vmatprep.subr.bf16.mxu1 %v25079_v56  ;;  %v25089_v9 = vld [vmem:[#allocation112_spill] sm:$0xff]  ;;  %v25090_v56 = vld [vmem:[#allocation70_spill] sm:$0xff] }
 0x985   :  { %18594 = vmatpush1.bf16.msra.mxu0 %v25080_v14  ;;  %18786 = vmatpush1.bf16.msra.mxu1 %v25081_v37  ;;  %v25091_v14 = vld [vmem:[#allocation113_spill] sm:$0xff]  ;;  %v25092_v37 = vld [vmem:[#allocation71_spill] sm:$0xff] }
 0x986   :  { %18596 = vmatprep.subr.bf16.mxu0 %v25082_v11  ;;  %18788 = vmatprep.subr.bf16.mxu1 %v25083_v0  ;;  %v25093_v11 = vld [vmem:[#allocation114_spill] sm:$0xff]  ;;  %v25094_v0 = vld [vmem:[#allocation72_spill] sm:$0xff] }
 0x989   :  { %18598 = vmatpush1.bf16.msra.mxu0 %v25084_v15  ;;  %18790 = vmatpush1.bf16.msra.mxu1 %v25085_v23  ;;  %v25095_v15 = vld [vmem:[#allocation115_spill] sm:$0xff]  ;;  %v25096_v23 = vld [vmem:[#allocation73_spill] sm:$0xff] }
 0x98a   :  { %18600 = vmatprep.subr.bf16.mxu0 %v25086_v25  ;;  %18792 = vmatprep.subr.bf16.mxu1 %v25087_v17  ;;  %v25097_v25 = vld [vmem:[#allocation116_spill] sm:$0xff]  ;;  %v25109_v17 = vld [vmem:[#allocation118_spill] sm:$0xff] }
 0x98d   :  { %18602 = vmatpush1.bf16.msra.mxu0 %v25088_v4  ;;  %18794 = vmatpush1.bf16.msra.mxu1 %v25089_v9  ;;  %v25107_v9 = vld [vmem:[#allocation117_spill] sm:$0xff]  ;;  %v25108_v4 = vld [vmem:[#allocation31_spill] sm:$0xff] }
 0x98e   :  { %18604 = vmatprep.subr.bf16.mxu0 %v25090_v56  ;;  %18796 = vmatprep.subr.bf16.mxu1 %v25091_v14  ;;  %v25105_v14 = vld [vmem:[#allocation84_spill] sm:$0xff]  ;;  %v25106_v56 = vld [vmem:[#allocation29_spill] sm:$0xff] }
 0x991   :  { %18606 = vmatpush1.bf16.msra.mxu0 %v25092_v37  ;;  %18798 = vmatpush1.bf16.msra.mxu1 %v25093_v11  ;;  %v25103_v11 = vld [vmem:[#allocation83_spill] sm:$0xff] }
 0x992   :  { %18608 = vmatprep.subr.bf16.mxu0 %v25094_v0  ;;  %18800 = vmatprep.subr.bf16.mxu1 %v25095_v15  ;;  %v25101_v15 = vld [vmem:[#allocation82_spill] sm:$0xff]  ;;  %v25104_v37 = vld [vmem:[#allocation27_spill] sm:$0xff] }
 0x993   :  { %v25102_v0 = vld [vmem:[#allocation26_spill] sm:$0xff] }
 0x995   :  { %18610 = vmatpush1.bf16.msra.mxu0 %v25096_v23  ;;  %18802 = vmatpush1.bf16.msra.mxu1 %v25097_v25  ;;  %v25099_v25 = vld [vmem:[#allocation81_spill] sm:$0xff] }
 0x996   :  { %18612 = vmatprep.subr.bf16.mxu0 %v24751_v57  ;;  %18804 = vmatprep.subr.bf16.mxu1 %v21096_v22  ;;  %v25100_v23 = vld [vmem:[#allocation25_spill] sm:$0xff] }
 0x998   :  { %10604 = vmatmul.mubr.f32.vlgmr.msra.gmra.mrb[14].mxu0 %v22886_v45  ;;  %11459 = vmatmul.mubr.f32.vlgmr.msra.gmra.mrb[16].mxu1 %v22886_v45  ;;  %v25098_v45 = vld [vmem:[#allocation24_spill] sm:$0xff] }
 0x999   :  { %18614 = vmatpush1.bf16.msra.mxu0 %v24752_v30  ;;  %18806 = vmatpush1.bf16.msra.mxu1 %v21114_v35 }
 0x99a   :  { %18616 = vmatprep.subr.bf16.mxu0 %v24753_v51  ;;  %18808 = vmatprep.subr.bf16.mxu1 %v21123_v7 }
 0x99b   :  { %10706 = vmatprep.mubr.f32.mxu0 %v24413_v61  ;;  %11561 = vmatprep.mubr.f32.mxu1 %v24413_v61 }
 0x99d   :  { %18618 = vmatpush1.bf16.msra.mxu0 %v24754_v59  ;;  %18810 = vmatpush1.bf16.msra.mxu1 %v21143_v2 }
 0x99e   :  { %18620 = vmatprep.subr.bf16.mxu0 %v24755_v60  ;;  %18812 = vmatprep.subr.bf16.mxu1 %v24680_v29 }
 0x9a1   :  { %18622 = vmatpush1.bf16.msra.mxu0 %v24756_v52  ;;  %18814 = vmatpush1.bf16.msra.mxu1 %v24681_v40 }
 0x9a2   :  { %18624 = vmatprep.subr.bf16.mxu0 %v24757_v46  ;;  %18816 = vmatprep.subr.bf16.mxu1 %v24682_v21 }
 0x9a5   :  { %18626 = vmatpush1.bf16.msra.mxu0 %v24758_v54  ;;  %18818 = vmatpush1.bf16.msra.mxu1 %v24683_v27 }
 0x9a6   :  { %18628 = vmatprep.subr.bf16.mxu0 %v24759_v12  ;;  %18820 = vmatprep.subr.bf16.mxu1 %v24684_v31 }
 0x9a9   :  { %18630 = vmatpush1.bf16.msra.mxu0 %v24760_v28  ;;  %18822 = vmatpush1.bf16.msra.mxu1 %v24685_v55 }
 0x9aa   :  { %18632 = vmatprep.subr.bf16.mxu0 %v24761_v8  ;;  %18824 = vmatprep.subr.bf16.mxu1 %v24686_v26 }
 0x9ad   :  { %18634 = vmatpush1.bf16.msra.mxu0 %v24762_v20  ;;  %18826 = vmatpush1.bf16.msra.mxu1 %v21331_v5 }
 0x9ae   :  { %18636 = vmatprep.subr.bf16.mxu0 %v25098_v45  ;;  %18828 = vmatprep.subr.bf16.mxu1 %v25099_v25 }
 0x9b1   :  { %18638 = vmatpush1.bf16.msra.mxu0 %v25100_v23  ;;  %18830 = vmatpush1.bf16.msra.mxu1 %v25101_v15 }
 0x9b2   :  { %18640 = vmatprep.subr.bf16.mxu0 %v25102_v0  ;;  %18832 = vmatprep.subr.bf16.mxu1 %v25103_v11 }
 0x9b5   :  { %18642 = vmatpush1.bf16.msra.mxu0 %v25104_v37  ;;  %18834 = vmatpush1.bf16.msra.mxu1 %v25105_v14 }
 0x9b6   :  { %18644 = vmatprep.subr.bf16.mxu0 %v25106_v56  ;;  %18836 = vmatprep.subr.bf16.mxu1 %v25107_v9  ;;  %v25113_v56 = vld [vmem:[#allocation124_spill] sm:$0xff]  ;;  %v25114_v9 = vld [vmem:[#allocation39_spill] sm:$0xff] }
 0x9b8   :  { %10710 = vmatmul.mubr.f32.vlgmr.msra.gmra.mrb[14].mxu0 %v22889_v36  ;;  %11565 = vmatmul.mubr.f32.vlgmr.msra.gmra.mrb[16].mxu1 %v22889_v36  ;;  %v25116_v36 = vld [vmem:[#allocation40_spill] sm:$0xff] }
 0x9b9   :  { %18646 = vmatpush1.bf16.msra.mxu0 %v25108_v4  ;;  %18838 = vmatpush1.bf16.msra.mxu1 %v25109_v17  ;;  %v25117_v4 = vld [vmem:[#allocation126_spill] sm:$0xff]  ;;  %v25118_v17 = vld [vmem:[#allocation41_spill] sm:$0xff] }
 0x9ba   :  { %18648 = vmatprep.subr.bf16.mxu0 %v25110_v34  ;;  %18840 = vmatprep.subr.bf16.mxu1 %v25111_v48  ;;  %v25119_v34 = vld [vmem:[#allocation127_spill] sm:$0xff]  ;;  %v25120_v48 = vld [vmem:[#allocation44_spill] sm:$0xff] }
 0x9bb   :  { %10876 = vmatprep.mubr.f32.mxu0 %v24413_v61  ;;  %11731 = vmatprep.mubr.f32.mxu1 %v24413_v61 }
 0x9bd   :  { %18650 = vmatpush1.bf16.msra.mxu0 %v25112_v53  ;;  %18842 = vmatpush1.bf16.msra.mxu1 %v25113_v56  ;;  %v25123_v53 = vld [vmem:[#allocation129_spill] sm:$0xff] }
 0x9be   :  { %18652 = vmatprep.subr.bf16.mxu0 %v25114_v9  ;;  %18844 = vmatprep.subr.bf16.mxu1 %v25115_v39  ;;  %v25124_v56 = vld [vmem:[#allocation49_spill] sm:$0xff]  ;;  %v25125_v9 = vld [vmem:[#allocation130_spill] sm:$0xff] }
 0x9bf   :  { %v25126_v39 = vld [vmem:[#allocation50_spill] sm:$0xff] }
 0x9c1   :  { %18654 = vmatpush1.bf16.msra.mxu0 %v25116_v36  ;;  %18846 = vmatpush1.bf16.msra.mxu1 %v25117_v4  ;;  %v25127_v36 = vld [vmem:[#allocation131_spill] sm:$0xff]  ;;  %v25128_v4 = vld [vmem:[#allocation54_spill] sm:$0xff] }
 0x9c2   :  { %18656 = vmatprep.subr.bf16.mxu0 %v25118_v17  ;;  %18848 = vmatprep.subr.bf16.mxu1 %v25119_v34  ;;  %v25129_v17 = vld [vmem:[#allocation132_spill] sm:$0xff] }
 0x9c3   :  { %v25130_v34 = vld [vmem:[#allocation56_spill] sm:$0xff] }
 0x9c5   :  { %18658 = vmatpush1.bf16.msra.mxu0 %v25120_v48  ;;  %18850 = vmatpush1.bf16.msra.mxu1 %v25121_v49  ;;  %v25131_v48 = vld [vmem:[#allocation133_spill] sm:$0xff]  ;;  %v25132_v49 = vld [vmem:[#allocation58_spill] sm:$0xff] }
 0x9c6   :  { %18660 = vmatprep.subr.bf16.mxu0 %v25122_v6  ;;  %18852 = vmatprep.subr.bf16.mxu1 %v25123_v53  ;;  %v25133_v6 = vld [vmem:[#allocation134_spill] sm:$0xff]  ;;  %v25134_v53 = vld [vmem:[#allocation60_spill] sm:$0xff] }
 0x9c9   :  { %18662 = vmatpush1.bf16.msra.mxu0 %v25124_v56  ;;  %18854 = vmatpush1.bf16.msra.mxu1 %v25125_v9  ;;  %v25135_v56 = vld [vmem:[#allocation135_spill] sm:$0xff]  ;;  %v25136_v9 = vld [vmem:[#allocation62_spill] sm:$0xff] }
 0x9ca   :  { %18664 = vmatprep.subr.bf16.mxu0 %v25126_v39  ;;  %18856 = vmatprep.subr.bf16.mxu1 %v25127_v36  ;;  %v25137_v39 = vld [vmem:[#allocation136_spill] sm:$0xff]  ;;  %v25140_v36 = vcombine.high %v25050_v19, %v25051_v16 }
 0x9cd   :  { %18666 = vmatpush1.bf16.msra.mxu0 %v25128_v4  ;;  %18858 = vmatpush1.bf16.msra.mxu1 %v25129_v17 }
 0x9ce   :  { %18668 = vmatprep.subr.bf16.mxu0 %v25130_v34  ;;  %18860 = vmatprep.subr.bf16.mxu1 %v25131_v48 }
 0x9d1   :  { %18670 = vmatpush1.bf16.msra.mxu0 %v25132_v49  ;;  %18862 = vmatpush1.bf16.msra.mxu1 %v25133_v6 }
 0x9d2   :  { %18672 = vmatprep.subr.bf16.mxu0 %v25134_v53  ;;  %18864 = vmatprep.subr.bf16.mxu1 %v25135_v56 }
 0x9d5   :  { %18674 = vmatpush1.bf16.msra.mxu0 %v25136_v9  ;;  %18866 = vmatpush1.bf16.msra.mxu1 %v25137_v39  ;;  %v25139_v39 = vld [vmem:[#allocation85_spill] sm:$0xff] }
 0x9d6   :  { %18676 = vmatprep.subr.bf16.mxu0 %v24751_v57  ;;  %18868 = vmatprep.subr.bf16.mxu1 %v21096_v22 }
 0x9d8   :  { %10878 = vmatmul.mubr.f32.vlgmr.msra.gmra.mrb[14].mxu0 %v22883_v41  ;;  %11733 = vmatmul.mubr.f32.vlgmr.msra.gmra.mrb[16].mxu1 %v22883_v41 }
 0x9d9   :  { %18678 = vmatpush1.bf16.msra.mxu0 %v24752_v30  ;;  %18870 = vmatpush1.bf16.msra.mxu1 %v21114_v35 }
 0x9da   :  { %18680 = vmatprep.subr.bf16.mxu0 %v24753_v51  ;;  %18872 = vmatprep.subr.bf16.mxu1 %v21123_v7 }
 0x9db   :  { %10980 = vmatprep.mubr.f32.mxu0 %v24413_v61  ;;  %11835 = vmatprep.mubr.f32.mxu1 %v24413_v61 }
 0x9dd   :  { %18682 = vmatpush1.bf16.msra.mxu0 %v24754_v59  ;;  %18874 = vmatpush1.bf16.msra.mxu1 %v21143_v2 }
 0x9de   :  { %18684 = vmatprep.subr.bf16.mxu0 %v24755_v60  ;;  %18876 = vmatprep.subr.bf16.mxu1 %v24680_v29 }
 0x9e1   :  { %18686 = vmatpush1.bf16.msra.mxu0 %v24756_v52  ;;  %18878 = vmatpush1.bf16.msra.mxu1 %v24681_v40 }
 0x9e2   :  { %18688 = vmatprep.subr.bf16.mxu0 %v24757_v46  ;;  %18880 = vmatprep.subr.bf16.mxu1 %v24682_v21 }
 0x9e5   :  { %18690 = vmatpush1.bf16.msra.mxu0 %v24758_v54  ;;  %18882 = vmatpush1.bf16.msra.mxu1 %v24683_v27 }
 0x9e6   :  { %18692 = vmatprep.subr.bf16.mxu0 %v24759_v12  ;;  %18884 = vmatprep.subr.bf16.mxu1 %v24684_v31 }
 0x9e9   :  { %18694 = vmatpush1.bf16.msra.mxu0 %v24760_v28  ;;  %18886 = vmatpush1.bf16.msra.mxu1 %v24685_v55 }
 0x9ea   :  { %18696 = vmatprep.subr.bf16.mxu0 %v24761_v8  ;;  %18888 = vmatprep.subr.bf16.mxu1 %v24686_v26 }
 0x9ed   :  { %18698 = vmatpush1.bf16.msra.mxu0 %v24762_v20  ;;  %18890 = vmatpush1.bf16.msra.mxu1 %v21331_v5 }
 0x9ee   :  { %18700 = vmatprep.subr.bf16.mxu0 %v25098_v45  ;;  %18892 = vmatprep.subr.bf16.mxu1 %v25099_v25 }
 0x9f1   :  { %18702 = vmatpush1.bf16.msra.mxu0 %v25100_v23  ;;  %18894 = vmatpush1.bf16.msra.mxu1 %v25101_v15 }
 0x9f2   :  { %18704 = vmatprep.subr.bf16.mxu0 %v25102_v0  ;;  %18896 = vmatprep.subr.bf16.mxu1 %v25103_v11 }
 0x9f5   :  { %18706 = vmatpush1.bf16.msra.mxu0 %v25104_v37  ;;  %18898 = vmatpush1.bf16.msra.mxu1 %v25105_v14 }
 0x9f6   :  { %18900 = vmatprep.subr.bf16.mxu0 %v24751_v57  ;;  %19092 = vmatprep.subr.bf16.mxu1 %v21096_v22 }
 0x9f8   :  { %10982 = vmatmul.mubr.f32.vlgmr.msra.gmra.mrb[14].mxu0 %v22883_v41  ;;  %11837 = vmatmul.mubr.f32.vlgmr.msra.gmra.mrb[16].mxu1 %v22883_v41  ;;  %v25138_v41 = vld [vmem:[#allocation32_spill] sm:$0xff] }
 0x9f9   :  { %18902 = vmatpush1.bf16.msra.mxu0 %v24752_v30  ;;  %19094 = vmatpush1.bf16.msra.mxu1 %v21114_v35 }
 0x9fa   :  { %18904 = vmatprep.subr.bf16.mxu0 %v24753_v51  ;;  %19096 = vmatprep.subr.bf16.mxu1 %v21123_v7 }
 0x9fb   :  { %11997 = vmatprep.mubr.f32.mxu0 %v24413_v61  ;;  %12852 = vmatprep.mubr.f32.mxu1 %v24413_v61 }
 0x9fd   :  { %18906 = vmatpush1.bf16.msra.mxu0 %v24754_v59  ;;  %19098 = vmatpush1.bf16.msra.mxu1 %v21143_v2 }
 0x9fe   :  { %18908 = vmatprep.subr.bf16.mxu0 %v24755_v60  ;;  %19100 = vmatprep.subr.bf16.mxu1 %v24680_v29 }
 0xa01   :  { %18910 = vmatpush1.bf16.msra.mxu0 %v24756_v52  ;;  %19102 = vmatpush1.bf16.msra.mxu1 %v24681_v40 }
 0xa02   :  { %18912 = vmatprep.subr.bf16.mxu0 %v24757_v46  ;;  %19104 = vmatprep.subr.bf16.mxu1 %v24682_v21 }
 0xa05   :  { %18914 = vmatpush1.bf16.msra.mxu0 %v24758_v54  ;;  %19106 = vmatpush1.bf16.msra.mxu1 %v24683_v27 }
 0xa06   :  { %18916 = vmatprep.subr.bf16.mxu0 %v24759_v12  ;;  %19108 = vmatprep.subr.bf16.mxu1 %v24684_v31 }
 0xa09   :  { %18918 = vmatpush1.bf16.msra.mxu0 %v24760_v28  ;;  %19110 = vmatpush1.bf16.msra.mxu1 %v24685_v55 }
 0xa0a   :  { %18920 = vmatprep.subr.bf16.mxu0 %v24761_v8  ;;  %19112 = vmatprep.subr.bf16.mxu1 %v24686_v26 }
 0xa0d   :  { %18922 = vmatpush1.bf16.msra.mxu0 %v24762_v20  ;;  %19114 = vmatpush1.bf16.msra.mxu1 %v21331_v5 }
 0xa0e   :  { %18924 = vmatprep.subr.bf16.mxu0 %v25098_v45  ;;  %19116 = vmatprep.subr.bf16.mxu1 %v25099_v25 }
 0xa11   :  { %18926 = vmatpush1.bf16.msra.mxu0 %v25100_v23  ;;  %19118 = vmatpush1.bf16.msra.mxu1 %v25101_v15 }
 0xa12   :  { %18928 = vmatprep.subr.bf16.mxu0 %v25102_v0  ;;  %19120 = vmatprep.subr.bf16.mxu1 %v25103_v11 }
 0xa15   :  { %18930 = vmatpush1.bf16.msra.mxu0 %v25104_v37  ;;  %19122 = vmatpush1.bf16.msra.mxu1 %v25105_v14 }
 0xa16   :  { %18932 = vmatprep.subr.bf16.mxu0 %v25138_v41  ;;  %19124 = vmatprep.subr.bf16.mxu1 %v25139_v39 }
 0xacb   :  { %v10983_v9 = vpop.f32.mrb[14].mxu0  ;;  %v11838_v56 = vpop.f32.mrb[16].mxu1 }
 0xacc   :  { %v10985_v53 = vpop.f32.mrb[15].mxu0  ;;  %v11840_v6 = vpop.f32.mrb[17].mxu1 }
 0xacd   :  { %v11847_v49 = vcombine.low %v10983_v9, %v10985_v53  ;;  %v11848_v48 = vcombine.low %v11838_v56, %v11840_v6 }
 0xacf   :  { %v11855_v34 = vrot.slane %v11847_v49, %v24625_v62  ;;  %v11862_v17 = vrot.slane %v11848_v48, %v24625_v62 }
 0xad1   :  { %v11863_v4 = vcombine.low %v11855_v34, %v11862_v17 }
 0xad3   :  { %v11865_v37 = vadd.f32 %v11863_v4, %v25140_v36  ;;  %v25141_v36 = vld [vmem:[#allocation93_spill] sm:$0xff] }
 0xad5   :  { %v16267_v14 = vmul.f32 -1.442695, %v11865_v37  ;;  %v11873_v11 = vrot.slane %v11865_v37, 2  ;;  %v11884_v39 = vrot.slane %v11865_v37, 6  ;;  %v11881_v23 = vrot.slane %v11865_v37, 4 }
 0xad7   :  { %20166 = vpow2.f32 %v16267_v14  ;;  %v16268_v41 = vmul.f32 -1.442695, %v11873_v11  ;;  %v16269_v0 = vmul.f32 -1.442695, %v11884_v39 }
 0xad9   :  { %20168 = vpow2.f32 %v16268_v41  ;;  %v25142_v41 = vld [vmem:[#allocation51_spill] sm:$0xff] }
 0xada   :  { %20170 = vpow2.f32 %v16269_v0 }
 0xae1   :  { %v20167_v15 = vpop.eup %20166 }
 0xae2   :  { %v11869_v53 = vadd.f32 1.0, %v20167_v15 }
 0xae3   :  { %v20169_v6 = vpop.eup %20168 }
 0xae4   :  { %20172 = vrcp.f32 %v11869_v53  ;;  %v11878_v49 = vadd.f32 1.0, %v20169_v6  ;;  %v20171_v48 = vpop.eup %20170  ;;  %v25143_v53 = vld [vmem:[#allocation94_spill] sm:$0xff]  ;;  %v25144_v6 = vld [vmem:[#allocation52_spill] sm:$0xff] }
 0xae5   :  { %20174 = vtanh.f32 %v11881_v23  ;;  %v11889_v4 = vadd.f32 1.0, %v20171_v48  ;;  %v25146_v48 = vld [vmem:[#allocation53_spill] sm:$0xff] }
 0xae6   :  { %20176 = vrcp.f32 %v11878_v49  ;;  %v25145_v49 = vld [vmem:[#allocation95_spill] sm:$0xff] }
 0xae7   :  { %20178 = vrcp.f32 %v11889_v4  ;;  %v25150_v4 = vld [vmem:[#allocation57_spill] sm:$0xff] }
 0xaee   :  { %v20173_v34 = vpop.eup %20172 }
 0xaef   :  { %v20175_v16 = vpop.eup %20174 }
 0xaf0   :  { %v20177_v19 = vpop.eup %20176  ;;  %v11893_v11 = vmul.f32 %v20175_v16, %v20173_v34  ;;  %v25147_v34 = vld [vmem:[#allocation96_spill] sm:$0xff]  ;;  %v25148_v16 = vld [vmem:[#allocation55_spill] sm:$0xff] }
 0xaf1   :  { %v11892_v9 = vmul.f32 %v20177_v19, %v22880_v3  ;;  %v20179_v39 = vpop.eup %20178  ;;  %v25149_v19 = vld [vmem:[#allocation97_spill] sm:$0xff] }
 0xaf3   :  { %v23113_v56 = vadd.f32 %v11893_v11, %v11892_v9  ;;  %v25151_v9 = vld [vmem:[#allocation98_spill] sm:$0xff]  ;;  %v25152_v11 = vld [vmem:[#allocation59_spill] sm:$0xff] }
 0xaf5   :  { %20180 = vtanh.f32 %v23113_v56 }
 0xaff   :  { %v20181_v37 = vpop.eup %20180 }
 0xb00   :  { %v11896_v14 = vmul.f32 %v20181_v37, %v20179_v39  ;;  %v25153_v39 = vld [vmem:[#allocation99_spill] sm:$0xff]  ;;  %v25154_v37 = vld [vmem:[#allocation61_spill] sm:$0xff] }
 0xb02   :  { %11898 = vst [vmem:[#allocation3 + $0xa] sm:$0x3] %v11896_v14  ;;  %v23116_v17 = vand.u32 4294901760, %v11896_v14 }
 0xb04   :  { %v23119_v0 = vsub.f32 %v11896_v14, %v23116_v17  ;;  %v25155_v14 = vld [vmem:[#allocation100_spill] sm:$0xff] }
 0xb06   :  { %v23122_v15 = vand.u32 4294901760, %v23119_v0 }
 0xb08   :  { %v12001_v3 = vsub.f32 %v23119_v0, %v23122_v15 }
 0xb0a   :  { %v12002_v23 = vand.u32 4294901760, %v12001_v3  ;;  %v25156_v3 = vld [vmem:[#allocation63_spill] sm:$0xff] }
 0xb0c   :  { %12003 = vmatmul.mubr.f32.vlgmr.msra.gmra.mrb[16].mxu0 %v12002_v23  ;;  %12858 = vmatmul.mubr.f32.vlgmr.msra.gmra.mrb[18].mxu1 %v12002_v23  ;;  %v25157_v23 = vld [vmem:[#allocation101_spill] sm:$0xff] }
 0xb0d   :  { %18934 = vmatpush1.bf16.msra.mxu0 %v24689_v43  ;;  %19126 = vmatpush1.bf16.msra.mxu1 %v24690_v32 }
 0xb0e   :  { %18936 = vmatprep.subr.bf16.mxu0 %v24691_v38  ;;  %19128 = vmatprep.subr.bf16.mxu1 %v24692_v1 }
 0xb0f   :  { %12233 = vmatprep.mubr.f32.mxu0 %v24413_v61  ;;  %13088 = vmatprep.mubr.f32.mxu1 %v24413_v61 }
 0xb11   :  { %18938 = vmatpush1.bf16.msra.mxu0 %v24785_v13  ;;  %19130 = vmatpush1.bf16.msra.mxu1 %v24786_v63 }
 0xb12   :  { %18940 = vmatprep.subr.bf16.mxu0 %v24787_v44  ;;  %19132 = vmatprep.subr.bf16.mxu1 %v24788_v10 }
 0xb15   :  { %18942 = vmatpush1.bf16.msra.mxu0 %v24789_v47  ;;  %19134 = vmatpush1.bf16.msra.mxu1 %v24790_v58 }
 0xb16   :  { %18944 = vmatprep.subr.bf16.mxu0 %v24875_v42  ;;  %19136 = vmatprep.subr.bf16.mxu1 %v24876_v24 }
 0xb19   :  { %18946 = vmatpush1.bf16.msra.mxu0 %v24877_v33  ;;  %19138 = vmatpush1.bf16.msra.mxu1 %v24878_v50 }
 0xb1a   :  { %18948 = vmatprep.subr.bf16.mxu0 %v24963_v18  ;;  %19140 = vmatprep.subr.bf16.mxu1 %v25141_v36 }
 0xb1d   :  { %18950 = vmatpush1.bf16.msra.mxu0 %v25142_v41  ;;  %19142 = vmatpush1.bf16.msra.mxu1 %v25143_v53  ;;  %v25210_v53 = vld [vmem:[#allocation46_spill] sm:$0xff] }
 0xb1e   :  { %18952 = vmatprep.subr.bf16.mxu0 %v25144_v6  ;;  %19144 = vmatprep.subr.bf16.mxu1 %v25145_v49  ;;  %v25203_v49 = vld [vmem:[#allocation125_spill] sm:$0xff]  ;;  %v25209_v6 = vld [vmem:[#allocation128_spill] sm:$0xff] }
 0xb21   :  { %18954 = vmatpush1.bf16.msra.mxu0 %v25146_v48  ;;  %19146 = vmatpush1.bf16.msra.mxu1 %v25147_v34  ;;  %v25172_v34 = vld [vmem:[#allocation34_spill] sm:$0xff] }
 0xb22   :  { %18956 = vmatprep.subr.bf16.mxu0 %v25148_v16  ;;  %19148 = vmatprep.subr.bf16.mxu1 %v25149_v19  ;;  %v25158_v19 = vld [vmem:[#allocation64_spill] sm:$0xff]  ;;  %v25200_v48 = vld [vmem:[#allocation38_spill] sm:$0xff] }
 0xb23   :  { %v25171_v16 = vld [vmem:[#allocation108_spill] sm:$0xff] }
 0xb25   :  { %18958 = vmatpush1.bf16.msra.mxu0 %v25150_v4  ;;  %19150 = vmatpush1.bf16.msra.mxu1 %v25151_v9  ;;  %v25159_v4 = vld [vmem:[#allocation102_spill] sm:$0xff]  ;;  %v25160_v9 = vld [vmem:[#allocation65_spill] sm:$0xff] }
 0xb26   :  { %18960 = vmatprep.subr.bf16.mxu0 %v25152_v11  ;;  %19152 = vmatprep.subr.bf16.mxu1 %v25153_v39  ;;  %v25161_v11 = vld [vmem:[#allocation103_spill] sm:$0xff]  ;;  %v25166_v39 = vld [vmem:[#allocation28_spill] sm:$0xff] }
 0xb29   :  { %18962 = vmatpush1.bf16.msra.mxu0 %v25154_v37  ;;  %19154 = vmatpush1.bf16.msra.mxu1 %v25155_v14  ;;  %v25162_v14 = vld [vmem:[#allocation20_spill] sm:$0xff]  ;;  %v25165_v37 = vld [vmem:[#allocation105_spill] sm:$0xff] }
 0xb2a   :  { %18964 = vmatprep.subr.bf16.mxu0 %v25156_v3  ;;  %19156 = vmatprep.subr.bf16.mxu1 %v25157_v23  ;;  %v25163_v3 = vld [vmem:[#allocation104_spill] sm:$0xff]  ;;  %v25164_v23 = vld [vmem:[#allocation21_spill] sm:$0xff] }
 0xb2c   :  { %12235 = vmatmul.mubr.f32.vlgmr.msra.gmra.mrb[16].mxu0 %v23116_v17  ;;  %13090 = vmatmul.mubr.f32.vlgmr.msra.gmra.mrb[18].mxu1 %v23116_v17 }
 0xb2d   :  { %18966 = vmatpush1.bf16.msra.mxu0 %v25158_v19  ;;  %19158 = vmatpush1.bf16.msra.mxu1 %v25159_v4  ;;  %v25167_v19 = vld [vmem:[#allocation106_spill] sm:$0xff] }
 0xb2e   :  { %18968 = vmatprep.subr.bf16.mxu0 %v25160_v9  ;;  %19160 = vmatprep.subr.bf16.mxu1 %v25161_v11  ;;  %v25168_v4 = vld [vmem:[#allocation30_spill] sm:$0xff]  ;;  %v25169_v9 = vld [vmem:[#allocation107_spill] sm:$0xff] }
 0xb2f   :  { %12369 = vmatprep.mubr.f32.mxu0 %v24413_v61  ;;  %13224 = vmatprep.mubr.f32.mxu1 %v24413_v61  ;;  %v25170_v11 = vld [vmem:[#allocation66_spill] sm:$0xff] }
 0xb31   :  { %18970 = vmatpush1.bf16.msra.mxu0 %v25162_v14  ;;  %19162 = vmatpush1.bf16.msra.mxu1 %v25163_v3  ;;  %v25173_v14 = vld [vmem:[#allocation109_spill] sm:$0xff]  ;;  %v25174_v3 = vld [vmem:[#allocation67_spill] sm:$0xff] }
 0xb32   :  { %18972 = vmatprep.subr.bf16.mxu0 %v25164_v23  ;;  %19164 = vmatprep.subr.bf16.mxu1 %v25165_v37  ;;  %v25175_v23 = vld [vmem:[#allocation110_spill] sm:$0xff]  ;;  %v25176_v37 = vld [vmem:[#allocation68_spill] sm:$0xff] }
 0xb35   :  { %18974 = vmatpush1.bf16.msra.mxu0 %v25166_v39  ;;  %19166 = vmatpush1.bf16.msra.mxu1 %v25167_v19  ;;  %v25177_v39 = vld [vmem:[#allocation111_spill] sm:$0xff]  ;;  %v25178_v19 = vld [vmem:[#allocation69_spill] sm:$0xff] }
 0xb36   :  { %18976 = vmatprep.subr.bf16.mxu0 %v25168_v4  ;;  %19168 = vmatprep.subr.bf16.mxu1 %v25169_v9  ;;  %v25179_v4 = vld [vmem:[#allocation112_spill] sm:$0xff]  ;;  %v25180_v9 = vld [vmem:[#allocation70_spill] sm:$0xff] }
 0xb39   :  { %18978 = vmatpush1.bf16.msra.mxu0 %v25170_v11  ;;  %19170 = vmatpush1.bf16.msra.mxu1 %v25171_v16  ;;  %v25181_v11 = vld [vmem:[#allocation113_spill] sm:$0xff]  ;;  %v25182_v16 = vld [vmem:[#allocation71_spill] sm:$0xff] }
 0xb3a   :  { %18980 = vmatprep.subr.bf16.mxu0 %v25172_v34  ;;  %19172 = vmatprep.subr.bf16.mxu1 %v25173_v14  ;;  %v25183_v34 = vld [vmem:[#allocation114_spill] sm:$0xff]  ;;  %v25184_v14 = vld [vmem:[#allocation72_spill] sm:$0xff] }
 0xb3d   :  { %18982 = vmatpush1.bf16.msra.mxu0 %v25174_v3  ;;  %19174 = vmatpush1.bf16.msra.mxu1 %v25175_v23  ;;  %v25185_v3 = vld [vmem:[#allocation115_spill] sm:$0xff]  ;;  %v25186_v23 = vld [vmem:[#allocation73_spill] sm:$0xff] }
 0xb3e   :  { %18984 = vmatprep.subr.bf16.mxu0 %v25176_v37  ;;  %19176 = vmatprep.subr.bf16.mxu1 %v25177_v39  ;;  %v25187_v37 = vld [vmem:[#allocation116_spill] sm:$0xff]  ;;  %v25199_v39 = vld [vmem:[#allocation119_spill] sm:$0xff] }
 0xb41   :  { %18986 = vmatpush1.bf16.msra.mxu0 %v25178_v19  ;;  %19178 = vmatpush1.bf16.msra.mxu1 %v25179_v4  ;;  %v25197_v4 = vld [vmem:[#allocation118_spill] sm:$0xff]  ;;  %v25198_v19 = vld [vmem:[#allocation33_spill] sm:$0xff] }
 0xb42   :  { %18988 = vmatprep.subr.bf16.mxu0 %v25180_v9  ;;  %19180 = vmatprep.subr.bf16.mxu1 %v25181_v11  ;;  %v25195_v11 = vld [vmem:[#allocation117_spill] sm:$0xff]  ;;  %v25196_v9 = vld [vmem:[#allocation31_spill] sm:$0xff] }
 0xb45   :  { %18990 = vmatpush1.bf16.msra.mxu0 %v25182_v16  ;;  %19182 = vmatpush1.bf16.msra.mxu1 %v25183_v34  ;;  %v25193_v34 = vld [vmem:[#allocation84_spill] sm:$0xff]  ;;  %v25194_v16 = vld [vmem:[#allocation29_spill] sm:$0xff] }
 0xb46   :  { %18992 = vmatprep.subr.bf16.mxu0 %v25184_v14  ;;  %19184 = vmatprep.subr.bf16.mxu1 %v25185_v3  ;;  %v25191_v3 = vld [vmem:[#allocation83_spill] sm:$0xff] }
 0xb47   :  { %v25192_v14 = vld [vmem:[#allocation27_spill] sm:$0xff] }
 0xb49   :  { %18994 = vmatpush1.bf16.msra.mxu0 %v25186_v23  ;;  %19186 = vmatpush1.bf16.msra.mxu1 %v25187_v37  ;;  %v25189_v37 = vld [vmem:[#allocation82_spill] sm:$0xff] }
 0xb4a   :  { %18996 = vmatprep.subr.bf16.mxu0 %v24751_v57  ;;  %19188 = vmatprep.subr.bf16.mxu1 %v21096_v22  ;;  %v25190_v23 = vld [vmem:[#allocation26_spill] sm:$0xff] }
 0xb4c   :  { %12372 = vmatmul.mubr.f32.vlgmr.msra.gmra.mrb[16].mxu0 %v23119_v0  ;;  %13227 = vmatmul.mubr.f32.vlgmr.msra.gmra.mrb[18].mxu1 %v23119_v0  ;;  %v25188_v0 = vld [vmem:[#allocation25_spill] sm:$0xff] }
 0xb4d   :  { %18998 = vmatpush1.bf16.msra.mxu0 %v24752_v30  ;;  %19190 = vmatpush1.bf16.msra.mxu1 %v21114_v35 }
 0xb4e   :  { %19000 = vmatprep.subr.bf16.mxu0 %v24753_v51  ;;  %19192 = vmatprep.subr.bf16.mxu1 %v21123_v7 }
 0xb4f   :  { %12474 = vmatprep.mubr.f32.mxu0 %v24413_v61  ;;  %13329 = vmatprep.mubr.f32.mxu1 %v24413_v61 }
 0xb51   :  { %19002 = vmatpush1.bf16.msra.mxu0 %v24754_v59  ;;  %19194 = vmatpush1.bf16.msra.mxu1 %v21143_v2 }
 0xb52   :  { %19004 = vmatprep.subr.bf16.mxu0 %v24755_v60  ;;  %19196 = vmatprep.subr.bf16.mxu1 %v24680_v29 }
 0xb55   :  { %19006 = vmatpush1.bf16.msra.mxu0 %v24756_v52  ;;  %19198 = vmatpush1.bf16.msra.mxu1 %v24681_v40 }
 0xb56   :  { %19008 = vmatprep.subr.bf16.mxu0 %v24757_v46  ;;  %19200 = vmatprep.subr.bf16.mxu1 %v24682_v21 }
 0xb59   :  { %19010 = vmatpush1.bf16.msra.mxu0 %v24758_v54  ;;  %19202 = vmatpush1.bf16.msra.mxu1 %v24683_v27 }
 0xb5a   :  { %19012 = vmatprep.subr.bf16.mxu0 %v24759_v12  ;;  %19204 = vmatprep.subr.bf16.mxu1 %v24684_v31 }
 0xb5d   :  { %19014 = vmatpush1.bf16.msra.mxu0 %v24760_v28  ;;  %19206 = vmatpush1.bf16.msra.mxu1 %v24685_v55 }
 0xb5e   :  { %19016 = vmatprep.subr.bf16.mxu0 %v24761_v8  ;;  %19208 = vmatprep.subr.bf16.mxu1 %v24686_v26 }
 0xb61   :  { %19018 = vmatpush1.bf16.msra.mxu0 %v24762_v20  ;;  %19210 = vmatpush1.bf16.msra.mxu1 %v21331_v5 }
 0xb62   :  { %19020 = vmatprep.subr.bf16.mxu0 %v25098_v45  ;;  %19212 = vmatprep.subr.bf16.mxu1 %v25099_v25 }
 0xb65   :  { %19022 = vmatpush1.bf16.msra.mxu0 %v25188_v0  ;;  %19214 = vmatpush1.bf16.msra.mxu1 %v25189_v37 }
 0xb66   :  { %19024 = vmatprep.subr.bf16.mxu0 %v25190_v23  ;;  %19216 = vmatprep.subr.bf16.mxu1 %v25191_v3 }
 0xb69   :  { %19026 = vmatpush1.bf16.msra.mxu0 %v25192_v14  ;;  %19218 = vmatpush1.bf16.msra.mxu1 %v25193_v34 }
 0xb6a   :  { %19028 = vmatprep.subr.bf16.mxu0 %v25194_v16  ;;  %19220 = vmatprep.subr.bf16.mxu1 %v25195_v11  ;;  %v25201_v16 = vld [vmem:[#allocation124_spill] sm:$0xff]  ;;  %v25202_v11 = vld [vmem:[#allocation39_spill] sm:$0xff] }
 0xb6c   :  { %12478 = vmatmul.mubr.f32.vlgmr.msra.gmra.mrb[16].mxu0 %v23122_v15  ;;  %13333 = vmatmul.mubr.f32.vlgmr.msra.gmra.mrb[18].mxu1 %v23122_v15  ;;  %v25204_v15 = vld [vmem:[#allocation40_spill] sm:$0xff] }
 0xb6d   :  { %19030 = vmatpush1.bf16.msra.mxu0 %v25196_v9  ;;  %19222 = vmatpush1.bf16.msra.mxu1 %v25197_v4  ;;  %v25205_v9 = vld [vmem:[#allocation126_spill] sm:$0xff]  ;;  %v25206_v4 = vld [vmem:[#allocation41_spill] sm:$0xff] }
 0xb6e   :  { %19032 = vmatprep.subr.bf16.mxu0 %v25198_v19  ;;  %19224 = vmatprep.subr.bf16.mxu1 %v25199_v39  ;;  %v25207_v19 = vld [vmem:[#allocation127_spill] sm:$0xff]  ;;  %v25208_v39 = vld [vmem:[#allocation44_spill] sm:$0xff] }
 0xb6f   :  { %12644 = vmatprep.mubr.f32.mxu0 %v24413_v61  ;;  %13499 = vmatprep.mubr.f32.mxu1 %v24413_v61 }
 0xb71   :  { %19034 = vmatpush1.bf16.msra.mxu0 %v25200_v48  ;;  %19226 = vmatpush1.bf16.msra.mxu1 %v25201_v16  ;;  %v25211_v48 = vld [vmem:[#allocation129_spill] sm:$0xff] }
 0xb72   :  { %19036 = vmatprep.subr.bf16.mxu0 %v25202_v11  ;;  %19228 = vmatprep.subr.bf16.mxu1 %v25203_v49  ;;  %v25212_v16 = vld [vmem:[#allocation49_spill] sm:$0xff]  ;;  %v25213_v11 = vld [vmem:[#allocation130_spill] sm:$0xff] }
 0xb73   :  { %v25214_v49 = vld [vmem:[#allocation50_spill] sm:$0xff] }
 0xb75   :  { %19038 = vmatpush1.bf16.msra.mxu0 %v25204_v15  ;;  %19230 = vmatpush1.bf16.msra.mxu1 %v25205_v9  ;;  %v25215_v15 = vld [vmem:[#allocation131_spill] sm:$0xff]  ;;  %v25216_v9 = vld [vmem:[#allocation54_spill] sm:$0xff] }
 0xb76   :  { %19040 = vmatprep.subr.bf16.mxu0 %v25206_v4  ;;  %19232 = vmatprep.subr.bf16.mxu1 %v25207_v19  ;;  %v25217_v4 = vld [vmem:[#allocation132_spill] sm:$0xff] }
 0xb77   :  { %v25218_v19 = vld [vmem:[#allocation56_spill] sm:$0xff] }
 0xb79   :  { %19042 = vmatpush1.bf16.msra.mxu0 %v25208_v39  ;;  %19234 = vmatpush1.bf16.msra.mxu1 %v25209_v6  ;;  %v25219_v39 = vld [vmem:[#allocation133_spill] sm:$0xff]  ;;  %v25220_v6 = vld [vmem:[#allocation58_spill] sm:$0xff] }
 0xb7a   :  { %19044 = vmatprep.subr.bf16.mxu0 %v25210_v53  ;;  %19236 = vmatprep.subr.bf16.mxu1 %v25211_v48  ;;  %v25221_v53 = vld [vmem:[#allocation134_spill] sm:$0xff]  ;;  %v25222_v48 = vld [vmem:[#allocation60_spill] sm:$0xff] }
 0xb7d   :  { %19046 = vmatpush1.bf16.msra.mxu0 %v25212_v16  ;;  %19238 = vmatpush1.bf16.msra.mxu1 %v25213_v11  ;;  %v25223_v16 = vld [vmem:[#allocation135_spill] sm:$0xff]  ;;  %v25224_v11 = vld [vmem:[#allocation62_spill] sm:$0xff] }
 0xb7e   :  { %19048 = vmatprep.subr.bf16.mxu0 %v25214_v49  ;;  %19240 = vmatprep.subr.bf16.mxu1 %v25215_v15  ;;  %v25225_v49 = vld [vmem:[#allocation136_spill] sm:$0xff]  ;;  %v25228_v15 = vld [vmem:[#allocation121_spill] sm:$0xff] }
 0xb81   :  { %19050 = vmatpush1.bf16.msra.mxu0 %v25216_v9  ;;  %19242 = vmatpush1.bf16.msra.mxu1 %v25217_v4 }
 0xb82   :  { %19052 = vmatprep.subr.bf16.mxu0 %v25218_v19  ;;  %19244 = vmatprep.subr.bf16.mxu1 %v25219_v39 }
 0xb85   :  { %19054 = vmatpush1.bf16.msra.mxu0 %v25220_v6  ;;  %19246 = vmatpush1.bf16.msra.mxu1 %v25221_v53 }
 0xb86   :  { %19056 = vmatprep.subr.bf16.mxu0 %v25222_v48  ;;  %19248 = vmatprep.subr.bf16.mxu1 %v25223_v16 }
 0xb89   :  { %19058 = vmatpush1.bf16.msra.mxu0 %v25224_v11  ;;  %19250 = vmatpush1.bf16.msra.mxu1 %v25225_v49  ;;  %v25227_v49 = vld [vmem:[#allocation85_spill] sm:$0xff] }
 0xb8a   :  { %19060 = vmatprep.subr.bf16.mxu0 %v24751_v57  ;;  %19252 = vmatprep.subr.bf16.mxu1 %v21096_v22 }
 0xb8c   :  { %12646 = vmatmul.mubr.f32.vlgmr.msra.gmra.mrb[16].mxu0 %v23116_v17  ;;  %13501 = vmatmul.mubr.f32.vlgmr.msra.gmra.mrb[18].mxu1 %v23116_v17 }
 0xb8d   :  { %19062 = vmatpush1.bf16.msra.mxu0 %v24752_v30  ;;  %19254 = vmatpush1.bf16.msra.mxu1 %v21114_v35 }
 0xb8e   :  { %19064 = vmatprep.subr.bf16.mxu0 %v24753_v51  ;;  %19256 = vmatprep.subr.bf16.mxu1 %v21123_v7 }
 0xb8f   :  { %12748 = vmatprep.mubr.f32.mxu0 %v24413_v61  ;;  %13603 = vmatprep.mubr.f32.mxu1 %v24413_v61 }
 0xb91   :  { %19066 = vmatpush1.bf16.msra.mxu0 %v24754_v59  ;;  %19258 = vmatpush1.bf16.msra.mxu1 %v21143_v2 }
 0xb92   :  { %19068 = vmatprep.subr.bf16.mxu0 %v24755_v60  ;;  %19260 = vmatprep.subr.bf16.mxu1 %v24680_v29 }
 0xb95   :  { %19070 = vmatpush1.bf16.msra.mxu0 %v24756_v52  ;;  %19262 = vmatpush1.bf16.msra.mxu1 %v24681_v40 }
 0xb96   :  { %19072 = vmatprep.subr.bf16.mxu0 %v24757_v46  ;;  %19264 = vmatprep.subr.bf16.mxu1 %v24682_v21 }
 0xb99   :  { %19074 = vmatpush1.bf16.msra.mxu0 %v24758_v54  ;;  %19266 = vmatpush1.bf16.msra.mxu1 %v24683_v27 }
 0xb9a   :  { %19076 = vmatprep.subr.bf16.mxu0 %v24759_v12  ;;  %19268 = vmatprep.subr.bf16.mxu1 %v24684_v31 }
 0xb9d   :  { %19078 = vmatpush1.bf16.msra.mxu0 %v24760_v28  ;;  %19270 = vmatpush1.bf16.msra.mxu1 %v24685_v55 }
 0xb9e   :  { %19080 = vmatprep.subr.bf16.mxu0 %v24761_v8  ;;  %19272 = vmatprep.subr.bf16.mxu1 %v24686_v26 }
 0xba1   :  { %19082 = vmatpush1.bf16.msra.mxu0 %v24762_v20  ;;  %19274 = vmatpush1.bf16.msra.mxu1 %v21331_v5 }
 0xba2   :  { %19084 = vmatprep.subr.bf16.mxu0 %v25098_v45  ;;  %19276 = vmatprep.subr.bf16.mxu1 %v25099_v25 }
 0xba5   :  { %19086 = vmatpush1.bf16.msra.mxu0 %v25188_v0  ;;  %19278 = vmatpush1.bf16.msra.mxu1 %v25189_v37 }
 0xba6   :  { %19088 = vmatprep.subr.bf16.mxu0 %v25190_v23  ;;  %19280 = vmatprep.subr.bf16.mxu1 %v25191_v3 }
 0xba9   :  { %19090 = vmatpush1.bf16.msra.mxu0 %v25192_v14  ;;  %19282 = vmatpush1.bf16.msra.mxu1 %v25193_v34 }
 0xbaa   :  { %19284 = vmatprep.subr.bf16.mxu0 %v24751_v57  ;;  %19476 = vmatprep.subr.bf16.mxu1 %v21096_v22 }
 0xbac   :  { %12750 = vmatmul.mubr.f32.vlgmr.msra.gmra.mrb[16].mxu0 %v23116_v17  ;;  %13605 = vmatmul.mubr.f32.vlgmr.msra.gmra.mrb[18].mxu1 %v23116_v17  ;;  %v25226_v17 = vld [vmem:[#allocation32_spill] sm:$0xff] }
 0xbad   :  { %19286 = vmatpush1.bf16.msra.mxu0 %v24752_v30  ;;  %19478 = vmatpush1.bf16.msra.mxu1 %v21114_v35 }
 0xbae   :  { %19288 = vmatprep.subr.bf16.mxu0 %v24753_v51  ;;  %19480 = vmatprep.subr.bf16.mxu1 %v21123_v7 }
 0xbaf   :  { %13765 = vmatprep.mubr.f32.mxu0 %v24413_v61  ;;  %14620 = vmatprep.mubr.f32.mxu1 %v24413_v61 }
 0xbb1   :  { %19290 = vmatpush1.bf16.msra.mxu0 %v24754_v59  ;;  %19482 = vmatpush1.bf16.msra.mxu1 %v21143_v2 }
 0xbb2   :  { %19292 = vmatprep.subr.bf16.mxu0 %v24755_v60  ;;  %19484 = vmatprep.subr.bf16.mxu1 %v24680_v29 }
 0xbb5   :  { %19294 = vmatpush1.bf16.msra.mxu0 %v24756_v52  ;;  %19486 = vmatpush1.bf16.msra.mxu1 %v24681_v40 }
 0xbb6   :  { %19296 = vmatprep.subr.bf16.mxu0 %v24757_v46  ;;  %19488 = vmatprep.subr.bf16.mxu1 %v24682_v21 }
 0xbb9   :  { %19298 = vmatpush1.bf16.msra.mxu0 %v24758_v54  ;;  %19490 = vmatpush1.bf16.msra.mxu1 %v24683_v27 }
 0xbba   :  { %19300 = vmatprep.subr.bf16.mxu0 %v24759_v12  ;;  %19492 = vmatprep.subr.bf16.mxu1 %v24684_v31 }
 0xbbd   :  { %19302 = vmatpush1.bf16.msra.mxu0 %v24760_v28  ;;  %19494 = vmatpush1.bf16.msra.mxu1 %v24685_v55 }
 0xbbe   :  { %19304 = vmatprep.subr.bf16.mxu0 %v24761_v8  ;;  %19496 = vmatprep.subr.bf16.mxu1 %v24686_v26 }
 0xbc1   :  { %19306 = vmatpush1.bf16.msra.mxu0 %v24762_v20  ;;  %19498 = vmatpush1.bf16.msra.mxu1 %v21331_v5 }
 0xbc2   :  { %19308 = vmatprep.subr.bf16.mxu0 %v25098_v45  ;;  %19500 = vmatprep.subr.bf16.mxu1 %v25099_v25 }
 0xbc5   :  { %19310 = vmatpush1.bf16.msra.mxu0 %v25188_v0  ;;  %19502 = vmatpush1.bf16.msra.mxu1 %v25189_v37 }
 0xbc6   :  { %19312 = vmatprep.subr.bf16.mxu0 %v25190_v23  ;;  %19504 = vmatprep.subr.bf16.mxu1 %v25191_v3  ;;  %v25229_v3 = vld [vmem:[#allocation123_spill] sm:$0xff] }
 0xbc9   :  { %19314 = vmatpush1.bf16.msra.mxu0 %v25192_v14  ;;  %19506 = vmatpush1.bf16.msra.mxu1 %v25193_v34  ;;  %v25230_v14 = vcombine.low %v25228_v15, %v25229_v3 }
 0xbca   :  { %19316 = vmatprep.subr.bf16.mxu0 %v25226_v17  ;;  %19508 = vmatprep.subr.bf16.mxu1 %v25227_v49 }
 0xc7f   :  { %v12751_v11 = vpop.f32.mrb[16].mxu0  ;;  %v13606_v16 = vpop.f32.mrb[18].mxu1 }
 0xc80   :  { %v12753_v48 = vpop.f32.mrb[17].mxu0  ;;  %v13608_v53 = vpop.f32.mrb[19].mxu1 }
 0xc81   :  { %v13615_v6 = vcombine.low %v12751_v11, %v12753_v48  ;;  %v13616_v39 = vcombine.low %v13606_v16, %v13608_v53 }
 0xc83   :  { %v13623_v19 = vrot.slane %v13615_v6, %v24625_v62  ;;  %v13630_v4 = vrot.slane %v13616_v39, %v24625_v62 }
 0xc85   :  { %v13631_v9 = vcombine.low %v13623_v19, %v13630_v4 }
 0xc87   :  { %v13633_v23 = vadd.f32 %v13631_v9, %v25230_v14 }
 0xc89   :  { %v16270_v34 = vmul.f32 -1.442695, %v13633_v23  ;;  %v13641_v37 = vrot.slane %v13633_v23, 2  ;;  %v13652_v49 = vrot.slane %v13633_v23, 6  ;;  %v13649_v45 = vrot.slane %v13633_v23, 4 }
 0xc8b   :  { %20182 = vpow2.f32 %v16270_v34  ;;  %v16271_v17 = vmul.f32 -1.442695, %v13641_v37  ;;  %v16272_v0 = vmul.f32 -1.442695, %v13652_v49 }
 0xc8d   :  { %20184 = vpow2.f32 %v16271_v17 }
 0xc8e   :  { %20186 = vpow2.f32 %v16272_v0 }
 0xc95   :  { %v20183_v25 = vpop.eup %20182 }
 0xc96   :  { %v13637_v48 = vadd.f32 1.0, %v20183_v25 }
 0xc97   :  { %v20185_v53 = vpop.eup %20184 }
 0xc98   :  { %20188 = vrcp.f32 %v13637_v48  ;;  %v13646_v6 = vadd.f32 1.0, %v20185_v53  ;;  %v20187_v16 = vpop.eup %20186  ;;  %v25248_v48 = vld [vmem:[#allocation65_spill] sm:$0xff]  ;;  %v25249_v53 = vld [vmem:[#allocation103_spill] sm:$0xff] }
 0xc99   :  { %20190 = vtanh.f32 %v13649_v45  ;;  %v13657_v11 = vadd.f32 1.0, %v20187_v16  ;;  %v25251_v16 = vld [vmem:[#allocation104_spill] sm:$0xff] }
 0xc9a   :  { %20192 = vrcp.f32 %v13646_v6  ;;  %v25250_v6 = vld [vmem:[#allocation20_spill] sm:$0xff] }
 0xc9b   :  { %20194 = vrcp.f32 %v13657_v11  ;;  %v25255_v11 = vld [vmem:[#allocation106_spill] sm:$0xff] }
 0xca2   :  { %v20189_v19 = vpop.eup %20188 }
 0xca3   :  { %v20191_v4 = vpop.eup %20190 }
 0xca4   :  { %v20193_v9 = vpop.eup %20192  ;;  %v13661_v39 = vmul.f32 %v20191_v4, %v20189_v19  ;;  %v25252_v19 = vld [vmem:[#allocation21_spill] sm:$0xff] }
 0xca5   :  { %v13660_v34 = vmul.f32 %v20193_v9, %v23113_v56  ;;  %v20195_v25 = vpop.eup %20194  ;;  %v25253_v4 = vld [vmem:[#allocation105_spill] sm:$0xff]  ;;  %v25254_v9 = vld [vmem:[#allocation28_spill] sm:$0xff] }
 0xca7   :  { %v23346_v37 = vadd.f32 %v13661_v39, %v13660_v34  ;;  %v25256_v34 = vld [vmem:[#allocation30_spill] sm:$0xff]  ;;  %v25257_v39 = vld [vmem:[#allocation107_spill] sm:$0xff] }
 0xca9   :  { %20196 = vtanh.f32 %v23346_v37 }
 0xcb3   :  { %v20197_v14 = vpop.eup %20196 }
 0xcb4   :  { %v13664_v23 = vmul.f32 %v20197_v14, %v20195_v25  ;;  %v25258_v25 = vld [vmem:[#allocation66_spill] sm:$0xff]  ;;  %v25259_v14 = vld [vmem:[#allocation108_spill] sm:$0xff] }
 0xcb6   :  { %13666 = vst [vmem:[#allocation3 + $0xc] sm:$0x3] %v13664_v23  ;;  %v23349_v0 = vand.u32 4294901760, %v13664_v23 }
 0xcb8   :  { %v23352_v45 = vsub.f32 %v13664_v23, %v23349_v0  ;;  %v25260_v23 = vld [vmem:[#allocation34_spill] sm:$0xff] }
 0xcba   :  { %v23355_v17 = vand.u32 4294901760, %v23352_v45 }
 0xcbc   :  { %v13769_v56 = vsub.f32 %v23352_v45, %v23355_v17 }
 0xcbe   :  { %v13770_v49 = vand.u32 4294901760, %v13769_v56  ;;  %v25261_v56 = vld [vmem:[#allocation109_spill] sm:$0xff] }
 0xcc0   :  { %13771 = vmatmul.mubr.f32.vlgmr.msra.gmra.mrb[18].mxu0 %v13770_v49  ;;  %14626 = vmatmul.mubr.f32.vlgmr.msra.gmra.mrb[20].mxu1 %v13770_v49  ;;  %v25262_v49 = vld [vmem:[#allocation67_spill] sm:$0xff] }
 0xcc1   :  { %19318 = vmatpush1.bf16.msra.mxu0 %v24689_v43  ;;  %19510 = vmatpush1.bf16.msra.mxu1 %v24690_v32  ;;  %v25231_v43 = vld [vmem:[#allocation94_spill] sm:$0xff]  ;;  %v25232_v32 = vld [vmem:[#allocation52_spill] sm:$0xff] }
 0xcc2   :  { %19320 = vmatprep.subr.bf16.mxu0 %v24691_v38  ;;  %19512 = vmatprep.subr.bf16.mxu1 %v24692_v1  ;;  %v25233_v38 = vld [vmem:[#allocation95_spill] sm:$0xff]  ;;  %v25234_v1 = vld [vmem:[#allocation53_spill] sm:$0xff] }
 0xcc3   :  { %14001 = vmatprep.mubr.f32.mxu0 %v24413_v61  ;;  %14856 = vmatprep.mubr.f32.mxu1 %v24413_v61 }
 0xcc5   :  { %19322 = vmatpush1.bf16.msra.mxu0 %v24785_v13  ;;  %19514 = vmatpush1.bf16.msra.mxu1 %v24786_v63  ;;  %v25235_v13 = vld [vmem:[#allocation96_spill] sm:$0xff]  ;;  %v25236_v63 = vld [vmem:[#allocation55_spill] sm:$0xff] }
 0xcc6   :  { %19324 = vmatprep.subr.bf16.mxu0 %v24787_v44  ;;  %19516 = vmatprep.subr.bf16.mxu1 %v24788_v10  ;;  %v25237_v44 = vld [vmem:[#allocation97_spill] sm:$0xff] }
 0xcc7   :  { %v25238_v10 = vld [vmem:[#allocation57_spill] sm:$0xff] }
 0xcc9   :  { %19326 = vmatpush1.bf16.msra.mxu0 %v24789_v47  ;;  %19518 = vmatpush1.bf16.msra.mxu1 %v24790_v58  ;;  %v25239_v47 = vld [vmem:[#allocation98_spill] sm:$0xff]  ;;  %v25240_v58 = vld [vmem:[#allocation59_spill] sm:$0xff] }
 0xcca   :  { %19328 = vmatprep.subr.bf16.mxu0 %v24875_v42  ;;  %19520 = vmatprep.subr.bf16.mxu1 %v24876_v24  ;;  %v25241_v42 = vld [vmem:[#allocation99_spill] sm:$0xff]  ;;  %v25242_v24 = vld [vmem:[#allocation61_spill] sm:$0xff] }
 0xccd   :  { %19330 = vmatpush1.bf16.msra.mxu0 %v24877_v33  ;;  %19522 = vmatpush1.bf16.msra.mxu1 %v24878_v50  ;;  %v25243_v33 = vld [vmem:[#allocation100_spill] sm:$0xff]  ;;  %v25244_v50 = vld [vmem:[#allocation63_spill] sm:$0xff] }
 0xcce   :  { %19332 = vmatprep.subr.bf16.mxu0 %v24963_v18  ;;  %19524 = vmatprep.subr.bf16.mxu1 %v25141_v36  ;;  %v25245_v18 = vld [vmem:[#allocation101_spill] sm:$0xff]  ;;  %v25246_v36 = vld [vmem:[#allocation64_spill] sm:$0xff] }
 0xcd1   :  { %19334 = vmatpush1.bf16.msra.mxu0 %v25142_v41  ;;  %19526 = vmatpush1.bf16.msra.mxu1 %v25231_v43  ;;  %v25247_v41 = vld [vmem:[#allocation102_spill] sm:$0xff] }
 0xcd2   :  { %19336 = vmatprep.subr.bf16.mxu0 %v25232_v32  ;;  %19528 = vmatprep.subr.bf16.mxu1 %v25233_v38  ;;  %v25263_v43 = vld [vmem:[#allocation110_spill] sm:$0xff]  ;;  %v25264_v32 = vld [vmem:[#allocation68_spill] sm:$0xff]  ;;  %v25265_v38 = vld [vmem:[#allocation111_spill] sm:$0xff] }
 0xcd5   :  { %19338 = vmatpush1.bf16.msra.mxu0 %v25234_v1  ;;  %19530 = vmatpush1.bf16.msra.mxu1 %v25235_v13  ;;  %v25266_v1 = vld [vmem:[#allocation69_spill] sm:$0xff]  ;;  %v25267_v13 = vld [vmem:[#allocation112_spill] sm:$0xff] }
 0xcd6   :  { %19340 = vmatprep.subr.bf16.mxu0 %v25236_v63  ;;  %19532 = vmatprep.subr.bf16.mxu1 %v25237_v44  ;;  %v25268_v63 = vld [vmem:[#allocation70_spill] sm:$0xff]  ;;  %v25269_v44 = vld [vmem:[#allocation113_spill] sm:$0xff] }
 0xcd9   :  { %19342 = vmatpush1.bf16.msra.mxu0 %v25238_v10  ;;  %19534 = vmatpush1.bf16.msra.mxu1 %v25239_v47  ;;  %v25270_v10 = vld [vmem:[#allocation71_spill] sm:$0xff]  ;;  %v25271_v47 = vld [vmem:[#allocation114_spill] sm:$0xff] }
 0xcda   :  { %19344 = vmatprep.subr.bf16.mxu0 %v25240_v58  ;;  %19536 = vmatprep.subr.bf16.mxu1 %v25241_v42  ;;  %v25272_v58 = vld [vmem:[#allocation72_spill] sm:$0xff]  ;;  %v25273_v42 = vld [vmem:[#allocation115_spill] sm:$0xff] }
 0xcdd   :  { %19346 = vmatpush1.bf16.msra.mxu0 %v25242_v24  ;;  %19538 = vmatpush1.bf16.msra.mxu1 %v25243_v33  ;;  %v25274_v24 = vld [vmem:[#allocation73_spill] sm:$0xff]  ;;  %v25275_v33 = vld [vmem:[#allocation116_spill] sm:$0xff] }
 0xcde   :  { %19348 = vmatprep.subr.bf16.mxu0 %v25244_v50  ;;  %19540 = vmatprep.subr.bf16.mxu1 %v25245_v18  ;;  %v25277_v50 = vld [vmem:[#allocation81_spill] sm:$0xff] }
 0xcdf   :  { %v25278_v18 = vld [vmem:[#allocation25_spill] sm:$0xff] }
 0xce0   :  { %14003 = vmatmul.mubr.f32.vlgmr.msra.gmra.mrb[18].mxu0 %v23349_v0  ;;  %14858 = vmatmul.mubr.f32.vlgmr.msra.gmra.mrb[20].mxu1 %v23349_v0 }
 0xce1   :  { %19350 = vmatpush1.bf16.msra.mxu0 %v25246_v36  ;;  %19542 = vmatpush1.bf16.msra.mxu1 %v25247_v41  ;;  %v25279_v36 = vld [vmem:[#allocation82_spill] sm:$0xff] }
 0xce2   :  { %19352 = vmatprep.subr.bf16.mxu0 %v25248_v48  ;;  %19544 = vmatprep.subr.bf16.mxu1 %v25249_v53  ;;  %v25280_v41 = vld [vmem:[#allocation26_spill] sm:$0xff]  ;;  %v25281_v48 = vld [vmem:[#allocation83_spill] sm:$0xff] }
 0xce3   :  { %14137 = vmatprep.mubr.f32.mxu0 %v24413_v61  ;;  %14992 = vmatprep.mubr.f32.mxu1 %v24413_v61  ;;  %v25282_v53 = vld [vmem:[#allocation27_spill] sm:$0xff] }
 0xce5   :  { %19354 = vmatpush1.bf16.msra.mxu0 %v25250_v6  ;;  %19546 = vmatpush1.bf16.msra.mxu1 %v25251_v16  ;;  %v25283_v6 = vld [vmem:[#allocation84_spill] sm:$0xff]  ;;  %v25284_v16 = vld [vmem:[#allocation29_spill] sm:$0xff] }
 0xce6   :  { %19356 = vmatprep.subr.bf16.mxu0 %v25252_v19  ;;  %19548 = vmatprep.subr.bf16.mxu1 %v25253_v4  ;;  %v25285_v19 = vld [vmem:[#allocation117_spill] sm:$0xff]  ;;  %v25286_v4 = vld [vmem:[#allocation31_spill] sm:$0xff] }
 0xce9   :  { %19358 = vmatpush1.bf16.msra.mxu0 %v25254_v9  ;;  %19550 = vmatpush1.bf16.msra.mxu1 %v25255_v11  ;;  %v25287_v9 = vld [vmem:[#allocation118_spill] sm:$0xff]  ;;  %v25288_v11 = vld [vmem:[#allocation33_spill] sm:$0xff] }
 0xcea   :  { %19360 = vmatprep.subr.bf16.mxu0 %v25256_v34  ;;  %19552 = vmatprep.subr.bf16.mxu1 %v25257_v39  ;;  %v25289_v34 = vld [vmem:[#allocation119_spill] sm:$0xff]  ;;  %v25290_v39 = vld [vmem:[#allocation38_spill] sm:$0xff] }
 0xced   :  { %19362 = vmatpush1.bf16.msra.mxu0 %v25258_v25  ;;  %19554 = vmatpush1.bf16.msra.mxu1 %v25259_v14  ;;  %v25291_v25 = vld [vmem:[#allocation124_spill] sm:$0xff]  ;;  %v25292_v14 = vld [vmem:[#allocation39_spill] sm:$0xff] }
 0xcee   :  { %19364 = vmatprep.subr.bf16.mxu0 %v25260_v23  ;;  %19556 = vmatprep.subr.bf16.mxu1 %v25261_v56  ;;  %v25293_v23 = vld [vmem:[#allocation125_spill] sm:$0xff]  ;;  %v25295_v56 = vld [vmem:[#allocation126_spill] sm:$0xff] }
 0xcf1   :  { %19366 = vmatpush1.bf16.msra.mxu0 %v25262_v49  ;;  %19558 = vmatpush1.bf16.msra.mxu1 %v25263_v43  ;;  %v25296_v49 = vld [vmem:[#allocation41_spill] sm:$0xff]  ;;  %v25297_v43 = vld [vmem:[#allocation127_spill] sm:$0xff] }
 0xcf2   :  { %19368 = vmatprep.subr.bf16.mxu0 %v25264_v32  ;;  %19560 = vmatprep.subr.bf16.mxu1 %v25265_v38  ;;  %v25298_v32 = vld [vmem:[#allocation44_spill] sm:$0xff] }
 0xcf3   :  { %v25299_v38 = vld [vmem:[#allocation128_spill] sm:$0xff] }
 0xcf5   :  { %19370 = vmatpush1.bf16.msra.mxu0 %v25266_v1  ;;  %19562 = vmatpush1.bf16.msra.mxu1 %v25267_v13  ;;  %v25300_v1 = vld [vmem:[#allocation46_spill] sm:$0xff]  ;;  %v25301_v13 = vld [vmem:[#allocation129_spill] sm:$0xff] }
 0xcf6   :  { %19372 = vmatprep.subr.bf16.mxu0 %v25268_v63  ;;  %19564 = vmatprep.subr.bf16.mxu1 %v25269_v44  ;;  %v25302_v63 = vld [vmem:[#allocation49_spill] sm:$0xff]  ;;  %v25303_v44 = vld [vmem:[#allocation130_spill] sm:$0xff] }
 0xcf9   :  { %19374 = vmatpush1.bf16.msra.mxu0 %v25270_v10  ;;  %19566 = vmatpush1.bf16.msra.mxu1 %v25271_v47  ;;  %v25304_v10 = vld [vmem:[#allocation50_spill] sm:$0xff]  ;;  %v25305_v47 = vld [vmem:[#allocation131_spill] sm:$0xff] }
 0xcfa   :  { %19376 = vmatprep.subr.bf16.mxu0 %v25272_v58  ;;  %19568 = vmatprep.subr.bf16.mxu1 %v25273_v42  ;;  %v25306_v58 = vld [vmem:[#allocation54_spill] sm:$0xff]  ;;  %v25307_v42 = vld [vmem:[#allocation132_spill] sm:$0xff] }
 0xcfd   :  { %19378 = vmatpush1.bf16.msra.mxu0 %v25274_v24  ;;  %19570 = vmatpush1.bf16.msra.mxu1 %v25275_v33  ;;  %v25308_v24 = vld [vmem:[#allocation56_spill] sm:$0xff]  ;;  %v25309_v33 = vld [vmem:[#allocation133_spill] sm:$0xff] }
 0xcfe   :  { %19380 = vmatprep.subr.bf16.mxu0 %v24751_v57  ;;  %19572 = vmatprep.subr.bf16.mxu1 %v21096_v22 }
 0xd00   :  { %14140 = vmatmul.mubr.f32.vlgmr.msra.gmra.mrb[18].mxu0 %v23352_v45  ;;  %14995 = vmatmul.mubr.f32.vlgmr.msra.gmra.mrb[20].mxu1 %v23352_v45  ;;  %v25276_v45 = vld [vmem:[#allocation24_spill] sm:$0xff] }
 0xd01   :  { %19382 = vmatpush1.bf16.msra.mxu0 %v24752_v30  ;;  %19574 = vmatpush1.bf16.msra.mxu1 %v21114_v35 }
 0xd02   :  { %19384 = vmatprep.subr.bf16.mxu0 %v24753_v51  ;;  %19576 = vmatprep.subr.bf16.mxu1 %v21123_v7 }
 0xd03   :  { %14242 = vmatprep.mubr.f32.mxu0 %v24413_v61  ;;  %15097 = vmatprep.mubr.f32.mxu1 %v24413_v61 }
 0xd05   :  { %19386 = vmatpush1.bf16.msra.mxu0 %v24754_v59  ;;  %19578 = vmatpush1.bf16.msra.mxu1 %v21143_v2 }
 0xd06   :  { %19388 = vmatprep.subr.bf16.mxu0 %v24755_v60  ;;  %19580 = vmatprep.subr.bf16.mxu1 %v24680_v29 }
 0xd09   :  { %19390 = vmatpush1.bf16.msra.mxu0 %v24756_v52  ;;  %19582 = vmatpush1.bf16.msra.mxu1 %v24681_v40 }
 0xd0a   :  { %19392 = vmatprep.subr.bf16.mxu0 %v24757_v46  ;;  %19584 = vmatprep.subr.bf16.mxu1 %v24682_v21 }
 0xd0d   :  { %19394 = vmatpush1.bf16.msra.mxu0 %v24758_v54  ;;  %19586 = vmatpush1.bf16.msra.mxu1 %v24683_v27 }
 0xd0e   :  { %19396 = vmatprep.subr.bf16.mxu0 %v24759_v12  ;;  %19588 = vmatprep.subr.bf16.mxu1 %v24684_v31 }
 0xd11   :  { %19398 = vmatpush1.bf16.msra.mxu0 %v24760_v28  ;;  %19590 = vmatpush1.bf16.msra.mxu1 %v24685_v55 }
 0xd12   :  { %19400 = vmatprep.subr.bf16.mxu0 %v24761_v8  ;;  %19592 = vmatprep.subr.bf16.mxu1 %v24686_v26 }
 0xd15   :  { %19402 = vmatpush1.bf16.msra.mxu0 %v24762_v20  ;;  %19594 = vmatpush1.bf16.msra.mxu1 %v21331_v5 }
 0xd16   :  { %19404 = vmatprep.subr.bf16.mxu0 %v25276_v45  ;;  %19596 = vmatprep.subr.bf16.mxu1 %v25277_v50 }
 0xd19   :  { %19406 = vmatpush1.bf16.msra.mxu0 %v25278_v18  ;;  %19598 = vmatpush1.bf16.msra.mxu1 %v25279_v36 }
 0xd1a   :  { %19408 = vmatprep.subr.bf16.mxu0 %v25280_v41  ;;  %19600 = vmatprep.subr.bf16.mxu1 %v25281_v48 }
 0xd1d   :  { %19410 = vmatpush1.bf16.msra.mxu0 %v25282_v53  ;;  %19602 = vmatpush1.bf16.msra.mxu1 %v25283_v6 }
 0xd1e   :  { %19412 = vmatprep.subr.bf16.mxu0 %v25284_v16  ;;  %19604 = vmatprep.subr.bf16.mxu1 %v25285_v19  ;;  %v25310_v16 = vld [vmem:[#allocation58_spill] sm:$0xff] }
 0xd1f   :  { %v25311_v19 = vld [vmem:[#allocation134_spill] sm:$0xff] }
 0xd20   :  { %14246 = vmatmul.mubr.f32.vlgmr.msra.gmra.mrb[18].mxu0 %v23355_v17  ;;  %15101 = vmatmul.mubr.f32.vlgmr.msra.gmra.mrb[20].mxu1 %v23355_v17  ;;  %v25294_v17 = vld [vmem:[#allocation40_spill] sm:$0xff] }
 0xd21   :  { %19414 = vmatpush1.bf16.msra.mxu0 %v25286_v4  ;;  %19606 = vmatpush1.bf16.msra.mxu1 %v25287_v9  ;;  %v25312_v4 = vld [vmem:[#allocation60_spill] sm:$0xff]  ;;  %v25313_v9 = vld [vmem:[#allocation135_spill] sm:$0xff] }
 0xd22   :  { %19416 = vmatprep.subr.bf16.mxu0 %v25288_v11  ;;  %19608 = vmatprep.subr.bf16.mxu1 %v25289_v34  ;;  %v25314_v11 = vld [vmem:[#allocation62_spill] sm:$0xff]  ;;  %v25315_v34 = vld [vmem:[#allocation136_spill] sm:$0xff] }
 0xd23   :  { %14412 = vmatprep.mubr.f32.mxu0 %v24413_v61  ;;  %15267 = vmatprep.mubr.f32.mxu1 %v24413_v61 }
 0xd25   :  { %19418 = vmatpush1.bf16.msra.mxu0 %v25290_v39  ;;  %19610 = vmatpush1.bf16.msra.mxu1 %v25291_v25  ;;  %v15438_v39 = vld [vmem:[#allocation3 + $0x6] sm:$0x3]  ;;  %v15436_v25 = vld [vmem:[#allocation3 + $0x2] sm:$0x3] }
 0xd26   :  { %19420 = vmatprep.subr.bf16.mxu0 %v25292_v14  ;;  %19612 = vmatprep.subr.bf16.mxu1 %v25293_v23  ;;  %v15437_v14 = vld [vmem:[#allocation3 + $0x4] sm:$0x3] }
 0xd29   :  { %19422 = vmatpush1.bf16.msra.mxu0 %v25294_v17  ;;  %19614 = vmatpush1.bf16.msra.mxu1 %v25295_v56  ;;  %v23604_v17 = vld [vmem:[%s23984_s4 + $0x58] sm:$0xff] }
 0xd2a   :  { %19424 = vmatprep.subr.bf16.mxu0 %v25296_v49  ;;  %19616 = vmatprep.subr.bf16.mxu1 %v25297_v43 }
 0xd2d   :  { %19426 = vmatpush1.bf16.msra.mxu0 %v25298_v32  ;;  %19618 = vmatpush1.bf16.msra.mxu1 %v25299_v38  ;;  %v15544_v32 = vand.u32 4294901760, %v23604_v17  ;;  %v23615_v38 = vld [vmem:[%s23984_s4 + $0x60] sm:$0xff] }
 0xd2e   :  { %19428 = vmatprep.subr.bf16.mxu0 %v25300_v1  ;;  %19620 = vmatprep.subr.bf16.mxu1 %v25301_v13 }
 0xd31   :  { %19430 = vmatpush1.bf16.msra.mxu0 %v25302_v63  ;;  %19622 = vmatpush1.bf16.msra.mxu1 %v25303_v44  ;;  %v23624_v63 = vld [vmem:[%s23984_s4 + $0x68] sm:$0xff]  ;;  %v15547_v44 = vand.u32 4294901760, %v23615_v38 }
 0xd32   :  { %19432 = vmatprep.subr.bf16.mxu0 %v25304_v10  ;;  %19624 = vmatprep.subr.bf16.mxu1 %v25305_v47  ;;  %v15550_v47 = vand.u32 4294901760, %v23624_v63 }
 0xd35   :  { %19434 = vmatpush1.bf16.msra.mxu0 %v25306_v58  ;;  %19626 = vmatpush1.bf16.msra.mxu1 %v25307_v42  ;;  %v23640_v58 = vld [vmem:[%s23984_s4 + $0x70] sm:$0xff] }
 0xd36   :  { %19436 = vmatprep.subr.bf16.mxu0 %v25308_v24  ;;  %19628 = vmatprep.subr.bf16.mxu1 %v25309_v33  ;;  %v23647_v33 = vld [vmem:[%s23984_s4 + $0x78] sm:$0xff] }
 0xd39   :  { %19438 = vmatpush1.bf16.msra.mxu0 %v25310_v16  ;;  %19630 = vmatpush1.bf16.msra.mxu1 %v25311_v19  ;;  %v15553_v16 = vand.u32 4294901760, %v23640_v58  ;;  %v23656_v19 = vpack.c.bf16 %v15550_v47, %v15547_v44 }
 0xd3a   :  { %19440 = vmatprep.subr.bf16.mxu0 %v25312_v4  ;;  %19632 = vmatprep.subr.bf16.mxu1 %v25313_v9  ;;  %v15556_v4 = vand.u32 4294901760, %v23647_v33 }
 0xd3d   :  { %19442 = vmatpush1.bf16.msra.mxu0 %v25314_v11  ;;  %19634 = vmatpush1.bf16.msra.mxu1 %v25315_v34  ;;  %v23671_v34 = vpack.c.bf16 %v15556_v4, %v15553_v16 }
 0xd3e   :  { %19444 = vmatprep.subr.bf16.mxu0 %v24751_v57  ;;  %19636 = vmatprep.subr.bf16.mxu1 %v21096_v22  ;;  %v15475_v22 = vcombine.low %v15437_v14, %v15438_v39  ;;  %v15435_v57 = vld [vmem:[#allocation3] sm:$0x3] }
 0xd3f   :  { %v15474_v23 = vcombine.low %v15435_v57, %v15436_v25 }
 0xd40   :  { %14414 = vmatmul.mubr.f32.vlgmr.msra.gmra.mrb[18].mxu0 %v23349_v0  ;;  %15269 = vmatmul.mubr.f32.vlgmr.msra.gmra.mrb[20].mxu1 %v23349_v0 }
 0xd41   :  { %19446 = vmatpush1.bf16.msra.mxu0 %v24752_v30  ;;  %19638 = vmatpush1.bf16.msra.mxu1 %v21114_v35  ;;  %v15489_v35 = vrot.slane %v15475_v22, %v24625_v62 }
 0xd42   :  { %19448 = vmatprep.subr.bf16.mxu0 %v24753_v51  ;;  %19640 = vmatprep.subr.bf16.mxu1 %v21123_v7  ;;  %v15482_v7 = vrot.slane %v15474_v23, %v24625_v62 }
 0xd43   :  { %14516 = vmatprep.mubr.f32.mxu0 %v24413_v61  ;;  %15371 = vmatprep.mubr.f32.mxu1 %v24413_v61 }
 0xd44   :  { %v15490_v61 = vcombine.low %v15482_v7, %v15489_v35 }
 0xd45   :  { %19450 = vmatpush1.bf16.msra.mxu0 %v24754_v59  ;;  %19642 = vmatpush1.bf16.msra.mxu1 %v21143_v2 }
 0xd46   :  { %19452 = vmatprep.subr.bf16.mxu0 %v24755_v60  ;;  %19644 = vmatprep.subr.bf16.mxu1 %v24680_v29  ;;  %v23523_v2 = vand.u32 4294901760, %v15490_v61  ;;  %v15444_v60 = vld [vmem:[%s23984_s4 + $0x8] sm:$0xff]  ;;  %v15446_v29 = vld [vmem:[%s23984_s4 + $0x18] sm:$0xff] }
 0xd48   :  { %v23530_v51 = vsub.f32 %v15490_v61, %v23523_v2 }
 0xd49   :  { %19454 = vmatpush1.bf16.msra.mxu0 %v24756_v52  ;;  %19646 = vmatpush1.bf16.msra.mxu1 %v24681_v40 }
 0xd4a   :  { %19456 = vmatprep.subr.bf16.mxu0 %v24757_v46  ;;  %19648 = vmatprep.subr.bf16.mxu1 %v24682_v21  ;;  %v15514_v46 = vand.u32 4294901760, %v15444_v60  ;;  %v15520_v21 = vand.u32 4294901760, %v15446_v29 }
 0xd4c   :  { %v23617_v1 = vsub.f32 %v15444_v60, %v15514_v46  ;;  %v23679_v57 = vsub.f32 %v15446_v29, %v15520_v21 }
 0xd4d   :  { %19458 = vmatpush1.bf16.msra.mxu0 %v24758_v54  ;;  %19650 = vmatpush1.bf16.msra.mxu1 %v24683_v27 }
 0xd4e   :  { %19460 = vmatprep.subr.bf16.mxu0 %v24759_v12  ;;  %19652 = vmatprep.subr.bf16.mxu1 %v24684_v31  ;;  %v15593_v12 = vand.u32 4294901760, %v23530_v51  ;;  %v15447_v31 = vld [vmem:[%s23984_s4 + $0x20] sm:$0xff]  ;;  %v24362_v24 = vand.u32 4294901760, %v23617_v1  ;;  %v24360_v35 = vand.u32 4294901760, %v23679_v57 }
 0xd50   :  { %v15594_v30 = vsub.f32 %v23530_v51, %v15593_v12  ;;  %v15622_v11 = vsub.f32 %v23617_v1, %v24362_v24  ;;  %v15636_v61 = vsub.f32 %v23679_v57, %v24360_v35 }
 0xd51   :  { %19462 = vmatpush1.bf16.msra.mxu0 %v24760_v28  ;;  %19654 = vmatpush1.bf16.msra.mxu1 %v24685_v55  ;;  %v15443_v28 = vld [vmem:[%s23984_s4] sm:$0xff]  ;;  %v15448_v55 = vld [vmem:[%s23984_s4 + $0x28] sm:$0xff] }
 0xd52   :  { %19464 = vmatprep.subr.bf16.mxu0 %v24761_v8  ;;  %19656 = vmatprep.subr.bf16.mxu1 %v24686_v26  ;;  %v15511_v54 = vand.u32 4294901760, %v15443_v28  ;;  %v15445_v8 = vld [vmem:[%s23984_s4 + $0x10] sm:$0xff]  ;;  %v15523_v26 = vand.u32 4294901760, %v15447_v31  ;;  %v15623_v25 = vand.u32 4294901760, %v15622_v11  ;;  %v15637_v60 = vand.u32 4294901760, %v15636_v61 }
 0xd53   :  { %v15517_v40 = vand.u32 4294901760, %v15445_v8 }
 0xd54   :  { %v23554_v59 = vpack.c.bf16 %v15514_v46, %v15511_v54  ;;  %v23606_v56 = vsub.f32 %v15443_v28, %v15511_v54 }
 0xd55   :  { %19466 = vmatpush1.bf16.msra.mxu0 %v24762_v20  ;;  %19658 = vmatpush1.bf16.msra.mxu1 %v21331_v5  ;;  %v15595_v5 = vand.u32 4294901760, %v15594_v30  ;;  %v23564_v27 = vpack.c.bf16 %v15520_v21, %v15517_v40  ;;  %v15526_v20 = vand.u32 4294901760, %v15448_v55  ;;  %v23677_v22 = vsub.f32 %v15445_v8, %v15517_v40 }
 0xd56   :  { %19468 = vmatprep.subr.bf16.mxu0 %v25276_v45  ;;  %19660 = vmatprep.subr.bf16.mxu1 %v25277_v50  ;;  %v15450_v45 = vld [vmem:[%s23984_s4 + $0x38] sm:$0xff]  ;;  %v24363_v42 = vand.u32 4294901760, %v23606_v56  ;;  %v23691_v30 = vsub.f32 %v15447_v31, %v15523_v26 }
 0xd57   :  { %v23574_v52 = vpack.c.bf16 %v15526_v20, %v15523_v26  ;;  %v24361_v23 = vand.u32 4294901760, %v23677_v22 }
 0xd58   :  { %v15615_v9 = vsub.f32 %v23606_v56, %v24363_v42  ;;  %v24359_v54 = vand.u32 4294901760, %v23691_v30 }
 0xd59   :  { %19470 = vmatpush1.bf16.msra.mxu0 %v25278_v18  ;;  %19662 = vmatpush1.bf16.msra.mxu1 %v25279_v36  ;;  %v15532_v18 = vand.u32 4294901760, %v15450_v45  ;;  %v23586_v36 = vld [vmem:[%s23984_s4 + $0x40] sm:$0xff]  ;;  %v15629_v7 = vsub.f32 %v23677_v22, %v24361_v23 }
 0xd5a   :  { %19472 = vmatprep.subr.bf16.mxu0 %v25280_v41  ;;  %19664 = vmatprep.subr.bf16.mxu1 %v25281_v48  ;;  %v23591_v41 = vld [vmem:[%s23984_s4 + $0x48] sm:$0xff]  ;;  %v23596_v48 = vld [vmem:[%s23984_s4 + $0x50] sm:$0xff]  ;;  %v15616_v39 = vand.u32 4294901760, %v15615_v9  ;;  %v15643_v29 = vsub.f32 %v23691_v30, %v24359_v54 }
 0xd5b   :  { %v15541_v43 = vand.u32 4294901760, %v23596_v48  ;;  %v15630_v28 = vand.u32 4294901760, %v15629_v7  ;;  %v23707_v31 = vsub.f32 %v15450_v45, %v15532_v18 }
 0xd5c   :  { %v23675_v14 = vpack.c.bf16 %v15623_v25, %v15616_v39 }
 0xd5d   :  { %19474 = vmatpush1.bf16.msra.mxu0 %v25282_v53  ;;  %19666 = vmatpush1.bf16.msra.mxu1 %v25283_v6  ;;  %v15535_v53 = vand.u32 4294901760, %v23586_v36  ;;  %v15538_v6 = vand.u32 4294901760, %v23591_v41  ;;  %v23634_v10 = vpack.c.bf16 %v15544_v32, %v15541_v43  ;;  %v23697_v8 = vpack.c.bf16 %v15637_v60, %v15630_v28 }
 0xd5e   :  { %19668 = vmatprep.subr.bf16.mxu0 %v23554_v59  ;;  %v24356_v9 = vand.u32 4294901760, %v23707_v31 }
 0xd5f   :  { %v23619_v13 = vpack.c.bf16 %v15538_v6, %v15535_v53  ;;  %v23717_v25 = vsub.f32 %v23586_v36, %v15535_v53  ;;  %v23741_v53 = vsub.f32 %v23604_v17, %v15544_v32  ;;  %v23758_v17 = vsub.f32 %v23615_v38, %v15547_v44 }
 0xd60   :  { %14518 = vmatmul.mubr.f32.vlgmr.msra.gmra.mrb[18].mxu0 %v23349_v0  ;;  %15373 = vmatmul.mubr.f32.vlgmr.msra.gmra.mrb[20].mxu1 %v23349_v0  ;;  %v15449_v0 = vld [vmem:[%s23984_s4 + $0x30] sm:$0xff]  ;;  %v15664_v45 = vsub.f32 %v23707_v31, %v24356_v9  ;;  %v23763_v32 = vsub.f32 %v23624_v63, %v15550_v47  ;;  %v23775_v38 = vsub.f32 %v23640_v58, %v15553_v16 }
 0xd61   :  { %16417 = vmatprep.mubr.f32.mxu0 %v15595_v5  ;;  %19670 = vmatpush3.bf16.msra.mxu0 %v23554_v59  ;;  %v15529_v50 = vand.u32 4294901760, %v15449_v0  ;;  %v23693_v5 = vsub.f32 %v15448_v55, %v15526_v20  ;;  %v15644_v55 = vand.u32 4294901760, %v15643_v29  ;;  %v23780_v63 = vsub.f32 %v23647_v33, %v15556_v4 }
 0xd62   :  { %19672 = vmatprep.subr.bf16.mxu0 %v23564_v27  ;;  %v15665_v61 = vand.u32 4294901760, %v15664_v45 }
 0xd63   :  { %v23608_v49 = vpack.c.bf16 %v15532_v18, %v15529_v50  ;;  %v24358_v46 = vand.u32 4294901760, %v23693_v5  ;;  %v23705_v21 = vsub.f32 %v15449_v0, %v15529_v50  ;;  %v23720_v0 = vsub.f32 %v23591_v41, %v15538_v6 }
 0xd64   :  { %v24355_v18 = vand.u32 4294901760, %v23717_v25  ;;  %v23736_v41 = vsub.f32 %v23596_v48, %v15541_v43 }
 0xd65   :  { %19674 = vmatpush3.bf16.msra.mxu0 %v23564_v27  ;;  %v15650_v40 = vsub.f32 %v23693_v5, %v24358_v46  ;;  %v24357_v20 = vand.u32 4294901760, %v23705_v21  ;;  %v24354_v7 = vand.u32 4294901760, %v23720_v0 }
 0xd66   :  { %19676 = vmatprep.subr.bf16.mxu0 %v23574_v52  ;;  %v15671_v28 = vsub.f32 %v23717_v25, %v24355_v18  ;;  %v25316_v18 = vcombine.high %v25228_v15, %v25229_v3 }
 0xd67   :  { %v15651_v26 = vand.u32 4294901760, %v15650_v40  ;;  %v15657_v39 = vsub.f32 %v23705_v21, %v24357_v20  ;;  %v15678_v36 = vsub.f32 %v23720_v0, %v24354_v7  ;;  %v24353_v40 = vand.u32 4294901760, %v23736_v41 }
 0xd68   :  { %v15672_v60 = vand.u32 4294901760, %v15671_v28  ;;  %v23832_v20 = vpack.c.bf16 %v23780_v63, %v23775_v38 }
 0xd69   :  { %19678 = vmatpush3.bf16.msra.mxu0 %v23574_v52  ;;  %v23711_v11 = vpack.c.bf16 %v15651_v26, %v15644_v55  ;;  %v15658_v50 = vand.u32 4294901760, %v15657_v39  ;;  %v15679_v29 = vand.u32 4294901760, %v15678_v36  ;;  %v24352_v55 = vand.u32 4294901760, %v23741_v53 }
 0xd6a   :  { %19680 = vmatprep.subr.bf16.mxu0 %v23608_v49  ;;  %v15685_v48 = vsub.f32 %v23736_v41, %v24353_v40  ;;  %v23825_v40 = vpack.c.bf16 %v23763_v32, %v23758_v17 }
 0xd6b   :  { %v23743_v6 = vpack.c.bf16 %v15665_v61, %v15658_v50  ;;  %v23747_v26 = vpack.c.bf16 %v15679_v29, %v15672_v60  ;;  %v15692_v43 = vsub.f32 %v23741_v53, %v24352_v55  ;;  %v24351_v50 = vand.u32 4294901760, %v23758_v17 }
 0xd6c   :  { %v15686_v39 = vand.u32 4294901760, %v15685_v48  ;;  %v24350_v61 = vand.u32 4294901760, %v23763_v32  ;;  %v24349_v60 = vand.u32 4294901760, %v23775_v38  ;;  %v24348_v29 = vand.u32 4294901760, %v23780_v63 }
 0xd6d   :  { %19682 = vmatpush3.bf16.msra.mxu0 %v23608_v49  ;;  %v15693_v45 = vand.u32 4294901760, %v15692_v43  ;;  %v15699_v36 = vsub.f32 %v23758_v17, %v24351_v50 }
 0xd6e   :  { %19684 = vmatprep.subr.bf16.mxu0 %v23619_v13  ;;  %v15706_v44 = vsub.f32 %v23763_v32, %v24350_v61  ;;  %v15713_v58 = vsub.f32 %v23775_v38, %v24349_v60  ;;  %v15720_v16 = vsub.f32 %v23780_v63, %v24348_v29 }
 0xd6f   :  { %v23767_v28 = vpack.c.bf16 %v15693_v45, %v15686_v39  ;;  %v15700_v47 = vand.u32 4294901760, %v15699_v36  ;;  %v23799_v45 = vpack.c.bf16 %v23617_v1, %v23606_v56  ;;  %v23803_v36 = vpack.c.bf16 %v23679_v57, %v23677_v22 }
 0xd70   :  { %v15707_v48 = vand.u32 4294901760, %v15706_v44  ;;  %v15714_v4 = vand.u32 4294901760, %v15713_v58  ;;  %v15721_v43 = vand.u32 4294901760, %v15720_v16  ;;  %v23807_v44 = vpack.c.bf16 %v23693_v5, %v23691_v30 }
 0xd71   :  { %19686 = vmatpush3.bf16.msra.mxu0 %v23619_v13 }
 0xd72   :  { %19688 = vmatprep.subr.bf16.mxu0 %v23634_v10  ;;  %v23793_v33 = vpack.c.bf16 %v15707_v48, %v15700_v47  ;;  %v23795_v39 = vpack.c.bf16 %v15721_v43, %v15714_v4  ;;  %v23811_v47 = vpack.c.bf16 %v23707_v31, %v23705_v21  ;;  %v23815_v48 = vpack.c.bf16 %v23720_v0, %v23717_v25 }
 0xd73   :  { %v23819_v4 = vpack.c.bf16 %v23741_v53, %v23736_v41 }
 0xd75   :  { %19690 = vmatpush3.bf16.msra.mxu0 %v23634_v10 }
 0xd76   :  { %19692 = vmatprep.subr.bf16.mxu0 %v23656_v19 }
 0xd79   :  { %19694 = vmatpush3.bf16.msra.mxu0 %v23656_v19 }
 0xd7a   :  { %19696 = vmatprep.subr.bf16.mxu0 %v23671_v34 }
 0xd7d   :  { %19698 = vmatpush3.bf16.msra.mxu0 %v23671_v34 }
 0xd7e   :  { %19700 = vmatprep.subr.bf16.mxu0 %v23675_v14 }
 0xe33   :  { %v14519_v58 = vpop.f32.mrb[18].mxu0  ;;  %v15374_v16 = vpop.f32.mrb[20].mxu1 }
 0xe34   :  { %v14521_v43 = vpop.f32.mrb[19].mxu0  ;;  %v15376_v29 = vpop.f32.mrb[21].mxu1 }
 0xe35   :  { %v15383_v60 = vcombine.low %v14519_v58, %v14521_v43  ;;  %v15384_v61 = vcombine.low %v15374_v16, %v15376_v29 }
 0xe37   :  { %v15391_v50 = vrot.slane %v15383_v60, %v24625_v62  ;;  %v15398_v55 = vrot.slane %v15384_v61, %v24625_v62 }
 0xe39   :  { %v15399_v7 = vcombine.low %v15391_v50, %v15398_v55 }
 0xe3b   :  { %v15401_v9 = vadd.f32 %v15399_v7, %v25316_v18 }
 0xe3d   :  { %v16273_v46 = vmul.f32 -1.442695, %v15401_v9  ;;  %v15409_v58 = vrot.slane %v15401_v9, 2  ;;  %v15420_v60 = vrot.slane %v15401_v9, 6  ;;  %v15417_v43 = vrot.slane %v15401_v9, 4 }
 0xe3f   :  { %20198 = vpow2.f32 %v16273_v46  ;;  %v16274_v29 = vmul.f32 -1.442695, %v15409_v58  ;;  %v16275_v61 = vmul.f32 -1.442695, %v15420_v60 }
 0xe41   :  { %20200 = vpow2.f32 %v16274_v29 }
 0xe42   :  { %20202 = vpow2.f32 %v16275_v61  ;;  %v15440_v61 = vld [vmem:[#allocation3 + $0xa] sm:$0x3] }
 0xe49   :  { %v20199_v16 = vpop.eup %20198 }
 0xe4a   :  { %v15405_v54 = vadd.f32 1.0, %v20199_v16 }
 0xe4b   :  { %v20201_v35 = vpop.eup %20200 }
 0xe4c   :  { %20204 = vrcp.f32 %v15405_v54  ;;  %v15414_v55 = vadd.f32 1.0, %v20201_v35  ;;  %v20203_v3 = vpop.eup %20202  ;;  %v15439_v54 = vld [vmem:[#allocation3 + $0x8] sm:$0x3] }
 0xe4d   :  { %20206 = vtanh.f32 %v15417_v43  ;;  %v15425_v50 = vadd.f32 1.0, %v20203_v3  ;;  %v15491_v35 = vcombine.low %v15439_v54, %v15440_v61  ;;  %v15441_v43 = vld [vmem:[#allocation3 + $0xc] sm:$0x3] }
 0xe4e   :  { %20208 = vrcp.f32 %v15414_v55 }
 0xe4f   :  { %20210 = vrcp.f32 %v15425_v50  ;;  %v15499_v24 = vrot.slane %v15491_v35, %v24625_v62 }
 0xe56   :  { %v20205_v15 = vpop.eup %20204 }
 0xe57   :  { %v20207_v18 = vpop.eup %20206 }
 0xe58   :  { %v20209_v7 = vpop.eup %20208  ;;  %v15429_v58 = vmul.f32 %v20207_v18, %v20205_v15 }
 0xe59   :  { %v15428_v46 = vmul.f32 %v20209_v7, %v23346_v37  ;;  %v20211_v60 = vpop.eup %20210 }
 0xe5b   :  { %v15430_v29 = vadd.f32 %v15429_v58, %v15428_v46 }
 0xe5d   :  { %20212 = vtanh.f32 %v15430_v29 }
 0xe67   :  { %v20213_v9 = vpop.eup %20212 }
 0xe68   :  { %v15432_v16 = vmul.f32 %v20213_v9, %v20211_v60 }
 0xe6a   :  { %15434 = vst [vmem:[#allocation3 + $0xe] sm:$0x3] %v15432_v16 }
 0xe71   :  { %v15442_v55 = vld [vmem:[#allocation3 + $0xe] sm:$0x3] }
 0xe72   :  { %v15492_v23 = vcombine.low %v15441_v43, %v15442_v55 }
 0xe74   :  { %v15506_v3 = vrot.slane %v15492_v23, %v24625_v62 }
 0xe76   :  { %v15507_v42 = vcombine.low %v15499_v24, %v15506_v3  ;;  %v25319_v24 = vand.u32 4294901760, %v23677_v22 }
 0xe78   :  { %v23837_v37 = vand.u32 4294901760, %v15507_v42 }
 0xe7a   :  { %v15602_v15 = vsub.f32 %v15507_v42, %v23837_v37 }
 0xe7c   :  { %v15603_v18 = vand.u32 4294901760, %v15602_v15 }
 0xe7e   :  { %v15604_v7 = vsub.f32 %v15602_v15, %v15603_v18 }
 0xe80   :  { %v15605_v50 = vand.u32 4294901760, %v15604_v7 }
 0xe82   :  { %16418 = vmatmul.mubr.f32.vlgmr.msra.gmra.mrb[20].mxu0 %v15605_v50 }
 0xe83   :  { %19702 = vmatpush3.bf16.msra.mxu0 %v23675_v14  ;;  %16452 = vmatprep.mubr.f32.mxu0 %v23523_v2  ;;  %v25320_v14 = vand.u32 4294901760, %v23679_v57  ;;  %v25325_v57 = vand.u32 4294901760, %v23717_v25  ;;  %v25331_v25 = vand.u32 4294901760, %v23775_v38 }
 0xe84   :  { %19704 = vmatprep.subr.bf16.mxu0 %v23697_v8 }
 0xe85   :  { %v19799_v23 = vpack.c.bf16 %v25320_v14, %v25319_v24 }
 0xe87   :  { %19706 = vmatpush3.bf16.msra.mxu0 %v23697_v8  ;;  %v25321_v8 = vand.u32 4294901760, %v23691_v30  ;;  %v25327_v30 = vand.u32 4294901760, %v23736_v41 }
 0xe88   :  { %19708 = vmatprep.subr.bf16.mxu0 %v23711_v11 }
 0xe8b   :  { %19710 = vmatpush3.bf16.msra.mxu0 %v23711_v11  ;;  %v25324_v11 = vand.u32 4294901760, %v23707_v31  ;;  %v25330_v31 = vand.u32 4294901760, %v23763_v32 }
 0xe8c   :  { %19712 = vmatprep.subr.bf16.mxu0 %v23743_v6 }
 0xe8f   :  { %19714 = vmatpush3.bf16.msra.mxu0 %v23743_v6  ;;  %v25326_v6 = vand.u32 4294901760, %v23720_v0  ;;  %v25332_v0 = vand.u32 4294901760, %v23780_v63 }
 0xe90   :  { %19716 = vmatprep.subr.bf16.mxu0 %v23747_v26 }
 0xe93   :  { %19718 = vmatpush3.bf16.msra.mxu0 %v23747_v26 }
 0xe94   :  { %19720 = vmatprep.subr.bf16.mxu0 %v23767_v28 }
 0xe97   :  { %19722 = vmatpush3.bf16.msra.mxu0 %v23767_v28 }
 0xe98   :  { %19724 = vmatprep.subr.bf16.mxu0 %v23793_v33 }
 0xe9b   :  { %19726 = vmatpush3.bf16.msra.mxu0 %v23793_v33  ;;  %v19823_v33 = vpack.c.bf16 %v25332_v0, %v25331_v25 }
 0xe9c   :  { %19728 = vmatprep.subr.bf16.mxu0 %v23795_v39 }
 0xe9f   :  { %19730 = vmatpush3.bf16.msra.mxu0 %v23795_v39 }
 0xea0   :  { %19732 = vmatprep.subr.bf16.mxu0 %v23799_v45 }
 0xea2   :  { %16453 = vmatmul.mubr.f32.vlgmr.msra.gmra.mrb[20].mxu0 %v23837_v37 }
 0xea3   :  { %19734 = vmatpush3.bf16.msra.mxu0 %v23799_v45  ;;  %16487 = vmatprep.mubr.f32.mxu0 %v23530_v51  ;;  %v25317_v51 = vand.u32 4294901760, %v23606_v56  ;;  %v25322_v56 = vand.u32 4294901760, %v23693_v5  ;;  %v25328_v5 = vand.u32 4294901760, %v23741_v53 }
 0xea4   :  { %19736 = vmatprep.subr.bf16.mxu0 %v23803_v36 }
 0xea5   :  { %v19815_v26 = vpack.c.bf16 %v25328_v5, %v25327_v30 }
 0xea7   :  { %19738 = vmatpush3.bf16.msra.mxu0 %v23803_v36 }
 0xea8   :  { %19740 = vmatprep.subr.bf16.mxu0 %v23807_v44 }
 0xeab   :  { %19742 = vmatpush3.bf16.msra.mxu0 %v23807_v44 }
 0xeac   :  { %19744 = vmatprep.subr.bf16.mxu0 %v23811_v47 }
 0xeaf   :  { %19746 = vmatpush3.bf16.msra.mxu0 %v23811_v47 }
 0xeb0   :  { %19748 = vmatprep.subr.bf16.mxu0 %v23815_v48 }
 0xeb3   :  { %19750 = vmatpush3.bf16.msra.mxu0 %v23815_v48 }
 0xeb4   :  { %19752 = vmatprep.subr.bf16.mxu0 %v23819_v4 }
 0xeb7   :  { %19754 = vmatpush3.bf16.msra.mxu0 %v23819_v4 }
 0xeb8   :  { %19756 = vmatprep.subr.bf16.mxu0 %v23825_v40 }
 0xebb   :  { %19758 = vmatpush3.bf16.msra.mxu0 %v23825_v40  ;;  %v19811_v40 = vpack.c.bf16 %v25326_v6, %v25325_v57 }
 0xebc   :  { %19760 = vmatprep.subr.bf16.mxu0 %v23832_v20 }
 0xebf   :  { %19762 = vmatpush3.bf16.msra.mxu0 %v23832_v20  ;;  %v19803_v20 = vpack.c.bf16 %v25322_v56, %v25321_v8 }
 0xec0   :  { %19764 = vmatprep.subr.bf16.mxu0 %v23554_v59 }
 0xec2   :  { %16488 = vmatmul.mubr.f32.vlgmr.msra.gmra.mrb[20].mxu0 %v15602_v15 }
 0xec3   :  { %19766 = vmatpush3.bf16.msra.mxu0 %v23554_v59  ;;  %16522 = vmatprep.mubr.f32.mxu0 %v15593_v12  ;;  %v25318_v12 = vand.u32 4294901760, %v23617_v1  ;;  %v25323_v1 = vand.u32 4294901760, %v23705_v21  ;;  %v25329_v21 = vand.u32 4294901760, %v23758_v17 }
 0xec4   :  { %19768 = vmatprep.subr.bf16.mxu0 %v23564_v27 }
 0xec5   :  { %v19795_v42 = vpack.c.bf16 %v25318_v12, %v25317_v51  ;;  %v19807_v22 = vpack.c.bf16 %v25324_v11, %v25323_v1  ;;  %v19819_v28 = vpack.c.bf16 %v25330_v31, %v25329_v21 }
 0xec7   :  { %19770 = vmatpush3.bf16.msra.mxu0 %v23564_v27 }
 0xec8   :  { %19772 = vmatprep.subr.bf16.mxu0 %v23574_v52 }
 0xecb   :  { %19774 = vmatpush3.bf16.msra.mxu0 %v23574_v52 }
 0xecc   :  { %19776 = vmatprep.subr.bf16.mxu0 %v23608_v49 }
 0xecf   :  { %19778 = vmatpush3.bf16.msra.mxu0 %v23608_v49 }
 0xed0   :  { %19780 = vmatprep.subr.bf16.mxu0 %v23619_v13 }
 0xed3   :  { %19782 = vmatpush3.bf16.msra.mxu0 %v23619_v13 }
 0xed4   :  { %19784 = vmatprep.subr.bf16.mxu0 %v23634_v10 }
 0xed7   :  { %19786 = vmatpush3.bf16.msra.mxu0 %v23634_v10 }
 0xed8   :  { %19788 = vmatprep.subr.bf16.mxu0 %v23656_v19 }
 0xedb   :  { %19790 = vmatpush3.bf16.msra.mxu0 %v23656_v19 }
 0xedc   :  { %19792 = vmatprep.subr.bf16.mxu0 %v23671_v34 }
 0xedf   :  { %19794 = vmatpush3.bf16.msra.mxu0 %v23671_v34 }
 0xee0   :  { %19796 = vmatprep.subr.bf16.mxu0 %v19795_v42 }
 0xee2   :  { %16523 = vmatmul.mubr.f32.vlgmr.msra.gmra.mrb[20].mxu0 %v15603_v18 }
 0xee3   :  { %19798 = vmatpush3.bf16.msra.mxu0 %v19795_v42  ;;  %16557 = vmatprep.mubr.f32.mxu0 %v23523_v2 }
 0xee4   :  { %19800 = vmatprep.subr.bf16.mxu0 %v19799_v23 }
 0xee7   :  { %19802 = vmatpush3.bf16.msra.mxu0 %v19799_v23 }
 0xee8   :  { %19804 = vmatprep.subr.bf16.mxu0 %v19803_v20 }
 0xeeb   :  { %19806 = vmatpush3.bf16.msra.mxu0 %v19803_v20 }
 0xeec   :  { %19808 = vmatprep.subr.bf16.mxu0 %v19807_v22 }
 0xeef   :  { %19810 = vmatpush3.bf16.msra.mxu0 %v19807_v22 }
 0xef0   :  { %19812 = vmatprep.subr.bf16.mxu0 %v19811_v40 }
 0xef3   :  { %19814 = vmatpush3.bf16.msra.mxu0 %v19811_v40 }
 0xef4   :  { %19816 = vmatprep.subr.bf16.mxu0 %v19815_v26 }
 0xef7   :  { %19818 = vmatpush3.bf16.msra.mxu0 %v19815_v26 }
 0xef8   :  { %19820 = vmatprep.subr.bf16.mxu0 %v19819_v28 }
 0xefb   :  { %19822 = vmatpush3.bf16.msra.mxu0 %v19819_v28 }
 0xefc   :  { %19824 = vmatprep.subr.bf16.mxu0 %v19823_v33 }
 0xeff   :  { %19826 = vmatpush3.bf16.msra.mxu0 %v19823_v33 }
 0xf00   :  { %19828 = vmatprep.subr.bf16.mxu0 %v23554_v59 }
 0xf02   :  { %16558 = vmatmul.mubr.f32.vlgmr.msra.gmra.mrb[20].mxu0 %v23837_v37 }
 0xf03   :  { %19830 = vmatpush3.bf16.msra.mxu0 %v23554_v59  ;;  %16592 = vmatprep.mubr.f32.mxu0 %v23523_v2  ;;  %v16276_v2 = vld [vmem:[#allocation4] ss:$0 sm:$0xff] }
 0xf04   :  { %19832 = vmatprep.subr.bf16.mxu0 %v23564_v27 }
 0xf07   :  { %19834 = vmatpush3.bf16.msra.mxu0 %v23564_v27 }
 0xf08   :  { %19836 = vmatprep.subr.bf16.mxu0 %v23574_v52 }
 0xf0b   :  { %19838 = vmatpush3.bf16.msra.mxu0 %v23574_v52 }
 0xf0c   :  { %19840 = vmatprep.subr.bf16.mxu0 %v23608_v49 }
 0xf0f   :  { %19842 = vmatpush3.bf16.msra.mxu0 %v23608_v49 }
 0xf10   :  { %19844 = vmatprep.subr.bf16.mxu0 %v23619_v13 }
 0xf13   :  { %19846 = vmatpush3.bf16.msra.mxu0 %v23619_v13 }
 0xf14   :  { %19848 = vmatprep.subr.bf16.mxu0 %v23634_v10 }
 0xf17   :  { %19850 = vmatpush3.bf16.msra.mxu0 %v23634_v10 }
 0xf18   :  { %19852 = vmatprep.subr.bf16.mxu0 %v23656_v19 }
 0xf1b   :  { %19854 = vmatpush3.bf16.msra.mxu0 %v23656_v19 }
 0xf1c   :  { %19856 = vmatprep.subr.bf16.mxu0 %v23671_v34 }
 0xf1f   :  { %19858 = vmatpush3.bf16.msra.mxu0 %v23671_v34 }
 0xf22   :  { %16593 = vmatmul.mubr.f32.vlgmr.msra.gmra.mrb[20].mxu0 %v23837_v37 }
 0xff5   :  { %v16594_v59 = vpop.f32.mrb[20].mxu0 }
 0xff6   :  { %v19869_v27 = vadd.f32 %v16594_v59, %v16276_v2  ;;  %v16184_v52 = vpop.f32.mrb[21].mxu0 }
 0xff7   :  { %v19870_v49 = vadd.f32 %v16276_v2, %v16184_v52 }
 0xff8   :  { %v16213_v13 = vcombine.high %v19869_v27, %v19869_v27  ;;  %v16220_v41 = vrot.slane %v19869_v27, %v24625_v62 }
 0xff9   :  { %v16196_v10 = vcombine.high %v19870_v49, %v19870_v49  ;;  %v16203_v53 = vrot.slane %v19870_v49, %v24625_v62 }
 0xffa   :  { %v16227_v19 = vrot.slane %v16213_v13, %v24625_v62  ;;  %v16228_v17 = vcombine.high %v16220_v41, %v16220_v41  ;;  %16243 = vst.msk [vmem:[%s23986_s6 + $0x8] sm:$0x3] %vm16238_vm2, %v16220_v41 }
 0xffb   :  { %v16210_v34 = vrot.slane %v16196_v10, %v24625_v62  ;;  %v16211_v32 = vcombine.high %v16203_v53, %v16203_v53  ;;  %16239 = vst.msk [vmem:[%s23986_s6] sm:$0x3] %vm16238_vm2, %v16203_v53 }
 0xffc   :  { %v16229_v38 = vcombine.high %v16227_v19, %v16227_v19  ;;  %16244 = vst.msk [vmem:[%s23986_s6 + $0xa] sm:$0x3] %vm16238_vm2, %v16228_v17  ;;  %16245 = vst.msk [vmem:[%s23986_s6 + $0xc] sm:$0x3] %vm16238_vm2, %v16227_v19 }
 0xffd   :  { %v16212_v63 = vcombine.high %v16210_v34, %v16210_v34  ;;  %16240 = vst.msk [vmem:[%s23986_s6 + $0x2] sm:$0x3] %vm16238_vm2, %v16211_v32  ;;  %16241 = vst.msk [vmem:[%s23986_s6 + $0x4] sm:$0x3] %vm16238_vm2, %v16210_v34 }
 0xffe   :  { %16246 = vst.msk [vmem:[%s23986_s6 + $0xe] sm:$0x3] %vm16238_vm2, %v16229_v38 }
 0xfff   :  { %16242 = vst.msk [vmem:[%s23986_s6 + $0x6] sm:$0x3] %vm16238_vm2, %v16212_v63 }
0x1000   :  { %16251 = vsyncpa [#allocation6], 1 }

</bundles_post_ra>
